<compile_context>
chip_gen: v7x
topology: tpu7x:2x2x1
jax: 0.10.0
libtpu: 0.0.40
codegen_flags: <defaults>
</compile_context>

<pallas_src>
import functools
import math

import numpy as np
import jax
import jax.numpy as jnp
from jax.experimental import pallas as pl
from jax.experimental.pallas import tpu as pltpu

# ----------------------------- configuration (small synthetic sizes) ----------
B = 2            # batch
T = 4            # seq_len
C = 16           # CNN self-attention channels (original: 512)
H = W = 8        # spatial size (original: 7)
SPP_LEVELS = (1, 2, 4)
C_SPP = len(SPP_LEVELS) * C    # SPP output channels
C1 = 32          # conv1 out channels (original: 256)
C2 = 8           # conv2 out channels (original: 64)
DFRAME = 32      # d_model / fc output
NHEAD = 4
NLAYERS = 2
RNN_HIDDEN = 32
FF = 4 * RNN_HIDDEN
LN_EPS = 1e-5
BN_EPS = 1e-5

BF16 = jnp.bfloat16
F32 = jnp.float32


# ----------------------------- small helpers ----------------------------------
def _rep_spec(arr):
    """BlockSpec for a weight that is identical at every grid step (stays resident)."""
    nd = arr.ndim
    return pl.BlockSpec(arr.shape, lambda i, nd=nd: (0,) * nd)


def _ln(x, g, b, eps=LN_EPS):
    mu = jnp.mean(x, axis=-1, keepdims=True)
    xc = x - mu
    var = jnp.mean(xc * xc, axis=-1, keepdims=True)
    return xc * jax.lax.rsqrt(var + eps) * g + b


# ===============================================================================
# Fused CNN front-end kernel:
#   per image: SelfAttention -> (SPP + conv1) -> bn1/relu -> conv2
#   outputs conv1_raw and conv2_raw in channel-major (C, HW) layout (== NCHW).
# ===============================================================================
def _cnn_kernel(x_ref, wqkv_ref, bqkv_ref, kt_ref, w1_ref, cb1_ref, s1_ref, t1_ref,
                w2_ref, cb2_ref, c1_ref, c2_ref, *, nb, cqp, nlev):
    wqkv = wqkv_ref[...].astype(BF16)          # (2*cqp + C, C)  q/k rows zero-padded
    bqkv = bqkv_ref[...]                       # (2*cqp + C, 1)  f32
    w2 = w2_ref[...].astype(BF16)              # (C2, C1)
    cb1 = cb1_ref[...]                         # (C1, 1)
    cb2 = cb2_ref[...]                         # (C2, 1)
    s1 = s1_ref[...]                           # (C1, 1)  folded BN1 scale
    t1 = t1_ref[...]                           # (C1, 1)  folded BN1 shift

    for n in range(nb):                        # static unroll over images in the block
        x = x_ref[n].astype(F32)               # (C, HW)
        xb = x.astype(BF16)

        # --- SelfAttention: single concatenated (padded) q/k/v matmul -----------
        qkv = jnp.dot(wqkv, xb, preferred_element_type=F32) + bqkv
        q = qkv[:cqp].astype(BF16)             # padded rows are exactly zero
        k = qkv[cqp:2 * cqp].astype(BF16)
        v = qkv[2 * cqp:].astype(BF16)
        s = jax.lax.dot_general(q, k, (((0,), (0,)), ((), ())),
                                preferred_element_type=F32)        # (HW, HW)
        s = s - jnp.max(s, axis=-1, keepdims=True)
        p = jnp.exp(s)
        p = p * pl.reciprocal(jnp.sum(p, axis=-1, keepdims=True), approx=True)
        attn = jax.lax.dot_general(v, p.astype(BF16), (((1,), (1,)), ((), ())),
                                   preferred_element_type=F32)     # (C, HW)
        a = attn + x                           # residual (f32)
        ab = a.astype(BF16)

        # --- SPP fused into conv1: y1 = sum_l (W1_l @ a) @ K_l^T + b1 -----------
        y1 = cb1
        for l in range(nlev):
            wa = jnp.dot(w1_ref[l].astype(BF16), ab,
                         preferred_element_type=F32)               # (C1, HW)
            y1 = y1 + jnp.dot(wa.astype(BF16), kt_ref[l].astype(BF16),
                              preferred_element_type=F32)          # (C1, HW)
        c1_ref[n] = y1.astype(c1_ref.dtype)

        # --- bn1 + relu (eval-mode folded) + conv2 -------------------------------
        h1 = jnp.maximum(y1 * s1 + t1, 0.0)                        # (C1, HW) in VMEM only
        y2 = jnp.dot(w2, h1.astype(BF16), preferred_element_type=F32) + cb2
        c2_ref[n] = y2.astype(c2_ref.dtype)


def _bilinear_matrix(out_size, in_size):
    # PyTorch F.interpolate(mode='bilinear', align_corners=False) 1-D weights.
    M = np.zeros((out_size, in_size), dtype=np.float32)
    scale = in_size / out_size
    for i in range(out_size):
        src = (i + 0.5) * scale - 0.5
        src = max(src, 0.0)
        i0 = min(int(np.floor(src)), in_size - 1)
        i1 = min(i0 + 1, in_size - 1)
        lam = src - i0
        M[i, i0] += 1.0 - lam
        M[i, i1] += lam
    return M


def _spp_operators_T(h, w, levels):
    """Per level, (HW, HW) matrix K^T with K = (upsample ∘ avg-pool), flattened row-major."""
    ops = []
    for L in levels:
        kh, kw = h // L, w // L
        oh, ow = (h - kh) // kh + 1, (w - kw) // kw + 1
        Ph = np.zeros((oh, h), np.float32)
        for i in range(oh):
            Ph[i, i * kh:(i + 1) * kh] = 1.0 / kh
        Pw = np.zeros((ow, w), np.float32)
        for j in range(ow):
            Pw[j, j * kw:(j + 1) * kw] = 1.0 / kw
        Ah = _bilinear_matrix(h, oh) @ Ph            # (H, H)
        Aw = _bilinear_matrix(w, ow) @ Pw            # (W, W)
        K = np.kron(Ah, Aw)                          # (HW, HW)
        ops.append(K.T)
    return jnp.asarray(np.stack(ops, axis=0))        # (L, HW, HW)


def cnn_frontend(x_img, params, nb):
    """x_img: (N, C, H, W) f32 -> conv1_raw (N, C1, H, W), conv2_raw (N, C2, H, W)."""
    N, Cc, Hh, Ww = x_img.shape
    HW = Hh * Ww
    xr = x_img.reshape(N, Cc, HW)

    a = params["attn"]
    cq = a["wq"].shape[0]
    cqp = max(8, ((cq + 7) // 8) * 8)                # pad q/k rows to a sublane tile

    def pad_rows(wgt, bias):
        wp = jnp.zeros((cqp, Cc), wgt.dtype).at[:cq].set(wgt)
        bp = jnp.zeros((cqp,), bias.dtype).at[:cq].set(bias)
        return wp, bp

    wq_p, bq_p = pad_rows(a["wq"], a["bq"])
    wk_p, bk_p = pad_rows(a["wk"], a["bk"])
    wqkv = jnp.concatenate([wq_p, wk_p, a["wv"]], axis=0)          # (2*cqp + C, C)
    bqkv = jnp.concatenate([bq_p, bk_p, a["bv"]], axis=0).reshape(-1, 1)

    kt = _spp_operators_T(Hh, Ww, SPP_LEVELS)                      # (L, HW, HW)
    nlev = kt.shape[0]

    C1o = params["conv1_w"].shape[0]
    w1s = params["conv1_w"].reshape(C1o, nlev, Cc).transpose(1, 0, 2)   # (L, C1, C)
    cb1 = params["conv1_b"].reshape(C1o, 1)
    s1v = params["bn1_g"] * jax.lax.rsqrt(params["bn1_v"] + BN_EPS)
    t1v = params["bn1_b"] - params["bn1_m"] * s1v
    s1 = s1v.reshape(C1o, 1)
    t1 = t1v.reshape(C1o, 1)

    C2o = params["conv2_w"].shape[0]
    w2 = params["conv2_w"]
    cb2 = params["conv2_b"].reshape(C2o, 1)

    consts = (wqkv, bqkv, kt, w1s, cb1, s1, t1, w2, cb2)
    nsteps = N // nb
    conv1_raw, conv2_raw = pl.pallas_call(
        functools.partial(_cnn_kernel, nb=nb, cqp=cqp, nlev=nlev),
        grid=(nsteps,),
        in_specs=[pl.BlockSpec((nb, Cc, HW), lambda i: (i, 0, 0))] +
                 [_rep_spec(c) for c in consts],
        out_specs=(pl.BlockSpec((nb, C1o, HW), lambda i: (i, 0, 0)),
                   pl.BlockSpec((nb, C2o, HW), lambda i: (i, 0, 0))),
        out_shape=(jax.ShapeDtypeStruct((N, C1o, HW), x_img.dtype),
                   jax.ShapeDtypeStruct((N, C2o, HW), x_img.dtype)),
        compiler_params=pltpu.CompilerParams(dimension_semantics=("parallel",)),
    )(xr, *consts)
    return (conv1_raw.reshape(N, C1o, Hh, Ww),
            conv2_raw.reshape(N, C2o, Hh, Ww))


# ===============================================================================
# Fused bn2+relu+fc(+bias+positional encoding) kernel.
# conv2_raw is already NCHW row-major, so its flat view matches PyTorch's .view().
# ===============================================================================
def _fc_kernel(x_ref, s2_ref, t2_ref, wf_ref, bf_ref, pe_ref, o_ref):
    h = jnp.maximum(x_ref[...].astype(F32) * s2_ref[...] + t2_ref[...], 0.0)
    feat = jnp.dot(h.astype(BF16), wf_ref[...].astype(BF16),
                   preferred_element_type=F32)
    o_ref[...] = (feat + bf_ref[...] + pe_ref[...]).astype(o_ref.dtype)


def fc_head(conv2_raw, params, pe_tiled):
    N, C2o, Hh, Ww = conv2_raw.shape
    HW = Hh * Ww
    x2 = conv2_raw.reshape(N, C2o * HW)                 # NCHW flatten (no transpose)
    s2 = params["bn2_g"] * jax.lax.rsqrt(params["bn2_v"] + BN_EPS)
    t2 = params["bn2_b"] - params["bn2_m"] * s2
    s2f = jnp.repeat(s2, HW).reshape(1, C2o * HW)
    t2f = jnp.repeat(t2, HW).reshape(1, C2o * HW)
    wf = params["fc_w"].T                               # (C2*HW, DFRAME)
    bf = params["fc_b"].reshape(1, -1)
    D = wf.shape[1]
    consts = (s2f, t2f, wf, bf, pe_tiled)
    return pl.pallas_call(
        _fc_kernel,
        grid=(1,),
        in_specs=[pl.BlockSpec((N, C2o * HW), lambda i: (0, 0))] +
                 [_rep_spec(c) for c in consts],
        out_specs=pl.BlockSpec((N, D), lambda i: (0, 0)),
        out_shape=jax.ShapeDtypeStruct((N, D), conv2_raw.dtype),
    )(x2, *consts)


# ===============================================================================
# Fused transformer layers.  One pallas_call per encoder/decoder layer,
# grid over batch.  MHA weights are packed head-major on the host so the kernel
# only uses leading-axis (static) ref indexing -- no unaligned value slicing.
# ===============================================================================
def _mha(xq, xkv, wi_ref, bi_ref, wo_ref, ob_ref, nhead, hd):
    Tq, D = xq.shape
    scale = 1.0 / math.sqrt(hd)
    xq_b = xq.astype(BF16)
    xkv_b = xkv.astype(BF16)
    out = jnp.zeros((Tq, D), F32)
    for h in range(nhead):
        wq = wi_ref[h].astype(BF16)                     # (D, hd)
        wk = wi_ref[nhead + h].astype(BF16)
        wv = wi_ref[2 * nhead + h].astype(BF16)
        qh = jnp.dot(xq_b, wq, preferred_element_type=F32) + bi_ref[h]
        kh = jnp.dot(xkv_b, wk, preferred_element_type=F32) + bi_ref[nhead + h]
        vh = jnp.dot(xkv_b, wv, preferred_element_type=F32) + bi_ref[2 * nhead + h]
        s = jax.lax.dot_general(qh.astype(BF16), kh.astype(BF16),
                                (((1,), (1,)), ((), ())),
                                preferred_element_type=F32) * scale     # (Tq, Tk)
        s = s - jnp.max(s, axis=-1, keepdims=True)
        p = jnp.exp(s)
        p = p * pl.reciprocal(jnp.sum(p, axis=-1, keepdims=True), approx=True)
        oh = jnp.dot(p.astype(BF16), vh.astype(BF16),
                     preferred_element_type=F32)                        # (Tq, hd)
        out = out + jnp.dot(oh.astype(BF16), wo_ref[h].astype(BF16),
                            preferred_element_type=F32)                 # (Tq, D)
    return out + ob_ref[...]


def _ffn_body(x, l1wt_ref, l1b_ref, l2wt_ref, l2b_ref):
    hdn = jnp.dot(x.astype(BF16), l1wt_ref[...].astype(BF16),
                  preferred_element_type=F32) + l1b_ref[...]
    hdn = jnp.maximum(hdn, 0.0)
    return jnp.dot(hdn.astype(BF16), l2wt_ref[...].astype(BF16),
                   preferred_element_type=F32) + l2b_ref[...]


def _encoder_layer_kernel(x_ref, wi_ref, bi_ref, wo_ref, ob_ref,
                          n1g_ref, n1b_ref, l1wt_ref, l1b_ref, l2wt_ref, l2b_ref,
                          n2g_ref, n2b_ref, o_ref, *, nhead, hd):
    x = x_ref[0].astype(F32)                                            # (T, D)
    sa = _mha(x, x, wi_ref, bi_ref, wo_ref, ob_ref, nhead, hd)
    x1 = _ln(x + sa, n1g_ref[...], n1b_ref[...])
    ff = _ffn_body(x1, l1wt_ref, l1b_ref, l2wt_ref, l2b_ref)
    o_ref[0] = _ln(x1 + ff, n2g_ref[...], n2b_ref[...]).astype(o_ref.dtype)


def _decoder_layer_kernel(x_ref, mem_ref,
                          swi_ref, sbi_ref, swo_ref, sob_ref,
                          cwi_ref, cbi_ref, cwo_ref, cob_ref,
                          n1g_ref, n1b_ref, n2g_ref, n2b_ref,
                          l1wt_ref, l1b_ref, l2wt_ref, l2b_ref,
                          n3g_ref, n3b_ref, o_ref, *, nhead, hd):
    x = x_ref[0].astype(F32)
    mem = mem_ref[0].astype(F32)
    sa = _mha(x, x, swi_ref, sbi_ref, swo_ref, sob_ref, nhead, hd)
    x1 = _ln(x + sa, n1g_ref[...], n1b_ref[...])
    ca = _mha(x1, mem, cwi_ref, cbi_ref, cwo_ref, cob_ref, nhead, hd)
    x2 = _ln(x1 + ca, n2g_ref[...], n2b_ref[...])
    ff = _ffn_body(x2, l1wt_ref, l1b_ref, l2wt_ref, l2b_ref)
    o_ref[0] = _ln(x2 + ff, n3g_ref[...], n3b_ref[...]).astype(o_ref.dtype)


def _layernorm_kernel(x_ref, g_ref, b_ref, o_ref):
    o_ref[...] = _ln(x_ref[...].astype(F32), g_ref[...], b_ref[...]).astype(o_ref.dtype)


def _pack_mha(p, nhead):
    """Pack PyTorch-style (3D, D) in_proj into head-major tensors (static ref indexing)."""
    in_w, in_b, out_w, out_b = p["in_w"], p["in_b"], p["out_w"], p["out_b"]
    D = out_w.shape[0]
    hd = D // nhead
    wi = jnp.transpose(in_w.reshape(3, nhead, hd, D), (0, 1, 3, 2)).reshape(3 * nhead, D, hd)
    bi = in_b.reshape(3 * nhead, 1, hd)
    wo = out_w.T.reshape(nhead, hd, D)
    ob = out_b.reshape(1, D)
    return wi, bi, wo, ob


def encoder_layer(x, p, nhead):
    Bb, Tt, D = x.shape
    hd = D // nhead
    wi, bi, wo, ob = _pack_mha(p["self_attn"], nhead)
    consts = (wi, bi, wo, ob,
              p["norm1_g"].reshape(1, D), p["norm1_b"].reshape(1, D),
              p["lin1_w"].T, p["lin1_b"].reshape(1, -1),
              p["lin2_w"].T, p["lin2_b"].reshape(1, -1),
              p["norm2_g"].reshape(1, D), p["norm2_b"].reshape(1, D))
    return pl.pallas_call(
        functools.partial(_encoder_layer_kernel, nhead=nhead, hd=hd),
        grid=(Bb,),
        in_specs=[pl.BlockSpec((1, Tt, D), lambda b: (b, 0, 0))] +
                 [_rep_spec(c) for c in consts],
        out_specs=pl.BlockSpec((1, Tt, D), lambda b: (b, 0, 0)),
        out_shape=jax.ShapeDtypeStruct((Bb, Tt, D), x.dtype),
        compiler_params=pltpu.CompilerParams(dimension_semantics=("parallel",)),
    )(x, *consts)


def decoder_layer(x, mem, p, nhead):
    Bb, Tt, D = x.shape
    hd = D // nhead
    swi, sbi, swo, sob = _pack_mha(p["self_attn"], nhead)
    cwi, cbi, cwo, cob = _pack_mha(p["cross_attn"], nhead)
    consts = (swi, sbi, swo, sob, cwi, cbi, cwo, cob,
              p["norm1_g"].reshape(1, D), p["norm1_b"].reshape(1, D),
              p["norm2_g"].reshape(1, D), p["norm2_b"].reshape(1, D),
              p["lin1_w"].T, p["lin1_b"].reshape(1, -1),
              p["lin2_w"].T, p["lin2_b"].reshape(1, -1),
              p["norm3_g"].reshape(1, D), p["norm3_b"].reshape(1, D))
    return pl.pallas_call(
        functools.partial(_decoder_layer_kernel, nhead=nhead, hd=hd),
        grid=(Bb,),
        in_specs=[pl.BlockSpec((1, Tt, D), lambda b: (b, 0, 0)),
                  pl.BlockSpec((1, Tt, D), lambda b: (b, 0, 0))] +
                 [_rep_spec(c) for c in consts],
        out_specs=pl.BlockSpec((1, Tt, D), lambda b: (b, 0, 0)),
        out_shape=jax.ShapeDtypeStruct((Bb, Tt, D), x.dtype),
        compiler_params=pltpu.CompilerParams(dimension_semantics=("parallel",)),
    )(x, mem, *consts)


def layer_norm_call(x2d, g, b):
    M, D = x2d.shape
    g2 = g.reshape(1, D)
    b2 = b.reshape(1, D)
    return pl.pallas_call(
        _layernorm_kernel,
        grid=(1,),
        in_specs=[pl.BlockSpec((M, D), lambda i: (0, 0)),
                  pl.BlockSpec((1, D), lambda i: (0, 0)),
                  pl.BlockSpec((1, D), lambda i: (0, 0))],
        out_specs=pl.BlockSpec((M, D), lambda i: (0, 0)),
        out_shape=jax.ShapeDtypeStruct((M, D), x2d.dtype),
    )(x2d, g2, b2)


# ----------------------------- positional encoding ----------------------------
def positional_encoding(seq_len, demb):
    position = jnp.arange(seq_len, dtype=F32)[:, None]
    div_term = jnp.exp(jnp.arange(0, demb, 2, dtype=F32) * -(math.log(10000.0) / demb))
    pe = jnp.zeros((seq_len, demb), dtype=F32)
    pe = pe.at[:, 0::2].set(jnp.sin(position * div_term))
    pe = pe.at[:, 1::2].set(jnp.cos(position * div_term))
    return pe


# ----------------------------- parameters -------------------------------------
def init_params(key):
    ks = iter(jax.random.split(key, 256))

    def nrm(shape, scale=0.1):
        return (scale * jax.random.normal(next(ks), shape)).astype(F32)

    def ones(shape):
        return jnp.ones(shape, F32)

    def zeros(shape):
        return jnp.zeros(shape, F32)

    def mha_p():
        return dict(in_w=nrm((3 * DFRAME, DFRAME)), in_b=nrm((3 * DFRAME,)),
                    out_w=nrm((DFRAME, DFRAME)), out_b=nrm((DFRAME,)))

    def enc_layer_p():
        return dict(self_attn=mha_p(),
                    lin1_w=nrm((FF, DFRAME)), lin1_b=nrm((FF,)),
                    lin2_w=nrm((DFRAME, FF)), lin2_b=nrm((DFRAME,)),
                    norm1_g=ones((DFRAME,)), norm1_b=zeros((DFRAME,)),
                    norm2_g=ones((DFRAME,)), norm2_b=zeros((DFRAME,)))

    def dec_layer_p():
        d = enc_layer_p()
        d["cross_attn"] = mha_p()
        d["norm3_g"] = ones((DFRAME,))
        d["norm3_b"] = zeros((DFRAME,))
        return d

    return dict(
        attn=dict(wq=nrm((C // 8, C)), bq=nrm((C // 8,)),
                  wk=nrm((C // 8, C)), bk=nrm((C // 8,)),
                  wv=nrm((C, C)), bv=nrm((C,))),
        conv1_w=nrm((C1, C_SPP)), conv1_b=nrm((C1,)),
        bn1_g=ones((C1,)), bn1_b=zeros((C1,)),
        bn1_m=nrm((C1,)), bn1_v=ones((C1,)) + 0.1,
        conv2_w=nrm((C2, C1)), conv2_b=nrm((C2,)),
        bn2_g=ones((C2,)), bn2_b=zeros((C2,)),
        bn2_m=nrm((C2,)), bn2_v=ones((C2,)) + 0.1,
        fc_w=nrm((DFRAME, C2 * H * W)), fc_b=nrm((DFRAME,)),
        enc_layers=[enc_layer_p() for _ in range(NLAYERS)],
        dec_layers=[dec_layer_p() for _ in range(NLAYERS)],
        enc_norm_g=ones((DFRAME,)), enc_norm_b=zeros((DFRAME,)),
        dec_norm_g=ones((DFRAME,)), dec_norm_b=zeros((DFRAME,)),
    )


# ----------------------------- full forward -----------------------------------
def forward(x, params):
    Bb, Tt, Cc, Hh, Ww = x.shape
    N = Bb * Tt
    xf = x.reshape(N, Cc, Hh, Ww)

    nb = 4 if N % 4 == 0 else (2 if N % 2 == 0 else 1)   # images per grid step
    conv1_raw, conv2_raw = cnn_frontend(xf, params, nb)

    pe = positional_encoding(Tt, DFRAME)
    pe_tiled = jnp.tile(pe, (Bb, 1))                      # image n = b*T + t -> pe[t]
    feat = fc_head(conv2_raw, params, pe_tiled)           # (N, DFRAME), PE already added
    feat3 = feat.reshape(Bb, Tt, DFRAME)

    # transformer (src = tgt = feat3, post-norm, eval-mode dropout = identity)
    mem = feat3
    for p in params["enc_layers"]:
        mem = encoder_layer(mem, p, NHEAD)
    mem = layer_norm_call(mem.reshape(N, DFRAME),
                          params["enc_norm_g"], params["enc_norm_b"]).reshape(Bb, Tt, DFRAME)
    out = feat3
    for p in params["dec_layers"]:
        out = decoder_layer(out, mem, p, NHEAD)
    out = layer_norm_call(out.reshape(N, DFRAME),
                          params["dec_norm_g"], params["dec_norm_b"]).reshape(Bb, Tt, DFRAME)
    return out, conv1_raw, conv2_raw


if __name__ == "__main__":
    key = jax.random.PRNGKey(0)
    pkey, xkey = jax.random.split(key)
    params = init_params(pkey)
    x = jax.random.normal(xkey, (B, T, C, H, W), dtype=F32)

    fwd = jax.jit(forward)
    out, conv1_out, conv2_out = fwd(x, params)
    jax.block_until_ready((out, conv1_out, conv2_out))

    assert out.shape == (B, T, DFRAME)
    assert conv1_out.shape == (B * T, C1, H, W)
    assert conv2_out.shape == (B * T, C2, H, W)
    assert bool(jnp.all(jnp.isfinite(out)))
    print("KERNEL_OK")
</pallas_src>

<mosaic_0001>
module attributes {stable_mosaic.version = 11 : i64} {
  func.func @_cnn_kernel(%arg0: i32, %arg1: memref<4x16x64xf32, #tpu.memory_space<vmem>>, %arg2: memref<32x16xf32, #tpu.memory_space<vmem>>, %arg3: memref<32x1xf32, #tpu.memory_space<vmem>>, %arg4: memref<3x64x64xf32, #tpu.memory_space<vmem>>, %arg5: memref<3x32x16xf32, #tpu.memory_space<vmem>>, %arg6: memref<32x1xf32, #tpu.memory_space<vmem>>, %arg7: memref<32x1xf32, #tpu.memory_space<vmem>>, %arg8: memref<32x1xf32, #tpu.memory_space<vmem>>, %arg9: memref<8x32xf32, #tpu.memory_space<vmem>>, %arg10: memref<8x1xf32, #tpu.memory_space<vmem>>, %arg11: memref<4x32x64xf32, #tpu.memory_space<vmem>>, %arg12: memref<4x8x64xf32, #tpu.memory_space<vmem>>) attributes {dimension_semantics = [#tpu.dimension_semantics<parallel>], iteration_bounds = array<i64: 2>, scalar_prefetch = 0 : i64, scratch_operands = 0 : i64, tpu.core_type = #tpu.core_type<tc>, window_params = [{transform_indices = @transform_0, window_bounds = array<i64: 4, 16, 64>}, {pipeline_mode = #tpu.pipeline_mode<synchronous>, transform_indices = @transform_1, window_bounds = array<i64: 32, 16>}, {pipeline_mode = #tpu.pipeline_mode<synchronous>, transform_indices = @transform_2, window_bounds = array<i64: 32, 1>}, {pipeline_mode = #tpu.pipeline_mode<synchronous>, transform_indices = @transform_3, window_bounds = array<i64: 3, 64, 64>}, {pipeline_mode = #tpu.pipeline_mode<synchronous>, transform_indices = @transform_4, window_bounds = array<i64: 3, 32, 16>}, {pipeline_mode = #tpu.pipeline_mode<synchronous>, transform_indices = @transform_5, window_bounds = array<i64: 32, 1>}, {pipeline_mode = #tpu.pipeline_mode<synchronous>, transform_indices = @transform_6, window_bounds = array<i64: 32, 1>}, {pipeline_mode = #tpu.pipeline_mode<synchronous>, transform_indices = @transform_7, window_bounds = array<i64: 32, 1>}, {pipeline_mode = #tpu.pipeline_mode<synchronous>, transform_indices = @transform_8, window_bounds = array<i64: 8, 32>}, {pipeline_mode = #tpu.pipeline_mode<synchronous>, transform_indices = @transform_9, window_bounds = array<i64: 8, 1>}, {transform_indices = @transform_10, window_bounds = array<i64: 4, 32, 64>}, {transform_indices = @transform_11, window_bounds = array<i64: 4, 8, 64>}]} {
    %c0 = arith.constant 0 : index
    %c0_0 = arith.constant 0 : index
    %0 = vector.load %arg2[%c0, %c0_0] : memref<32x16xf32, #tpu.memory_space<vmem>>, vector<32x16xf32>
    %1 = arith.truncf %0 : vector<32x16xf32> to vector<32x16xbf16>
    %c0_1 = arith.constant 0 : index
    %c0_2 = arith.constant 0 : index
    %2 = vector.load %arg3[%c0_1, %c0_2] : memref<32x1xf32, #tpu.memory_space<vmem>>, vector<32x1xf32>
    %c0_3 = arith.constant 0 : index
    %c0_4 = arith.constant 0 : index
    %3 = vector.load %arg9[%c0_3, %c0_4] : memref<8x32xf32, #tpu.memory_space<vmem>>, vector<8x32xf32>
    %4 = arith.truncf %3 : vector<8x32xf32> to vector<8x32xbf16>
    %c0_5 = arith.constant 0 : index
    %c0_6 = arith.constant 0 : index
    %5 = vector.load %arg6[%c0_5, %c0_6] : memref<32x1xf32, #tpu.memory_space<vmem>>, vector<32x1xf32>
    %c0_7 = arith.constant 0 : index
    %c0_8 = arith.constant 0 : index
    %6 = vector.load %arg10[%c0_7, %c0_8] : memref<8x1xf32, #tpu.memory_space<vmem>>, vector<8x1xf32>
    %c0_9 = arith.constant 0 : index
    %c0_10 = arith.constant 0 : index
    %7 = vector.load %arg7[%c0_9, %c0_10] : memref<32x1xf32, #tpu.memory_space<vmem>>, vector<32x1xf32>
    %c0_11 = arith.constant 0 : index
    %c0_12 = arith.constant 0 : index
    %8 = vector.load %arg8[%c0_11, %c0_12] : memref<32x1xf32, #tpu.memory_space<vmem>>, vector<32x1xf32>
    %c0_13 = arith.constant 0 : index
    %c0_14 = arith.constant 0 : index
    %c0_15 = arith.constant 0 : index
    %9 = vector.load %arg1[%c0_13, %c0_14, %c0_15] : memref<4x16x64xf32, #tpu.memory_space<vmem>>, vector<1x16x64xf32>
    %10 = vector.shape_cast %9 : vector<1x16x64xf32> to vector<16x64xf32>
    %11 = arith.truncf %10 : vector<16x64xf32> to vector<16x64xbf16>
    %cst = arith.constant dense<0.000000e+00> : vector<32x64xf32>
    %12 = tpu.matmul %1, %11, %cst {dimension_numbers = #tpu.dot_dimension_numbers<[1], [0], [0], [1], [0, 0, 1, 1], [], []>} : vector<32x16xbf16>, vector<16x64xbf16>, vector<32x64xf32> -> vector<32x64xf32>
    %13 = vector.broadcast %2 : vector<32x1xf32> to vector<32x64xf32>
    %14 = arith.addf %12, %13 : vector<32x64xf32>
    %15 = vector.extract_strided_slice %14 {offsets = [0, 0], sizes = [8, 64], strides = [1, 1]} : vector<32x64xf32> to vector<8x64xf32>
    %16 = arith.truncf %15 : vector<8x64xf32> to vector<8x64xbf16>
    %17 = vector.extract_strided_slice %14 {offsets = [8, 0], sizes = [8, 64], strides = [1, 1]} : vector<32x64xf32> to vector<8x64xf32>
    %18 = arith.truncf %17 : vector<8x64xf32> to vector<8x64xbf16>
    %19 = vector.extract_strided_slice %14 {offsets = [16, 0], sizes = [16, 64], strides = [1, 1]} : vector<32x64xf32> to vector<16x64xf32>
    %20 = arith.truncf %19 : vector<16x64xf32> to vector<16x64xbf16>
    %cst_16 = arith.constant dense<0.000000e+00> : vector<64x64xf32>
    %21 = tpu.matmul %16, %18, %cst_16 {dimension_numbers = #tpu.dot_dimension_numbers<[0], [0], [1], [1], [0, 1, 1, 1], [], []>} : vector<8x64xbf16>, vector<8x64xbf16>, vector<64x64xf32> -> vector<64x64xf32>
    %cst_17 = arith.constant dense<0xFF800000> : vector<64xf32>
    %22 = vector.multi_reduction <maximumf>, %21, %cst_17 [1] : vector<64x64xf32> to vector<64xf32>
    %23 = vector.shape_cast %22 : vector<64xf32> to vector<64x1xf32>
    %24 = vector.broadcast %23 : vector<64x1xf32> to vector<64x64xf32>
    %25 = arith.subf %21, %24 : vector<64x64xf32>
    %26 = math.exp %25 : vector<64x64xf32>
    %cst_18 = arith.constant dense<0.000000e+00> : vector<64xf32>
    %27 = vector.multi_reduction <add>, %26, %cst_18 [1] : vector<64x64xf32> to vector<64xf32>
    %28 = vector.shape_cast %27 : vector<64xf32> to vector<64x1xf32>
    %29 = tpu.reciprocal %28 {approx = true} : vector<64x1xf32> -> vector<64x1xf32>
    %30 = vector.broadcast %29 : vector<64x1xf32> to vector<64x64xf32>
    %31 = arith.mulf %26, %30 : vector<64x64xf32>
    %32 = arith.truncf %31 : vector<64x64xf32> to vector<64x64xbf16>
    %cst_19 = arith.constant dense<0.000000e+00> : vector<16x64xf32>
    %33 = tpu.matmul %20, %32, %cst_19 {dimension_numbers = #tpu.dot_dimension_numbers<[1], [1], [0], [0], [0, 0, 1, 0], [], []>} : vector<16x64xbf16>, vector<64x64xbf16>, vector<16x64xf32> -> vector<16x64xf32>
    %34 = arith.addf %33, %10 : vector<16x64xf32>
    %35 = arith.truncf %34 : vector<16x64xf32> to vector<16x64xbf16>
    %c0_20 = arith.constant 0 : index
    %c0_21 = arith.constant 0 : index
    %c0_22 = arith.constant 0 : index
    %36 = vector.load %arg5[%c0_20, %c0_21, %c0_22] : memref<3x32x16xf32, #tpu.memory_space<vmem>>, vector<1x32x16xf32>
    %37 = vector.shape_cast %36 : vector<1x32x16xf32> to vector<32x16xf32>
    %38 = arith.truncf %37 : vector<32x16xf32> to vector<32x16xbf16>
    %cst_23 = arith.constant dense<0.000000e+00> : vector<32x64xf32>
    %39 = tpu.matmul %38, %35, %cst_23 {dimension_numbers = #tpu.dot_dimension_numbers<[1], [0], [0], [1], [0, 0, 1, 1], [], []>} : vector<32x16xbf16>, vector<16x64xbf16>, vector<32x64xf32> -> vector<32x64xf32>
    %40 = arith.truncf %39 : vector<32x64xf32> to vector<32x64xbf16>
    %c0_24 = arith.constant 0 : index
    %c0_25 = arith.constant 0 : index
    %c0_26 = arith.constant 0 : index
    %41 = vector.load %arg4[%c0_24, %c0_25, %c0_26] : memref<3x64x64xf32, #tpu.memory_space<vmem>>, vector<1x64x64xf32>
    %42 = vector.shape_cast %41 : vector<1x64x64xf32> to vector<64x64xf32>
    %43 = arith.truncf %42 : vector<64x64xf32> to vector<64x64xbf16>
    %cst_27 = arith.constant dense<0.000000e+00> : vector<32x64xf32>
    %44 = tpu.matmul %40, %43, %cst_27 {dimension_numbers = #tpu.dot_dimension_numbers<[1], [0], [0], [1], [0, 0, 1, 1], [], []>} : vector<32x64xbf16>, vector<64x64xbf16>, vector<32x64xf32> -> vector<32x64xf32>
    %45 = vector.broadcast %5 : vector<32x1xf32> to vector<32x64xf32>
    %46 = arith.addf %45, %44 : vector<32x64xf32>
    %c1 = arith.constant 1 : index
    %c0_28 = arith.constant 0 : index
    %c0_29 = arith.constant 0 : index
    %47 = vector.load %arg5[%c1, %c0_28, %c0_29] : memref<3x32x16xf32, #tpu.memory_space<vmem>>, vector<1x32x16xf32>
    %48 = vector.shape_cast %47 : vector<1x32x16xf32> to vector<32x16xf32>
    %49 = arith.truncf %48 : vector<32x16xf32> to vector<32x16xbf16>
    %cst_30 = arith.constant dense<0.000000e+00> : vector<32x64xf32>
    %50 = tpu.matmul %49, %35, %cst_30 {dimension_numbers = #tpu.dot_dimension_numbers<[1], [0], [0], [1], [0, 0, 1, 1], [], []>} : vector<32x16xbf16>, vector<16x64xbf16>, vector<32x64xf32> -> vector<32x64xf32>
    %51 = arith.truncf %50 : vector<32x64xf32> to vector<32x64xbf16>
    %c1_31 = arith.constant 1 : index
    %c0_32 = arith.constant 0 : index
    %c0_33 = arith.constant 0 : index
    %52 = vector.load %arg4[%c1_31, %c0_32, %c0_33] : memref<3x64x64xf32, #tpu.memory_space<vmem>>, vector<1x64x64xf32>
    %53 = vector.shape_cast %52 : vector<1x64x64xf32> to vector<64x64xf32>
    %54 = arith.truncf %53 : vector<64x64xf32> to vector<64x64xbf16>
    %cst_34 = arith.constant dense<0.000000e+00> : vector<32x64xf32>
    %55 = tpu.matmul %51, %54, %cst_34 {dimension_numbers = #tpu.dot_dimension_numbers<[1], [0], [0], [1], [0, 0, 1, 1], [], []>} : vector<32x64xbf16>, vector<64x64xbf16>, vector<32x64xf32> -> vector<32x64xf32>
    %56 = arith.addf %46, %55 : vector<32x64xf32>
    %c2 = arith.constant 2 : index
    %c0_35 = arith.constant 0 : index
    %c0_36 = arith.constant 0 : index
    %57 = vector.load %arg5[%c2, %c0_35, %c0_36] : memref<3x32x16xf32, #tpu.memory_space<vmem>>, vector<1x32x16xf32>
    %58 = vector.shape_cast %57 : vector<1x32x16xf32> to vector<32x16xf32>
    %59 = arith.truncf %58 : vector<32x16xf32> to vector<32x16xbf16>
    %cst_37 = arith.constant dense<0.000000e+00> : vector<32x64xf32>
    %60 = tpu.matmul %59, %35, %cst_37 {dimension_numbers = #tpu.dot_dimension_numbers<[1], [0], [0], [1], [0, 0, 1, 1], [], []>} : vector<32x16xbf16>, vector<16x64xbf16>, vector<32x64xf32> -> vector<32x64xf32>
    %61 = arith.truncf %60 : vector<32x64xf32> to vector<32x64xbf16>
    %c2_38 = arith.constant 2 : index
    %c0_39 = arith.constant 0 : index
    %c0_40 = arith.constant 0 : index
    %62 = vector.load %arg4[%c2_38, %c0_39, %c0_40] : memref<3x64x64xf32, #tpu.memory_space<vmem>>, vector<1x64x64xf32>
    %63 = vector.shape_cast %62 : vector<1x64x64xf32> to vector<64x64xf32>
    %64 = arith.truncf %63 : vector<64x64xf32> to vector<64x64xbf16>
    %cst_41 = arith.constant dense<0.000000e+00> : vector<32x64xf32>
    %65 = tpu.matmul %61, %64, %cst_41 {dimension_numbers = #tpu.dot_dimension_numbers<[1], [0], [0], [1], [0, 0, 1, 1], [], []>} : vector<32x64xbf16>, vector<64x64xbf16>, vector<32x64xf32> -> vector<32x64xf32>
    %66 = arith.addf %56, %65 : vector<32x64xf32>
    %c0_42 = arith.constant 0 : index
    %c0_43 = arith.constant 0 : index
    %c0_44 = arith.constant 0 : index
    %67 = vector.load %arg11[%c0_42, %c0_43, %c0_44] : memref<4x32x64xf32, #tpu.memory_space<vmem>>, vector<1x32x64xf32>
    %68 = vector.shape_cast %67 : vector<1x32x64xf32> to vector<32x64xf32>
    %69 = vector.shape_cast %66 : vector<32x64xf32> to vector<1x32x64xf32>
    tpu.vector_store %arg11[%c0_42, %c0_43, %c0_44], %69 {strides = array<i32>} : memref<4x32x64xf32, #tpu.memory_space<vmem>>, vector<1x32x64xf32>,
    %70 = vector.broadcast %7 : vector<32x1xf32> to vector<32x64xf32>
    %71 = arith.mulf %66, %70 : vector<32x64xf32>
    %72 = vector.broadcast %8 : vector<32x1xf32> to vector<32x64xf32>
    %73 = arith.addf %71, %72 : vector<32x64xf32>
    %cst_45 = arith.constant 0.000000e+00 : f32
    %74 = vector.broadcast %cst_45 : f32 to vector<32x64xf32>
    %75 = arith.maximumf %73, %74 : vector<32x64xf32>
    %76 = arith.truncf %75 : vector<32x64xf32> to vector<32x64xbf16>
    %cst_46 = arith.constant dense<0.000000e+00> : vector<8x64xf32>
    %77 = tpu.matmul %4, %76, %cst_46 {dimension_numbers = #tpu.dot_dimension_numbers<[1], [0], [0], [1], [0, 0, 1, 1], [], []>} : vector<8x32xbf16>, vector<32x64xbf16>, vector<8x64xf32> -> vector<8x64xf32>
    %78 = vector.broadcast %6 : vector<8x1xf32> to vector<8x64xf32>
    %79 = arith.addf %77, %78 : vector<8x64xf32>
    %c0_47 = arith.constant 0 : index
    %c0_48 = arith.constant 0 : index
    %c0_49 = arith.constant 0 : index
    %80 = vector.load %arg12[%c0_47, %c0_48, %c0_49] : memref<4x8x64xf32, #tpu.memory_space<vmem>>, vector<1x8x64xf32>
    %81 = vector.shape_cast %80 : vector<1x8x64xf32> to vector<8x64xf32>
    %82 = vector.shape_cast %79 : vector<8x64xf32> to vector<1x8x64xf32>
    tpu.vector_store %arg12[%c0_47, %c0_48, %c0_49], %82 {strides = array<i32>} : memref<4x8x64xf32, #tpu.memory_space<vmem>>, vector<1x8x64xf32>,
    %c1_50 = arith.constant 1 : index
    %c0_51 = arith.constant 0 : index
    %c0_52 = arith.constant 0 : index
    %83 = vector.load %arg1[%c1_50, %c0_51, %c0_52] : memref<4x16x64xf32, #tpu.memory_space<vmem>>, vector<1x16x64xf32>
    %84 = vector.shape_cast %83 : vector<1x16x64xf32> to vector<16x64xf32>
    %85 = arith.truncf %84 : vector<16x64xf32> to vector<16x64xbf16>
    %cst_53 = arith.constant dense<0.000000e+00> : vector<32x64xf32>
    %86 = tpu.matmul %1, %85, %cst_53 {dimension_numbers = #tpu.dot_dimension_numbers<[1], [0], [0], [1], [0, 0, 1, 1], [], []>} : vector<32x16xbf16>, vector<16x64xbf16>, vector<32x64xf32> -> vector<32x64xf32>
    %87 = vector.broadcast %2 : vector<32x1xf32> to vector<32x64xf32>
    %88 = arith.addf %86, %87 : vector<32x64xf32>
    %89 = vector.extract_strided_slice %88 {offsets = [0, 0], sizes = [8, 64], strides = [1, 1]} : vector<32x64xf32> to vector<8x64xf32>
    %90 = arith.truncf %89 : vector<8x64xf32> to vector<8x64xbf16>
    %91 = vector.extract_strided_slice %88 {offsets = [8, 0], sizes = [8, 64], strides = [1, 1]} : vector<32x64xf32> to vector<8x64xf32>
    %92 = arith.truncf %91 : vector<8x64xf32> to vector<8x64xbf16>
    %93 = vector.extract_strided_slice %88 {offsets = [16, 0], sizes = [16, 64], strides = [1, 1]} : vector<32x64xf32> to vector<16x64xf32>
    %94 = arith.truncf %93 : vector<16x64xf32> to vector<16x64xbf16>
    %cst_54 = arith.constant dense<0.000000e+00> : vector<64x64xf32>
    %95 = tpu.matmul %90, %92, %cst_54 {dimension_numbers = #tpu.dot_dimension_numbers<[0], [0], [1], [1], [0, 1, 1, 1], [], []>} : vector<8x64xbf16>, vector<8x64xbf16>, vector<64x64xf32> -> vector<64x64xf32>
    %cst_55 = arith.constant dense<0xFF800000> : vector<64xf32>
    %96 = vector.multi_reduction <maximumf>, %95, %cst_55 [1] : vector<64x64xf32> to vector<64xf32>
    %97 = vector.shape_cast %96 : vector<64xf32> to vector<64x1xf32>
    %98 = vector.broadcast %97 : vector<64x1xf32> to vector<64x64xf32>
    %99 = arith.subf %95, %98 : vector<64x64xf32>
    %100 = math.exp %99 : vector<64x64xf32>
    %cst_56 = arith.constant dense<0.000000e+00> : vector<64xf32>
    %101 = vector.multi_reduction <add>, %100, %cst_56 [1] : vector<64x64xf32> to vector<64xf32>
    %102 = vector.shape_cast %101 : vector<64xf32> to vector<64x1xf32>
    %103 = tpu.reciprocal %102 {approx = true} : vector<64x1xf32> -> vector<64x1xf32>
    %104 = vector.broadcast %103 : vector<64x1xf32> to vector<64x64xf32>
    %105 = arith.mulf %100, %104 : vector<64x64xf32>
    %106 = arith.truncf %105 : vector<64x64xf32> to vector<64x64xbf16>
    %cst_57 = arith.constant dense<0.000000e+00> : vector<16x64xf32>
    %107 = tpu.matmul %94, %106, %cst_57 {dimension_numbers = #tpu.dot_dimension_numbers<[1], [1], [0], [0], [0, 0, 1, 0], [], []>} : vector<16x64xbf16>, vector<64x64xbf16>, vector<16x64xf32> -> vector<16x64xf32>
    %108 = arith.addf %107, %84 : vector<16x64xf32>
    %109 = arith.truncf %108 : vector<16x64xf32> to vector<16x64xbf16>
    %c0_58 = arith.constant 0 : index
    %c0_59 = arith.constant 0 : index
    %c0_60 = arith.constant 0 : index
    %110 = vector.load %arg5[%c0_58, %c0_59, %c0_60] : memref<3x32x16xf32, #tpu.memory_space<vmem>>, vector<1x32x16xf32>
    %111 = vector.shape_cast %110 : vector<1x32x16xf32> to vector<32x16xf32>
    %112 = arith.truncf %111 : vector<32x16xf32> to vector<32x16xbf16>
    %cst_61 = arith.constant dense<0.000000e+00> : vector<32x64xf32>
    %113 = tpu.matmul %112, %109, %cst_61 {dimension_numbers = #tpu.dot_dimension_numbers<[1], [0], [0], [1], [0, 0, 1, 1], [], []>} : vector<32x16xbf16>, vector<16x64xbf16>, vector<32x64xf32> -> vector<32x64xf32>
    %114 = arith.truncf %113 : vector<32x64xf32> to vector<32x64xbf16>
    %c0_62 = arith.constant 0 : index
    %c0_63 = arith.constant 0 : index
    %c0_64 = arith.constant 0 : index
    %115 = vector.load %arg4[%c0_62, %c0_63, %c0_64] : memref<3x64x64xf32, #tpu.memory_space<vmem>>, vector<1x64x64xf32>
    %116 = vector.shape_cast %115 : vector<1x64x64xf32> to vector<64x64xf32>
    %117 = arith.truncf %116 : vector<64x64xf32> to vector<64x64xbf16>
    %cst_65 = arith.constant dense<0.000000e+00> : vector<32x64xf32>
    %118 = tpu.matmul %114, %117, %cst_65 {dimension_numbers = #tpu.dot_dimension_numbers<[1], [0], [0], [1], [0, 0, 1, 1], [], []>} : vector<32x64xbf16>, vector<64x64xbf16>, vector<32x64xf32> -> vector<32x64xf32>
    %119 = vector.broadcast %5 : vector<32x1xf32> to vector<32x64xf32>
    %120 = arith.addf %119, %118 : vector<32x64xf32>
    %c1_66 = arith.constant 1 : index
    %c0_67 = arith.constant 0 : index
    %c0_68 = arith.constant 0 : index
    %121 = vector.load %arg5[%c1_66, %c0_67, %c0_68] : memref<3x32x16xf32, #tpu.memory_space<vmem>>, vector<1x32x16xf32>
    %122 = vector.shape_cast %121 : vector<1x32x16xf32> to vector<32x16xf32>
    %123 = arith.truncf %122 : vector<32x16xf32> to vector<32x16xbf16>
    %cst_69 = arith.constant dense<0.000000e+00> : vector<32x64xf32>
    %124 = tpu.matmul %123, %109, %cst_69 {dimension_numbers = #tpu.dot_dimension_numbers<[1], [0], [0], [1], [0, 0, 1, 1], [], []>} : vector<32x16xbf16>, vector<16x64xbf16>, vector<32x64xf32> -> vector<32x64xf32>
    %125 = arith.truncf %124 : vector<32x64xf32> to vector<32x64xbf16>
    %c1_70 = arith.constant 1 : index
    %c0_71 = arith.constant 0 : index
    %c0_72 = arith.constant 0 : index
    %126 = vector.load %arg4[%c1_70, %c0_71, %c0_72] : memref<3x64x64xf32, #tpu.memory_space<vmem>>, vector<1x64x64xf32>
    %127 = vector.shape_cast %126 : vector<1x64x64xf32> to vector<64x64xf32>
    %128 = arith.truncf %127 : vector<64x64xf32> to vector<64x64xbf16>
    %cst_73 = arith.constant dense<0.000000e+00> : vector<32x64xf32>
    %129 = tpu.matmul %125, %128, %cst_73 {dimension_numbers = #tpu.dot_dimension_numbers<[1], [0], [0], [1], [0, 0, 1, 1], [], []>} : vector<32x64xbf16>, vector<64x64xbf16>, vector<32x64xf32> -> vector<32x64xf32>
    %130 = arith.addf %120, %129 : vector<32x64xf32>
    %c2_74 = arith.constant 2 : index
    %c0_75 = arith.constant 0 : index
    %c0_76 = arith.constant 0 : index
    %131 = vector.load %arg5[%c2_74, %c0_75, %c0_76] : memref<3x32x16xf32, #tpu.memory_space<vmem>>, vector<1x32x16xf32>
    %132 = vector.shape_cast %131 : vector<1x32x16xf32> to vector<32x16xf32>
    %133 = arith.truncf %132 : vector<32x16xf32> to vector<32x16xbf16>
    %cst_77 = arith.constant dense<0.000000e+00> : vector<32x64xf32>
    %134 = tpu.matmul %133, %109, %cst_77 {dimension_numbers = #tpu.dot_dimension_numbers<[1], [0], [0], [1], [0, 0, 1, 1], [], []>} : vector<32x16xbf16>, vector<16x64xbf16>, vector<32x64xf32> -> vector<32x64xf32>
    %135 = arith.truncf %134 : vector<32x64xf32> to vector<32x64xbf16>
    %c2_78 = arith.constant 2 : index
    %c0_79 = arith.constant 0 : index
    %c0_80 = arith.constant 0 : index
    %136 = vector.load %arg4[%c2_78, %c0_79, %c0_80] : memref<3x64x64xf32, #tpu.memory_space<vmem>>, vector<1x64x64xf32>
    %137 = vector.shape_cast %136 : vector<1x64x64xf32> to vector<64x64xf32>
    %138 = arith.truncf %137 : vector<64x64xf32> to vector<64x64xbf16>
    %cst_81 = arith.constant dense<0.000000e+00> : vector<32x64xf32>
    %139 = tpu.matmul %135, %138, %cst_81 {dimension_numbers = #tpu.dot_dimension_numbers<[1], [0], [0], [1], [0, 0, 1, 1], [], []>} : vector<32x64xbf16>, vector<64x64xbf16>, vector<32x64xf32> -> vector<32x64xf32>
    %140 = arith.addf %130, %139 : vector<32x64xf32>
    %c1_82 = arith.constant 1 : index
    %c0_83 = arith.constant 0 : index
    %c0_84 = arith.constant 0 : index
    %141 = vector.load %arg11[%c1_82, %c0_83, %c0_84] : memref<4x32x64xf32, #tpu.memory_space<vmem>>, vector<1x32x64xf32>
    %142 = vector.shape_cast %141 : vector<1x32x64xf32> to vector<32x64xf32>
    %143 = vector.shape_cast %140 : vector<32x64xf32> to vector<1x32x64xf32>
    tpu.vector_store %arg11[%c1_82, %c0_83, %c0_84], %143 {strides = array<i32>} : memref<4x32x64xf32, #tpu.memory_space<vmem>>, vector<1x32x64xf32>,
    %144 = vector.broadcast %7 : vector<32x1xf32> to vector<32x64xf32>
    %145 = arith.mulf %140, %144 : vector<32x64xf32>
    %146 = vector.broadcast %8 : vector<32x1xf32> to vector<32x64xf32>
    %147 = arith.addf %145, %146 : vector<32x64xf32>
    %cst_85 = arith.constant 0.000000e+00 : f32
    %148 = vector.broadcast %cst_85 : f32 to vector<32x64xf32>
    %149 = arith.maximumf %147, %148 : vector<32x64xf32>
    %150 = arith.truncf %149 : vector<32x64xf32> to vector<32x64xbf16>
    %cst_86 = arith.constant dense<0.000000e+00> : vector<8x64xf32>
    %151 = tpu.matmul %4, %150, %cst_86 {dimension_numbers = #tpu.dot_dimension_numbers<[1], [0], [0], [1], [0, 0, 1, 1], [], []>} : vector<8x32xbf16>, vector<32x64xbf16>, vector<8x64xf32> -> vector<8x64xf32>
    %152 = vector.broadcast %6 : vector<8x1xf32> to vector<8x64xf32>
    %153 = arith.addf %151, %152 : vector<8x64xf32>
    %c1_87 = arith.constant 1 : index
    %c0_88 = arith.constant 0 : index
    %c0_89 = arith.constant 0 : index
    %154 = vector.load %arg12[%c1_87, %c0_88, %c0_89] : memref<4x8x64xf32, #tpu.memory_space<vmem>>, vector<1x8x64xf32>
    %155 = vector.shape_cast %154 : vector<1x8x64xf32> to vector<8x64xf32>
    %156 = vector.shape_cast %153 : vector<8x64xf32> to vector<1x8x64xf32>
    tpu.vector_store %arg12[%c1_87, %c0_88, %c0_89], %156 {strides = array<i32>} : memref<4x8x64xf32, #tpu.memory_space<vmem>>, vector<1x8x64xf32>,
    %c2_90 = arith.constant 2 : index
    %c0_91 = arith.constant 0 : index
    %c0_92 = arith.constant 0 : index
    %157 = vector.load %arg1[%c2_90, %c0_91, %c0_92] : memref<4x16x64xf32, #tpu.memory_space<vmem>>, vector<1x16x64xf32>
    %158 = vector.shape_cast %157 : vector<1x16x64xf32> to vector<16x64xf32>
    %159 = arith.truncf %158 : vector<16x64xf32> to vector<16x64xbf16>
    %cst_93 = arith.constant dense<0.000000e+00> : vector<32x64xf32>
    %160 = tpu.matmul %1, %159, %cst_93 {dimension_numbers = #tpu.dot_dimension_numbers<[1], [0], [0], [1], [0, 0, 1, 1], [], []>} : vector<32x16xbf16>, vector<16x64xbf16>, vector<32x64xf32> -> vector<32x64xf32>
    %161 = vector.broadcast %2 : vector<32x1xf32> to vector<32x64xf32>
    %162 = arith.addf %160, %161 : vector<32x64xf32>
    %163 = vector.extract_strided_slice %162 {offsets = [0, 0], sizes = [8, 64], strides = [1, 1]} : vector<32x64xf32> to vector<8x64xf32>
    %164 = arith.truncf %163 : vector<8x64xf32> to vector<8x64xbf16>
    %165 = vector.extract_strided_slice %162 {offsets = [8, 0], sizes = [8, 64], strides = [1, 1]} : vector<32x64xf32> to vector<8x64xf32>
    %166 = arith.truncf %165 : vector<8x64xf32> to vector<8x64xbf16>
    %167 = vector.extract_strided_slice %162 {offsets = [16, 0], sizes = [16, 64], strides = [1, 1]} : vector<32x64xf32> to vector<16x64xf32>
    %168 = arith.truncf %167 : vector<16x64xf32> to vector<16x64xbf16>
    %cst_94 = arith.constant dense<0.000000e+00> : vector<64x64xf32>
    %169 = tpu.matmul %164, %166, %cst_94 {dimension_numbers = #tpu.dot_dimension_numbers<[0], [0], [1], [1], [0, 1, 1, 1], [], []>} : vector<8x64xbf16>, vector<8x64xbf16>, vector<64x64xf32> -> vector<64x64xf32>
    %cst_95 = arith.constant dense<0xFF800000> : vector<64xf32>
    %170 = vector.multi_reduction <maximumf>, %169, %cst_95 [1] : vector<64x64xf32> to vector<64xf32>
    %171 = vector.shape_cast %170 : vector<64xf32> to vector<64x1xf32>
    %172 = vector.broadcast %171 : vector<64x1xf32> to vector<64x64xf32>
    %173 = arith.subf %169, %172 : vector<64x64xf32>
    %174 = math.exp %173 : vector<64x64xf32>
    %cst_96 = arith.constant dense<0.000000e+00> : vector<64xf32>
    %175 = vector.multi_reduction <add>, %174, %cst_96 [1] : vector<64x64xf32> to vector<64xf32>
    %176 = vector.shape_cast %175 : vector<64xf32> to vector<64x1xf32>
    %177 = tpu.reciprocal %176 {approx = true} : vector<64x1xf32> -> vector<64x1xf32>
    %178 = vector.broadcast %177 : vector<64x1xf32> to vector<64x64xf32>
    %179 = arith.mulf %174, %178 : vector<64x64xf32>
    %180 = arith.truncf %179 : vector<64x64xf32> to vector<64x64xbf16>
    %cst_97 = arith.constant dense<0.000000e+00> : vector<16x64xf32>
    %181 = tpu.matmul %168, %180, %cst_97 {dimension_numbers = #tpu.dot_dimension_numbers<[1], [1], [0], [0], [0, 0, 1, 0], [], []>} : vector<16x64xbf16>, vector<64x64xbf16>, vector<16x64xf32> -> vector<16x64xf32>
    %182 = arith.addf %181, %158 : vector<16x64xf32>
    %183 = arith.truncf %182 : vector<16x64xf32> to vector<16x64xbf16>
    %c0_98 = arith.constant 0 : index
    %c0_99 = arith.constant 0 : index
    %c0_100 = arith.constant 0 : index
    %184 = vector.load %arg5[%c0_98, %c0_99, %c0_100] : memref<3x32x16xf32, #tpu.memory_space<vmem>>, vector<1x32x16xf32>
    %185 = vector.shape_cast %184 : vector<1x32x16xf32> to vector<32x16xf32>
    %186 = arith.truncf %185 : vector<32x16xf32> to vector<32x16xbf16>
    %cst_101 = arith.constant dense<0.000000e+00> : vector<32x64xf32>
    %187 = tpu.matmul %186, %183, %cst_101 {dimension_numbers = #tpu.dot_dimension_numbers<[1], [0], [0], [1], [0, 0, 1, 1], [], []>} : vector<32x16xbf16>, vector<16x64xbf16>, vector<32x64xf32> -> vector<32x64xf32>
    %188 = arith.truncf %187 : vector<32x64xf32> to vector<32x64xbf16>
    %c0_102 = arith.constant 0 : index
    %c0_103 = arith.constant 0 : index
    %c0_104 = arith.constant 0 : index
    %189 = vector.load %arg4[%c0_102, %c0_103, %c0_104] : memref<3x64x64xf32, #tpu.memory_space<vmem>>, vector<1x64x64xf32>
    %190 = vector.shape_cast %189 : vector<1x64x64xf32> to vector<64x64xf32>
    %191 = arith.truncf %190 : vector<64x64xf32> to vector<64x64xbf16>
    %cst_105 = arith.constant dense<0.000000e+00> : vector<32x64xf32>
    %192 = tpu.matmul %188, %191, %cst_105 {dimension_numbers = #tpu.dot_dimension_numbers<[1], [0], [0], [1], [0, 0, 1, 1], [], []>} : vector<32x64xbf16>, vector<64x64xbf16>, vector<32x64xf32> -> vector<32x64xf32>
    %193 = vector.broadcast %5 : vector<32x1xf32> to vector<32x64xf32>
    %194 = arith.addf %193, %192 : vector<32x64xf32>
    %c1_106 = arith.constant 1 : index
    %c0_107 = arith.constant 0 : index
    %c0_108 = arith.constant 0 : index
    %195 = vector.load %arg5[%c1_106, %c0_107, %c0_108] : memref<3x32x16xf32, #tpu.memory_space<vmem>>, vector<1x32x16xf32>
    %196 = vector.shape_cast %195 : vector<1x32x16xf32> to vector<32x16xf32>
    %197 = arith.truncf %196 : vector<32x16xf32> to vector<32x16xbf16>
    %cst_109 = arith.constant dense<0.000000e+00> : vector<32x64xf32>
    %198 = tpu.matmul %197, %183, %cst_109 {dimension_numbers = #tpu.dot_dimension_numbers<[1], [0], [0], [1], [0, 0, 1, 1], [], []>} : vector<32x16xbf16>, vector<16x64xbf16>, vector<32x64xf32> -> vector<32x64xf32>
    %199 = arith.truncf %198 : vector<32x64xf32> to vector<32x64xbf16>
    %c1_110 = arith.constant 1 : index
    %c0_111 = arith.constant 0 : index
    %c0_112 = arith.constant 0 : index
    %200 = vector.load %arg4[%c1_110, %c0_111, %c0_112] : memref<3x64x64xf32, #tpu.memory_space<vmem>>, vector<1x64x64xf32>
    %201 = vector.shape_cast %200 : vector<1x64x64xf32> to vector<64x64xf32>
    %202 = arith.truncf %201 : vector<64x64xf32> to vector<64x64xbf16>
    %cst_113 = arith.constant dense<0.000000e+00> : vector<32x64xf32>
    %203 = tpu.matmul %199, %202, %cst_113 {dimension_numbers = #tpu.dot_dimension_numbers<[1], [0], [0], [1], [0, 0, 1, 1], [], []>} : vector<32x64xbf16>, vector<64x64xbf16>, vector<32x64xf32> -> vector<32x64xf32>
    %204 = arith.addf %194, %203 : vector<32x64xf32>
    %c2_114 = arith.constant 2 : index
    %c0_115 = arith.constant 0 : index
    %c0_116 = arith.constant 0 : index
    %205 = vector.load %arg5[%c2_114, %c0_115, %c0_116] : memref<3x32x16xf32, #tpu.memory_space<vmem>>, vector<1x32x16xf32>
    %206 = vector.shape_cast %205 : vector<1x32x16xf32> to vector<32x16xf32>
    %207 = arith.truncf %206 : vector<32x16xf32> to vector<32x16xbf16>
    %cst_117 = arith.constant dense<0.000000e+00> : vector<32x64xf32>
    %208 = tpu.matmul %207, %183, %cst_117 {dimension_numbers = #tpu.dot_dimension_numbers<[1], [0], [0], [1], [0, 0, 1, 1], [], []>} : vector<32x16xbf16>, vector<16x64xbf16>, vector<32x64xf32> -> vector<32x64xf32>
    %209 = arith.truncf %208 : vector<32x64xf32> to vector<32x64xbf16>
    %c2_118 = arith.constant 2 : index
    %c0_119 = arith.constant 0 : index
    %c0_120 = arith.constant 0 : index
    %210 = vector.load %arg4[%c2_118, %c0_119, %c0_120] : memref<3x64x64xf32, #tpu.memory_space<vmem>>, vector<1x64x64xf32>
    %211 = vector.shape_cast %210 : vector<1x64x64xf32> to vector<64x64xf32>
    %212 = arith.truncf %211 : vector<64x64xf32> to vector<64x64xbf16>
    %cst_121 = arith.constant dense<0.000000e+00> : vector<32x64xf32>
    %213 = tpu.matmul %209, %212, %cst_121 {dimension_numbers = #tpu.dot_dimension_numbers<[1], [0], [0], [1], [0, 0, 1, 1], [], []>} : vector<32x64xbf16>, vector<64x64xbf16>, vector<32x64xf32> -> vector<32x64xf32>
    %214 = arith.addf %204, %213 : vector<32x64xf32>
    %c2_122 = arith.constant 2 : index
    %c0_123 = arith.constant 0 : index
    %c0_124 = arith.constant 0 : index
    %215 = vector.load %arg11[%c2_122, %c0_123, %c0_124] : memref<4x32x64xf32, #tpu.memory_space<vmem>>, vector<1x32x64xf32>
    %216 = vector.shape_cast %215 : vector<1x32x64xf32> to vector<32x64xf32>
    %217 = vector.shape_cast %214 : vector<32x64xf32> to vector<1x32x64xf32>
    tpu.vector_store %arg11[%c2_122, %c0_123, %c0_124], %217 {strides = array<i32>} : memref<4x32x64xf32, #tpu.memory_space<vmem>>, vector<1x32x64xf32>,
    %218 = vector.broadcast %7 : vector<32x1xf32> to vector<32x64xf32>
    %219 = arith.mulf %214, %218 : vector<32x64xf32>
    %220 = vector.broadcast %8 : vector<32x1xf32> to vector<32x64xf32>
    %221 = arith.addf %219, %220 : vector<32x64xf32>
    %cst_125 = arith.constant 0.000000e+00 : f32
    %222 = vector.broadcast %cst_125 : f32 to vector<32x64xf32>
    %223 = arith.maximumf %221, %222 : vector<32x64xf32>
    %224 = arith.truncf %223 : vector<32x64xf32> to vector<32x64xbf16>
    %cst_126 = arith.constant dense<0.000000e+00> : vector<8x64xf32>
    %225 = tpu.matmul %4, %224, %cst_126 {dimension_numbers = #tpu.dot_dimension_numbers<[1], [0], [0], [1], [0, 0, 1, 1], [], []>} : vector<8x32xbf16>, vector<32x64xbf16>, vector<8x64xf32> -> vector<8x64xf32>
    %226 = vector.broadcast %6 : vector<8x1xf32> to vector<8x64xf32>
    %227 = arith.addf %225, %226 : vector<8x64xf32>
    %c2_127 = arith.constant 2 : index
    %c0_128 = arith.constant 0 : index
    %c0_129 = arith.constant 0 : index
    %228 = vector.load %arg12[%c2_127, %c0_128, %c0_129] : memref<4x8x64xf32, #tpu.memory_space<vmem>>, vector<1x8x64xf32>
    %229 = vector.shape_cast %228 : vector<1x8x64xf32> to vector<8x64xf32>
    %230 = vector.shape_cast %227 : vector<8x64xf32> to vector<1x8x64xf32>
    tpu.vector_store %arg12[%c2_127, %c0_128, %c0_129], %230 {strides = array<i32>} : memref<4x8x64xf32, #tpu.memory_space<vmem>>, vector<1x8x64xf32>,
    %c3 = arith.constant 3 : index
    %c0_130 = arith.constant 0 : index
    %c0_131 = arith.constant 0 : index
    %231 = vector.load %arg1[%c3, %c0_130, %c0_131] : memref<4x16x64xf32, #tpu.memory_space<vmem>>, vector<1x16x64xf32>
    %232 = vector.shape_cast %231 : vector<1x16x64xf32> to vector<16x64xf32>
    %233 = arith.truncf %232 : vector<16x64xf32> to vector<16x64xbf16>
    %cst_132 = arith.constant dense<0.000000e+00> : vector<32x64xf32>
    %234 = tpu.matmul %1, %233, %cst_132 {dimension_numbers = #tpu.dot_dimension_numbers<[1], [0], [0], [1], [0, 0, 1, 1], [], []>} : vector<32x16xbf16>, vector<16x64xbf16>, vector<32x64xf32> -> vector<32x64xf32>
    %235 = vector.broadcast %2 : vector<32x1xf32> to vector<32x64xf32>
    %236 = arith.addf %234, %235 : vector<32x64xf32>
    %237 = vector.extract_strided_slice %236 {offsets = [0, 0], sizes = [8, 64], strides = [1, 1]} : vector<32x64xf32> to vector<8x64xf32>
    %238 = arith.truncf %237 : vector<8x64xf32> to vector<8x64xbf16>
    %239 = vector.extract_strided_slice %236 {offsets = [8, 0], sizes = [8, 64], strides = [1, 1]} : vector<32x64xf32> to vector<8x64xf32>
    %240 = arith.truncf %239 : vector<8x64xf32> to vector<8x64xbf16>
    %241 = vector.extract_strided_slice %236 {offsets = [16, 0], sizes = [16, 64], strides = [1, 1]} : vector<32x64xf32> to vector<16x64xf32>
    %242 = arith.truncf %241 : vector<16x64xf32> to vector<16x64xbf16>
    %cst_133 = arith.constant dense<0.000000e+00> : vector<64x64xf32>
    %243 = tpu.matmul %238, %240, %cst_133 {dimension_numbers = #tpu.dot_dimension_numbers<[0], [0], [1], [1], [0, 1, 1, 1], [], []>} : vector<8x64xbf16>, vector<8x64xbf16>, vector<64x64xf32> -> vector<64x64xf32>
    %cst_134 = arith.constant dense<0xFF800000> : vector<64xf32>
    %244 = vector.multi_reduction <maximumf>, %243, %cst_134 [1] : vector<64x64xf32> to vector<64xf32>
    %245 = vector.shape_cast %244 : vector<64xf32> to vector<64x1xf32>
    %246 = vector.broadcast %245 : vector<64x1xf32> to vector<64x64xf32>
    %247 = arith.subf %243, %246 : vector<64x64xf32>
    %248 = math.exp %247 : vector<64x64xf32>
    %cst_135 = arith.constant dense<0.000000e+00> : vector<64xf32>
    %249 = vector.multi_reduction <add>, %248, %cst_135 [1] : vector<64x64xf32> to vector<64xf32>
    %250 = vector.shape_cast %249 : vector<64xf32> to vector<64x1xf32>
    %251 = tpu.reciprocal %250 {approx = true} : vector<64x1xf32> -> vector<64x1xf32>
    %252 = vector.broadcast %251 : vector<64x1xf32> to vector<64x64xf32>
    %253 = arith.mulf %248, %252 : vector<64x64xf32>
    %254 = arith.truncf %253 : vector<64x64xf32> to vector<64x64xbf16>
    %cst_136 = arith.constant dense<0.000000e+00> : vector<16x64xf32>
    %255 = tpu.matmul %242, %254, %cst_136 {dimension_numbers = #tpu.dot_dimension_numbers<[1], [1], [0], [0], [0, 0, 1, 0], [], []>} : vector<16x64xbf16>, vector<64x64xbf16>, vector<16x64xf32> -> vector<16x64xf32>
    %256 = arith.addf %255, %232 : vector<16x64xf32>
    %257 = arith.truncf %256 : vector<16x64xf32> to vector<16x64xbf16>
    %c0_137 = arith.constant 0 : index
    %c0_138 = arith.constant 0 : index
    %c0_139 = arith.constant 0 : index
    %258 = vector.load %arg5[%c0_137, %c0_138, %c0_139] : memref<3x32x16xf32, #tpu.memory_space<vmem>>, vector<1x32x16xf32>
    %259 = vector.shape_cast %258 : vector<1x32x16xf32> to vector<32x16xf32>
    %260 = arith.truncf %259 : vector<32x16xf32> to vector<32x16xbf16>
    %cst_140 = arith.constant dense<0.000000e+00> : vector<32x64xf32>
    %261 = tpu.matmul %260, %257, %cst_140 {dimension_numbers = #tpu.dot_dimension_numbers<[1], [0], [0], [1], [0, 0, 1, 1], [], []>} : vector<32x16xbf16>, vector<16x64xbf16>, vector<32x64xf32> -> vector<32x64xf32>
    %262 = arith.truncf %261 : vector<32x64xf32> to vector<32x64xbf16>
    %c0_141 = arith.constant 0 : index
    %c0_142 = arith.constant 0 : index
    %c0_143 = arith.constant 0 : index
    %263 = vector.load %arg4[%c0_141, %c0_142, %c0_143] : memref<3x64x64xf32, #tpu.memory_space<vmem>>, vector<1x64x64xf32>
    %264 = vector.shape_cast %263 : vector<1x64x64xf32> to vector<64x64xf32>
    %265 = arith.truncf %264 : vector<64x64xf32> to vector<64x64xbf16>
    %cst_144 = arith.constant dense<0.000000e+00> : vector<32x64xf32>
    %266 = tpu.matmul %262, %265, %cst_144 {dimension_numbers = #tpu.dot_dimension_numbers<[1], [0], [0], [1], [0, 0, 1, 1], [], []>} : vector<32x64xbf16>, vector<64x64xbf16>, vector<32x64xf32> -> vector<32x64xf32>
    %267 = vector.broadcast %5 : vector<32x1xf32> to vector<32x64xf32>
    %268 = arith.addf %267, %266 : vector<32x64xf32>
    %c1_145 = arith.constant 1 : index
    %c0_146 = arith.constant 0 : index
    %c0_147 = arith.constant 0 : index
    %269 = vector.load %arg5[%c1_145, %c0_146, %c0_147] : memref<3x32x16xf32, #tpu.memory_space<vmem>>, vector<1x32x16xf32>
    %270 = vector.shape_cast %269 : vector<1x32x16xf32> to vector<32x16xf32>
    %271 = arith.truncf %270 : vector<32x16xf32> to vector<32x16xbf16>
    %cst_148 = arith.constant dense<0.000000e+00> : vector<32x64xf32>
    %272 = tpu.matmul %271, %257, %cst_148 {dimension_numbers = #tpu.dot_dimension_numbers<[1], [0], [0], [1], [0, 0, 1, 1], [], []>} : vector<32x16xbf16>, vector<16x64xbf16>, vector<32x64xf32> -> vector<32x64xf32>
    %273 = arith.truncf %272 : vector<32x64xf32> to vector<32x64xbf16>
    %c1_149 = arith.constant 1 : index
    %c0_150 = arith.constant 0 : index
    %c0_151 = arith.constant 0 : index
    %274 = vector.load %arg4[%c1_149, %c0_150, %c0_151] : memref<3x64x64xf32, #tpu.memory_space<vmem>>, vector<1x64x64xf32>
    %275 = vector.shape_cast %274 : vector<1x64x64xf32> to vector<64x64xf32>
    %276 = arith.truncf %275 : vector<64x64xf32> to vector<64x64xbf16>
    %cst_152 = arith.constant dense<0.000000e+00> : vector<32x64xf32>
    %277 = tpu.matmul %273, %276, %cst_152 {dimension_numbers = #tpu.dot_dimension_numbers<[1], [0], [0], [1], [0, 0, 1, 1], [], []>} : vector<32x64xbf16>, vector<64x64xbf16>, vector<32x64xf32> -> vector<32x64xf32>
    %278 = arith.addf %268, %277 : vector<32x64xf32>
    %c2_153 = arith.constant 2 : index
    %c0_154 = arith.constant 0 : index
    %c0_155 = arith.constant 0 : index
    %279 = vector.load %arg5[%c2_153, %c0_154, %c0_155] : memref<3x32x16xf32, #tpu.memory_space<vmem>>, vector<1x32x16xf32>
    %280 = vector.shape_cast %279 : vector<1x32x16xf32> to vector<32x16xf32>
    %281 = arith.truncf %280 : vector<32x16xf32> to vector<32x16xbf16>
    %cst_156 = arith.constant dense<0.000000e+00> : vector<32x64xf32>
    %282 = tpu.matmul %281, %257, %cst_156 {dimension_numbers = #tpu.dot_dimension_numbers<[1], [0], [0], [1], [0, 0, 1, 1], [], []>} : vector<32x16xbf16>, vector<16x64xbf16>, vector<32x64xf32> -> vector<32x64xf32>
    %283 = arith.truncf %282 : vector<32x64xf32> to vector<32x64xbf16>
    %c2_157 = arith.constant 2 : index
    %c0_158 = arith.constant 0 : index
    %c0_159 = arith.constant 0 : index
    %284 = vector.load %arg4[%c2_157, %c0_158, %c0_159] : memref<3x64x64xf32, #tpu.memory_space<vmem>>, vector<1x64x64xf32>
    %285 = vector.shape_cast %284 : vector<1x64x64xf32> to vector<64x64xf32>
    %286 = arith.truncf %285 : vector<64x64xf32> to vector<64x64xbf16>
    %cst_160 = arith.constant dense<0.000000e+00> : vector<32x64xf32>
    %287 = tpu.matmul %283, %286, %cst_160 {dimension_numbers = #tpu.dot_dimension_numbers<[1], [0], [0], [1], [0, 0, 1, 1], [], []>} : vector<32x64xbf16>, vector<64x64xbf16>, vector<32x64xf32> -> vector<32x64xf32>
    %288 = arith.addf %278, %287 : vector<32x64xf32>
    %c3_161 = arith.constant 3 : index
    %c0_162 = arith.constant 0 : index
    %c0_163 = arith.constant 0 : index
    %289 = vector.load %arg11[%c3_161, %c0_162, %c0_163] : memref<4x32x64xf32, #tpu.memory_space<vmem>>, vector<1x32x64xf32>
    %290 = vector.shape_cast %289 : vector<1x32x64xf32> to vector<32x64xf32>
    %291 = vector.shape_cast %288 : vector<32x64xf32> to vector<1x32x64xf32>
    tpu.vector_store %arg11[%c3_161, %c0_162, %c0_163], %291 {strides = array<i32>} : memref<4x32x64xf32, #tpu.memory_space<vmem>>, vector<1x32x64xf32>,
    %292 = vector.broadcast %7 : vector<32x1xf32> to vector<32x64xf32>
    %293 = arith.mulf %288, %292 : vector<32x64xf32>
    %294 = vector.broadcast %8 : vector<32x1xf32> to vector<32x64xf32>
    %295 = arith.addf %293, %294 : vector<32x64xf32>
    %cst_164 = arith.constant 0.000000e+00 : f32
    %296 = vector.broadcast %cst_164 : f32 to vector<32x64xf32>
    %297 = arith.maximumf %295, %296 : vector<32x64xf32>
    %298 = arith.truncf %297 : vector<32x64xf32> to vector<32x64xbf16>
    %cst_165 = arith.constant dense<0.000000e+00> : vector<8x64xf32>
    %299 = tpu.matmul %4, %298, %cst_165 {dimension_numbers = #tpu.dot_dimension_numbers<[1], [0], [0], [1], [0, 0, 1, 1], [], []>} : vector<8x32xbf16>, vector<32x64xbf16>, vector<8x64xf32> -> vector<8x64xf32>
    %300 = vector.broadcast %6 : vector<8x1xf32> to vector<8x64xf32>
    %301 = arith.addf %299, %300 : vector<8x64xf32>
    %c3_166 = arith.constant 3 : index
    %c0_167 = arith.constant 0 : index
    %c0_168 = arith.constant 0 : index
    %302 = vector.load %arg12[%c3_166, %c0_167, %c0_168] : memref<4x8x64xf32, #tpu.memory_space<vmem>>, vector<1x8x64xf32>
    %303 = vector.shape_cast %302 : vector<1x8x64xf32> to vector<8x64xf32>
    %304 = vector.shape_cast %301 : vector<8x64xf32> to vector<1x8x64xf32>
    tpu.vector_store %arg12[%c3_166, %c0_167, %c0_168], %304 {strides = array<i32>} : memref<4x8x64xf32, #tpu.memory_space<vmem>>, vector<1x8x64xf32>,
    return
  }
  func.func @transform_0(%arg0: i32) -> (i32, i32, i32) {
    %c0_i32 = arith.constant 0 : i32
    %c0_i32_0 = arith.constant 0 : i32
    %c0_i32_1 = arith.constant 0 : i32
    return %arg0, %c0_i32, %c0_i32_0 : i32, i32, i32
  }
  func.func @transform_1(%arg0: i32) -> (i32, i32) {
    %c0_i32 = arith.constant 0 : i32
    %c0_i32_0 = arith.constant 0 : i32
    %c0_i32_1 = arith.constant 0 : i32
    return %c0_i32, %c0_i32_0 : i32, i32
  }
  func.func @transform_2(%arg0: i32) -> (i32, i32) {
    %c0_i32 = arith.constant 0 : i32
    %c0_i32_0 = arith.constant 0 : i32
    %c0_i32_1 = arith.constant 0 : i32
    return %c0_i32, %c0_i32_0 : i32, i32
  }
  func.func @transform_3(%arg0: i32) -> (i32, i32, i32) {
    %c0_i32 = arith.constant 0 : i32
    %c0_i32_0 = arith.constant 0 : i32
    %c0_i32_1 = arith.constant 0 : i32
    %c0_i32_2 = arith.constant 0 : i32
    return %c0_i32, %c0_i32_0, %c0_i32_1 : i32, i32, i32
  }
  func.func @transform_4(%arg0: i32) -> (i32, i32, i32) {
    %c0_i32 = arith.constant 0 : i32
    %c0_i32_0 = arith.constant 0 : i32
    %c0_i32_1 = arith.constant 0 : i32
    %c0_i32_2 = arith.constant 0 : i32
    return %c0_i32, %c0_i32_0, %c0_i32_1 : i32, i32, i32
  }
  func.func @transform_5(%arg0: i32) -> (i32, i32) {
    %c0_i32 = arith.constant 0 : i32
    %c0_i32_0 = arith.constant 0 : i32
    %c0_i32_1 = arith.constant 0 : i32
    return %c0_i32, %c0_i32_0 : i32, i32
  }
  func.func @transform_6(%arg0: i32) -> (i32, i32) {
    %c0_i32 = arith.constant 0 : i32
    %c0_i32_0 = arith.constant 0 : i32
    %c0_i32_1 = arith.constant 0 : i32
    return %c0_i32, %c0_i32_0 : i32, i32
  }
  func.func @transform_7(%arg0: i32) -> (i32, i32) {
    %c0_i32 = arith.constant 0 : i32
    %c0_i32_0 = arith.constant 0 : i32
    %c0_i32_1 = arith.constant 0 : i32
    return %c0_i32, %c0_i32_0 : i32, i32
  }
  func.func @transform_8(%arg0: i32) -> (i32, i32) {
    %c0_i32 = arith.constant 0 : i32
    %c0_i32_0 = arith.constant 0 : i32
    %c0_i32_1 = arith.constant 0 : i32
    return %c0_i32, %c0_i32_0 : i32, i32
  }
  func.func @transform_9(%arg0: i32) -> (i32, i32) {
    %c0_i32 = arith.constant 0 : i32
    %c0_i32_0 = arith.constant 0 : i32
    %c0_i32_1 = arith.constant 0 : i32
    return %c0_i32, %c0_i32_0 : i32, i32
  }
  func.func @transform_10(%arg0: i32) -> (i32, i32, i32) {
    %c0_i32 = arith.constant 0 : i32
    %c0_i32_0 = arith.constant 0 : i32
    %c0_i32_1 = arith.constant 0 : i32
    return %arg0, %c0_i32, %c0_i32_0 : i32, i32, i32
  }
  func.func @transform_11(%arg0: i32) -> (i32, i32, i32) {
    %c0_i32 = arith.constant 0 : i32
    %c0_i32_0 = arith.constant 0 : i32
    %c0_i32_1 = arith.constant 0 : i32
    return %arg0, %c0_i32, %c0_i32_0 : i32, i32, i32
  }
}

module attributes {stable_mosaic.version = 11 : i64} {
  func.func @_fc_kernel(%arg0: i32, %arg1: memref<8x512xf32, #tpu.memory_space<vmem>>, %arg2: memref<1x512xf32, #tpu.memory_space<vmem>>, %arg3: memref<1x512xf32, #tpu.memory_space<vmem>>, %arg4: memref<512x32xf32, #tpu.memory_space<vmem>>, %arg5: memref<1x32xf32, #tpu.memory_space<vmem>>, %arg6: memref<8x32xf32, #tpu.memory_space<vmem>>, %arg7: memref<8x32xf32, #tpu.memory_space<vmem>>) attributes {dimension_semantics = [#tpu.dimension_semantics<arbitrary>], iteration_bounds = array<i64: 1>, scalar_prefetch = 0 : i64, scratch_operands = 0 : i64, tpu.core_type = #tpu.core_type<tc>, window_params = [{pipeline_mode = #tpu.pipeline_mode<synchronous>, transform_indices = @transform_0, window_bounds = array<i64: 8, 512>}, {pipeline_mode = #tpu.pipeline_mode<synchronous>, transform_indices = @transform_1, window_bounds = array<i64: 1, 512>}, {pipeline_mode = #tpu.pipeline_mode<synchronous>, transform_indices = @transform_2, window_bounds = array<i64: 1, 512>}, {pipeline_mode = #tpu.pipeline_mode<synchronous>, transform_indices = @transform_3, window_bounds = array<i64: 512, 32>}, {pipeline_mode = #tpu.pipeline_mode<synchronous>, transform_indices = @transform_4, window_bounds = array<i64: 1, 32>}, {pipeline_mode = #tpu.pipeline_mode<synchronous>, transform_indices = @transform_5, window_bounds = array<i64: 8, 32>}, {pipeline_mode = #tpu.pipeline_mode<synchronous>, transform_indices = @transform_6, window_bounds = array<i64: 8, 32>}]} {
    %c0 = arith.constant 0 : index
    %c0_0 = arith.constant 0 : index
    %0 = vector.load %arg1[%c0, %c0_0] : memref<8x512xf32, #tpu.memory_space<vmem>>, vector<8x512xf32>
    %c0_1 = arith.constant 0 : index
    %c0_2 = arith.constant 0 : index
    %1 = vector.load %arg2[%c0_1, %c0_2] : memref<1x512xf32, #tpu.memory_space<vmem>>, vector<1x512xf32>
    %2 = vector.broadcast %1 : vector<1x512xf32> to vector<8x512xf32>
    %3 = arith.mulf %0, %2 : vector<8x512xf32>
    %c0_3 = arith.constant 0 : index
    %c0_4 = arith.constant 0 : index
    %4 = vector.load %arg3[%c0_3, %c0_4] : memref<1x512xf32, #tpu.memory_space<vmem>>, vector<1x512xf32>
    %5 = vector.broadcast %4 : vector<1x512xf32> to vector<8x512xf32>
    %6 = arith.addf %3, %5 : vector<8x512xf32>
    %cst = arith.constant 0.000000e+00 : f32
    %7 = vector.broadcast %cst : f32 to vector<8x512xf32>
    %8 = arith.maximumf %6, %7 : vector<8x512xf32>
    %9 = arith.truncf %8 : vector<8x512xf32> to vector<8x512xbf16>
    %c0_5 = arith.constant 0 : index
    %c0_6 = arith.constant 0 : index
    %10 = vector.load %arg4[%c0_5, %c0_6] : memref<512x32xf32, #tpu.memory_space<vmem>>, vector<512x32xf32>
    %11 = arith.truncf %10 : vector<512x32xf32> to vector<512x32xbf16>
    %cst_7 = arith.constant dense<0.000000e+00> : vector<8x32xf32>
    %12 = tpu.matmul %9, %11, %cst_7 {dimension_numbers = #tpu.dot_dimension_numbers<[1], [0], [0], [1], [0, 0, 1, 1], [], []>} : vector<8x512xbf16>, vector<512x32xbf16>, vector<8x32xf32> -> vector<8x32xf32>
    %c0_8 = arith.constant 0 : index
    %c0_9 = arith.constant 0 : index
    %13 = vector.load %arg5[%c0_8, %c0_9] : memref<1x32xf32, #tpu.memory_space<vmem>>, vector<1x32xf32>
    %14 = vector.broadcast %13 : vector<1x32xf32> to vector<8x32xf32>
    %15 = arith.addf %12, %14 : vector<8x32xf32>
    %c0_10 = arith.constant 0 : index
    %c0_11 = arith.constant 0 : index
    %16 = vector.load %arg6[%c0_10, %c0_11] : memref<8x32xf32, #tpu.memory_space<vmem>>, vector<8x32xf32>
    %17 = arith.addf %15, %16 : vector<8x32xf32>
    %c0_12 = arith.constant 0 : index
    %c0_13 = arith.constant 0 : index
    %18 = vector.load %arg7[%c0_12, %c0_13] : memref<8x32xf32, #tpu.memory_space<vmem>>, vector<8x32xf32>
    tpu.vector_store %arg7[%c0_12, %c0_13], %17 {strides = array<i32>} : memref<8x32xf32, #tpu.memory_space<vmem>>, vector<8x32xf32>,
    return
  }
  func.func @transform_0(%arg0: i32) -> (i32, i32) {
    %c0_i32 = arith.constant 0 : i32
    %c0_i32_0 = arith.constant 0 : i32
    %c0_i32_1 = arith.constant 0 : i32
    return %c0_i32, %c0_i32_0 : i32, i32
  }
  func.func @transform_1(%arg0: i32) -> (i32, i32) {
    %c0_i32 = arith.constant 0 : i32
    %c0_i32_0 = arith.constant 0 : i32
    %c0_i32_1 = arith.constant 0 : i32
    return %c0_i32, %c0_i32_0 : i32, i32
  }
  func.func @transform_2(%arg0: i32) -> (i32, i32) {
    %c0_i32 = arith.constant 0 : i32
    %c0_i32_0 = arith.constant 0 : i32
    %c0_i32_1 = arith.constant 0 : i32
    return %c0_i32, %c0_i32_0 : i32, i32
  }
  func.func @transform_3(%arg0: i32) -> (i32, i32) {
    %c0_i32 = arith.constant 0 : i32
    %c0_i32_0 = arith.constant 0 : i32
    %c0_i32_1 = arith.constant 0 : i32
    return %c0_i32, %c0_i32_0 : i32, i32
  }
  func.func @transform_4(%arg0: i32) -> (i32, i32) {
    %c0_i32 = arith.constant 0 : i32
    %c0_i32_0 = arith.constant 0 : i32
    %c0_i32_1 = arith.constant 0 : i32
    return %c0_i32, %c0_i32_0 : i32, i32
  }
  func.func @transform_5(%arg0: i32) -> (i32, i32) {
    %c0_i32 = arith.constant 0 : i32
    %c0_i32_0 = arith.constant 0 : i32
    %c0_i32_1 = arith.constant 0 : i32
    return %c0_i32, %c0_i32_0 : i32, i32
  }
  func.func @transform_6(%arg0: i32) -> (i32, i32) {
    %c0_i32 = arith.constant 0 : i32
    %c0_i32_0 = arith.constant 0 : i32
    %c0_i32_1 = arith.constant 0 : i32
    return %c0_i32, %c0_i32_0 : i32, i32
  }
}

module attributes {stable_mosaic.version = 11 : i64} {
  func.func @_encoder_layer_kernel(%arg0: i32, %arg1: memref<1x4x32xf32, #tpu.memory_space<vmem>>, %arg2: memref<12x32x8xf32, #tpu.memory_space<vmem>>, %arg3: memref<12x1x8xf32, #tpu.memory_space<vmem>>, %arg4: memref<4x8x32xf32, #tpu.memory_space<vmem>>, %arg5: memref<1x32xf32, #tpu.memory_space<vmem>>, %arg6: memref<1x32xf32, #tpu.memory_space<vmem>>, %arg7: memref<1x32xf32, #tpu.memory_space<vmem>>, %arg8: memref<32x128xf32, #tpu.memory_space<vmem>>, %arg9: memref<1x128xf32, #tpu.memory_space<vmem>>, %arg10: memref<128x32xf32, #tpu.memory_space<vmem>>, %arg11: memref<1x32xf32, #tpu.memory_space<vmem>>, %arg12: memref<1x32xf32, #tpu.memory_space<vmem>>, %arg13: memref<1x32xf32, #tpu.memory_space<vmem>>, %arg14: memref<1x4x32xf32, #tpu.memory_space<vmem>>) attributes {dimension_semantics = [#tpu.dimension_semantics<parallel>], iteration_bounds = array<i64: 2>, scalar_prefetch = 0 : i64, scratch_operands = 0 : i64, tpu.core_type = #tpu.core_type<tc>, window_params = [{transform_indices = @transform_0, window_bounds = array<i64: 1, 4, 32>}, {pipeline_mode = #tpu.pipeline_mode<synchronous>, transform_indices = @transform_1, window_bounds = array<i64: 12, 32, 8>}, {pipeline_mode = #tpu.pipeline_mode<synchronous>, transform_indices = @transform_2, window_bounds = array<i64: 12, 1, 8>}, {pipeline_mode = #tpu.pipeline_mode<synchronous>, transform_indices = @transform_3, window_bounds = array<i64: 4, 8, 32>}, {pipeline_mode = #tpu.pipeline_mode<synchronous>, transform_indices = @transform_4, window_bounds = array<i64: 1, 32>}, {pipeline_mode = #tpu.pipeline_mode<synchronous>, transform_indices = @transform_5, window_bounds = array<i64: 1, 32>}, {pipeline_mode = #tpu.pipeline_mode<synchronous>, transform_indices = @transform_6, window_bounds = array<i64: 1, 32>}, {pipeline_mode = #tpu.pipeline_mode<synchronous>, transform_indices = @transform_7, window_bounds = array<i64: 32, 128>}, {pipeline_mode = #tpu.pipeline_mode<synchronous>, transform_indices = @transform_8, window_bounds = array<i64: 1, 128>}, {pipeline_mode = #tpu.pipeline_mode<synchronous>, transform_indices = @transform_9, window_bounds = array<i64: 128, 32>}, {pipeline_mode = #tpu.pipeline_mode<synchronous>, transform_indices = @transform_10, window_bounds = array<i64: 1, 32>}, {pipeline_mode = #tpu.pipeline_mode<synchronous>, transform_indices = @transform_11, window_bounds = array<i64: 1, 32>}, {pipeline_mode = #tpu.pipeline_mode<synchronous>, transform_indices = @transform_12, window_bounds = array<i64: 1, 32>}, {transform_indices = @transform_13, window_bounds = array<i64: 1, 4, 32>}]} {
    %c0 = arith.constant 0 : index
    %c0_0 = arith.constant 0 : index
    %c0_1 = arith.constant 0 : index
    %0 = vector.load %arg1[%c0, %c0_0, %c0_1] : memref<1x4x32xf32, #tpu.memory_space<vmem>>, vector<1x4x32xf32>
    %1 = vector.shape_cast %0 : vector<1x4x32xf32> to vector<4x32xf32>
    %2 = arith.truncf %1 : vector<4x32xf32> to vector<4x32xbf16>
    %3 = arith.truncf %1 : vector<4x32xf32> to vector<4x32xbf16>
    %cst = arith.constant 0.000000e+00 : f32
    %4 = vector.broadcast %cst : f32 to vector<4x32xf32>
    %c0_2 = arith.constant 0 : index
    %c0_3 = arith.constant 0 : index
    %c0_4 = arith.constant 0 : index
    %5 = vector.load %arg2[%c0_2, %c0_3, %c0_4] : memref<12x32x8xf32, #tpu.memory_space<vmem>>, vector<1x32x8xf32>
    %6 = vector.shape_cast %5 : vector<1x32x8xf32> to vector<32x8xf32>
    %7 = arith.truncf %6 : vector<32x8xf32> to vector<32x8xbf16>
    %c4 = arith.constant 4 : index
    %c0_5 = arith.constant 0 : index
    %c0_6 = arith.constant 0 : index
    %8 = vector.load %arg2[%c4, %c0_5, %c0_6] : memref<12x32x8xf32, #tpu.memory_space<vmem>>, vector<1x32x8xf32>
    %9 = vector.shape_cast %8 : vector<1x32x8xf32> to vector<32x8xf32>
    %10 = arith.truncf %9 : vector<32x8xf32> to vector<32x8xbf16>
    %c8 = arith.constant 8 : index
    %c0_7 = arith.constant 0 : index
    %c0_8 = arith.constant 0 : index
    %11 = vector.load %arg2[%c8, %c0_7, %c0_8] : memref<12x32x8xf32, #tpu.memory_space<vmem>>, vector<1x32x8xf32>
    %12 = vector.shape_cast %11 : vector<1x32x8xf32> to vector<32x8xf32>
    %13 = arith.truncf %12 : vector<32x8xf32> to vector<32x8xbf16>
    %cst_9 = arith.constant dense<0.000000e+00> : vector<4x8xf32>
    %14 = tpu.matmul %2, %7, %cst_9 {dimension_numbers = #tpu.dot_dimension_numbers<[1], [0], [0], [1], [0, 0, 1, 1], [], []>} : vector<4x32xbf16>, vector<32x8xbf16>, vector<4x8xf32> -> vector<4x8xf32>
    %c0_10 = arith.constant 0 : index
    %c0_11 = arith.constant 0 : index
    %c0_12 = arith.constant 0 : index
    %15 = vector.load %arg3[%c0_10, %c0_11, %c0_12] : memref<12x1x8xf32, #tpu.memory_space<vmem>>, vector<1x1x8xf32>
    %16 = vector.shape_cast %15 : vector<1x1x8xf32> to vector<1x8xf32>
    %17 = vector.broadcast %16 : vector<1x8xf32> to vector<4x8xf32>
    %18 = arith.addf %14, %17 : vector<4x8xf32>
    %cst_13 = arith.constant dense<0.000000e+00> : vector<4x8xf32>
    %19 = tpu.matmul %3, %10, %cst_13 {dimension_numbers = #tpu.dot_dimension_numbers<[1], [0], [0], [1], [0, 0, 1, 1], [], []>} : vector<4x32xbf16>, vector<32x8xbf16>, vector<4x8xf32> -> vector<4x8xf32>
    %c4_14 = arith.constant 4 : index
    %c0_15 = arith.constant 0 : index
    %c0_16 = arith.constant 0 : index
    %20 = vector.load %arg3[%c4_14, %c0_15, %c0_16] : memref<12x1x8xf32, #tpu.memory_space<vmem>>, vector<1x1x8xf32>
    %21 = vector.shape_cast %20 : vector<1x1x8xf32> to vector<1x8xf32>
    %22 = vector.broadcast %21 : vector<1x8xf32> to vector<4x8xf32>
    %23 = arith.addf %19, %22 : vector<4x8xf32>
    %cst_17 = arith.constant dense<0.000000e+00> : vector<4x8xf32>
    %24 = tpu.matmul %3, %13, %cst_17 {dimension_numbers = #tpu.dot_dimension_numbers<[1], [0], [0], [1], [0, 0, 1, 1], [], []>} : vector<4x32xbf16>, vector<32x8xbf16>, vector<4x8xf32> -> vector<4x8xf32>
    %c8_18 = arith.constant 8 : index
    %c0_19 = arith.constant 0 : index
    %c0_20 = arith.constant 0 : index
    %25 = vector.load %arg3[%c8_18, %c0_19, %c0_20] : memref<12x1x8xf32, #tpu.memory_space<vmem>>, vector<1x1x8xf32>
    %26 = vector.shape_cast %25 : vector<1x1x8xf32> to vector<1x8xf32>
    %27 = vector.broadcast %26 : vector<1x8xf32> to vector<4x8xf32>
    %28 = arith.addf %24, %27 : vector<4x8xf32>
    %29 = arith.truncf %18 : vector<4x8xf32> to vector<4x8xbf16>
    %30 = arith.truncf %23 : vector<4x8xf32> to vector<4x8xbf16>
    %cst_21 = arith.constant dense<0.000000e+00> : vector<4x4xf32>
    %31 = tpu.matmul %29, %30, %cst_21 {dimension_numbers = #tpu.dot_dimension_numbers<[1], [1], [0], [0], [0, 0, 1, 0], [], []>} : vector<4x8xbf16>, vector<4x8xbf16>, vector<4x4xf32> -> vector<4x4xf32>
    %cst_22 = arith.constant 0.353553385 : f32
    %32 = vector.broadcast %cst_22 : f32 to vector<4x4xf32>
    %33 = arith.mulf %31, %32 : vector<4x4xf32>
    %cst_23 = arith.constant dense<0xFF800000> : vector<4xf32>
    %34 = vector.multi_reduction <maximumf>, %33, %cst_23 [1] : vector<4x4xf32> to vector<4xf32>
    %35 = vector.shape_cast %34 : vector<4xf32> to vector<4x1xf32>
    %36 = vector.broadcast %35 : vector<4x1xf32> to vector<4x4xf32>
    %37 = arith.subf %33, %36 : vector<4x4xf32>
    %38 = math.exp %37 : vector<4x4xf32>
    %cst_24 = arith.constant dense<0.000000e+00> : vector<4xf32>
    %39 = vector.multi_reduction <add>, %38, %cst_24 [1] : vector<4x4xf32> to vector<4xf32>
    %40 = vector.shape_cast %39 : vector<4xf32> to vector<4x1xf32>
    %41 = tpu.reciprocal %40 {approx = true} : vector<4x1xf32> -> vector<4x1xf32>
    %42 = vector.broadcast %41 : vector<4x1xf32> to vector<4x4xf32>
    %43 = arith.mulf %38, %42 : vector<4x4xf32>
    %44 = arith.truncf %43 : vector<4x4xf32> to vector<4x4xbf16>
    %45 = arith.truncf %28 : vector<4x8xf32> to vector<4x8xbf16>
    %cst_25 = arith.constant dense<0.000000e+00> : vector<4x8xf32>
    %46 = tpu.matmul %44, %45, %cst_25 {dimension_numbers = #tpu.dot_dimension_numbers<[1], [0], [0], [1], [0, 0, 1, 1], [], []>} : vector<4x4xbf16>, vector<4x8xbf16>, vector<4x8xf32> -> vector<4x8xf32>
    %47 = arith.truncf %46 : vector<4x8xf32> to vector<4x8xbf16>
    %c0_26 = arith.constant 0 : index
    %c0_27 = arith.constant 0 : index
    %c0_28 = arith.constant 0 : index
    %48 = vector.load %arg4[%c0_26, %c0_27, %c0_28] : memref<4x8x32xf32, #tpu.memory_space<vmem>>, vector<1x8x32xf32>
    %49 = vector.shape_cast %48 : vector<1x8x32xf32> to vector<8x32xf32>
    %50 = arith.truncf %49 : vector<8x32xf32> to vector<8x32xbf16>
    %cst_29 = arith.constant dense<0.000000e+00> : vector<4x32xf32>
    %51 = tpu.matmul %47, %50, %cst_29 {dimension_numbers = #tpu.dot_dimension_numbers<[1], [0], [0], [1], [0, 0, 1, 1], [], []>} : vector<4x8xbf16>, vector<8x32xbf16>, vector<4x32xf32> -> vector<4x32xf32>
    %52 = arith.addf %4, %51 : vector<4x32xf32>
    %c1 = arith.constant 1 : index
    %c0_30 = arith.constant 0 : index
    %c0_31 = arith.constant 0 : index
    %53 = vector.load %arg2[%c1, %c0_30, %c0_31] : memref<12x32x8xf32, #tpu.memory_space<vmem>>, vector<1x32x8xf32>
    %54 = vector.shape_cast %53 : vector<1x32x8xf32> to vector<32x8xf32>
    %55 = arith.truncf %54 : vector<32x8xf32> to vector<32x8xbf16>
    %c5 = arith.constant 5 : index
    %c0_32 = arith.constant 0 : index
    %c0_33 = arith.constant 0 : index
    %56 = vector.load %arg2[%c5, %c0_32, %c0_33] : memref<12x32x8xf32, #tpu.memory_space<vmem>>, vector<1x32x8xf32>
    %57 = vector.shape_cast %56 : vector<1x32x8xf32> to vector<32x8xf32>
    %58 = arith.truncf %57 : vector<32x8xf32> to vector<32x8xbf16>
    %c9 = arith.constant 9 : index
    %c0_34 = arith.constant 0 : index
    %c0_35 = arith.constant 0 : index
    %59 = vector.load %arg2[%c9, %c0_34, %c0_35] : memref<12x32x8xf32, #tpu.memory_space<vmem>>, vector<1x32x8xf32>
    %60 = vector.shape_cast %59 : vector<1x32x8xf32> to vector<32x8xf32>
    %61 = arith.truncf %60 : vector<32x8xf32> to vector<32x8xbf16>
    %cst_36 = arith.constant dense<0.000000e+00> : vector<4x8xf32>
    %62 = tpu.matmul %2, %55, %cst_36 {dimension_numbers = #tpu.dot_dimension_numbers<[1], [0], [0], [1], [0, 0, 1, 1], [], []>} : vector<4x32xbf16>, vector<32x8xbf16>, vector<4x8xf32> -> vector<4x8xf32>
    %c1_37 = arith.constant 1 : index
    %c0_38 = arith.constant 0 : index
    %c0_39 = arith.constant 0 : index
    %63 = vector.load %arg3[%c1_37, %c0_38, %c0_39] : memref<12x1x8xf32, #tpu.memory_space<vmem>>, vector<1x1x8xf32>
    %64 = vector.shape_cast %63 : vector<1x1x8xf32> to vector<1x8xf32>
    %65 = vector.broadcast %64 : vector<1x8xf32> to vector<4x8xf32>
    %66 = arith.addf %62, %65 : vector<4x8xf32>
    %cst_40 = arith.constant dense<0.000000e+00> : vector<4x8xf32>
    %67 = tpu.matmul %3, %58, %cst_40 {dimension_numbers = #tpu.dot_dimension_numbers<[1], [0], [0], [1], [0, 0, 1, 1], [], []>} : vector<4x32xbf16>, vector<32x8xbf16>, vector<4x8xf32> -> vector<4x8xf32>
    %c5_41 = arith.constant 5 : index
    %c0_42 = arith.constant 0 : index
    %c0_43 = arith.constant 0 : index
    %68 = vector.load %arg3[%c5_41, %c0_42, %c0_43] : memref<12x1x8xf32, #tpu.memory_space<vmem>>, vector<1x1x8xf32>
    %69 = vector.shape_cast %68 : vector<1x1x8xf32> to vector<1x8xf32>
    %70 = vector.broadcast %69 : vector<1x8xf32> to vector<4x8xf32>
    %71 = arith.addf %67, %70 : vector<4x8xf32>
    %cst_44 = arith.constant dense<0.000000e+00> : vector<4x8xf32>
    %72 = tpu.matmul %3, %61, %cst_44 {dimension_numbers = #tpu.dot_dimension_numbers<[1], [0], [0], [1], [0, 0, 1, 1], [], []>} : vector<4x32xbf16>, vector<32x8xbf16>, vector<4x8xf32> -> vector<4x8xf32>
    %c9_45 = arith.constant 9 : index
    %c0_46 = arith.constant 0 : index
    %c0_47 = arith.constant 0 : index
    %73 = vector.load %arg3[%c9_45, %c0_46, %c0_47] : memref<12x1x8xf32, #tpu.memory_space<vmem>>, vector<1x1x8xf32>
    %74 = vector.shape_cast %73 : vector<1x1x8xf32> to vector<1x8xf32>
    %75 = vector.broadcast %74 : vector<1x8xf32> to vector<4x8xf32>
    %76 = arith.addf %72, %75 : vector<4x8xf32>
    %77 = arith.truncf %66 : vector<4x8xf32> to vector<4x8xbf16>
    %78 = arith.truncf %71 : vector<4x8xf32> to vector<4x8xbf16>
    %cst_48 = arith.constant dense<0.000000e+00> : vector<4x4xf32>
    %79 = tpu.matmul %77, %78, %cst_48 {dimension_numbers = #tpu.dot_dimension_numbers<[1], [1], [0], [0], [0, 0, 1, 0], [], []>} : vector<4x8xbf16>, vector<4x8xbf16>, vector<4x4xf32> -> vector<4x4xf32>
    %cst_49 = arith.constant 0.353553385 : f32
    %80 = vector.broadcast %cst_49 : f32 to vector<4x4xf32>
    %81 = arith.mulf %79, %80 : vector<4x4xf32>
    %cst_50 = arith.constant dense<0xFF800000> : vector<4xf32>
    %82 = vector.multi_reduction <maximumf>, %81, %cst_50 [1] : vector<4x4xf32> to vector<4xf32>
    %83 = vector.shape_cast %82 : vector<4xf32> to vector<4x1xf32>
    %84 = vector.broadcast %83 : vector<4x1xf32> to vector<4x4xf32>
    %85 = arith.subf %81, %84 : vector<4x4xf32>
    %86 = math.exp %85 : vector<4x4xf32>
    %cst_51 = arith.constant dense<0.000000e+00> : vector<4xf32>
    %87 = vector.multi_reduction <add>, %86, %cst_51 [1] : vector<4x4xf32> to vector<4xf32>
    %88 = vector.shape_cast %87 : vector<4xf32> to vector<4x1xf32>
    %89 = tpu.reciprocal %88 {approx = true} : vector<4x1xf32> -> vector<4x1xf32>
    %90 = vector.broadcast %89 : vector<4x1xf32> to vector<4x4xf32>
    %91 = arith.mulf %86, %90 : vector<4x4xf32>
    %92 = arith.truncf %91 : vector<4x4xf32> to vector<4x4xbf16>
    %93 = arith.truncf %76 : vector<4x8xf32> to vector<4x8xbf16>
    %cst_52 = arith.constant dense<0.000000e+00> : vector<4x8xf32>
    %94 = tpu.matmul %92, %93, %cst_52 {dimension_numbers = #tpu.dot_dimension_numbers<[1], [0], [0], [1], [0, 0, 1, 1], [], []>} : vector<4x4xbf16>, vector<4x8xbf16>, vector<4x8xf32> -> vector<4x8xf32>
    %95 = arith.truncf %94 : vector<4x8xf32> to vector<4x8xbf16>
    %c1_53 = arith.constant 1 : index
    %c0_54 = arith.constant 0 : index
    %c0_55 = arith.constant 0 : index
    %96 = vector.load %arg4[%c1_53, %c0_54, %c0_55] : memref<4x8x32xf32, #tpu.memory_space<vmem>>, vector<1x8x32xf32>
    %97 = vector.shape_cast %96 : vector<1x8x32xf32> to vector<8x32xf32>
    %98 = arith.truncf %97 : vector<8x32xf32> to vector<8x32xbf16>
    %cst_56 = arith.constant dense<0.000000e+00> : vector<4x32xf32>
    %99 = tpu.matmul %95, %98, %cst_56 {dimension_numbers = #tpu.dot_dimension_numbers<[1], [0], [0], [1], [0, 0, 1, 1], [], []>} : vector<4x8xbf16>, vector<8x32xbf16>, vector<4x32xf32> -> vector<4x32xf32>
    %100 = arith.addf %52, %99 : vector<4x32xf32>
    %c2 = arith.constant 2 : index
    %c0_57 = arith.constant 0 : index
    %c0_58 = arith.constant 0 : index
    %101 = vector.load %arg2[%c2, %c0_57, %c0_58] : memref<12x32x8xf32, #tpu.memory_space<vmem>>, vector<1x32x8xf32>
    %102 = vector.shape_cast %101 : vector<1x32x8xf32> to vector<32x8xf32>
    %103 = arith.truncf %102 : vector<32x8xf32> to vector<32x8xbf16>
    %c6 = arith.constant 6 : index
    %c0_59 = arith.constant 0 : index
    %c0_60 = arith.constant 0 : index
    %104 = vector.load %arg2[%c6, %c0_59, %c0_60] : memref<12x32x8xf32, #tpu.memory_space<vmem>>, vector<1x32x8xf32>
    %105 = vector.shape_cast %104 : vector<1x32x8xf32> to vector<32x8xf32>
    %106 = arith.truncf %105 : vector<32x8xf32> to vector<32x8xbf16>
    %c10 = arith.constant 10 : index
    %c0_61 = arith.constant 0 : index
    %c0_62 = arith.constant 0 : index
    %107 = vector.load %arg2[%c10, %c0_61, %c0_62] : memref<12x32x8xf32, #tpu.memory_space<vmem>>, vector<1x32x8xf32>
    %108 = vector.shape_cast %107 : vector<1x32x8xf32> to vector<32x8xf32>
    %109 = arith.truncf %108 : vector<32x8xf32> to vector<32x8xbf16>
    %cst_63 = arith.constant dense<0.000000e+00> : vector<4x8xf32>
    %110 = tpu.matmul %2, %103, %cst_63 {dimension_numbers = #tpu.dot_dimension_numbers<[1], [0], [0], [1], [0, 0, 1, 1], [], []>} : vector<4x32xbf16>, vector<32x8xbf16>, vector<4x8xf32> -> vector<4x8xf32>
    %c2_64 = arith.constant 2 : index
    %c0_65 = arith.constant 0 : index
    %c0_66 = arith.constant 0 : index
    %111 = vector.load %arg3[%c2_64, %c0_65, %c0_66] : memref<12x1x8xf32, #tpu.memory_space<vmem>>, vector<1x1x8xf32>
    %112 = vector.shape_cast %111 : vector<1x1x8xf32> to vector<1x8xf32>
    %113 = vector.broadcast %112 : vector<1x8xf32> to vector<4x8xf32>
    %114 = arith.addf %110, %113 : vector<4x8xf32>
    %cst_67 = arith.constant dense<0.000000e+00> : vector<4x8xf32>
    %115 = tpu.matmul %3, %106, %cst_67 {dimension_numbers = #tpu.dot_dimension_numbers<[1], [0], [0], [1], [0, 0, 1, 1], [], []>} : vector<4x32xbf16>, vector<32x8xbf16>, vector<4x8xf32> -> vector<4x8xf32>
    %c6_68 = arith.constant 6 : index
    %c0_69 = arith.constant 0 : index
    %c0_70 = arith.constant 0 : index
    %116 = vector.load %arg3[%c6_68, %c0_69, %c0_70] : memref<12x1x8xf32, #tpu.memory_space<vmem>>, vector<1x1x8xf32>
    %117 = vector.shape_cast %116 : vector<1x1x8xf32> to vector<1x8xf32>
    %118 = vector.broadcast %117 : vector<1x8xf32> to vector<4x8xf32>
    %119 = arith.addf %115, %118 : vector<4x8xf32>
    %cst_71 = arith.constant dense<0.000000e+00> : vector<4x8xf32>
    %120 = tpu.matmul %3, %109, %cst_71 {dimension_numbers = #tpu.dot_dimension_numbers<[1], [0], [0], [1], [0, 0, 1, 1], [], []>} : vector<4x32xbf16>, vector<32x8xbf16>, vector<4x8xf32> -> vector<4x8xf32>
    %c10_72 = arith.constant 10 : index
    %c0_73 = arith.constant 0 : index
    %c0_74 = arith.constant 0 : index
    %121 = vector.load %arg3[%c10_72, %c0_73, %c0_74] : memref<12x1x8xf32, #tpu.memory_space<vmem>>, vector<1x1x8xf32>
    %122 = vector.shape_cast %121 : vector<1x1x8xf32> to vector<1x8xf32>
    %123 = vector.broadcast %122 : vector<1x8xf32> to vector<4x8xf32>
    %124 = arith.addf %120, %123 : vector<4x8xf32>
    %125 = arith.truncf %114 : vector<4x8xf32> to vector<4x8xbf16>
    %126 = arith.truncf %119 : vector<4x8xf32> to vector<4x8xbf16>
    %cst_75 = arith.constant dense<0.000000e+00> : vector<4x4xf32>
    %127 = tpu.matmul %125, %126, %cst_75 {dimension_numbers = #tpu.dot_dimension_numbers<[1], [1], [0], [0], [0, 0, 1, 0], [], []>} : vector<4x8xbf16>, vector<4x8xbf16>, vector<4x4xf32> -> vector<4x4xf32>
    %cst_76 = arith.constant 0.353553385 : f32
    %128 = vector.broadcast %cst_76 : f32 to vector<4x4xf32>
    %129 = arith.mulf %127, %128 : vector<4x4xf32>
    %cst_77 = arith.constant dense<0xFF800000> : vector<4xf32>
    %130 = vector.multi_reduction <maximumf>, %129, %cst_77 [1] : vector<4x4xf32> to vector<4xf32>
    %131 = vector.shape_cast %130 : vector<4xf32> to vector<4x1xf32>
    %132 = vector.broadcast %131 : vector<4x1xf32> to vector<4x4xf32>
    %133 = arith.subf %129, %132 : vector<4x4xf32>
    %134 = math.exp %133 : vector<4x4xf32>
    %cst_78 = arith.constant dense<0.000000e+00> : vector<4xf32>
    %135 = vector.multi_reduction <add>, %134, %cst_78 [1] : vector<4x4xf32> to vector<4xf32>
    %136 = vector.shape_cast %135 : vector<4xf32> to vector<4x1xf32>
    %137 = tpu.reciprocal %136 {approx = true} : vector<4x1xf32> -> vector<4x1xf32>
    %138 = vector.broadcast %137 : vector<4x1xf32> to vector<4x4xf32>
    %139 = arith.mulf %134, %138 : vector<4x4xf32>
    %140 = arith.truncf %139 : vector<4x4xf32> to vector<4x4xbf16>
    %141 = arith.truncf %124 : vector<4x8xf32> to vector<4x8xbf16>
    %cst_79 = arith.constant dense<0.000000e+00> : vector<4x8xf32>
    %142 = tpu.matmul %140, %141, %cst_79 {dimension_numbers = #tpu.dot_dimension_numbers<[1], [0], [0], [1], [0, 0, 1, 1], [], []>} : vector<4x4xbf16>, vector<4x8xbf16>, vector<4x8xf32> -> vector<4x8xf32>
    %143 = arith.truncf %142 : vector<4x8xf32> to vector<4x8xbf16>
    %c2_80 = arith.constant 2 : index
    %c0_81 = arith.constant 0 : index
    %c0_82 = arith.constant 0 : index
    %144 = vector.load %arg4[%c2_80, %c0_81, %c0_82] : memref<4x8x32xf32, #tpu.memory_space<vmem>>, vector<1x8x32xf32>
    %145 = vector.shape_cast %144 : vector<1x8x32xf32> to vector<8x32xf32>
    %146 = arith.truncf %145 : vector<8x32xf32> to vector<8x32xbf16>
    %cst_83 = arith.constant dense<0.000000e+00> : vector<4x32xf32>
    %147 = tpu.matmul %143, %146, %cst_83 {dimension_numbers = #tpu.dot_dimension_numbers<[1], [0], [0], [1], [0, 0, 1, 1], [], []>} : vector<4x8xbf16>, vector<8x32xbf16>, vector<4x32xf32> -> vector<4x32xf32>
    %148 = arith.addf %100, %147 : vector<4x32xf32>
    %c3 = arith.constant 3 : index
    %c0_84 = arith.constant 0 : index
    %c0_85 = arith.constant 0 : index
    %149 = vector.load %arg2[%c3, %c0_84, %c0_85] : memref<12x32x8xf32, #tpu.memory_space<vmem>>, vector<1x32x8xf32>
    %150 = vector.shape_cast %149 : vector<1x32x8xf32> to vector<32x8xf32>
    %151 = arith.truncf %150 : vector<32x8xf32> to vector<32x8xbf16>
    %c7 = arith.constant 7 : index
    %c0_86 = arith.constant 0 : index
    %c0_87 = arith.constant 0 : index
    %152 = vector.load %arg2[%c7, %c0_86, %c0_87] : memref<12x32x8xf32, #tpu.memory_space<vmem>>, vector<1x32x8xf32>
    %153 = vector.shape_cast %152 : vector<1x32x8xf32> to vector<32x8xf32>
    %154 = arith.truncf %153 : vector<32x8xf32> to vector<32x8xbf16>
    %c11 = arith.constant 11 : index
    %c0_88 = arith.constant 0 : index
    %c0_89 = arith.constant 0 : index
    %155 = vector.load %arg2[%c11, %c0_88, %c0_89] : memref<12x32x8xf32, #tpu.memory_space<vmem>>, vector<1x32x8xf32>
    %156 = vector.shape_cast %155 : vector<1x32x8xf32> to vector<32x8xf32>
    %157 = arith.truncf %156 : vector<32x8xf32> to vector<32x8xbf16>
    %cst_90 = arith.constant dense<0.000000e+00> : vector<4x8xf32>
    %158 = tpu.matmul %2, %151, %cst_90 {dimension_numbers = #tpu.dot_dimension_numbers<[1], [0], [0], [1], [0, 0, 1, 1], [], []>} : vector<4x32xbf16>, vector<32x8xbf16>, vector<4x8xf32> -> vector<4x8xf32>
    %c3_91 = arith.constant 3 : index
    %c0_92 = arith.constant 0 : index
    %c0_93 = arith.constant 0 : index
    %159 = vector.load %arg3[%c3_91, %c0_92, %c0_93] : memref<12x1x8xf32, #tpu.memory_space<vmem>>, vector<1x1x8xf32>
    %160 = vector.shape_cast %159 : vector<1x1x8xf32> to vector<1x8xf32>
    %161 = vector.broadcast %160 : vector<1x8xf32> to vector<4x8xf32>
    %162 = arith.addf %158, %161 : vector<4x8xf32>
    %cst_94 = arith.constant dense<0.000000e+00> : vector<4x8xf32>
    %163 = tpu.matmul %3, %154, %cst_94 {dimension_numbers = #tpu.dot_dimension_numbers<[1], [0], [0], [1], [0, 0, 1, 1], [], []>} : vector<4x32xbf16>, vector<32x8xbf16>, vector<4x8xf32> -> vector<4x8xf32>
    %c7_95 = arith.constant 7 : index
    %c0_96 = arith.constant 0 : index
    %c0_97 = arith.constant 0 : index
    %164 = vector.load %arg3[%c7_95, %c0_96, %c0_97] : memref<12x1x8xf32, #tpu.memory_space<vmem>>, vector<1x1x8xf32>
    %165 = vector.shape_cast %164 : vector<1x1x8xf32> to vector<1x8xf32>
    %166 = vector.broadcast %165 : vector<1x8xf32> to vector<4x8xf32>
    %167 = arith.addf %163, %166 : vector<4x8xf32>
    %cst_98 = arith.constant dense<0.000000e+00> : vector<4x8xf32>
    %168 = tpu.matmul %3, %157, %cst_98 {dimension_numbers = #tpu.dot_dimension_numbers<[1], [0], [0], [1], [0, 0, 1, 1], [], []>} : vector<4x32xbf16>, vector<32x8xbf16>, vector<4x8xf32> -> vector<4x8xf32>
    %c11_99 = arith.constant 11 : index
    %c0_100 = arith.constant 0 : index
    %c0_101 = arith.constant 0 : index
    %169 = vector.load %arg3[%c11_99, %c0_100, %c0_101] : memref<12x1x8xf32, #tpu.memory_space<vmem>>, vector<1x1x8xf32>
    %170 = vector.shape_cast %169 : vector<1x1x8xf32> to vector<1x8xf32>
    %171 = vector.broadcast %170 : vector<1x8xf32> to vector<4x8xf32>
    %172 = arith.addf %168, %171 : vector<4x8xf32>
    %173 = arith.truncf %162 : vector<4x8xf32> to vector<4x8xbf16>
    %174 = arith.truncf %167 : vector<4x8xf32> to vector<4x8xbf16>
    %cst_102 = arith.constant dense<0.000000e+00> : vector<4x4xf32>
    %175 = tpu.matmul %173, %174, %cst_102 {dimension_numbers = #tpu.dot_dimension_numbers<[1], [1], [0], [0], [0, 0, 1, 0], [], []>} : vector<4x8xbf16>, vector<4x8xbf16>, vector<4x4xf32> -> vector<4x4xf32>
    %cst_103 = arith.constant 0.353553385 : f32
    %176 = vector.broadcast %cst_103 : f32 to vector<4x4xf32>
    %177 = arith.mulf %175, %176 : vector<4x4xf32>
    %cst_104 = arith.constant dense<0xFF800000> : vector<4xf32>
    %178 = vector.multi_reduction <maximumf>, %177, %cst_104 [1] : vector<4x4xf32> to vector<4xf32>
    %179 = vector.shape_cast %178 : vector<4xf32> to vector<4x1xf32>
    %180 = vector.broadcast %179 : vector<4x1xf32> to vector<4x4xf32>
    %181 = arith.subf %177, %180 : vector<4x4xf32>
    %182 = math.exp %181 : vector<4x4xf32>
    %cst_105 = arith.constant dense<0.000000e+00> : vector<4xf32>
    %183 = vector.multi_reduction <add>, %182, %cst_105 [1] : vector<4x4xf32> to vector<4xf32>
    %184 = vector.shape_cast %183 : vector<4xf32> to vector<4x1xf32>
    %185 = tpu.reciprocal %184 {approx = true} : vector<4x1xf32> -> vector<4x1xf32>
    %186 = vector.broadcast %185 : vector<4x1xf32> to vector<4x4xf32>
    %187 = arith.mulf %182, %186 : vector<4x4xf32>
    %188 = arith.truncf %187 : vector<4x4xf32> to vector<4x4xbf16>
    %189 = arith.truncf %172 : vector<4x8xf32> to vector<4x8xbf16>
    %cst_106 = arith.constant dense<0.000000e+00> : vector<4x8xf32>
    %190 = tpu.matmul %188, %189, %cst_106 {dimension_numbers = #tpu.dot_dimension_numbers<[1], [0], [0], [1], [0, 0, 1, 1], [], []>} : vector<4x4xbf16>, vector<4x8xbf16>, vector<4x8xf32> -> vector<4x8xf32>
    %191 = arith.truncf %190 : vector<4x8xf32> to vector<4x8xbf16>
    %c3_107 = arith.constant 3 : index
    %c0_108 = arith.constant 0 : index
    %c0_109 = arith.constant 0 : index
    %192 = vector.load %arg4[%c3_107, %c0_108, %c0_109] : memref<4x8x32xf32, #tpu.memory_space<vmem>>, vector<1x8x32xf32>
    %193 = vector.shape_cast %192 : vector<1x8x32xf32> to vector<8x32xf32>
    %194 = arith.truncf %193 : vector<8x32xf32> to vector<8x32xbf16>
    %cst_110 = arith.constant dense<0.000000e+00> : vector<4x32xf32>
    %195 = tpu.matmul %191, %194, %cst_110 {dimension_numbers = #tpu.dot_dimension_numbers<[1], [0], [0], [1], [0, 0, 1, 1], [], []>} : vector<4x8xbf16>, vector<8x32xbf16>, vector<4x32xf32> -> vector<4x32xf32>
    %196 = arith.addf %148, %195 : vector<4x32xf32>
    %c0_111 = arith.constant 0 : index
    %c0_112 = arith.constant 0 : index
    %197 = vector.load %arg5[%c0_111, %c0_112] : memref<1x32xf32, #tpu.memory_space<vmem>>, vector<1x32xf32>
    %198 = vector.broadcast %197 : vector<1x32xf32> to vector<4x32xf32>
    %199 = arith.addf %196, %198 : vector<4x32xf32>
    %200 = arith.addf %1, %199 : vector<4x32xf32>
    %c0_113 = arith.constant 0 : index
    %c0_114 = arith.constant 0 : index
    %201 = vector.load %arg6[%c0_113, %c0_114] : memref<1x32xf32, #tpu.memory_space<vmem>>, vector<1x32xf32>
    %c0_115 = arith.constant 0 : index
    %c0_116 = arith.constant 0 : index
    %202 = vector.load %arg7[%c0_115, %c0_116] : memref<1x32xf32, #tpu.memory_space<vmem>>, vector<1x32xf32>
    %cst_117 = arith.constant dense<0.000000e+00> : vector<4xf32>
    %203 = vector.multi_reduction <add>, %200, %cst_117 [1] : vector<4x32xf32> to vector<4xf32>
    %204 = vector.shape_cast %203 : vector<4xf32> to vector<4x1xf32>
    %cst_118 = arith.constant 3.200000e+01 : f32
    %205 = vector.broadcast %cst_118 : f32 to vector<4x1xf32>
    %206 = arith.divf %204, %205 : vector<4x1xf32>
    %207 = vector.broadcast %206 : vector<4x1xf32> to vector<4x32xf32>
    %208 = arith.subf %200, %207 : vector<4x32xf32>
    %209 = arith.mulf %208, %208 : vector<4x32xf32>
    %cst_119 = arith.constant dense<0.000000e+00> : vector<4xf32>
    %210 = vector.multi_reduction <add>, %209, %cst_119 [1] : vector<4x32xf32> to vector<4xf32>
    %211 = vector.shape_cast %210 : vector<4xf32> to vector<4x1xf32>
    %cst_120 = arith.constant 3.200000e+01 : f32
    %212 = vector.broadcast %cst_120 : f32 to vector<4x1xf32>
    %213 = arith.divf %211, %212 : vector<4x1xf32>
    %cst_121 = arith.constant 9.99999974E-6 : f32
    %214 = vector.broadcast %cst_121 : f32 to vector<4x1xf32>
    %215 = arith.addf %213, %214 : vector<4x1xf32>
    %216 = math.rsqrt %215 : vector<4x1xf32>
    %217 = vector.broadcast %216 : vector<4x1xf32> to vector<4x32xf32>
    %218 = arith.mulf %208, %217 : vector<4x32xf32>
    %219 = vector.broadcast %201 : vector<1x32xf32> to vector<4x32xf32>
    %220 = arith.mulf %218, %219 : vector<4x32xf32>
    %221 = vector.broadcast %202 : vector<1x32xf32> to vector<4x32xf32>
    %222 = arith.addf %220, %221 : vector<4x32xf32>
    %223 = arith.truncf %222 : vector<4x32xf32> to vector<4x32xbf16>
    %c0_122 = arith.constant 0 : index
    %c0_123 = arith.constant 0 : index
    %224 = vector.load %arg8[%c0_122, %c0_123] : memref<32x128xf32, #tpu.memory_space<vmem>>, vector<32x128xf32>
    %225 = arith.truncf %224 : vector<32x128xf32> to vector<32x128xbf16>
    %cst_124 = arith.constant dense<0.000000e+00> : vector<4x128xf32>
    %226 = tpu.matmul %223, %225, %cst_124 {dimension_numbers = #tpu.dot_dimension_numbers<[1], [0], [0], [1], [0, 0, 1, 1], [], []>} : vector<4x32xbf16>, vector<32x128xbf16>, vector<4x128xf32> -> vector<4x128xf32>
    %c0_125 = arith.constant 0 : index
    %c0_126 = arith.constant 0 : index
    %227 = vector.load %arg9[%c0_125, %c0_126] : memref<1x128xf32, #tpu.memory_space<vmem>>, vector<1x128xf32>
    %228 = vector.broadcast %227 : vector<1x128xf32> to vector<4x128xf32>
    %229 = arith.addf %226, %228 : vector<4x128xf32>
    %cst_127 = arith.constant 0.000000e+00 : f32
    %230 = vector.broadcast %cst_127 : f32 to vector<4x128xf32>
    %231 = arith.maximumf %229, %230 : vector<4x128xf32>
    %232 = arith.truncf %231 : vector<4x128xf32> to vector<4x128xbf16>
    %c0_128 = arith.constant 0 : index
    %c0_129 = arith.constant 0 : index
    %233 = vector.load %arg10[%c0_128, %c0_129] : memref<128x32xf32, #tpu.memory_space<vmem>>, vector<128x32xf32>
    %234 = arith.truncf %233 : vector<128x32xf32> to vector<128x32xbf16>
    %cst_130 = arith.constant dense<0.000000e+00> : vector<4x32xf32>
    %235 = tpu.matmul %232, %234, %cst_130 {dimension_numbers = #tpu.dot_dimension_numbers<[1], [0], [0], [1], [0, 0, 1, 1], [], []>} : vector<4x128xbf16>, vector<128x32xbf16>, vector<4x32xf32> -> vector<4x32xf32>
    %c0_131 = arith.constant 0 : index
    %c0_132 = arith.constant 0 : index
    %236 = vector.load %arg11[%c0_131, %c0_132] : memref<1x32xf32, #tpu.memory_space<vmem>>, vector<1x32xf32>
    %237 = vector.broadcast %236 : vector<1x32xf32> to vector<4x32xf32>
    %238 = arith.addf %235, %237 : vector<4x32xf32>
    %239 = arith.addf %222, %238 : vector<4x32xf32>
    %c0_133 = arith.constant 0 : index
    %c0_134 = arith.constant 0 : index
    %240 = vector.load %arg12[%c0_133, %c0_134] : memref<1x32xf32, #tpu.memory_space<vmem>>, vector<1x32xf32>
    %c0_135 = arith.constant 0 : index
    %c0_136 = arith.constant 0 : index
    %241 = vector.load %arg13[%c0_135, %c0_136] : memref<1x32xf32, #tpu.memory_space<vmem>>, vector<1x32xf32>
    %cst_137 = arith.constant dense<0.000000e+00> : vector<4xf32>
    %242 = vector.multi_reduction <add>, %239, %cst_137 [1] : vector<4x32xf32> to vector<4xf32>
    %243 = vector.shape_cast %242 : vector<4xf32> to vector<4x1xf32>
    %cst_138 = arith.constant 3.200000e+01 : f32
    %244 = vector.broadcast %cst_138 : f32 to vector<4x1xf32>
    %245 = arith.divf %243, %244 : vector<4x1xf32>
    %246 = vector.broadcast %245 : vector<4x1xf32> to vector<4x32xf32>
    %247 = arith.subf %239, %246 : vector<4x32xf32>
    %248 = arith.mulf %247, %247 : vector<4x32xf32>
    %cst_139 = arith.constant dense<0.000000e+00> : vector<4xf32>
    %249 = vector.multi_reduction <add>, %248, %cst_139 [1] : vector<4x32xf32> to vector<4xf32>
    %250 = vector.shape_cast %249 : vector<4xf32> to vector<4x1xf32>
    %cst_140 = arith.constant 3.200000e+01 : f32
    %251 = vector.broadcast %cst_140 : f32 to vector<4x1xf32>
    %252 = arith.divf %250, %251 : vector<4x1xf32>
    %cst_141 = arith.constant 9.99999974E-6 : f32
    %253 = vector.broadcast %cst_141 : f32 to vector<4x1xf32>
    %254 = arith.addf %252, %253 : vector<4x1xf32>
    %255 = math.rsqrt %254 : vector<4x1xf32>
    %256 = vector.broadcast %255 : vector<4x1xf32> to vector<4x32xf32>
    %257 = arith.mulf %247, %256 : vector<4x32xf32>
    %258 = vector.broadcast %240 : vector<1x32xf32> to vector<4x32xf32>
    %259 = arith.mulf %257, %258 : vector<4x32xf32>
    %260 = vector.broadcast %241 : vector<1x32xf32> to vector<4x32xf32>
    %261 = arith.addf %259, %260 : vector<4x32xf32>
    %c0_142 = arith.constant 0 : index
    %c0_143 = arith.constant 0 : index
    %c0_144 = arith.constant 0 : index
    %262 = vector.load %arg14[%c0_142, %c0_143, %c0_144] : memref<1x4x32xf32, #tpu.memory_space<vmem>>, vector<1x4x32xf32>
    %263 = vector.shape_cast %262 : vector<1x4x32xf32> to vector<4x32xf32>
    %264 = vector.shape_cast %261 : vector<4x32xf32> to vector<1x4x32xf32>
    tpu.vector_store %arg14[%c0_142, %c0_143, %c0_144], %264 {strides = array<i32>} : memref<1x4x32xf32, #tpu.memory_space<vmem>>, vector<1x4x32xf32>,
    return
  }
  func.func @transform_0(%arg0: i32) -> (i32, i32, i32) {
    %c0_i32 = arith.constant 0 : i32
    %c0_i32_0 = arith.constant 0 : i32
    %c0_i32_1 = arith.constant 0 : i32
    return %arg0, %c0_i32, %c0_i32_0 : i32, i32, i32
  }
  func.func @transform_1(%arg0: i32) -> (i32, i32, i32) {
    %c0_i32 = arith.constant 0 : i32
    %c0_i32_0 = arith.constant 0 : i32
    %c0_i32_1 = arith.constant 0 : i32
    %c0_i32_2 = arith.constant 0 : i32
    return %c0_i32, %c0_i32_0, %c0_i32_1 : i32, i32, i32
  }
  func.func @transform_2(%arg0: i32) -> (i32, i32, i32) {
    %c0_i32 = arith.constant 0 : i32
    %c0_i32_0 = arith.constant 0 : i32
    %c0_i32_1 = arith.constant 0 : i32
    %c0_i32_2 = arith.constant 0 : i32
    return %c0_i32, %c0_i32_0, %c0_i32_1 : i32, i32, i32
  }
  func.func @transform_3(%arg0: i32) -> (i32, i32, i32) {
    %c0_i32 = arith.constant 0 : i32
    %c0_i32_0 = arith.constant 0 : i32
    %c0_i32_1 = arith.constant 0 : i32
    %c0_i32_2 = arith.constant 0 : i32
    return %c0_i32, %c0_i32_0, %c0_i32_1 : i32, i32, i32
  }
  func.func @transform_4(%arg0: i32) -> (i32, i32) {
    %c0_i32 = arith.constant 0 : i32
    %c0_i32_0 = arith.constant 0 : i32
    %c0_i32_1 = arith.constant 0 : i32
    return %c0_i32, %c0_i32_0 : i32, i32
  }
  func.func @transform_5(%arg0: i32) -> (i32, i32) {
    %c0_i32 = arith.constant 0 : i32
    %c0_i32_0 = arith.constant 0 : i32
    %c0_i32_1 = arith.constant 0 : i32
    return %c0_i32, %c0_i32_0 : i32, i32
  }
  func.func @transform_6(%arg0: i32) -> (i32, i32) {
    %c0_i32 = arith.constant 0 : i32
    %c0_i32_0 = arith.constant 0 : i32
    %c0_i32_1 = arith.constant 0 : i32
    return %c0_i32, %c0_i32_0 : i32, i32
  }
  func.func @transform_7(%arg0: i32) -> (i32, i32) {
    %c0_i32 = arith.constant 0 : i32
    %c0_i32_0 = arith.constant 0 : i32
    %c0_i32_1 = arith.constant 0 : i32
    return %c0_i32, %c0_i32_0 : i32, i32
  }
  func.func @transform_8(%arg0: i32) -> (i32, i32) {
    %c0_i32 = arith.constant 0 : i32
    %c0_i32_0 = arith.constant 0 : i32
    %c0_i32_1 = arith.constant 0 : i32
    return %c0_i32, %c0_i32_0 : i32, i32
  }
  func.func @transform_9(%arg0: i32) -> (i32, i32) {
    %c0_i32 = arith.constant 0 : i32
    %c0_i32_0 = arith.constant 0 : i32
    %c0_i32_1 = arith.constant 0 : i32
    return %c0_i32, %c0_i32_0 : i32, i32
  }
  func.func @transform_10(%arg0: i32) -> (i32, i32) {
    %c0_i32 = arith.constant 0 : i32
    %c0_i32_0 = arith.constant 0 : i32
    %c0_i32_1 = arith.constant 0 : i32
    return %c0_i32, %c0_i32_0 : i32, i32
  }
  func.func @transform_11(%arg0: i32) -> (i32, i32) {
    %c0_i32 = arith.constant 0 : i32
    %c0_i32_0 = arith.constant 0 : i32
    %c0_i32_1 = arith.constant 0 : i32
    return %c0_i32, %c0_i32_0 : i32, i32
  }
  func.func @transform_12(%arg0: i32) -> (i32, i32) {
    %c0_i32 = arith.constant 0 : i32
    %c0_i32_0 = arith.constant 0 : i32
    %c0_i32_1 = arith.constant 0 : i32
    return %c0_i32, %c0_i32_0 : i32, i32
  }
  func.func @transform_13(%arg0: i32) -> (i32, i32, i32) {
    %c0_i32 = arith.constant 0 : i32
    %c0_i32_0 = arith.constant 0 : i32
    %c0_i32_1 = arith.constant 0 : i32
    return %arg0, %c0_i32, %c0_i32_0 : i32, i32, i32
  }
}

module attributes {stable_mosaic.version = 11 : i64} {
  func.func @_layernorm_kernel(%arg0: i32, %arg1: memref<8x32xf32, #tpu.memory_space<vmem>>, %arg2: memref<1x32xf32, #tpu.memory_space<vmem>>, %arg3: memref<1x32xf32, #tpu.memory_space<vmem>>, %arg4: memref<8x32xf32, #tpu.memory_space<vmem>>) attributes {dimension_semantics = [#tpu.dimension_semantics<arbitrary>], iteration_bounds = array<i64: 1>, scalar_prefetch = 0 : i64, scratch_operands = 0 : i64, tpu.core_type = #tpu.core_type<tc>, window_params = [{pipeline_mode = #tpu.pipeline_mode<synchronous>, transform_indices = @transform_0, window_bounds = array<i64: 8, 32>}, {pipeline_mode = #tpu.pipeline_mode<synchronous>, transform_indices = @transform_1, window_bounds = array<i64: 1, 32>}, {pipeline_mode = #tpu.pipeline_mode<synchronous>, transform_indices = @transform_2, window_bounds = array<i64: 1, 32>}, {pipeline_mode = #tpu.pipeline_mode<synchronous>, transform_indices = @transform_3, window_bounds = array<i64: 8, 32>}]} {
    %c0 = arith.constant 0 : index
    %c0_0 = arith.constant 0 : index
    %0 = vector.load %arg1[%c0, %c0_0] : memref<8x32xf32, #tpu.memory_space<vmem>>, vector<8x32xf32>
    %c0_1 = arith.constant 0 : index
    %c0_2 = arith.constant 0 : index
    %1 = vector.load %arg2[%c0_1, %c0_2] : memref<1x32xf32, #tpu.memory_space<vmem>>, vector<1x32xf32>
    %c0_3 = arith.constant 0 : index
    %c0_4 = arith.constant 0 : index
    %2 = vector.load %arg3[%c0_3, %c0_4] : memref<1x32xf32, #tpu.memory_space<vmem>>, vector<1x32xf32>
    %cst = arith.constant dense<0.000000e+00> : vector<8xf32>
    %3 = vector.multi_reduction <add>, %0, %cst [1] : vector<8x32xf32> to vector<8xf32>
    %4 = vector.shape_cast %3 : vector<8xf32> to vector<8x1xf32>
    %cst_5 = arith.constant 3.200000e+01 : f32
    %5 = vector.broadcast %cst_5 : f32 to vector<8x1xf32>
    %6 = arith.divf %4, %5 : vector<8x1xf32>
    %7 = vector.broadcast %6 : vector<8x1xf32> to vector<8x32xf32>
    %8 = arith.subf %0, %7 : vector<8x32xf32>
    %9 = arith.mulf %8, %8 : vector<8x32xf32>
    %cst_6 = arith.constant dense<0.000000e+00> : vector<8xf32>
    %10 = vector.multi_reduction <add>, %9, %cst_6 [1] : vector<8x32xf32> to vector<8xf32>
    %11 = vector.shape_cast %10 : vector<8xf32> to vector<8x1xf32>
    %cst_7 = arith.constant 3.200000e+01 : f32
    %12 = vector.broadcast %cst_7 : f32 to vector<8x1xf32>
    %13 = arith.divf %11, %12 : vector<8x1xf32>
    %cst_8 = arith.constant 9.99999974E-6 : f32
    %14 = vector.broadcast %cst_8 : f32 to vector<8x1xf32>
    %15 = arith.addf %13, %14 : vector<8x1xf32>
    %16 = math.rsqrt %15 : vector<8x1xf32>
    %17 = vector.broadcast %16 : vector<8x1xf32> to vector<8x32xf32>
    %18 = arith.mulf %8, %17 : vector<8x32xf32>
    %19 = vector.broadcast %1 : vector<1x32xf32> to vector<8x32xf32>
    %20 = arith.mulf %18, %19 : vector<8x32xf32>
    %21 = vector.broadcast %2 : vector<1x32xf32> to vector<8x32xf32>
    %22 = arith.addf %20, %21 : vector<8x32xf32>
    %c0_9 = arith.constant 0 : index
    %c0_10 = arith.constant 0 : index
    %23 = vector.load %arg4[%c0_9, %c0_10] : memref<8x32xf32, #tpu.memory_space<vmem>>, vector<8x32xf32>
    tpu.vector_store %arg4[%c0_9, %c0_10], %22 {strides = array<i32>} : memref<8x32xf32, #tpu.memory_space<vmem>>, vector<8x32xf32>,
    return
  }
  func.func @transform_0(%arg0: i32) -> (i32, i32) {
    %c0_i32 = arith.constant 0 : i32
    %c0_i32_0 = arith.constant 0 : i32
    %c0_i32_1 = arith.constant 0 : i32
    return %c0_i32, %c0_i32_0 : i32, i32
  }
  func.func @transform_1(%arg0: i32) -> (i32, i32) {
    %c0_i32 = arith.constant 0 : i32
    %c0_i32_0 = arith.constant 0 : i32
    %c0_i32_1 = arith.constant 0 : i32
    return %c0_i32, %c0_i32_0 : i32, i32
  }
  func.func @transform_2(%arg0: i32) -> (i32, i32) {
    %c0_i32 = arith.constant 0 : i32
    %c0_i32_0 = arith.constant 0 : i32
    %c0_i32_1 = arith.constant 0 : i32
    return %c0_i32, %c0_i32_0 : i32, i32
  }
  func.func @transform_3(%arg0: i32) -> (i32, i32) {
    %c0_i32 = arith.constant 0 : i32
    %c0_i32_0 = arith.constant 0 : i32
    %c0_i32_1 = arith.constant 0 : i32
    return %c0_i32, %c0_i32_0 : i32, i32
  }
}

module attributes {stable_mosaic.version = 11 : i64} {
  func.func @_layernorm_kernel(%arg0: i32, %arg1: memref<8x32xf32, #tpu.memory_space<vmem>>, %arg2: memref<1x32xf32, #tpu.memory_space<vmem>>, %arg3: memref<1x32xf32, #tpu.memory_space<vmem>>, %arg4: memref<8x32xf32, #tpu.memory_space<vmem>>) attributes {dimension_semantics = [#tpu.dimension_semantics<arbitrary>], iteration_bounds = array<i64: 1>, scalar_prefetch = 0 : i64, scratch_operands = 0 : i64, tpu.core_type = #tpu.core_type<tc>, window_params = [{pipeline_mode = #tpu.pipeline_mode<synchronous>, transform_indices = @transform_0, window_bounds = array<i64: 8, 32>}, {pipeline_mode = #tpu.pipeline_mode<synchronous>, transform_indices = @transform_1, window_bounds = array<i64: 1, 32>}, {pipeline_mode = #tpu.pipeline_mode<synchronous>, transform_indices = @transform_2, window_bounds = array<i64: 1, 32>}, {pipeline_mode = #tpu.pipeline_mode<synchronous>, transform_indices = @transform_3, window_bounds = array<i64: 8, 32>}]} {
    %c0 = arith.constant 0 : index
    %c0_0 = arith.constant 0 : index
    %0 = vector.load %arg1[%c0, %c0_0] : memref<8x32xf32, #tpu.memory_space<vmem>>, vector<8x32xf32>
    %c0_1 = arith.constant 0 : index
    %c0_2 = arith.constant 0 : index
    %1 = vector.load %arg2[%c0_1, %c0_2] : memref<1x32xf32, #tpu.memory_space<vmem>>, vector<1x32xf32>
    %c0_3 = arith.constant 0 : index
    %c0_4 = arith.constant 0 : index
    %2 = vector.load %arg3[%c0_3, %c0_4] : memref<1x32xf32, #tpu.memory_space<vmem>>, vector<1x32xf32>
    %cst = arith.constant dense<0.000000e+00> : vector<8xf32>
    %3 = vector.multi_reduction <add>, %0, %cst [1] : vector<8x32xf32> to vector<8xf32>
    %4 = vector.shape_cast %3 : vector<8xf32> to vector<8x1xf32>
    %cst_5 = arith.constant 3.200000e+01 : f32
    %5 = vector.broadcast %cst_5 : f32 to vector<8x1xf32>
    %6 = arith.divf %4, %5 : vector<8x1xf32>
    %7 = vector.broadcast %6 : vector<8x1xf32> to vector<8x32xf32>
    %8 = arith.subf %0, %7 : vector<8x32xf32>
    %9 = arith.mulf %8, %8 : vector<8x32xf32>
    %cst_6 = arith.constant dense<0.000000e+00> : vector<8xf32>
    %10 = vector.multi_reduction <add>, %9, %cst_6 [1] : vector<8x32xf32> to vector<8xf32>
    %11 = vector.shape_cast %10 : vector<8xf32> to vector<8x1xf32>
    %cst_7 = arith.constant 3.200000e+01 : f32
    %12 = vector.broadcast %cst_7 : f32 to vector<8x1xf32>
    %13 = arith.divf %11, %12 : vector<8x1xf32>
    %cst_8 = arith.constant 9.99999974E-6 : f32
    %14 = vector.broadcast %cst_8 : f32 to vector<8x1xf32>
    %15 = arith.addf %13, %14 : vector<8x1xf32>
    %16 = math.rsqrt %15 : vector<8x1xf32>
    %17 = vector.broadcast %16 : vector<8x1xf32> to vector<8x32xf32>
    %18 = arith.mulf %8, %17 : vector<8x32xf32>
    %19 = vector.broadcast %1 : vector<1x32xf32> to vector<8x32xf32>
    %20 = arith.mulf %18, %19 : vector<8x32xf32>
    %21 = vector.broadcast %2 : vector<1x32xf32> to vector<8x32xf32>
    %22 = arith.addf %20, %21 : vector<8x32xf32>
    %c0_9 = arith.constant 0 : index
    %c0_10 = arith.constant 0 : index
    %23 = vector.load %arg4[%c0_9, %c0_10] : memref<8x32xf32, #tpu.memory_space<vmem>>, vector<8x32xf32>
    tpu.vector_store %arg4[%c0_9, %c0_10], %22 {strides = array<i32>} : memref<8x32xf32, #tpu.memory_space<vmem>>, vector<8x32xf32>,
    return
  }
  func.func @transform_0(%arg0: i32) -> (i32, i32) {
    %c0_i32 = arith.constant 0 : i32
    %c0_i32_0 = arith.constant 0 : i32
    %c0_i32_1 = arith.constant 0 : i32
    return %c0_i32, %c0_i32_0 : i32, i32
  }
  func.func @transform_1(%arg0: i32) -> (i32, i32) {
    %c0_i32 = arith.constant 0 : i32
    %c0_i32_0 = arith.constant 0 : i32
    %c0_i32_1 = arith.constant 0 : i32
    return %c0_i32, %c0_i32_0 : i32, i32
  }
  func.func @transform_2(%arg0: i32) -> (i32, i32) {
    %c0_i32 = arith.constant 0 : i32
    %c0_i32_0 = arith.constant 0 : i32
    %c0_i32_1 = arith.constant 0 : i32
    return %c0_i32, %c0_i32_0 : i32, i32
  }
  func.func @transform_3(%arg0: i32) -> (i32, i32) {
    %c0_i32 = arith.constant 0 : i32
    %c0_i32_0 = arith.constant 0 : i32
    %c0_i32_1 = arith.constant 0 : i32
    return %c0_i32, %c0_i32_0 : i32, i32
  }
}

module attributes {stable_mosaic.version = 11 : i64} {
  func.func @_decoder_layer_kernel(%arg0: i32, %arg1: memref<1x4x32xf32, #tpu.memory_space<vmem>>, %arg2: memref<1x4x32xf32, #tpu.memory_space<vmem>>, %arg3: memref<12x32x8xf32, #tpu.memory_space<vmem>>, %arg4: memref<12x1x8xf32, #tpu.memory_space<vmem>>, %arg5: memref<4x8x32xf32, #tpu.memory_space<vmem>>, %arg6: memref<1x32xf32, #tpu.memory_space<vmem>>, %arg7: memref<12x32x8xf32, #tpu.memory_space<vmem>>, %arg8: memref<12x1x8xf32, #tpu.memory_space<vmem>>, %arg9: memref<4x8x32xf32, #tpu.memory_space<vmem>>, %arg10: memref<1x32xf32, #tpu.memory_space<vmem>>, %arg11: memref<1x32xf32, #tpu.memory_space<vmem>>, %arg12: memref<1x32xf32, #tpu.memory_space<vmem>>, %arg13: memref<1x32xf32, #tpu.memory_space<vmem>>, %arg14: memref<1x32xf32, #tpu.memory_space<vmem>>, %arg15: memref<32x128xf32, #tpu.memory_space<vmem>>, %arg16: memref<1x128xf32, #tpu.memory_space<vmem>>, %arg17: memref<128x32xf32, #tpu.memory_space<vmem>>, %arg18: memref<1x32xf32, #tpu.memory_space<vmem>>, %arg19: memref<1x32xf32, #tpu.memory_space<vmem>>, %arg20: memref<1x32xf32, #tpu.memory_space<vmem>>, %arg21: memref<1x4x32xf32, #tpu.memory_space<vmem>>) attributes {dimension_semantics = [#tpu.dimension_semantics<parallel>], iteration_bounds = array<i64: 2>, scalar_prefetch = 0 : i64, scratch_operands = 0 : i64, tpu.core_type = #tpu.core_type<tc>, window_params = [{transform_indices = @transform_0, window_bounds = array<i64: 1, 4, 32>}, {transform_indices = @transform_1, window_bounds = array<i64: 1, 4, 32>}, {pipeline_mode = #tpu.pipeline_mode<synchronous>, transform_indices = @transform_2, window_bounds = array<i64: 12, 32, 8>}, {pipeline_mode = #tpu.pipeline_mode<synchronous>, transform_indices = @transform_3, window_bounds = array<i64: 12, 1, 8>}, {pipeline_mode = #tpu.pipeline_mode<synchronous>, transform_indices = @transform_4, window_bounds = array<i64: 4, 8, 32>}, {pipeline_mode = #tpu.pipeline_mode<synchronous>, transform_indices = @transform_5, window_bounds = array<i64: 1, 32>}, {pipeline_mode = #tpu.pipeline_mode<synchronous>, transform_indices = @transform_6, window_bounds = array<i64: 12, 32, 8>}, {pipeline_mode = #tpu.pipeline_mode<synchronous>, transform_indices = @transform_7, window_bounds = array<i64: 12, 1, 8>}, {pipeline_mode = #tpu.pipeline_mode<synchronous>, transform_indices = @transform_8, window_bounds = array<i64: 4, 8, 32>}, {pipeline_mode = #tpu.pipeline_mode<synchronous>, transform_indices = @transform_9, window_bounds = array<i64: 1, 32>}, {pipeline_mode = #tpu.pipeline_mode<synchronous>, transform_indices = @transform_10, window_bounds = array<i64: 1, 32>}, {pipeline_mode = #tpu.pipeline_mode<synchronous>, transform_indices = @transform_11, window_bounds = array<i64: 1, 32>}, {pipeline_mode = #tpu.pipeline_mode<synchronous>, transform_indices = @transform_12, window_bounds = array<i64: 1, 32>}, {pipeline_mode = #tpu.pipeline_mode<synchronous>, transform_indices = @transform_13, window_bounds = array<i64: 1, 32>}, {pipeline_mode = #tpu.pipeline_mode<synchronous>, transform_indices = @transform_14, window_bounds = array<i64: 32, 128>}, {pipeline_mode = #tpu.pipeline_mode<synchronous>, transform_indices = @transform_15, window_bounds = array<i64: 1, 128>}, {pipeline_mode = #tpu.pipeline_mode<synchronous>, transform_indices = @transform_16, window_bounds = array<i64: 128, 32>}, {pipeline_mode = #tpu.pipeline_mode<synchronous>, transform_indices = @transform_17, window_bounds = array<i64: 1, 32>}, {pipeline_mode = #tpu.pipeline_mode<synchronous>, transform_indices = @transform_18, window_bounds = array<i64: 1, 32>}, {pipeline_mode = #tpu.pipeline_mode<synchronous>, transform_indices = @transform_19, window_bounds = array<i64: 1, 32>}, {transform_indices = @transform_20, window_bounds = array<i64: 1, 4, 32>}]} {
    %c0 = arith.constant 0 : index
    %c0_0 = arith.constant 0 : index
    %c0_1 = arith.constant 0 : index
    %0 = vector.load %arg1[%c0, %c0_0, %c0_1] : memref<1x4x32xf32, #tpu.memory_space<vmem>>, vector<1x4x32xf32>
    %1 = vector.shape_cast %0 : vector<1x4x32xf32> to vector<4x32xf32>
    %c0_2 = arith.constant 0 : index
    %c0_3 = arith.constant 0 : index
    %c0_4 = arith.constant 0 : index
    %2 = vector.load %arg2[%c0_2, %c0_3, %c0_4] : memref<1x4x32xf32, #tpu.memory_space<vmem>>, vector<1x4x32xf32>
    %3 = vector.shape_cast %2 : vector<1x4x32xf32> to vector<4x32xf32>
    %4 = arith.truncf %1 : vector<4x32xf32> to vector<4x32xbf16>
    %5 = arith.truncf %1 : vector<4x32xf32> to vector<4x32xbf16>
    %cst = arith.constant 0.000000e+00 : f32
    %6 = vector.broadcast %cst : f32 to vector<4x32xf32>
    %c0_5 = arith.constant 0 : index
    %c0_6 = arith.constant 0 : index
    %c0_7 = arith.constant 0 : index
    %7 = vector.load %arg3[%c0_5, %c0_6, %c0_7] : memref<12x32x8xf32, #tpu.memory_space<vmem>>, vector<1x32x8xf32>
    %8 = vector.shape_cast %7 : vector<1x32x8xf32> to vector<32x8xf32>
    %9 = arith.truncf %8 : vector<32x8xf32> to vector<32x8xbf16>
    %c4 = arith.constant 4 : index
    %c0_8 = arith.constant 0 : index
    %c0_9 = arith.constant 0 : index
    %10 = vector.load %arg3[%c4, %c0_8, %c0_9] : memref<12x32x8xf32, #tpu.memory_space<vmem>>, vector<1x32x8xf32>
    %11 = vector.shape_cast %10 : vector<1x32x8xf32> to vector<32x8xf32>
    %12 = arith.truncf %11 : vector<32x8xf32> to vector<32x8xbf16>
    %c8 = arith.constant 8 : index
    %c0_10 = arith.constant 0 : index
    %c0_11 = arith.constant 0 : index
    %13 = vector.load %arg3[%c8, %c0_10, %c0_11] : memref<12x32x8xf32, #tpu.memory_space<vmem>>, vector<1x32x8xf32>
    %14 = vector.shape_cast %13 : vector<1x32x8xf32> to vector<32x8xf32>
    %15 = arith.truncf %14 : vector<32x8xf32> to vector<32x8xbf16>
    %cst_12 = arith.constant dense<0.000000e+00> : vector<4x8xf32>
    %16 = tpu.matmul %4, %9, %cst_12 {dimension_numbers = #tpu.dot_dimension_numbers<[1], [0], [0], [1], [0, 0, 1, 1], [], []>} : vector<4x32xbf16>, vector<32x8xbf16>, vector<4x8xf32> -> vector<4x8xf32>
    %c0_13 = arith.constant 0 : index
    %c0_14 = arith.constant 0 : index
    %c0_15 = arith.constant 0 : index
    %17 = vector.load %arg4[%c0_13, %c0_14, %c0_15] : memref<12x1x8xf32, #tpu.memory_space<vmem>>, vector<1x1x8xf32>
    %18 = vector.shape_cast %17 : vector<1x1x8xf32> to vector<1x8xf32>
    %19 = vector.broadcast %18 : vector<1x8xf32> to vector<4x8xf32>
    %20 = arith.addf %16, %19 : vector<4x8xf32>
    %cst_16 = arith.constant dense<0.000000e+00> : vector<4x8xf32>
    %21 = tpu.matmul %5, %12, %cst_16 {dimension_numbers = #tpu.dot_dimension_numbers<[1], [0], [0], [1], [0, 0, 1, 1], [], []>} : vector<4x32xbf16>, vector<32x8xbf16>, vector<4x8xf32> -> vector<4x8xf32>
    %c4_17 = arith.constant 4 : index
    %c0_18 = arith.constant 0 : index
    %c0_19 = arith.constant 0 : index
    %22 = vector.load %arg4[%c4_17, %c0_18, %c0_19] : memref<12x1x8xf32, #tpu.memory_space<vmem>>, vector<1x1x8xf32>
    %23 = vector.shape_cast %22 : vector<1x1x8xf32> to vector<1x8xf32>
    %24 = vector.broadcast %23 : vector<1x8xf32> to vector<4x8xf32>
    %25 = arith.addf %21, %24 : vector<4x8xf32>
    %cst_20 = arith.constant dense<0.000000e+00> : vector<4x8xf32>
    %26 = tpu.matmul %5, %15, %cst_20 {dimension_numbers = #tpu.dot_dimension_numbers<[1], [0], [0], [1], [0, 0, 1, 1], [], []>} : vector<4x32xbf16>, vector<32x8xbf16>, vector<4x8xf32> -> vector<4x8xf32>
    %c8_21 = arith.constant 8 : index
    %c0_22 = arith.constant 0 : index
    %c0_23 = arith.constant 0 : index
    %27 = vector.load %arg4[%c8_21, %c0_22, %c0_23] : memref<12x1x8xf32, #tpu.memory_space<vmem>>, vector<1x1x8xf32>
    %28 = vector.shape_cast %27 : vector<1x1x8xf32> to vector<1x8xf32>
    %29 = vector.broadcast %28 : vector<1x8xf32> to vector<4x8xf32>
    %30 = arith.addf %26, %29 : vector<4x8xf32>
    %31 = arith.truncf %20 : vector<4x8xf32> to vector<4x8xbf16>
    %32 = arith.truncf %25 : vector<4x8xf32> to vector<4x8xbf16>
    %cst_24 = arith.constant dense<0.000000e+00> : vector<4x4xf32>
    %33 = tpu.matmul %31, %32, %cst_24 {dimension_numbers = #tpu.dot_dimension_numbers<[1], [1], [0], [0], [0, 0, 1, 0], [], []>} : vector<4x8xbf16>, vector<4x8xbf16>, vector<4x4xf32> -> vector<4x4xf32>
    %cst_25 = arith.constant 0.353553385 : f32
    %34 = vector.broadcast %cst_25 : f32 to vector<4x4xf32>
    %35 = arith.mulf %33, %34 : vector<4x4xf32>
    %cst_26 = arith.constant dense<0xFF800000> : vector<4xf32>
    %36 = vector.multi_reduction <maximumf>, %35, %cst_26 [1] : vector<4x4xf32> to vector<4xf32>
    %37 = vector.shape_cast %36 : vector<4xf32> to vector<4x1xf32>
    %38 = vector.broadcast %37 : vector<4x1xf32> to vector<4x4xf32>
    %39 = arith.subf %35, %38 : vector<4x4xf32>
    %40 = math.exp %39 : vector<4x4xf32>
    %cst_27 = arith.constant dense<0.000000e+00> : vector<4xf32>
    %41 = vector.multi_reduction <add>, %40, %cst_27 [1] : vector<4x4xf32> to vector<4xf32>
    %42 = vector.shape_cast %41 : vector<4xf32> to vector<4x1xf32>
    %43 = tpu.reciprocal %42 {approx = true} : vector<4x1xf32> -> vector<4x1xf32>
    %44 = vector.broadcast %43 : vector<4x1xf32> to vector<4x4xf32>
    %45 = arith.mulf %40, %44 : vector<4x4xf32>
    %46 = arith.truncf %45 : vector<4x4xf32> to vector<4x4xbf16>
    %47 = arith.truncf %30 : vector<4x8xf32> to vector<4x8xbf16>
    %cst_28 = arith.constant dense<0.000000e+00> : vector<4x8xf32>
    %48 = tpu.matmul %46, %47, %cst_28 {dimension_numbers = #tpu.dot_dimension_numbers<[1], [0], [0], [1], [0, 0, 1, 1], [], []>} : vector<4x4xbf16>, vector<4x8xbf16>, vector<4x8xf32> -> vector<4x8xf32>
    %49 = arith.truncf %48 : vector<4x8xf32> to vector<4x8xbf16>
    %c0_29 = arith.constant 0 : index
    %c0_30 = arith.constant 0 : index
    %c0_31 = arith.constant 0 : index
    %50 = vector.load %arg5[%c0_29, %c0_30, %c0_31] : memref<4x8x32xf32, #tpu.memory_space<vmem>>, vector<1x8x32xf32>
    %51 = vector.shape_cast %50 : vector<1x8x32xf32> to vector<8x32xf32>
    %52 = arith.truncf %51 : vector<8x32xf32> to vector<8x32xbf16>
    %cst_32 = arith.constant dense<0.000000e+00> : vector<4x32xf32>
    %53 = tpu.matmul %49, %52, %cst_32 {dimension_numbers = #tpu.dot_dimension_numbers<[1], [0], [0], [1], [0, 0, 1, 1], [], []>} : vector<4x8xbf16>, vector<8x32xbf16>, vector<4x32xf32> -> vector<4x32xf32>
    %54 = arith.addf %6, %53 : vector<4x32xf32>
    %c1 = arith.constant 1 : index
    %c0_33 = arith.constant 0 : index
    %c0_34 = arith.constant 0 : index
    %55 = vector.load %arg3[%c1, %c0_33, %c0_34] : memref<12x32x8xf32, #tpu.memory_space<vmem>>, vector<1x32x8xf32>
    %56 = vector.shape_cast %55 : vector<1x32x8xf32> to vector<32x8xf32>
    %57 = arith.truncf %56 : vector<32x8xf32> to vector<32x8xbf16>
    %c5 = arith.constant 5 : index
    %c0_35 = arith.constant 0 : index
    %c0_36 = arith.constant 0 : index
    %58 = vector.load %arg3[%c5, %c0_35, %c0_36] : memref<12x32x8xf32, #tpu.memory_space<vmem>>, vector<1x32x8xf32>
    %59 = vector.shape_cast %58 : vector<1x32x8xf32> to vector<32x8xf32>
    %60 = arith.truncf %59 : vector<32x8xf32> to vector<32x8xbf16>
    %c9 = arith.constant 9 : index
    %c0_37 = arith.constant 0 : index
    %c0_38 = arith.constant 0 : index
    %61 = vector.load %arg3[%c9, %c0_37, %c0_38] : memref<12x32x8xf32, #tpu.memory_space<vmem>>, vector<1x32x8xf32>
    %62 = vector.shape_cast %61 : vector<1x32x8xf32> to vector<32x8xf32>
    %63 = arith.truncf %62 : vector<32x8xf32> to vector<32x8xbf16>
    %cst_39 = arith.constant dense<0.000000e+00> : vector<4x8xf32>
    %64 = tpu.matmul %4, %57, %cst_39 {dimension_numbers = #tpu.dot_dimension_numbers<[1], [0], [0], [1], [0, 0, 1, 1], [], []>} : vector<4x32xbf16>, vector<32x8xbf16>, vector<4x8xf32> -> vector<4x8xf32>
    %c1_40 = arith.constant 1 : index
    %c0_41 = arith.constant 0 : index
    %c0_42 = arith.constant 0 : index
    %65 = vector.load %arg4[%c1_40, %c0_41, %c0_42] : memref<12x1x8xf32, #tpu.memory_space<vmem>>, vector<1x1x8xf32>
    %66 = vector.shape_cast %65 : vector<1x1x8xf32> to vector<1x8xf32>
    %67 = vector.broadcast %66 : vector<1x8xf32> to vector<4x8xf32>
    %68 = arith.addf %64, %67 : vector<4x8xf32>
    %cst_43 = arith.constant dense<0.000000e+00> : vector<4x8xf32>
    %69 = tpu.matmul %5, %60, %cst_43 {dimension_numbers = #tpu.dot_dimension_numbers<[1], [0], [0], [1], [0, 0, 1, 1], [], []>} : vector<4x32xbf16>, vector<32x8xbf16>, vector<4x8xf32> -> vector<4x8xf32>
    %c5_44 = arith.constant 5 : index
    %c0_45 = arith.constant 0 : index
    %c0_46 = arith.constant 0 : index
    %70 = vector.load %arg4[%c5_44, %c0_45, %c0_46] : memref<12x1x8xf32, #tpu.memory_space<vmem>>, vector<1x1x8xf32>
    %71 = vector.shape_cast %70 : vector<1x1x8xf32> to vector<1x8xf32>
    %72 = vector.broadcast %71 : vector<1x8xf32> to vector<4x8xf32>
    %73 = arith.addf %69, %72 : vector<4x8xf32>
    %cst_47 = arith.constant dense<0.000000e+00> : vector<4x8xf32>
    %74 = tpu.matmul %5, %63, %cst_47 {dimension_numbers = #tpu.dot_dimension_numbers<[1], [0], [0], [1], [0, 0, 1, 1], [], []>} : vector<4x32xbf16>, vector<32x8xbf16>, vector<4x8xf32> -> vector<4x8xf32>
    %c9_48 = arith.constant 9 : index
    %c0_49 = arith.constant 0 : index
    %c0_50 = arith.constant 0 : index
    %75 = vector.load %arg4[%c9_48, %c0_49, %c0_50] : memref<12x1x8xf32, #tpu.memory_space<vmem>>, vector<1x1x8xf32>
    %76 = vector.shape_cast %75 : vector<1x1x8xf32> to vector<1x8xf32>
    %77 = vector.broadcast %76 : vector<1x8xf32> to vector<4x8xf32>
    %78 = arith.addf %74, %77 : vector<4x8xf32>
    %79 = arith.truncf %68 : vector<4x8xf32> to vector<4x8xbf16>
    %80 = arith.truncf %73 : vector<4x8xf32> to vector<4x8xbf16>
    %cst_51 = arith.constant dense<0.000000e+00> : vector<4x4xf32>
    %81 = tpu.matmul %79, %80, %cst_51 {dimension_numbers = #tpu.dot_dimension_numbers<[1], [1], [0], [0], [0, 0, 1, 0], [], []>} : vector<4x8xbf16>, vector<4x8xbf16>, vector<4x4xf32> -> vector<4x4xf32>
    %cst_52 = arith.constant 0.353553385 : f32
    %82 = vector.broadcast %cst_52 : f32 to vector<4x4xf32>
    %83 = arith.mulf %81, %82 : vector<4x4xf32>
    %cst_53 = arith.constant dense<0xFF800000> : vector<4xf32>
    %84 = vector.multi_reduction <maximumf>, %83, %cst_53 [1] : vector<4x4xf32> to vector<4xf32>
    %85 = vector.shape_cast %84 : vector<4xf32> to vector<4x1xf32>
    %86 = vector.broadcast %85 : vector<4x1xf32> to vector<4x4xf32>
    %87 = arith.subf %83, %86 : vector<4x4xf32>
    %88 = math.exp %87 : vector<4x4xf32>
    %cst_54 = arith.constant dense<0.000000e+00> : vector<4xf32>
    %89 = vector.multi_reduction <add>, %88, %cst_54 [1] : vector<4x4xf32> to vector<4xf32>
    %90 = vector.shape_cast %89 : vector<4xf32> to vector<4x1xf32>
    %91 = tpu.reciprocal %90 {approx = true} : vector<4x1xf32> -> vector<4x1xf32>
    %92 = vector.broadcast %91 : vector<4x1xf32> to vector<4x4xf32>
    %93 = arith.mulf %88, %92 : vector<4x4xf32>
    %94 = arith.truncf %93 : vector<4x4xf32> to vector<4x4xbf16>
    %95 = arith.truncf %78 : vector<4x8xf32> to vector<4x8xbf16>
    %cst_55 = arith.constant dense<0.000000e+00> : vector<4x8xf32>
    %96 = tpu.matmul %94, %95, %cst_55 {dimension_numbers = #tpu.dot_dimension_numbers<[1], [0], [0], [1], [0, 0, 1, 1], [], []>} : vector<4x4xbf16>, vector<4x8xbf16>, vector<4x8xf32> -> vector<4x8xf32>
    %97 = arith.truncf %96 : vector<4x8xf32> to vector<4x8xbf16>
    %c1_56 = arith.constant 1 : index
    %c0_57 = arith.constant 0 : index
    %c0_58 = arith.constant 0 : index
    %98 = vector.load %arg5[%c1_56, %c0_57, %c0_58] : memref<4x8x32xf32, #tpu.memory_space<vmem>>, vector<1x8x32xf32>
    %99 = vector.shape_cast %98 : vector<1x8x32xf32> to vector<8x32xf32>
    %100 = arith.truncf %99 : vector<8x32xf32> to vector<8x32xbf16>
    %cst_59 = arith.constant dense<0.000000e+00> : vector<4x32xf32>
    %101 = tpu.matmul %97, %100, %cst_59 {dimension_numbers = #tpu.dot_dimension_numbers<[1], [0], [0], [1], [0, 0, 1, 1], [], []>} : vector<4x8xbf16>, vector<8x32xbf16>, vector<4x32xf32> -> vector<4x32xf32>
    %102 = arith.addf %54, %101 : vector<4x32xf32>
    %c2 = arith.constant 2 : index
    %c0_60 = arith.constant 0 : index
    %c0_61 = arith.constant 0 : index
    %103 = vector.load %arg3[%c2, %c0_60, %c0_61] : memref<12x32x8xf32, #tpu.memory_space<vmem>>, vector<1x32x8xf32>
    %104 = vector.shape_cast %103 : vector<1x32x8xf32> to vector<32x8xf32>
    %105 = arith.truncf %104 : vector<32x8xf32> to vector<32x8xbf16>
    %c6 = arith.constant 6 : index
    %c0_62 = arith.constant 0 : index
    %c0_63 = arith.constant 0 : index
    %106 = vector.load %arg3[%c6, %c0_62, %c0_63] : memref<12x32x8xf32, #tpu.memory_space<vmem>>, vector<1x32x8xf32>
    %107 = vector.shape_cast %106 : vector<1x32x8xf32> to vector<32x8xf32>
    %108 = arith.truncf %107 : vector<32x8xf32> to vector<32x8xbf16>
    %c10 = arith.constant 10 : index
    %c0_64 = arith.constant 0 : index
    %c0_65 = arith.constant 0 : index
    %109 = vector.load %arg3[%c10, %c0_64, %c0_65] : memref<12x32x8xf32, #tpu.memory_space<vmem>>, vector<1x32x8xf32>
    %110 = vector.shape_cast %109 : vector<1x32x8xf32> to vector<32x8xf32>
    %111 = arith.truncf %110 : vector<32x8xf32> to vector<32x8xbf16>
    %cst_66 = arith.constant dense<0.000000e+00> : vector<4x8xf32>
    %112 = tpu.matmul %4, %105, %cst_66 {dimension_numbers = #tpu.dot_dimension_numbers<[1], [0], [0], [1], [0, 0, 1, 1], [], []>} : vector<4x32xbf16>, vector<32x8xbf16>, vector<4x8xf32> -> vector<4x8xf32>
    %c2_67 = arith.constant 2 : index
    %c0_68 = arith.constant 0 : index
    %c0_69 = arith.constant 0 : index
    %113 = vector.load %arg4[%c2_67, %c0_68, %c0_69] : memref<12x1x8xf32, #tpu.memory_space<vmem>>, vector<1x1x8xf32>
    %114 = vector.shape_cast %113 : vector<1x1x8xf32> to vector<1x8xf32>
    %115 = vector.broadcast %114 : vector<1x8xf32> to vector<4x8xf32>
    %116 = arith.addf %112, %115 : vector<4x8xf32>
    %cst_70 = arith.constant dense<0.000000e+00> : vector<4x8xf32>
    %117 = tpu.matmul %5, %108, %cst_70 {dimension_numbers = #tpu.dot_dimension_numbers<[1], [0], [0], [1], [0, 0, 1, 1], [], []>} : vector<4x32xbf16>, vector<32x8xbf16>, vector<4x8xf32> -> vector<4x8xf32>
    %c6_71 = arith.constant 6 : index
    %c0_72 = arith.constant 0 : index
    %c0_73 = arith.constant 0 : index
    %118 = vector.load %arg4[%c6_71, %c0_72, %c0_73] : memref<12x1x8xf32, #tpu.memory_space<vmem>>, vector<1x1x8xf32>
    %119 = vector.shape_cast %118 : vector<1x1x8xf32> to vector<1x8xf32>
    %120 = vector.broadcast %119 : vector<1x8xf32> to vector<4x8xf32>
    %121 = arith.addf %117, %120 : vector<4x8xf32>
    %cst_74 = arith.constant dense<0.000000e+00> : vector<4x8xf32>
    %122 = tpu.matmul %5, %111, %cst_74 {dimension_numbers = #tpu.dot_dimension_numbers<[1], [0], [0], [1], [0, 0, 1, 1], [], []>} : vector<4x32xbf16>, vector<32x8xbf16>, vector<4x8xf32> -> vector<4x8xf32>
    %c10_75 = arith.constant 10 : index
    %c0_76 = arith.constant 0 : index
    %c0_77 = arith.constant 0 : index
    %123 = vector.load %arg4[%c10_75, %c0_76, %c0_77] : memref<12x1x8xf32, #tpu.memory_space<vmem>>, vector<1x1x8xf32>
    %124 = vector.shape_cast %123 : vector<1x1x8xf32> to vector<1x8xf32>
    %125 = vector.broadcast %124 : vector<1x8xf32> to vector<4x8xf32>
    %126 = arith.addf %122, %125 : vector<4x8xf32>
    %127 = arith.truncf %116 : vector<4x8xf32> to vector<4x8xbf16>
    %128 = arith.truncf %121 : vector<4x8xf32> to vector<4x8xbf16>
    %cst_78 = arith.constant dense<0.000000e+00> : vector<4x4xf32>
    %129 = tpu.matmul %127, %128, %cst_78 {dimension_numbers = #tpu.dot_dimension_numbers<[1], [1], [0], [0], [0, 0, 1, 0], [], []>} : vector<4x8xbf16>, vector<4x8xbf16>, vector<4x4xf32> -> vector<4x4xf32>
    %cst_79 = arith.constant 0.353553385 : f32
    %130 = vector.broadcast %cst_79 : f32 to vector<4x4xf32>
    %131 = arith.mulf %129, %130 : vector<4x4xf32>
    %cst_80 = arith.constant dense<0xFF800000> : vector<4xf32>
    %132 = vector.multi_reduction <maximumf>, %131, %cst_80 [1] : vector<4x4xf32> to vector<4xf32>
    %133 = vector.shape_cast %132 : vector<4xf32> to vector<4x1xf32>
    %134 = vector.broadcast %133 : vector<4x1xf32> to vector<4x4xf32>
    %135 = arith.subf %131, %134 : vector<4x4xf32>
    %136 = math.exp %135 : vector<4x4xf32>
    %cst_81 = arith.constant dense<0.000000e+00> : vector<4xf32>
    %137 = vector.multi_reduction <add>, %136, %cst_81 [1] : vector<4x4xf32> to vector<4xf32>
    %138 = vector.shape_cast %137 : vector<4xf32> to vector<4x1xf32>
    %139 = tpu.reciprocal %138 {approx = true} : vector<4x1xf32> -> vector<4x1xf32>
    %140 = vector.broadcast %139 : vector<4x1xf32> to vector<4x4xf32>
    %141 = arith.mulf %136, %140 : vector<4x4xf32>
    %142 = arith.truncf %141 : vector<4x4xf32> to vector<4x4xbf16>
    %143 = arith.truncf %126 : vector<4x8xf32> to vector<4x8xbf16>
    %cst_82 = arith.constant dense<0.000000e+00> : vector<4x8xf32>
    %144 = tpu.matmul %142, %143, %cst_82 {dimension_numbers = #tpu.dot_dimension_numbers<[1], [0], [0], [1], [0, 0, 1, 1], [], []>} : vector<4x4xbf16>, vector<4x8xbf16>, vector<4x8xf32> -> vector<4x8xf32>
    %145 = arith.truncf %144 : vector<4x8xf32> to vector<4x8xbf16>
    %c2_83 = arith.constant 2 : index
    %c0_84 = arith.constant 0 : index
    %c0_85 = arith.constant 0 : index
    %146 = vector.load %arg5[%c2_83, %c0_84, %c0_85] : memref<4x8x32xf32, #tpu.memory_space<vmem>>, vector<1x8x32xf32>
    %147 = vector.shape_cast %146 : vector<1x8x32xf32> to vector<8x32xf32>
    %148 = arith.truncf %147 : vector<8x32xf32> to vector<8x32xbf16>
    %cst_86 = arith.constant dense<0.000000e+00> : vector<4x32xf32>
    %149 = tpu.matmul %145, %148, %cst_86 {dimension_numbers = #tpu.dot_dimension_numbers<[1], [0], [0], [1], [0, 0, 1, 1], [], []>} : vector<4x8xbf16>, vector<8x32xbf16>, vector<4x32xf32> -> vector<4x32xf32>
    %150 = arith.addf %102, %149 : vector<4x32xf32>
    %c3 = arith.constant 3 : index
    %c0_87 = arith.constant 0 : index
    %c0_88 = arith.constant 0 : index
    %151 = vector.load %arg3[%c3, %c0_87, %c0_88] : memref<12x32x8xf32, #tpu.memory_space<vmem>>, vector<1x32x8xf32>
    %152 = vector.shape_cast %151 : vector<1x32x8xf32> to vector<32x8xf32>
    %153 = arith.truncf %152 : vector<32x8xf32> to vector<32x8xbf16>
    %c7 = arith.constant 7 : index
    %c0_89 = arith.constant 0 : index
    %c0_90 = arith.constant 0 : index
    %154 = vector.load %arg3[%c7, %c0_89, %c0_90] : memref<12x32x8xf32, #tpu.memory_space<vmem>>, vector<1x32x8xf32>
    %155 = vector.shape_cast %154 : vector<1x32x8xf32> to vector<32x8xf32>
    %156 = arith.truncf %155 : vector<32x8xf32> to vector<32x8xbf16>
    %c11 = arith.constant 11 : index
    %c0_91 = arith.constant 0 : index
    %c0_92 = arith.constant 0 : index
    %157 = vector.load %arg3[%c11, %c0_91, %c0_92] : memref<12x32x8xf32, #tpu.memory_space<vmem>>, vector<1x32x8xf32>
    %158 = vector.shape_cast %157 : vector<1x32x8xf32> to vector<32x8xf32>
    %159 = arith.truncf %158 : vector<32x8xf32> to vector<32x8xbf16>
    %cst_93 = arith.constant dense<0.000000e+00> : vector<4x8xf32>
    %160 = tpu.matmul %4, %153, %cst_93 {dimension_numbers = #tpu.dot_dimension_numbers<[1], [0], [0], [1], [0, 0, 1, 1], [], []>} : vector<4x32xbf16>, vector<32x8xbf16>, vector<4x8xf32> -> vector<4x8xf32>
    %c3_94 = arith.constant 3 : index
    %c0_95 = arith.constant 0 : index
    %c0_96 = arith.constant 0 : index
    %161 = vector.load %arg4[%c3_94, %c0_95, %c0_96] : memref<12x1x8xf32, #tpu.memory_space<vmem>>, vector<1x1x8xf32>
    %162 = vector.shape_cast %161 : vector<1x1x8xf32> to vector<1x8xf32>
    %163 = vector.broadcast %162 : vector<1x8xf32> to vector<4x8xf32>
    %164 = arith.addf %160, %163 : vector<4x8xf32>
    %cst_97 = arith.constant dense<0.000000e+00> : vector<4x8xf32>
    %165 = tpu.matmul %5, %156, %cst_97 {dimension_numbers = #tpu.dot_dimension_numbers<[1], [0], [0], [1], [0, 0, 1, 1], [], []>} : vector<4x32xbf16>, vector<32x8xbf16>, vector<4x8xf32> -> vector<4x8xf32>
    %c7_98 = arith.constant 7 : index
    %c0_99 = arith.constant 0 : index
    %c0_100 = arith.constant 0 : index
    %166 = vector.load %arg4[%c7_98, %c0_99, %c0_100] : memref<12x1x8xf32, #tpu.memory_space<vmem>>, vector<1x1x8xf32>
    %167 = vector.shape_cast %166 : vector<1x1x8xf32> to vector<1x8xf32>
    %168 = vector.broadcast %167 : vector<1x8xf32> to vector<4x8xf32>
    %169 = arith.addf %165, %168 : vector<4x8xf32>
    %cst_101 = arith.constant dense<0.000000e+00> : vector<4x8xf32>
    %170 = tpu.matmul %5, %159, %cst_101 {dimension_numbers = #tpu.dot_dimension_numbers<[1], [0], [0], [1], [0, 0, 1, 1], [], []>} : vector<4x32xbf16>, vector<32x8xbf16>, vector<4x8xf32> -> vector<4x8xf32>
    %c11_102 = arith.constant 11 : index
    %c0_103 = arith.constant 0 : index
    %c0_104 = arith.constant 0 : index
    %171 = vector.load %arg4[%c11_102, %c0_103, %c0_104] : memref<12x1x8xf32, #tpu.memory_space<vmem>>, vector<1x1x8xf32>
    %172 = vector.shape_cast %171 : vector<1x1x8xf32> to vector<1x8xf32>
    %173 = vector.broadcast %172 : vector<1x8xf32> to vector<4x8xf32>
    %174 = arith.addf %170, %173 : vector<4x8xf32>
    %175 = arith.truncf %164 : vector<4x8xf32> to vector<4x8xbf16>
    %176 = arith.truncf %169 : vector<4x8xf32> to vector<4x8xbf16>
    %cst_105 = arith.constant dense<0.000000e+00> : vector<4x4xf32>
    %177 = tpu.matmul %175, %176, %cst_105 {dimension_numbers = #tpu.dot_dimension_numbers<[1], [1], [0], [0], [0, 0, 1, 0], [], []>} : vector<4x8xbf16>, vector<4x8xbf16>, vector<4x4xf32> -> vector<4x4xf32>
    %cst_106 = arith.constant 0.353553385 : f32
    %178 = vector.broadcast %cst_106 : f32 to vector<4x4xf32>
    %179 = arith.mulf %177, %178 : vector<4x4xf32>
    %cst_107 = arith.constant dense<0xFF800000> : vector<4xf32>
    %180 = vector.multi_reduction <maximumf>, %179, %cst_107 [1] : vector<4x4xf32> to vector<4xf32>
    %181 = vector.shape_cast %180 : vector<4xf32> to vector<4x1xf32>
    %182 = vector.broadcast %181 : vector<4x1xf32> to vector<4x4xf32>
    %183 = arith.subf %179, %182 : vector<4x4xf32>
    %184 = math.exp %183 : vector<4x4xf32>
    %cst_108 = arith.constant dense<0.000000e+00> : vector<4xf32>
    %185 = vector.multi_reduction <add>, %184, %cst_108 [1] : vector<4x4xf32> to vector<4xf32>
    %186 = vector.shape_cast %185 : vector<4xf32> to vector<4x1xf32>
    %187 = tpu.reciprocal %186 {approx = true} : vector<4x1xf32> -> vector<4x1xf32>
    %188 = vector.broadcast %187 : vector<4x1xf32> to vector<4x4xf32>
    %189 = arith.mulf %184, %188 : vector<4x4xf32>
    %190 = arith.truncf %189 : vector<4x4xf32> to vector<4x4xbf16>
    %191 = arith.truncf %174 : vector<4x8xf32> to vector<4x8xbf16>
    %cst_109 = arith.constant dense<0.000000e+00> : vector<4x8xf32>
    %192 = tpu.matmul %190, %191, %cst_109 {dimension_numbers = #tpu.dot_dimension_numbers<[1], [0], [0], [1], [0, 0, 1, 1], [], []>} : vector<4x4xbf16>, vector<4x8xbf16>, vector<4x8xf32> -> vector<4x8xf32>
    %193 = arith.truncf %192 : vector<4x8xf32> to vector<4x8xbf16>
    %c3_110 = arith.constant 3 : index
    %c0_111 = arith.constant 0 : index
    %c0_112 = arith.constant 0 : index
    %194 = vector.load %arg5[%c3_110, %c0_111, %c0_112] : memref<4x8x32xf32, #tpu.memory_space<vmem>>, vector<1x8x32xf32>
    %195 = vector.shape_cast %194 : vector<1x8x32xf32> to vector<8x32xf32>
    %196 = arith.truncf %195 : vector<8x32xf32> to vector<8x32xbf16>
    %cst_113 = arith.constant dense<0.000000e+00> : vector<4x32xf32>
    %197 = tpu.matmul %193, %196, %cst_113 {dimension_numbers = #tpu.dot_dimension_numbers<[1], [0], [0], [1], [0, 0, 1, 1], [], []>} : vector<4x8xbf16>, vector<8x32xbf16>, vector<4x32xf32> -> vector<4x32xf32>
    %198 = arith.addf %150, %197 : vector<4x32xf32>
    %c0_114 = arith.constant 0 : index
    %c0_115 = arith.constant 0 : index
    %199 = vector.load %arg6[%c0_114, %c0_115] : memref<1x32xf32, #tpu.memory_space<vmem>>, vector<1x32xf32>
    %200 = vector.broadcast %199 : vector<1x32xf32> to vector<4x32xf32>
    %201 = arith.addf %198, %200 : vector<4x32xf32>
    %202 = arith.addf %1, %201 : vector<4x32xf32>
    %c0_116 = arith.constant 0 : index
    %c0_117 = arith.constant 0 : index
    %203 = vector.load %arg11[%c0_116, %c0_117] : memref<1x32xf32, #tpu.memory_space<vmem>>, vector<1x32xf32>
    %c0_118 = arith.constant 0 : index
    %c0_119 = arith.constant 0 : index
    %204 = vector.load %arg12[%c0_118, %c0_119] : memref<1x32xf32, #tpu.memory_space<vmem>>, vector<1x32xf32>
    %cst_120 = arith.constant dense<0.000000e+00> : vector<4xf32>
    %205 = vector.multi_reduction <add>, %202, %cst_120 [1] : vector<4x32xf32> to vector<4xf32>
    %206 = vector.shape_cast %205 : vector<4xf32> to vector<4x1xf32>
    %cst_121 = arith.constant 3.200000e+01 : f32
    %207 = vector.broadcast %cst_121 : f32 to vector<4x1xf32>
    %208 = arith.divf %206, %207 : vector<4x1xf32>
    %209 = vector.broadcast %208 : vector<4x1xf32> to vector<4x32xf32>
    %210 = arith.subf %202, %209 : vector<4x32xf32>
    %211 = arith.mulf %210, %210 : vector<4x32xf32>
    %cst_122 = arith.constant dense<0.000000e+00> : vector<4xf32>
    %212 = vector.multi_reduction <add>, %211, %cst_122 [1] : vector<4x32xf32> to vector<4xf32>
    %213 = vector.shape_cast %212 : vector<4xf32> to vector<4x1xf32>
    %cst_123 = arith.constant 3.200000e+01 : f32
    %214 = vector.broadcast %cst_123 : f32 to vector<4x1xf32>
    %215 = arith.divf %213, %214 : vector<4x1xf32>
    %cst_124 = arith.constant 9.99999974E-6 : f32
    %216 = vector.broadcast %cst_124 : f32 to vector<4x1xf32>
    %217 = arith.addf %215, %216 : vector<4x1xf32>
    %218 = math.rsqrt %217 : vector<4x1xf32>
    %219 = vector.broadcast %218 : vector<4x1xf32> to vector<4x32xf32>
    %220 = arith.mulf %210, %219 : vector<4x32xf32>
    %221 = vector.broadcast %203 : vector<1x32xf32> to vector<4x32xf32>
    %222 = arith.mulf %220, %221 : vector<4x32xf32>
    %223 = vector.broadcast %204 : vector<1x32xf32> to vector<4x32xf32>
    %224 = arith.addf %222, %223 : vector<4x32xf32>
    %225 = arith.truncf %224 : vector<4x32xf32> to vector<4x32xbf16>
    %226 = arith.truncf %3 : vector<4x32xf32> to vector<4x32xbf16>
    %cst_125 = arith.constant 0.000000e+00 : f32
    %227 = vector.broadcast %cst_125 : f32 to vector<4x32xf32>
    %c0_126 = arith.constant 0 : index
    %c0_127 = arith.constant 0 : index
    %c0_128 = arith.constant 0 : index
    %228 = vector.load %arg7[%c0_126, %c0_127, %c0_128] : memref<12x32x8xf32, #tpu.memory_space<vmem>>, vector<1x32x8xf32>
    %229 = vector.shape_cast %228 : vector<1x32x8xf32> to vector<32x8xf32>
    %230 = arith.truncf %229 : vector<32x8xf32> to vector<32x8xbf16>
    %c4_129 = arith.constant 4 : index
    %c0_130 = arith.constant 0 : index
    %c0_131 = arith.constant 0 : index
    %231 = vector.load %arg7[%c4_129, %c0_130, %c0_131] : memref<12x32x8xf32, #tpu.memory_space<vmem>>, vector<1x32x8xf32>
    %232 = vector.shape_cast %231 : vector<1x32x8xf32> to vector<32x8xf32>
    %233 = arith.truncf %232 : vector<32x8xf32> to vector<32x8xbf16>
    %c8_132 = arith.constant 8 : index
    %c0_133 = arith.constant 0 : index
    %c0_134 = arith.constant 0 : index
    %234 = vector.load %arg7[%c8_132, %c0_133, %c0_134] : memref<12x32x8xf32, #tpu.memory_space<vmem>>, vector<1x32x8xf32>
    %235 = vector.shape_cast %234 : vector<1x32x8xf32> to vector<32x8xf32>
    %236 = arith.truncf %235 : vector<32x8xf32> to vector<32x8xbf16>
    %cst_135 = arith.constant dense<0.000000e+00> : vector<4x8xf32>
    %237 = tpu.matmul %225, %230, %cst_135 {dimension_numbers = #tpu.dot_dimension_numbers<[1], [0], [0], [1], [0, 0, 1, 1], [], []>} : vector<4x32xbf16>, vector<32x8xbf16>, vector<4x8xf32> -> vector<4x8xf32>
    %c0_136 = arith.constant 0 : index
    %c0_137 = arith.constant 0 : index
    %c0_138 = arith.constant 0 : index
    %238 = vector.load %arg8[%c0_136, %c0_137, %c0_138] : memref<12x1x8xf32, #tpu.memory_space<vmem>>, vector<1x1x8xf32>
    %239 = vector.shape_cast %238 : vector<1x1x8xf32> to vector<1x8xf32>
    %240 = vector.broadcast %239 : vector<1x8xf32> to vector<4x8xf32>
    %241 = arith.addf %237, %240 : vector<4x8xf32>
    %cst_139 = arith.constant dense<0.000000e+00> : vector<4x8xf32>
    %242 = tpu.matmul %226, %233, %cst_139 {dimension_numbers = #tpu.dot_dimension_numbers<[1], [0], [0], [1], [0, 0, 1, 1], [], []>} : vector<4x32xbf16>, vector<32x8xbf16>, vector<4x8xf32> -> vector<4x8xf32>
    %c4_140 = arith.constant 4 : index
    %c0_141 = arith.constant 0 : index
    %c0_142 = arith.constant 0 : index
    %243 = vector.load %arg8[%c4_140, %c0_141, %c0_142] : memref<12x1x8xf32, #tpu.memory_space<vmem>>, vector<1x1x8xf32>
    %244 = vector.shape_cast %243 : vector<1x1x8xf32> to vector<1x8xf32>
    %245 = vector.broadcast %244 : vector<1x8xf32> to vector<4x8xf32>
    %246 = arith.addf %242, %245 : vector<4x8xf32>
    %cst_143 = arith.constant dense<0.000000e+00> : vector<4x8xf32>
    %247 = tpu.matmul %226, %236, %cst_143 {dimension_numbers = #tpu.dot_dimension_numbers<[1], [0], [0], [1], [0, 0, 1, 1], [], []>} : vector<4x32xbf16>, vector<32x8xbf16>, vector<4x8xf32> -> vector<4x8xf32>
    %c8_144 = arith.constant 8 : index
    %c0_145 = arith.constant 0 : index
    %c0_146 = arith.constant 0 : index
    %248 = vector.load %arg8[%c8_144, %c0_145, %c0_146] : memref<12x1x8xf32, #tpu.memory_space<vmem>>, vector<1x1x8xf32>
    %249 = vector.shape_cast %248 : vector<1x1x8xf32> to vector<1x8xf32>
    %250 = vector.broadcast %249 : vector<1x8xf32> to vector<4x8xf32>
    %251 = arith.addf %247, %250 : vector<4x8xf32>
    %252 = arith.truncf %241 : vector<4x8xf32> to vector<4x8xbf16>
    %253 = arith.truncf %246 : vector<4x8xf32> to vector<4x8xbf16>
    %cst_147 = arith.constant dense<0.000000e+00> : vector<4x4xf32>
    %254 = tpu.matmul %252, %253, %cst_147 {dimension_numbers = #tpu.dot_dimension_numbers<[1], [1], [0], [0], [0, 0, 1, 0], [], []>} : vector<4x8xbf16>, vector<4x8xbf16>, vector<4x4xf32> -> vector<4x4xf32>
    %cst_148 = arith.constant 0.353553385 : f32
    %255 = vector.broadcast %cst_148 : f32 to vector<4x4xf32>
    %256 = arith.mulf %254, %255 : vector<4x4xf32>
    %cst_149 = arith.constant dense<0xFF800000> : vector<4xf32>
    %257 = vector.multi_reduction <maximumf>, %256, %cst_149 [1] : vector<4x4xf32> to vector<4xf32>
    %258 = vector.shape_cast %257 : vector<4xf32> to vector<4x1xf32>
    %259 = vector.broadcast %258 : vector<4x1xf32> to vector<4x4xf32>
    %260 = arith.subf %256, %259 : vector<4x4xf32>
    %261 = math.exp %260 : vector<4x4xf32>
    %cst_150 = arith.constant dense<0.000000e+00> : vector<4xf32>
    %262 = vector.multi_reduction <add>, %261, %cst_150 [1] : vector<4x4xf32> to vector<4xf32>
    %263 = vector.shape_cast %262 : vector<4xf32> to vector<4x1xf32>
    %264 = tpu.reciprocal %263 {approx = true} : vector<4x1xf32> -> vector<4x1xf32>
    %265 = vector.broadcast %264 : vector<4x1xf32> to vector<4x4xf32>
    %266 = arith.mulf %261, %265 : vector<4x4xf32>
    %267 = arith.truncf %266 : vector<4x4xf32> to vector<4x4xbf16>
    %268 = arith.truncf %251 : vector<4x8xf32> to vector<4x8xbf16>
    %cst_151 = arith.constant dense<0.000000e+00> : vector<4x8xf32>
    %269 = tpu.matmul %267, %268, %cst_151 {dimension_numbers = #tpu.dot_dimension_numbers<[1], [0], [0], [1], [0, 0, 1, 1], [], []>} : vector<4x4xbf16>, vector<4x8xbf16>, vector<4x8xf32> -> vector<4x8xf32>
    %270 = arith.truncf %269 : vector<4x8xf32> to vector<4x8xbf16>
    %c0_152 = arith.constant 0 : index
    %c0_153 = arith.constant 0 : index
    %c0_154 = arith.constant 0 : index
    %271 = vector.load %arg9[%c0_152, %c0_153, %c0_154] : memref<4x8x32xf32, #tpu.memory_space<vmem>>, vector<1x8x32xf32>
    %272 = vector.shape_cast %271 : vector<1x8x32xf32> to vector<8x32xf32>
    %273 = arith.truncf %272 : vector<8x32xf32> to vector<8x32xbf16>
    %cst_155 = arith.constant dense<0.000000e+00> : vector<4x32xf32>
    %274 = tpu.matmul %270, %273, %cst_155 {dimension_numbers = #tpu.dot_dimension_numbers<[1], [0], [0], [1], [0, 0, 1, 1], [], []>} : vector<4x8xbf16>, vector<8x32xbf16>, vector<4x32xf32> -> vector<4x32xf32>
    %275 = arith.addf %227, %274 : vector<4x32xf32>
    %c1_156 = arith.constant 1 : index
    %c0_157 = arith.constant 0 : index
    %c0_158 = arith.constant 0 : index
    %276 = vector.load %arg7[%c1_156, %c0_157, %c0_158] : memref<12x32x8xf32, #tpu.memory_space<vmem>>, vector<1x32x8xf32>
    %277 = vector.shape_cast %276 : vector<1x32x8xf32> to vector<32x8xf32>
    %278 = arith.truncf %277 : vector<32x8xf32> to vector<32x8xbf16>
    %c5_159 = arith.constant 5 : index
    %c0_160 = arith.constant 0 : index
    %c0_161 = arith.constant 0 : index
    %279 = vector.load %arg7[%c5_159, %c0_160, %c0_161] : memref<12x32x8xf32, #tpu.memory_space<vmem>>, vector<1x32x8xf32>
    %280 = vector.shape_cast %279 : vector<1x32x8xf32> to vector<32x8xf32>
    %281 = arith.truncf %280 : vector<32x8xf32> to vector<32x8xbf16>
    %c9_162 = arith.constant 9 : index
    %c0_163 = arith.constant 0 : index
    %c0_164 = arith.constant 0 : index
    %282 = vector.load %arg7[%c9_162, %c0_163, %c0_164] : memref<12x32x8xf32, #tpu.memory_space<vmem>>, vector<1x32x8xf32>
    %283 = vector.shape_cast %282 : vector<1x32x8xf32> to vector<32x8xf32>
    %284 = arith.truncf %283 : vector<32x8xf32> to vector<32x8xbf16>
    %cst_165 = arith.constant dense<0.000000e+00> : vector<4x8xf32>
    %285 = tpu.matmul %225, %278, %cst_165 {dimension_numbers = #tpu.dot_dimension_numbers<[1], [0], [0], [1], [0, 0, 1, 1], [], []>} : vector<4x32xbf16>, vector<32x8xbf16>, vector<4x8xf32> -> vector<4x8xf32>
    %c1_166 = arith.constant 1 : index
    %c0_167 = arith.constant 0 : index
    %c0_168 = arith.constant 0 : index
    %286 = vector.load %arg8[%c1_166, %c0_167, %c0_168] : memref<12x1x8xf32, #tpu.memory_space<vmem>>, vector<1x1x8xf32>
    %287 = vector.shape_cast %286 : vector<1x1x8xf32> to vector<1x8xf32>
    %288 = vector.broadcast %287 : vector<1x8xf32> to vector<4x8xf32>
    %289 = arith.addf %285, %288 : vector<4x8xf32>
    %cst_169 = arith.constant dense<0.000000e+00> : vector<4x8xf32>
    %290 = tpu.matmul %226, %281, %cst_169 {dimension_numbers = #tpu.dot_dimension_numbers<[1], [0], [0], [1], [0, 0, 1, 1], [], []>} : vector<4x32xbf16>, vector<32x8xbf16>, vector<4x8xf32> -> vector<4x8xf32>
    %c5_170 = arith.constant 5 : index
    %c0_171 = arith.constant 0 : index
    %c0_172 = arith.constant 0 : index
    %291 = vector.load %arg8[%c5_170, %c0_171, %c0_172] : memref<12x1x8xf32, #tpu.memory_space<vmem>>, vector<1x1x8xf32>
    %292 = vector.shape_cast %291 : vector<1x1x8xf32> to vector<1x8xf32>
    %293 = vector.broadcast %292 : vector<1x8xf32> to vector<4x8xf32>
    %294 = arith.addf %290, %293 : vector<4x8xf32>
    %cst_173 = arith.constant dense<0.000000e+00> : vector<4x8xf32>
    %295 = tpu.matmul %226, %284, %cst_173 {dimension_numbers = #tpu.dot_dimension_numbers<[1], [0], [0], [1], [0, 0, 1, 1], [], []>} : vector<4x32xbf16>, vector<32x8xbf16>, vector<4x8xf32> -> vector<4x8xf32>
    %c9_174 = arith.constant 9 : index
    %c0_175 = arith.constant 0 : index
    %c0_176 = arith.constant 0 : index
    %296 = vector.load %arg8[%c9_174, %c0_175, %c0_176] : memref<12x1x8xf32, #tpu.memory_space<vmem>>, vector<1x1x8xf32>
    %297 = vector.shape_cast %296 : vector<1x1x8xf32> to vector<1x8xf32>
    %298 = vector.broadcast %297 : vector<1x8xf32> to vector<4x8xf32>
    %299 = arith.addf %295, %298 : vector<4x8xf32>
    %300 = arith.truncf %289 : vector<4x8xf32> to vector<4x8xbf16>
    %301 = arith.truncf %294 : vector<4x8xf32> to vector<4x8xbf16>
    %cst_177 = arith.constant dense<0.000000e+00> : vector<4x4xf32>
    %302 = tpu.matmul %300, %301, %cst_177 {dimension_numbers = #tpu.dot_dimension_numbers<[1], [1], [0], [0], [0, 0, 1, 0], [], []>} : vector<4x8xbf16>, vector<4x8xbf16>, vector<4x4xf32> -> vector<4x4xf32>
    %cst_178 = arith.constant 0.353553385 : f32
    %303 = vector.broadcast %cst_178 : f32 to vector<4x4xf32>
    %304 = arith.mulf %302, %303 : vector<4x4xf32>
    %cst_179 = arith.constant dense<0xFF800000> : vector<4xf32>
    %305 = vector.multi_reduction <maximumf>, %304, %cst_179 [1] : vector<4x4xf32> to vector<4xf32>
    %306 = vector.shape_cast %305 : vector<4xf32> to vector<4x1xf32>
    %307 = vector.broadcast %306 : vector<4x1xf32> to vector<4x4xf32>
    %308 = arith.subf %304, %307 : vector<4x4xf32>
    %309 = math.exp %308 : vector<4x4xf32>
    %cst_180 = arith.constant dense<0.000000e+00> : vector<4xf32>
    %310 = vector.multi_reduction <add>, %309, %cst_180 [1] : vector<4x4xf32> to vector<4xf32>
    %311 = vector.shape_cast %310 : vector<4xf32> to vector<4x1xf32>
    %312 = tpu.reciprocal %311 {approx = true} : vector<4x1xf32> -> vector<4x1xf32>
    %313 = vector.broadcast %312 : vector<4x1xf32> to vector<4x4xf32>
    %314 = arith.mulf %309, %313 : vector<4x4xf32>
    %315 = arith.truncf %314 : vector<4x4xf32> to vector<4x4xbf16>
    %316 = arith.truncf %299 : vector<4x8xf32> to vector<4x8xbf16>
    %cst_181 = arith.constant dense<0.000000e+00> : vector<4x8xf32>
    %317 = tpu.matmul %315, %316, %cst_181 {dimension_numbers = #tpu.dot_dimension_numbers<[1], [0], [0], [1], [0, 0, 1, 1], [], []>} : vector<4x4xbf16>, vector<4x8xbf16>, vector<4x8xf32> -> vector<4x8xf32>
    %318 = arith.truncf %317 : vector<4x8xf32> to vector<4x8xbf16>
    %c1_182 = arith.constant 1 : index
    %c0_183 = arith.constant 0 : index
    %c0_184 = arith.constant 0 : index
    %319 = vector.load %arg9[%c1_182, %c0_183, %c0_184] : memref<4x8x32xf32, #tpu.memory_space<vmem>>, vector<1x8x32xf32>
    %320 = vector.shape_cast %319 : vector<1x8x32xf32> to vector<8x32xf32>
    %321 = arith.truncf %320 : vector<8x32xf32> to vector<8x32xbf16>
    %cst_185 = arith.constant dense<0.000000e+00> : vector<4x32xf32>
    %322 = tpu.matmul %318, %321, %cst_185 {dimension_numbers = #tpu.dot_dimension_numbers<[1], [0], [0], [1], [0, 0, 1, 1], [], []>} : vector<4x8xbf16>, vector<8x32xbf16>, vector<4x32xf32> -> vector<4x32xf32>
    %323 = arith.addf %275, %322 : vector<4x32xf32>
    %c2_186 = arith.constant 2 : index
    %c0_187 = arith.constant 0 : index
    %c0_188 = arith.constant 0 : index
    %324 = vector.load %arg7[%c2_186, %c0_187, %c0_188] : memref<12x32x8xf32, #tpu.memory_space<vmem>>, vector<1x32x8xf32>
    %325 = vector.shape_cast %324 : vector<1x32x8xf32> to vector<32x8xf32>
    %326 = arith.truncf %325 : vector<32x8xf32> to vector<32x8xbf16>
    %c6_189 = arith.constant 6 : index
    %c0_190 = arith.constant 0 : index
    %c0_191 = arith.constant 0 : index
    %327 = vector.load %arg7[%c6_189, %c0_190, %c0_191] : memref<12x32x8xf32, #tpu.memory_space<vmem>>, vector<1x32x8xf32>
    %328 = vector.shape_cast %327 : vector<1x32x8xf32> to vector<32x8xf32>
    %329 = arith.truncf %328 : vector<32x8xf32> to vector<32x8xbf16>
    %c10_192 = arith.constant 10 : index
    %c0_193 = arith.constant 0 : index
    %c0_194 = arith.constant 0 : index
    %330 = vector.load %arg7[%c10_192, %c0_193, %c0_194] : memref<12x32x8xf32, #tpu.memory_space<vmem>>, vector<1x32x8xf32>
    %331 = vector.shape_cast %330 : vector<1x32x8xf32> to vector<32x8xf32>
    %332 = arith.truncf %331 : vector<32x8xf32> to vector<32x8xbf16>
    %cst_195 = arith.constant dense<0.000000e+00> : vector<4x8xf32>
    %333 = tpu.matmul %225, %326, %cst_195 {dimension_numbers = #tpu.dot_dimension_numbers<[1], [0], [0], [1], [0, 0, 1, 1], [], []>} : vector<4x32xbf16>, vector<32x8xbf16>, vector<4x8xf32> -> vector<4x8xf32>
    %c2_196 = arith.constant 2 : index
    %c0_197 = arith.constant 0 : index
    %c0_198 = arith.constant 0 : index
    %334 = vector.load %arg8[%c2_196, %c0_197, %c0_198] : memref<12x1x8xf32, #tpu.memory_space<vmem>>, vector<1x1x8xf32>
    %335 = vector.shape_cast %334 : vector<1x1x8xf32> to vector<1x8xf32>
    %336 = vector.broadcast %335 : vector<1x8xf32> to vector<4x8xf32>
    %337 = arith.addf %333, %336 : vector<4x8xf32>
    %cst_199 = arith.constant dense<0.000000e+00> : vector<4x8xf32>
    %338 = tpu.matmul %226, %329, %cst_199 {dimension_numbers = #tpu.dot_dimension_numbers<[1], [0], [0], [1], [0, 0, 1, 1], [], []>} : vector<4x32xbf16>, vector<32x8xbf16>, vector<4x8xf32> -> vector<4x8xf32>
    %c6_200 = arith.constant 6 : index
    %c0_201 = arith.constant 0 : index
    %c0_202 = arith.constant 0 : index
    %339 = vector.load %arg8[%c6_200, %c0_201, %c0_202] : memref<12x1x8xf32, #tpu.memory_space<vmem>>, vector<1x1x8xf32>
    %340 = vector.shape_cast %339 : vector<1x1x8xf32> to vector<1x8xf32>
    %341 = vector.broadcast %340 : vector<1x8xf32> to vector<4x8xf32>
    %342 = arith.addf %338, %341 : vector<4x8xf32>
    %cst_203 = arith.constant dense<0.000000e+00> : vector<4x8xf32>
    %343 = tpu.matmul %226, %332, %cst_203 {dimension_numbers = #tpu.dot_dimension_numbers<[1], [0], [0], [1], [0, 0, 1, 1], [], []>} : vector<4x32xbf16>, vector<32x8xbf16>, vector<4x8xf32> -> vector<4x8xf32>
    %c10_204 = arith.constant 10 : index
    %c0_205 = arith.constant 0 : index
    %c0_206 = arith.constant 0 : index
    %344 = vector.load %arg8[%c10_204, %c0_205, %c0_206] : memref<12x1x8xf32, #tpu.memory_space<vmem>>, vector<1x1x8xf32>
    %345 = vector.shape_cast %344 : vector<1x1x8xf32> to vector<1x8xf32>
    %346 = vector.broadcast %345 : vector<1x8xf32> to vector<4x8xf32>
    %347 = arith.addf %343, %346 : vector<4x8xf32>
    %348 = arith.truncf %337 : vector<4x8xf32> to vector<4x8xbf16>
    %349 = arith.truncf %342 : vector<4x8xf32> to vector<4x8xbf16>
    %cst_207 = arith.constant dense<0.000000e+00> : vector<4x4xf32>
    %350 = tpu.matmul %348, %349, %cst_207 {dimension_numbers = #tpu.dot_dimension_numbers<[1], [1], [0], [0], [0, 0, 1, 0], [], []>} : vector<4x8xbf16>, vector<4x8xbf16>, vector<4x4xf32> -> vector<4x4xf32>
    %cst_208 = arith.constant 0.353553385 : f32
    %351 = vector.broadcast %cst_208 : f32 to vector<4x4xf32>
    %352 = arith.mulf %350, %351 : vector<4x4xf32>
    %cst_209 = arith.constant dense<0xFF800000> : vector<4xf32>
    %353 = vector.multi_reduction <maximumf>, %352, %cst_209 [1] : vector<4x4xf32> to vector<4xf32>
    %354 = vector.shape_cast %353 : vector<4xf32> to vector<4x1xf32>
    %355 = vector.broadcast %354 : vector<4x1xf32> to vector<4x4xf32>
    %356 = arith.subf %352, %355 : vector<4x4xf32>
    %357 = math.exp %356 : vector<4x4xf32>
    %cst_210 = arith.constant dense<0.000000e+00> : vector<4xf32>
    %358 = vector.multi_reduction <add>, %357, %cst_210 [1] : vector<4x4xf32> to vector<4xf32>
    %359 = vector.shape_cast %358 : vector<4xf32> to vector<4x1xf32>
    %360 = tpu.reciprocal %359 {approx = true} : vector<4x1xf32> -> vector<4x1xf32>
    %361 = vector.broadcast %360 : vector<4x1xf32> to vector<4x4xf32>
    %362 = arith.mulf %357, %361 : vector<4x4xf32>
    %363 = arith.truncf %362 : vector<4x4xf32> to vector<4x4xbf16>
    %364 = arith.truncf %347 : vector<4x8xf32> to vector<4x8xbf16>
    %cst_211 = arith.constant dense<0.000000e+00> : vector<4x8xf32>
    %365 = tpu.matmul %363, %364, %cst_211 {dimension_numbers = #tpu.dot_dimension_numbers<[1], [0], [0], [1], [0, 0, 1, 1], [], []>} : vector<4x4xbf16>, vector<4x8xbf16>, vector<4x8xf32> -> vector<4x8xf32>
    %366 = arith.truncf %365 : vector<4x8xf32> to vector<4x8xbf16>
    %c2_212 = arith.constant 2 : index
    %c0_213 = arith.constant 0 : index
    %c0_214 = arith.constant 0 : index
    %367 = vector.load %arg9[%c2_212, %c0_213, %c0_214] : memref<4x8x32xf32, #tpu.memory_space<vmem>>, vector<1x8x32xf32>
    %368 = vector.shape_cast %367 : vector<1x8x32xf32> to vector<8x32xf32>
    %369 = arith.truncf %368 : vector<8x32xf32> to vector<8x32xbf16>
    %cst_215 = arith.constant dense<0.000000e+00> : vector<4x32xf32>
    %370 = tpu.matmul %366, %369, %cst_215 {dimension_numbers = #tpu.dot_dimension_numbers<[1], [0], [0], [1], [0, 0, 1, 1], [], []>} : vector<4x8xbf16>, vector<8x32xbf16>, vector<4x32xf32> -> vector<4x32xf32>
    %371 = arith.addf %323, %370 : vector<4x32xf32>
    %c3_216 = arith.constant 3 : index
    %c0_217 = arith.constant 0 : index
    %c0_218 = arith.constant 0 : index
    %372 = vector.load %arg7[%c3_216, %c0_217, %c0_218] : memref<12x32x8xf32, #tpu.memory_space<vmem>>, vector<1x32x8xf32>
    %373 = vector.shape_cast %372 : vector<1x32x8xf32> to vector<32x8xf32>
    %374 = arith.truncf %373 : vector<32x8xf32> to vector<32x8xbf16>
    %c7_219 = arith.constant 7 : index
    %c0_220 = arith.constant 0 : index
    %c0_221 = arith.constant 0 : index
    %375 = vector.load %arg7[%c7_219, %c0_220, %c0_221] : memref<12x32x8xf32, #tpu.memory_space<vmem>>, vector<1x32x8xf32>
    %376 = vector.shape_cast %375 : vector<1x32x8xf32> to vector<32x8xf32>
    %377 = arith.truncf %376 : vector<32x8xf32> to vector<32x8xbf16>
    %c11_222 = arith.constant 11 : index
    %c0_223 = arith.constant 0 : index
    %c0_224 = arith.constant 0 : index
    %378 = vector.load %arg7[%c11_222, %c0_223, %c0_224] : memref<12x32x8xf32, #tpu.memory_space<vmem>>, vector<1x32x8xf32>
    %379 = vector.shape_cast %378 : vector<1x32x8xf32> to vector<32x8xf32>
    %380 = arith.truncf %379 : vector<32x8xf32> to vector<32x8xbf16>
    %cst_225 = arith.constant dense<0.000000e+00> : vector<4x8xf32>
    %381 = tpu.matmul %225, %374, %cst_225 {dimension_numbers = #tpu.dot_dimension_numbers<[1], [0], [0], [1], [0, 0, 1, 1], [], []>} : vector<4x32xbf16>, vector<32x8xbf16>, vector<4x8xf32> -> vector<4x8xf32>
    %c3_226 = arith.constant 3 : index
    %c0_227 = arith.constant 0 : index
    %c0_228 = arith.constant 0 : index
    %382 = vector.load %arg8[%c3_226, %c0_227, %c0_228] : memref<12x1x8xf32, #tpu.memory_space<vmem>>, vector<1x1x8xf32>
    %383 = vector.shape_cast %382 : vector<1x1x8xf32> to vector<1x8xf32>
    %384 = vector.broadcast %383 : vector<1x8xf32> to vector<4x8xf32>
    %385 = arith.addf %381, %384 : vector<4x8xf32>
    %cst_229 = arith.constant dense<0.000000e+00> : vector<4x8xf32>
    %386 = tpu.matmul %226, %377, %cst_229 {dimension_numbers = #tpu.dot_dimension_numbers<[1], [0], [0], [1], [0, 0, 1, 1], [], []>} : vector<4x32xbf16>, vector<32x8xbf16>, vector<4x8xf32> -> vector<4x8xf32>
    %c7_230 = arith.constant 7 : index
    %c0_231 = arith.constant 0 : index
    %c0_232 = arith.constant 0 : index
    %387 = vector.load %arg8[%c7_230, %c0_231, %c0_232] : memref<12x1x8xf32, #tpu.memory_space<vmem>>, vector<1x1x8xf32>
    %388 = vector.shape_cast %387 : vector<1x1x8xf32> to vector<1x8xf32>
    %389 = vector.broadcast %388 : vector<1x8xf32> to vector<4x8xf32>
    %390 = arith.addf %386, %389 : vector<4x8xf32>
    %cst_233 = arith.constant dense<0.000000e+00> : vector<4x8xf32>
    %391 = tpu.matmul %226, %380, %cst_233 {dimension_numbers = #tpu.dot_dimension_numbers<[1], [0], [0], [1], [0, 0, 1, 1], [], []>} : vector<4x32xbf16>, vector<32x8xbf16>, vector<4x8xf32> -> vector<4x8xf32>
    %c11_234 = arith.constant 11 : index
    %c0_235 = arith.constant 0 : index
    %c0_236 = arith.constant 0 : index
    %392 = vector.load %arg8[%c11_234, %c0_235, %c0_236] : memref<12x1x8xf32, #tpu.memory_space<vmem>>, vector<1x1x8xf32>
    %393 = vector.shape_cast %392 : vector<1x1x8xf32> to vector<1x8xf32>
    %394 = vector.broadcast %393 : vector<1x8xf32> to vector<4x8xf32>
    %395 = arith.addf %391, %394 : vector<4x8xf32>
    %396 = arith.truncf %385 : vector<4x8xf32> to vector<4x8xbf16>
    %397 = arith.truncf %390 : vector<4x8xf32> to vector<4x8xbf16>
    %cst_237 = arith.constant dense<0.000000e+00> : vector<4x4xf32>
    %398 = tpu.matmul %396, %397, %cst_237 {dimension_numbers = #tpu.dot_dimension_numbers<[1], [1], [0], [0], [0, 0, 1, 0], [], []>} : vector<4x8xbf16>, vector<4x8xbf16>, vector<4x4xf32> -> vector<4x4xf32>
    %cst_238 = arith.constant 0.353553385 : f32
    %399 = vector.broadcast %cst_238 : f32 to vector<4x4xf32>
    %400 = arith.mulf %398, %399 : vector<4x4xf32>
    %cst_239 = arith.constant dense<0xFF800000> : vector<4xf32>
    %401 = vector.multi_reduction <maximumf>, %400, %cst_239 [1] : vector<4x4xf32> to vector<4xf32>
    %402 = vector.shape_cast %401 : vector<4xf32> to vector<4x1xf32>
    %403 = vector.broadcast %402 : vector<4x1xf32> to vector<4x4xf32>
    %404 = arith.subf %400, %403 : vector<4x4xf32>
    %405 = math.exp %404 : vector<4x4xf32>
    %cst_240 = arith.constant dense<0.000000e+00> : vector<4xf32>
    %406 = vector.multi_reduction <add>, %405, %cst_240 [1] : vector<4x4xf32> to vector<4xf32>
    %407 = vector.shape_cast %406 : vector<4xf32> to vector<4x1xf32>
    %408 = tpu.reciprocal %407 {approx = true} : vector<4x1xf32> -> vector<4x1xf32>
    %409 = vector.broadcast %408 : vector<4x1xf32> to vector<4x4xf32>
    %410 = arith.mulf %405, %409 : vector<4x4xf32>
    %411 = arith.truncf %410 : vector<4x4xf32> to vector<4x4xbf16>
    %412 = arith.truncf %395 : vector<4x8xf32> to vector<4x8xbf16>
    %cst_241 = arith.constant dense<0.000000e+00> : vector<4x8xf32>
    %413 = tpu.matmul %411, %412, %cst_241 {dimension_numbers = #tpu.dot_dimension_numbers<[1], [0], [0], [1], [0, 0, 1, 1], [], []>} : vector<4x4xbf16>, vector<4x8xbf16>, vector<4x8xf32> -> vector<4x8xf32>
    %414 = arith.truncf %413 : vector<4x8xf32> to vector<4x8xbf16>
    %c3_242 = arith.constant 3 : index
    %c0_243 = arith.constant 0 : index
    %c0_244 = arith.constant 0 : index
    %415 = vector.load %arg9[%c3_242, %c0_243, %c0_244] : memref<4x8x32xf32, #tpu.memory_space<vmem>>, vector<1x8x32xf32>
    %416 = vector.shape_cast %415 : vector<1x8x32xf32> to vector<8x32xf32>
    %417 = arith.truncf %416 : vector<8x32xf32> to vector<8x32xbf16>
    %cst_245 = arith.constant dense<0.000000e+00> : vector<4x32xf32>
    %418 = tpu.matmul %414, %417, %cst_245 {dimension_numbers = #tpu.dot_dimension_numbers<[1], [0], [0], [1], [0, 0, 1, 1], [], []>} : vector<4x8xbf16>, vector<8x32xbf16>, vector<4x32xf32> -> vector<4x32xf32>
    %419 = arith.addf %371, %418 : vector<4x32xf32>
    %c0_246 = arith.constant 0 : index
    %c0_247 = arith.constant 0 : index
    %420 = vector.load %arg10[%c0_246, %c0_247] : memref<1x32xf32, #tpu.memory_space<vmem>>, vector<1x32xf32>
    %421 = vector.broadcast %420 : vector<1x32xf32> to vector<4x32xf32>
    %422 = arith.addf %419, %421 : vector<4x32xf32>
    %423 = arith.addf %224, %422 : vector<4x32xf32>
    %c0_248 = arith.constant 0 : index
    %c0_249 = arith.constant 0 : index
    %424 = vector.load %arg13[%c0_248, %c0_249] : memref<1x32xf32, #tpu.memory_space<vmem>>, vector<1x32xf32>
    %c0_250 = arith.constant 0 : index
    %c0_251 = arith.constant 0 : index
    %425 = vector.load %arg14[%c0_250, %c0_251] : memref<1x32xf32, #tpu.memory_space<vmem>>, vector<1x32xf32>
    %cst_252 = arith.constant dense<0.000000e+00> : vector<4xf32>
    %426 = vector.multi_reduction <add>, %423, %cst_252 [1] : vector<4x32xf32> to vector<4xf32>
    %427 = vector.shape_cast %426 : vector<4xf32> to vector<4x1xf32>
    %cst_253 = arith.constant 3.200000e+01 : f32
    %428 = vector.broadcast %cst_253 : f32 to vector<4x1xf32>
    %429 = arith.divf %427, %428 : vector<4x1xf32>
    %430 = vector.broadcast %429 : vector<4x1xf32> to vector<4x32xf32>
    %431 = arith.subf %423, %430 : vector<4x32xf32>
    %432 = arith.mulf %431, %431 : vector<4x32xf32>
    %cst_254 = arith.constant dense<0.000000e+00> : vector<4xf32>
    %433 = vector.multi_reduction <add>, %432, %cst_254 [1] : vector<4x32xf32> to vector<4xf32>
    %434 = vector.shape_cast %433 : vector<4xf32> to vector<4x1xf32>
    %cst_255 = arith.constant 3.200000e+01 : f32
    %435 = vector.broadcast %cst_255 : f32 to vector<4x1xf32>
    %436 = arith.divf %434, %435 : vector<4x1xf32>
    %cst_256 = arith.constant 9.99999974E-6 : f32
    %437 = vector.broadcast %cst_256 : f32 to vector<4x1xf32>
    %438 = arith.addf %436, %437 : vector<4x1xf32>
    %439 = math.rsqrt %438 : vector<4x1xf32>
    %440 = vector.broadcast %439 : vector<4x1xf32> to vector<4x32xf32>
    %441 = arith.mulf %431, %440 : vector<4x32xf32>
    %442 = vector.broadcast %424 : vector<1x32xf32> to vector<4x32xf32>
    %443 = arith.mulf %441, %442 : vector<4x32xf32>
    %444 = vector.broadcast %425 : vector<1x32xf32> to vector<4x32xf32>
    %445 = arith.addf %443, %444 : vector<4x32xf32>
    %446 = arith.truncf %445 : vector<4x32xf32> to vector<4x32xbf16>
    %c0_257 = arith.constant 0 : index
    %c0_258 = arith.constant 0 : index
    %447 = vector.load %arg15[%c0_257, %c0_258] : memref<32x128xf32, #tpu.memory_space<vmem>>, vector<32x128xf32>
    %448 = arith.truncf %447 : vector<32x128xf32> to vector<32x128xbf16>
    %cst_259 = arith.constant dense<0.000000e+00> : vector<4x128xf32>
    %449 = tpu.matmul %446, %448, %cst_259 {dimension_numbers = #tpu.dot_dimension_numbers<[1], [0], [0], [1], [0, 0, 1, 1], [], []>} : vector<4x32xbf16>, vector<32x128xbf16>, vector<4x128xf32> -> vector<4x128xf32>
    %c0_260 = arith.constant 0 : index
    %c0_261 = arith.constant 0 : index
    %450 = vector.load %arg16[%c0_260, %c0_261] : memref<1x128xf32, #tpu.memory_space<vmem>>, vector<1x128xf32>
    %451 = vector.broadcast %450 : vector<1x128xf32> to vector<4x128xf32>
    %452 = arith.addf %449, %451 : vector<4x128xf32>
    %cst_262 = arith.constant 0.000000e+00 : f32
    %453 = vector.broadcast %cst_262 : f32 to vector<4x128xf32>
    %454 = arith.maximumf %452, %453 : vector<4x128xf32>
    %455 = arith.truncf %454 : vector<4x128xf32> to vector<4x128xbf16>
    %c0_263 = arith.constant 0 : index
    %c0_264 = arith.constant 0 : index
    %456 = vector.load %arg17[%c0_263, %c0_264] : memref<128x32xf32, #tpu.memory_space<vmem>>, vector<128x32xf32>
    %457 = arith.truncf %456 : vector<128x32xf32> to vector<128x32xbf16>
    %cst_265 = arith.constant dense<0.000000e+00> : vector<4x32xf32>
    %458 = tpu.matmul %455, %457, %cst_265 {dimension_numbers = #tpu.dot_dimension_numbers<[1], [0], [0], [1], [0, 0, 1, 1], [], []>} : vector<4x128xbf16>, vector<128x32xbf16>, vector<4x32xf32> -> vector<4x32xf32>
    %c0_266 = arith.constant 0 : index
    %c0_267 = arith.constant 0 : index
    %459 = vector.load %arg18[%c0_266, %c0_267] : memref<1x32xf32, #tpu.memory_space<vmem>>, vector<1x32xf32>
    %460 = vector.broadcast %459 : vector<1x32xf32> to vector<4x32xf32>
    %461 = arith.addf %458, %460 : vector<4x32xf32>
    %462 = arith.addf %445, %461 : vector<4x32xf32>
    %c0_268 = arith.constant 0 : index
    %c0_269 = arith.constant 0 : index
    %463 = vector.load %arg19[%c0_268, %c0_269] : memref<1x32xf32, #tpu.memory_space<vmem>>, vector<1x32xf32>
    %c0_270 = arith.constant 0 : index
    %c0_271 = arith.constant 0 : index
    %464 = vector.load %arg20[%c0_270, %c0_271] : memref<1x32xf32, #tpu.memory_space<vmem>>, vector<1x32xf32>
    %cst_272 = arith.constant dense<0.000000e+00> : vector<4xf32>
    %465 = vector.multi_reduction <add>, %462, %cst_272 [1] : vector<4x32xf32> to vector<4xf32>
    %466 = vector.shape_cast %465 : vector<4xf32> to vector<4x1xf32>
    %cst_273 = arith.constant 3.200000e+01 : f32
    %467 = vector.broadcast %cst_273 : f32 to vector<4x1xf32>
    %468 = arith.divf %466, %467 : vector<4x1xf32>
    %469 = vector.broadcast %468 : vector<4x1xf32> to vector<4x32xf32>
    %470 = arith.subf %462, %469 : vector<4x32xf32>
    %471 = arith.mulf %470, %470 : vector<4x32xf32>
    %cst_274 = arith.constant dense<0.000000e+00> : vector<4xf32>
    %472 = vector.multi_reduction <add>, %471, %cst_274 [1] : vector<4x32xf32> to vector<4xf32>
    %473 = vector.shape_cast %472 : vector<4xf32> to vector<4x1xf32>
    %cst_275 = arith.constant 3.200000e+01 : f32
    %474 = vector.broadcast %cst_275 : f32 to vector<4x1xf32>
    %475 = arith.divf %473, %474 : vector<4x1xf32>
    %cst_276 = arith.constant 9.99999974E-6 : f32
    %476 = vector.broadcast %cst_276 : f32 to vector<4x1xf32>
    %477 = arith.addf %475, %476 : vector<4x1xf32>
    %478 = math.rsqrt %477 : vector<4x1xf32>
    %479 = vector.broadcast %478 : vector<4x1xf32> to vector<4x32xf32>
    %480 = arith.mulf %470, %479 : vector<4x32xf32>
    %481 = vector.broadcast %463 : vector<1x32xf32> to vector<4x32xf32>
    %482 = arith.mulf %480, %481 : vector<4x32xf32>
    %483 = vector.broadcast %464 : vector<1x32xf32> to vector<4x32xf32>
    %484 = arith.addf %482, %483 : vector<4x32xf32>
    %c0_277 = arith.constant 0 : index
    %c0_278 = arith.constant 0 : index
    %c0_279 = arith.constant 0 : index
    %485 = vector.load %arg21[%c0_277, %c0_278, %c0_279] : memref<1x4x32xf32, #tpu.memory_space<vmem>>, vector<1x4x32xf32>
    %486 = vector.shape_cast %485 : vector<1x4x32xf32> to vector<4x32xf32>
    %487 = vector.shape_cast %484 : vector<4x32xf32> to vector<1x4x32xf32>
    tpu.vector_store %arg21[%c0_277, %c0_278, %c0_279], %487 {strides = array<i32>} : memref<1x4x32xf32, #tpu.memory_space<vmem>>, vector<1x4x32xf32>,
    return
  }
  func.func @transform_0(%arg0: i32) -> (i32, i32, i32) {
    %c0_i32 = arith.constant 0 : i32
    %c0_i32_0 = arith.constant 0 : i32
    %c0_i32_1 = arith.constant 0 : i32
    return %arg0, %c0_i32, %c0_i32_0 : i32, i32, i32
  }
  func.func @transform_1(%arg0: i32) -> (i32, i32, i32) {
    %c0_i32 = arith.constant 0 : i32
    %c0_i32_0 = arith.constant 0 : i32
    %c0_i32_1 = arith.constant 0 : i32
    return %arg0, %c0_i32, %c0_i32_0 : i32, i32, i32
  }
  func.func @transform_2(%arg0: i32) -> (i32, i32, i32) {
    %c0_i32 = arith.constant 0 : i32
    %c0_i32_0 = arith.constant 0 : i32
    %c0_i32_1 = arith.constant 0 : i32
    %c0_i32_2 = arith.constant 0 : i32
    return %c0_i32, %c0_i32_0, %c0_i32_1 : i32, i32, i32
  }
  func.func @transform_3(%arg0: i32) -> (i32, i32, i32) {
    %c0_i32 = arith.constant 0 : i32
    %c0_i32_0 = arith.constant 0 : i32
    %c0_i32_1 = arith.constant 0 : i32
    %c0_i32_2 = arith.constant 0 : i32
    return %c0_i32, %c0_i32_0, %c0_i32_1 : i32, i32, i32
  }
  func.func @transform_4(%arg0: i32) -> (i32, i32, i32) {
    %c0_i32 = arith.constant 0 : i32
    %c0_i32_0 = arith.constant 0 : i32
    %c0_i32_1 = arith.constant 0 : i32
    %c0_i32_2 = arith.constant 0 : i32
    return %c0_i32, %c0_i32_0, %c0_i32_1 : i32, i32, i32
  }
  func.func @transform_5(%arg0: i32) -> (i32, i32) {
    %c0_i32 = arith.constant 0 : i32
    %c0_i32_0 = arith.constant 0 : i32
    %c0_i32_1 = arith.constant 0 : i32
    return %c0_i32, %c0_i32_0 : i32, i32
  }
  func.func @transform_6(%arg0: i32) -> (i32, i32, i32) {
    %c0_i32 = arith.constant 0 : i32
    %c0_i32_0 = arith.constant 0 : i32
    %c0_i32_1 = arith.constant 0 : i32
    %c0_i32_2 = arith.constant 0 : i32
    return %c0_i32, %c0_i32_0, %c0_i32_1 : i32, i32, i32
  }
  func.func @transform_7(%arg0: i32) -> (i32, i32, i32) {
    %c0_i32 = arith.constant 0 : i32
    %c0_i32_0 = arith.constant 0 : i32
    %c0_i32_1 = arith.constant 0 : i32
    %c0_i32_2 = arith.constant 0 : i32
    return %c0_i32, %c0_i32_0, %c0_i32_1 : i32, i32, i32
  }
  func.func @transform_8(%arg0: i32) -> (i32, i32, i32) {
    %c0_i32 = arith.constant 0 : i32
    %c0_i32_0 = arith.constant 0 : i32
    %c0_i32_1 = arith.constant 0 : i32
    %c0_i32_2 = arith.constant 0 : i32
    return %c0_i32, %c0_i32_0, %c0_i32_1 : i32, i32, i32
  }
  func.func @transform_9(%arg0: i32) -> (i32, i32) {
    %c0_i32 = arith.constant 0 : i32
    %c0_i32_0 = arith.constant 0 : i32
    %c0_i32_1 = arith.constant 0 : i32
    return %c0_i32, %c0_i32_0 : i32, i32
  }
  func.func @transform_10(%arg0: i32) -> (i32, i32) {
    %c0_i32 = arith.constant 0 : i32
    %c0_i32_0 = arith.constant 0 : i32
    %c0_i32_1 = arith.constant 0 : i32
    return %c0_i32, %c0_i32_0 : i32, i32
  }
  func.func @transform_11(%arg0: i32) -> (i32, i32) {
    %c0_i32 = arith.constant 0 : i32
    %c0_i32_0 = arith.constant 0 : i32
    %c0_i32_1 = arith.constant 0 : i32
    return %c0_i32, %c0_i32_0 : i32, i32
  }
  func.func @transform_12(%arg0: i32) -> (i32, i32) {
    %c0_i32 = arith.constant 0 : i32
    %c0_i32_0 = arith.constant 0 : i32
    %c0_i32_1 = arith.constant 0 : i32
    return %c0_i32, %c0_i32_0 : i32, i32
  }
  func.func @transform_13(%arg0: i32) -> (i32, i32) {
    %c0_i32 = arith.constant 0 : i32
    %c0_i32_0 = arith.constant 0 : i32
    %c0_i32_1 = arith.constant 0 : i32
    return %c0_i32, %c0_i32_0 : i32, i32
  }
  func.func @transform_14(%arg0: i32) -> (i32, i32) {
    %c0_i32 = arith.constant 0 : i32
    %c0_i32_0 = arith.constant 0 : i32
    %c0_i32_1 = arith.constant 0 : i32
    return %c0_i32, %c0_i32_0 : i32, i32
  }
  func.func @transform_15(%arg0: i32) -> (i32, i32) {
    %c0_i32 = arith.constant 0 : i32
    %c0_i32_0 = arith.constant 0 : i32
    %c0_i32_1 = arith.constant 0 : i32
    return %c0_i32, %c0_i32_0 : i32, i32
  }
  func.func @transform_16(%arg0: i32) -> (i32, i32) {
    %c0_i32 = arith.constant 0 : i32
    %c0_i32_0 = arith.constant 0 : i32
    %c0_i32_1 = arith.constant 0 : i32
    return %c0_i32, %c0_i32_0 : i32, i32
  }
  func.func @transform_17(%arg0: i32) -> (i32, i32) {
    %c0_i32 = arith.constant 0 : i32
    %c0_i32_0 = arith.constant 0 : i32
    %c0_i32_1 = arith.constant 0 : i32
    return %c0_i32, %c0_i32_0 : i32, i32
  }
  func.func @transform_18(%arg0: i32) -> (i32, i32) {
    %c0_i32 = arith.constant 0 : i32
    %c0_i32_0 = arith.constant 0 : i32
    %c0_i32_1 = arith.constant 0 : i32
    return %c0_i32, %c0_i32_0 : i32, i32
  }
  func.func @transform_19(%arg0: i32) -> (i32, i32) {
    %c0_i32 = arith.constant 0 : i32
    %c0_i32_0 = arith.constant 0 : i32
    %c0_i32_1 = arith.constant 0 : i32
    return %c0_i32, %c0_i32_0 : i32, i32
  }
  func.func @transform_20(%arg0: i32) -> (i32, i32, i32) {
    %c0_i32 = arith.constant 0 : i32
    %c0_i32_0 = arith.constant 0 : i32
    %c0_i32_1 = arith.constant 0 : i32
    return %arg0, %c0_i32, %c0_i32_0 : i32, i32, i32
  }
}

</mosaic_0001>

<bundles_post_ra>
// kernel: forward.9
= control target key start
LH: loop header
LB: loop body
LE: loop exit
PB: predicated region body
PF: predicated region fallthrough
CT: control target
= control target key end

     0   :  { %v30_v47 = vlaneseq  ;;  %vm273_vm0 = vcmask 261120   ;;  %s578_s3 = inlined_call_operand.vmem [shape: f32[512,32], index: 3, kind: input, shape index: {}]   ;;  %s579_s0 = inlined_call_operand.vmem [shape: f32[8,512], index: 0, kind: input, shape index: {}]   ;;  %s580_s1 = inlined_call_operand.vmem [shape: f32[1,512], index: 1, kind: input, shape index: {}]   ;;  %s581_s2 = inlined_call_operand.vmem [shape: f32[1,512], index: 2, kind: input, shape index: {}]   ;;  %s582_s4 = inlined_call_operand.vmem [shape: f32[1,32], index: 4, kind: input, shape index: {}]   ;;  %s583_s5 = inlined_call_operand.vmem [shape: f32[8,32], index: 5, kind: input, shape index: {}]   ;;  %s584_s6 = inlined_call_operand.vmem [shape: f32[8,32], index: 6, kind: output, shape index: {}]  }
   0x1   :  { %v104_v0 = vld [vmem:[%s578_s3 + $0x80] sm:$0xff]  ;;  %v105_v1 = vld [vmem:[%s578_s3 + $0x88] sm:$0xff]  ;;  %v106_v11 = vld [vmem:[%s578_s3 + $0x90] sm:$0xff] }
   0x2   :  { %v136_v2 = vld [vmem:[%s578_s3 + $0x180] sm:$0xff]  ;;  %v160_v3 = vpack.c.bf16 %v105_v1, %v104_v0  ;;  %v137_v4 = vld [vmem:[%s578_s3 + $0x188] sm:$0xff]  ;;  %v107_v13 = vld [vmem:[%s578_s3 + $0x98] sm:$0xff]  ;;  %v31_v61 = vshrl.u32 %v30_v47, 7 }
   0x3   :  { %v88_v5 = vld [vmem:[%s578_s3] sm:$0xff]  ;;  %v89_v6 = vld [vmem:[%s578_s3 + $0x8] sm:$0xff]  ;;  %v176_v7 = vpack.c.bf16 %v137_v4, %v136_v2  ;;  %v138_v14 = vld [vmem:[%s578_s3 + $0x190] sm:$0xff]  ;;  %v161_v16 = vpack.c.bf16 %v107_v13, %v106_v11 }
   0x4   :  { %v152_v8 = vpack.c.bf16 %v89_v6, %v88_v5  ;;  %v120_v9 = vld [vmem:[%s578_s3 + $0x100] sm:$0xff]  ;;  %v121_v10 = vld [vmem:[%s578_s3 + $0x108] sm:$0xff]  ;;  %280 = vmatprep.subr.bf16.mxu0 %v160_v3  ;;  %v139_v15 = vld [vmem:[%s578_s3 + $0x198] sm:$0xff]  ;;  %v44_v13 = vsub.s32 3, %v31_v61 }
   0x5   :  { %v168_v12 = vpack.c.bf16 %v121_v10, %v120_v9  ;;  %302 = vmatprep.subr.bf16.mxu1 %v176_v7  ;;  %v177_v17 = vpack.c.bf16 %v139_v15, %v138_v14  ;;  %v90_v18 = vld [vmem:[%s578_s3 + $0x10] sm:$0xff]  ;;  %v91_v19 = vld [vmem:[%s578_s3 + $0x18] sm:$0xff]  ;;  %v108_v23 = vld [vmem:[%s578_s3 + $0xa0] sm:$0xff]  ;;  %v32_v14 = vsub.s32 0, %v31_v61 }
   0x6   :  { %281 = vmatpush3.bf16.msra.mxu0 %v152_v8  ;;  %v122_v20 = vld [vmem:[%s578_s3 + $0x110] sm:$0xff]  ;;  %v153_v21 = vpack.c.bf16 %v91_v19, %v90_v18  ;;  %v123_v22 = vld [vmem:[%s578_s3 + $0x118] sm:$0xff]  ;;  %v109_v24 = vld [vmem:[%s578_s3 + $0xa8] sm:$0xff] }
   0x7   :  { %303 = vmatpush3.bf16.msra.mxu1 %v168_v12  ;;  %282 = vmatprep.subr.bf16.mxu0 %v161_v16  ;;  %v169_v25 = vpack.c.bf16 %v123_v22, %v122_v20  ;;  %v162_v26 = vpack.c.bf16 %v109_v24, %v108_v23  ;;  %v140_v27 = vld [vmem:[%s578_s3 + $0x1a0] sm:$0xff]  ;;  %v141_v28 = vld [vmem:[%s578_s3 + $0x1a8] sm:$0xff]  ;;  %v110_v35 = vld [vmem:[%s578_s3 + $0xb0] sm:$0xff]  ;;  %v36_v12 = vsub.s32 1, %v31_v61 }
   0x8   :  { %304 = vmatprep.subr.bf16.mxu1 %v177_v17  ;;  %v92_v29 = vld [vmem:[%s578_s3 + $0x20] sm:$0xff]  ;;  %v178_v30 = vpack.c.bf16 %v141_v28, %v140_v27  ;;  %v93_v31 = vld [vmem:[%s578_s3 + $0x28] sm:$0xff]  ;;  %v111_v36 = vld [vmem:[%s578_s3 + $0xb8] sm:$0xff]  ;;  %v40_v17 = vsub.s32 2, %v31_v61 }
   0x9   :  { %v124_v32 = vld [vmem:[%s578_s3 + $0x120] sm:$0xff]  ;;  %v125_v33 = vld [vmem:[%s578_s3 + $0x128] sm:$0xff]  ;;  %v154_v34 = vpack.c.bf16 %v93_v31, %v92_v29  ;;  %v142_v37 = vld [vmem:[%s578_s3 + $0x1b0] sm:$0xff]  ;;  %v163_v39 = vpack.c.bf16 %v111_v36, %v110_v35 }
   0xa   :  { %283 = vmatpush3.bf16.msra.mxu0 %v153_v21  ;;  %v170_v38 = vpack.c.bf16 %v125_v33, %v124_v32  ;;  %v143_v40 = vld [vmem:[%s578_s3 + $0x1b8] sm:$0xff]  ;;  %v94_v41 = vld [vmem:[%s578_s3 + $0x30] sm:$0xff]  ;;  %v112_v46 = vld [vmem:[%s578_s3 + $0xc0] sm:$0xff] }
   0xb   :  { %305 = vmatpush3.bf16.msra.mxu1 %v169_v25  ;;  %284 = vmatprep.subr.bf16.mxu0 %v162_v26  ;;  %v95_v42 = vld [vmem:[%s578_s3 + $0x38] sm:$0xff]  ;;  %v179_v43 = vpack.c.bf16 %v143_v40, %v142_v37  ;;  %v126_v44 = vld [vmem:[%s578_s3 + $0x130] sm:$0xff]  ;;  %v113_v48 = vld [vmem:[%s578_s3 + $0xc8] sm:$0xff] }
   0xc   :  { %306 = vmatprep.subr.bf16.mxu1 %v178_v30  ;;  %v127_v45 = vld [vmem:[%s578_s3 + $0x138] sm:$0xff]  ;;  %v144_v49 = vld [vmem:[%s578_s3 + $0x1c0] sm:$0xff]  ;;  %v145_v50 = vld [vmem:[%s578_s3 + $0x1c8] sm:$0xff]  ;;  %v155_v51 = vpack.c.bf16 %v95_v42, %v94_v41  ;;  %v164_v53 = vpack.c.bf16 %v113_v48, %v112_v46 }
   0xd   :  { %v171_v52 = vpack.c.bf16 %v127_v45, %v126_v44  ;;  %v96_v54 = vld [vmem:[%s578_s3 + $0x40] sm:$0xff]  ;;  %v97_v55 = vld [vmem:[%s578_s3 + $0x48] sm:$0xff]  ;;  %v180_v57 = vpack.c.bf16 %v145_v50, %v144_v49  ;;  %v114_v59 = vld [vmem:[%s578_s3 + $0xd0] sm:$0xff] }
   0xe   :  { %285 = vmatpush3.bf16.msra.mxu0 %v154_v34  ;;  %v128_v56 = vld [vmem:[%s578_s3 + $0x140] sm:$0xff]  ;;  %v129_v58 = vld [vmem:[%s578_s3 + $0x148] sm:$0xff]  ;;  %v115_v60 = vld [vmem:[%s578_s3 + $0xd8] sm:$0xff]  ;;  %v156_v0 = vpack.c.bf16 %v97_v55, %v96_v54 }
   0xf   :  { %307 = vmatpush3.bf16.msra.mxu1 %v170_v38  ;;  %286 = vmatprep.subr.bf16.mxu0 %v163_v39  ;;  %v146_v62 = vld [vmem:[%s578_s3 + $0x1d0] sm:$0xff]  ;;  %v147_v63 = vld [vmem:[%s578_s3 + $0x1d8] sm:$0xff]  ;;  %v172_v3 = vpack.c.bf16 %v129_v58, %v128_v56  ;;  %v165_v4 = vpack.c.bf16 %v115_v60, %v114_v59  ;;  %v116_v7 = vld [vmem:[%s578_s3 + $0xe0] sm:$0xff] }
  0x10   :  { %308 = vmatprep.subr.bf16.mxu1 %v179_v43  ;;  %v98_v1 = vld [vmem:[%s578_s3 + $0x50] sm:$0xff]  ;;  %v99_v2 = vld [vmem:[%s578_s3 + $0x58] sm:$0xff]  ;;  %v181_v8 = vpack.c.bf16 %v147_v63, %v146_v62  ;;  %v117_v9 = vld [vmem:[%s578_s3 + $0xe8] sm:$0xff] }
  0x11   :  { %v130_v5 = vld [vmem:[%s578_s3 + $0x150] sm:$0xff]  ;;  %v131_v6 = vld [vmem:[%s578_s3 + $0x158] sm:$0xff]  ;;  %v148_v10 = vld [vmem:[%s578_s3 + $0x1e0] sm:$0xff]  ;;  %v157_v18 = vpack.c.bf16 %v99_v2, %v98_v1  ;;  %v166_v23 = vpack.c.bf16 %v117_v9, %v116_v7 }
  0x12   :  { %287 = vmatpush3.bf16.msra.mxu0 %v155_v51  ;;  %v149_v11 = vld [vmem:[%s578_s3 + $0x1e8] sm:$0xff]  ;;  %v100_v15 = vld [vmem:[%s578_s3 + $0x60] sm:$0xff]  ;;  %v118_v21 = vld [vmem:[%s578_s3 + $0xf0] sm:$0xff]  ;;  %v173_v22 = vpack.c.bf16 %v131_v6, %v130_v5 }
  0x13   :  { %309 = vmatpush3.bf16.msra.mxu1 %v171_v52  ;;  %288 = vmatprep.subr.bf16.mxu0 %v164_v53  ;;  %v101_v16 = vld [vmem:[%s578_s3 + $0x68] sm:$0xff]  ;;  %v132_v19 = vld [vmem:[%s578_s3 + $0x160] sm:$0xff]  ;;  %v182_v24 = vpack.c.bf16 %v149_v11, %v148_v10  ;;  %v119_v25 = vld [vmem:[%s578_s3 + $0xf8] sm:$0xff] }
  0x14   :  { %310 = vmatprep.subr.bf16.mxu1 %v180_v57  ;;  %v133_v20 = vld [vmem:[%s578_s3 + $0x168] sm:$0xff]  ;;  %v28_v27 = vld [vmem:[%s580_s1] sm:$0xf]  ;;  %v158_v28 = vpack.c.bf16 %v101_v16, %v100_v15  ;;  %v27_v31 = vld [vmem:[%s579_s0 + $0x18] sm:$0xff]  ;;  %v167_v47 = vpack.c.bf16 %v119_v25, %v118_v21 }
  0x15   :  { %v25_v26 = vld [vmem:[%s579_s0 + $0x8] sm:$0xff]  ;;  %v37_v29 = vrot.slane %v28_v27, %v36_v12  ;;  %v54_v30 = vld [vmem:[%s581_s2] sm:$0xf]  ;;  %v45_v32 = vrot.slane %v28_v27, %v44_v13  ;;  %v33_v34 = vrot.slane %v28_v27, %v32_v14  ;;  %v150_v35 = vld [vmem:[%s578_s3 + $0x1f0] sm:$0xff]  ;;  %v41_v41 = vrot.slane %v28_v27, %v40_v17 }
  0x16   :  { %289 = vmatpush3.bf16.msra.mxu0 %v156_v0  ;;  %v24_v33 = vld [vmem:[%s579_s0] sm:$0xff]  ;;  %v151_v36 = vld [vmem:[%s578_s3 + $0x1f8] sm:$0xff]  ;;  %v63_v37 = vrot.slane %v54_v30, %v36_v12  ;;  %v71_v38 = vrot.slane %v54_v30, %v44_v13  ;;  %v59_v39 = vrot.slane %v54_v30, %v32_v14  ;;  %v26_v40 = vld [vmem:[%s579_s0 + $0x10] sm:$0xff]  ;;  %v67_v45 = vrot.slane %v54_v30, %v40_v17 }
  0x17   :  { %311 = vmatpush3.bf16.msra.mxu1 %v172_v3  ;;  %290 = vmatprep.subr.bf16.mxu0 %v165_v4  ;;  %v51_v42 = vmul.f32 %v37_v29, %v25_v26  ;;  %v53_v43 = vmul.f32 %v45_v32, %v27_v31  ;;  %v50_v44 = vmul.f32 %v33_v34, %v24_v33  ;;  %v102_v48 = vld [vmem:[%s578_s3 + $0x70] sm:$0xff]  ;;  %v103_v49 = vld [vmem:[%s578_s3 + $0x78] sm:$0xff]  ;;  %v279_v6 = vld [vmem:[%s582_s4] ss:$0 sm:$0xff] }
  0x18   :  { %312 = vmatprep.subr.bf16.mxu1 %v181_v8  ;;  %v174_v46 = vpack.c.bf16 %v133_v20, %v132_v19  ;;  %v52_v50 = vmul.f32 %v41_v41, %v26_v40  ;;  %v183_v51 = vpack.c.bf16 %v151_v36, %v150_v35  ;;  %v134_v52 = vld [vmem:[%s578_s3 + $0x170] sm:$0xff]  ;;  %v135_v53 = vld [vmem:[%s578_s3 + $0x178] sm:$0xff]  ;;  %v159_v58 = vpack.c.bf16 %v103_v49, %v102_v48  ;;  %v271_v16 = vld [vmem:[%s583_s5] sm:$0xff] }
  0x19   :  { %v77_v54 = vadd.f32 %v63_v37, %v51_v42  ;;  %v79_v55 = vadd.f32 %v71_v38, %v53_v43  ;;  %v76_v56 = vadd.f32 %v59_v39, %v50_v44  ;;  %v175_v62 = vpack.c.bf16 %v135_v53, %v134_v52 }
  0x1a   :  { %291 = vmatpush3.bf16.msra.mxu0 %v157_v18  ;;  %v78_v57 = vadd.f32 %v67_v45, %v52_v50 }
  0x1b   :  { %313 = vmatpush3.bf16.msra.mxu1 %v173_v22  ;;  %292 = vmatprep.subr.bf16.mxu0 %v166_v23  ;;  %v81_v59 = vmax.f32 %v77_v54, 0.0  ;;  %v83_v60 = vmax.f32 %v79_v55, 0.0  ;;  %v80_v61 = vmax.f32 %v76_v56, 0.0 }
  0x1c   :  { %314 = vmatprep.subr.bf16.mxu1 %v182_v24  ;;  %v82_v63 = vmax.f32 %v78_v57, 0.0 }
  0x1d   :  { %v85_v0 = vpack.c.bf16 %v81_v59, %v81_v59  ;;  %v87_v1 = vpack.c.bf16 %v83_v60, %v83_v60  ;;  %v84_v2 = vpack.c.bf16 %v80_v61, %v80_v61 }
  0x1e   :  { %293 = vmatpush3.bf16.msra.mxu0 %v158_v28  ;;  %v86_v3 = vpack.c.bf16 %v82_v63, %v82_v63 }
  0x1f   :  { %315 = vmatpush3.bf16.msra.mxu1 %v174_v46  ;;  %294 = vmatprep.subr.bf16.mxu0 %v167_v47 }
  0x20   :  { %316 = vmatprep.subr.bf16.mxu1 %v183_v51  ;;  %223 = vmatprep.mubr.bf16.mxu0 %v85_v0 }
  0x21   :  { %263 = vmatprep.mubr.bf16.mxu1 %v87_v1 }
  0x22   :  { %295 = vmatpush3.bf16.msra.mxu0 %v159_v58 }
  0x23   :  { %317 = vmatpush3.bf16.msra.mxu1 %v175_v62 }
  0x25   :  { %224 = vmatmul.mubr.bf16.vlgmr.msra.gmra.mrb[0].mxu0 %v84_v2 }
  0x26   :  { %264 = vmatmul.mubr.bf16.vlgmr.msra.gmra.mrb[0].mxu1 %v86_v3 }
  0xf8   :  { %v296_v4 = vpop.f32.mrb[0].mxu0 }
  0xf9   :  { %v318_v5 = vpop.f32.mrb[0].mxu1  ;;  %v297_v7 = vpop.f32.mrb[1].mxu0 }
  0xfa   :  { %v298_v8 = vadd.f32 %v297_v7, %v296_v4  ;;  %v319_v9 = vpop.f32.mrb[1].mxu1  ;;  %v299_v10 = vpop.f32.mrb[2].mxu0 }
  0xfb   :  { %v320_v11 = vadd.f32 %v319_v9, %v318_v5  ;;  %v321_v12 = vpop.f32.mrb[2].mxu1  ;;  %v300_v13 = vpop.f32.mrb[3].mxu0 }
  0xfc   :  { %v226_v14 = vadd.f32 %v298_v8, %v279_v6  ;;  %v322_v15 = vpop.f32.mrb[3].mxu1 }
  0xfe   :  { %v266_v17 = vadd.f32 %v320_v11, %v226_v14 }
 0x100   :  { %v272_v18 = vadd.f32 %v271_v16, %v266_v17 }
 0x102   :  { %274 = vst.msk [vmem:[%s584_s6] sm:$0xff] %vm273_vm0, %v272_v18 }

// kernel: forward.12
= control target key start
LH: loop header
LB: loop body
LE: loop exit
PB: predicated region body
PF: predicated region fallthrough
CT: control target
= control target key end

     0   :  { %vm17_vm0 = vcmask 261120   ;;  %s90_s0 = inlined_call_operand.vmem [shape: f32[8,32], index: 0, kind: input, shape index: {}]   ;;  %s91_s1 = inlined_call_operand.vmem [shape: f32[1,32], index: 1, kind: input, shape index: {}]   ;;  %s92_s2 = inlined_call_operand.vmem [shape: f32[1,32], index: 2, kind: input, shape index: {}]   ;;  %s93_s3 = inlined_call_operand.vmem [shape: f32[8,32], index: 3, kind: output, shape index: {}]  }
   0x1   :  { %v14_v0 = vld [vmem:[%s90_s0] sm:$0xff] }
   0x2   :  { %v18_v1 = vsel %vm17_vm0, %v14_v0, 0.0  ;;  %v51_v11 = vld [vmem:[%s91_s1] ss:$0 sm:$0xff] }
   0x3   :  { %19 = vadd.xlane.f32.xlu0 %v18_v1  ;;  %v52_v13 = vld [vmem:[%s92_s2] ss:$0 sm:$0xff] }
  0x90   :  { %v20_v2 = vpop.xlane.xlu0 %19 }
  0x91   :  { %v22_v3 = vmul.f32 0.03125, %v20_v2 }
  0x93   :  { %v23_v4 = vsub.f32 %v14_v0, %v22_v3 }
  0x95   :  { %v24_v5 = vmul.f32 %v23_v4, %v23_v4 }
  0x97   :  { %v25_v6 = vsel %vm17_vm0, %v24_v5, 0.0 }
  0x98   :  { %26 = vadd.xlane.f32.xlu0 %v25_v6 }
 0x125   :  { %v27_v7 = vpop.xlane.xlu0 %26 }
 0x126   :  { %v28_v8 = vmul.f32 0.03125, %v27_v7 }
 0x128   :  { %v29_v9 = vadd.f32 1e-05, %v28_v8 }
 0x12a   :  { %53 = vrsqrt.f32 %v29_v9 }
 0x134   :  { %v54_v10 = vpop.eup %53 }
 0x135   :  { %v31_v12 = vmul.f32 %v54_v10, %v23_v4 }
 0x137   :  { %v38_v14 = vmul.f32 %v51_v11, %v31_v12 }
 0x139   :  { %v45_v15 = vadd.f32 %v52_v13, %v38_v14 }
 0x13b   :  { %46 = vst.msk [vmem:[%s93_s3] sm:$0xff] %vm17_vm0, %v45_v15 }

// kernel: forward.15
= control target key start
LH: loop header
LB: loop body
LE: loop exit
PB: predicated region body
PF: predicated region fallthrough
CT: control target
= control target key end

     0   :  { %vm18_vm0 = vcmask 261120   ;;  %s136_s0 = inlined_call_operand.vmem [shape: f32[8,32], index: 0, kind: input, shape index: {}]   ;;  %s137_s1 = inlined_call_operand.vmem [shape: f32[1,32], index: 1, kind: input, shape index: {}]   ;;  %s138_s2 = inlined_call_operand.vmem [shape: f32[1,32], index: 2, kind: input, shape index: {}]   ;;  %s139_s3 = inlined_call_operand.hbm [shape: f32[8,32], index: 3, kind: output, shape index: {}]  }
   0x1   :  { %v15_v0 = vld [vmem:[%s136_s0] sm:$0xff] }
   0x2   :  { %8 = vsyncpa [#allocation3], 0  ;;  %v19_v1 = vsel %vm18_vm0, %v15_v0, 0.0  ;;  %v62_v11 = vld [vmem:[%s137_s1] ss:$0 sm:$0xff]  ;;  %s91_s17 = smov [#allocation2]  }
   0x3   :  { %20 = vadd.xlane.f32.xlu0 %v19_v1  ;;  %v63_v13 = vld [vmem:[%s138_s2] ss:$0 sm:$0xff]  ;;  %s54_s18 = sshll.u32 %s91_s17, 4  ;;  %s55_s18 = int_to_ptr.vmem [resolvable:$true] %s54_s18 }
   0x4   :  { %s67_s19 = scalar_lea.vmem %s55_s18, 128  ;;  %p72_p1 = scmp.lt.s32.totalorder %s55_s18, %s55_s18 }
   0x5   :  { %p68_p0 = scmp.ne.s32.totalorder %s55_s18, %s67_s19  ;;  %p73_p2 = scmp.lt.s32.totalorder %s67_s19, %s67_s19 }
   0x7   :  { %p74_p3 = por %p73_p2, %p72_p1 }
   0x9   :  { %p75_p4 = pnand %p74_p3, %p68_p0 }
  0x90   :  { %v21_v2 = vpop.xlane.xlu0 %20 }
  0x91   :  { %v23_v3 = vmul.f32 0.03125, %v21_v2 }
  0x93   :  { %v24_v4 = vsub.f32 %v15_v0, %v23_v3 }
  0x95   :  { %v25_v5 = vmul.f32 %v24_v4, %v24_v4 }
  0x97   :  { %v26_v6 = vsel %vm18_vm0, %v25_v5, 0.0 }
  0x98   :  { %27 = vadd.xlane.f32.xlu0 %v26_v6 }
 0x125   :  { %v28_v7 = vpop.xlane.xlu0 %27 }
 0x126   :  { %v29_v8 = vmul.f32 0.03125, %v28_v7 }
 0x128   :  { %v30_v9 = vadd.f32 1e-05, %v29_v8 }
 0x12a   :  { %65 = vrsqrt.f32 %v30_v9 }
 0x134   :  { %v66_v10 = vpop.eup %65 }
 0x135   :  { %v32_v12 = vmul.f32 %v66_v10, %v24_v4 }
 0x137   :  { %v39_v14 = vmul.f32 %v62_v11, %v32_v12 }
 0x139   :  { %v46_v15 = vadd.f32 %v63_v13, %v39_v14 }
 0x13b   :  { %47 = vst.msk [vmem:[#allocation2] sm:$0xff] %vm18_vm0, %v46_v15 }
 0x13c   :  { %78 = shalt.err (!%p75_p4)
}
 0x13d   :  { %s79_s21 = scalar_lea.hbm %s139_s3, 128 }
 0x13e   :  { %p80_p5 = scmp.ne.s32.totalorder %s139_s3, %s79_s21  ;;  %p83_p6 = scmp.lt.u32.totalorder %s79_s21, %s139_s3 }
 0x140   :  { %p85_p7 = pnand %p83_p6, %p80_p5 }
 0x142   :  { %88 = shalt.err (!%p85_p7)
}
 0x143   :  { %57 = dma.vmem_to_hbm [thread:$0]  %s55_s18, 128, %s139_s3, [#allocation3]  }
 0x144   :  { %89 = dma.done.wait [#allocation3], 128  }
 0x145   :  { %90 = vsyncadd [#allocation3], 4294967168 }
 0x146   :  { %61 = vsyncpa [#allocation3], 1 }

// kernel: forward.10
= control target key start
LH: loop header
LB: loop body
LE: loop exit
PB: predicated region body
PF: predicated region fallthrough
CT: control target
= control target key end

     0   :  { %s2482_s25 = smov 0   ;;  %s2956_s0 = inlined_call_operand.vmem [shape: f32[2,4,32], index: 0, kind: input, shape index: {}]   ;;  %s2957_s1 = inlined_call_operand.vmem [shape: f32[12,32,8], index: 1, kind: input, shape index: {}]   ;;  %s2958_s2 = inlined_call_operand.vmem [shape: f32[12,1,8], index: 2, kind: input, shape index: {}]   ;;  %s2959_s3 = inlined_call_operand.vmem [shape: f32[4,8,32], index: 3, kind: input, shape index: {}]   ;;  %s2960_s4 = inlined_call_operand.vmem [shape: f32[1,32], index: 4, kind: input, shape index: {}]   ;;  %s2961_s5 = inlined_call_operand.vmem [shape: f32[1,32], index: 5, kind: input, shape index: {}]   ;;  %s2962_s6 = inlined_call_operand.vmem [shape: f32[1,32], index: 6, kind: input, shape index: {}]   ;;  %s2963_s7 = inlined_call_operand.vmem [shape: f32[32,128], index: 7, kind: input, shape index: {}]   ;;  %s2964_s8 = inlined_call_operand.vmem [shape: f32[1,128], index: 8, kind: input, shape index: {}]   ;;  %s2965_s9 = inlined_call_operand.vmem [shape: f32[128,32], index: 9, kind: input, shape index: {}]   ;;  %s2966_s10 = inlined_call_operand.vmem [shape: f32[1,32], index: 10, kind: input, shape index: {}]   ;;  %s2967_s11 = inlined_call_operand.vmem [shape: f32[1,32], index: 11, kind: input, shape index: {}]   ;;  %s2968_s12 = inlined_call_operand.vmem [shape: f32[1,32], index: 12, kind: input, shape index: {}]   ;;  %s2969_s13 = inlined_call_operand.vmem [shape: f32[2,4,32], index: 13, kind: output, shape index: {}]  }
   0x1 LB: > { %s1993_s26 = sadd.s32 4294967295, %s2408_s25   ;;  %p1997_p0 = scmp.ge.s32.totalorder %s2408_s25, 1  ;;  %s2408_s25 = sphi %s2482_s25, %s23_s25  }
   0x2   : > { %p386_p1 = scmp.lt.s32.totalorder %s2408_s25, 3 }
   0x4   : > { %p387_p2 = pnand %p1997_p0, %p386_p1 }
   0x5   : > { %v439_v0 = vld [vmem:[%s2957_s1] sm:$0xff] (!%p387_p2)  ;;  %v440_v1 = vld [vmem:[%s2957_s1 + $0x8] sm:$0xff] (!%p387_p2)  ;;  %v441_v2 = vld [vmem:[%s2957_s1 + $0x10] sm:$0xff] (!%p387_p2)  ;;  %p428_p3 = scmp.lt.s32.totalorder (!%p387_p2), %s1993_s26, 1  ;;  %v2410_v3 = vmov (!%p387_p2), 0.0   ;;  %vm2411_vm0 = vmmov (!%p387_p2), 0  }
   0x6   : > { %390 = sbr.rel (%p387_p2) target bundleno = 4982 (0x1376), region = 72  ;;  %2176 = vmatprep.subr.bf16.mxu0 (!%p387_p2), %v2410_v3  ;;  %v443_v4 = vpack.c.bf16 (!%p387_p2), %v440_v1, %v439_v0  ;;  %v442_v5 = vld [vmem:[%s2957_s1 + $0x18] sm:$0xff] (!%p387_p2)  ;;  %2180 = vmatprep.mubr.msk.bf16.mxu0 (!%p387_p2), %vm2411_vm0, %v2410_v3  ;;  %v2000_v7 = vld [vmem:[%s2957_s1 + $0x80] sm:$0xff] (!%p387_p2)  ;;  %v2001_v8 = vld [vmem:[%s2957_s1 + $0x88] sm:$0xff] (!%p387_p2)  ;;  %vm466_vm1 = vcmask (!%p387_p2), 261120   ;;  %vm608_vm2 = vcmask (!%p387_p2), 64512  }
   0x7   : > { %2200 = vmatprep.subr.bf16.mxu1 (!%p387_p2), %v2410_v3  ;;  %2202 = vmatprep.mubr.msk.bf16.mxu1 (!%p387_p2), %vm2411_vm0, %v2410_v3  ;;  %v444_v6 = vpack.c.bf16 (!%p387_p2), %v442_v5, %v441_v2  ;;  %v450_v11 = vpack.c.bf16 (!%p387_p2), %v2001_v8, %v2000_v7  ;;  %v2002_v12 = vld [vmem:[%s2957_s1 + $0x90] sm:$0xff] (!%p387_p2)  ;;  %v2003_v13 = vld [vmem:[%s2957_s1 + $0x98] sm:$0xff] (!%p387_p2)  ;;  %v2011_v19 = vld [vmem:[%s2958_s2 + $0x4] ss:$0 sm:$0xff] (!%p387_p2)  ;;  %vm656_vm3 = vcmask (!%p387_p2), 27648   ;;  %vm674_vm4 = vcmask (!%p387_p2), 1041408  }
   0x8   : > { %2177 = vmatpush3.bf16.msra.mxu0 (!%p387_p2), %v443_v4  ;;  %v451_v14 = vpack.c.bf16 (!%p387_p2), %v2003_v13, %v2002_v12  ;;  %v2008_v26 = vld [vmem:[%s2958_s2] ss:$0 sm:$0xff] (!%p387_p2)  ;;  %v2005_v31 = vld [vmem:[%s2957_s1 + $0x108] sm:$0xff] (!%p387_p2)  ;;  %v2006_v32 = vld [vmem:[%s2957_s1 + $0x110] sm:$0xff] (!%p387_p2)  ;;  %vm670_vm5 = vcmask (!%p387_p2), 31744   ;;  %vm1001_vm6 = vcmask (!%p387_p2), 1043456  }
   0x9   : > { %2178 = vmatprep.subr.bf16.mxu0 (!%p387_p2), %v2410_v3  ;;  %v2004_v30 = vld [vmem:[%s2957_s1 + $0x100] sm:$0xff] (!%p387_p2)  ;;  %v2007_v34 = vld [vmem:[%s2957_s1 + $0x118] sm:$0xff] (!%p387_p2)  ;;  %v2014_v50 = vld [vmem:[%s2958_s2 + $0x8] ss:$0 sm:$0xff] (!%p387_p2)  ;;  %vm1750_vm7 = vcmask (!%p387_p2), 257024  }
   0xa   : > { %v457_v33 = vpack.c.bf16 (!%p387_p2), %v2005_v31, %v2004_v30  ;;  %v458_v35 = vpack.c.bf16 (!%p387_p2), %v2007_v34, %v2006_v32  ;;  %v2018_v55 = vld [vmem:[%s2957_s1 + $0x20] sm:$0xff] (!%p387_p2)  ;;  %v2019_v56 = vld [vmem:[%s2957_s1 + $0x28] sm:$0xff] (!%p387_p2)  ;;  %v2020_v58 = vld [vmem:[%s2957_s1 + $0x30] sm:$0xff] (!%p387_p2) }
   0xb   : > { %v726_v57 = vpack.c.bf16 (!%p387_p2), %v2019_v56, %v2018_v55  ;;  %v2021_v59 = vld [vmem:[%s2957_s1 + $0x38] sm:$0xff] (!%p387_p2)  ;;  %v2022_v62 = vld [vmem:[%s2957_s1 + $0xa0] sm:$0xff] (!%p387_p2)  ;;  %v2023_v63 = vld [vmem:[%s2957_s1 + $0xa8] sm:$0xff] (!%p387_p2) }
   0xc   : > { %2179 = vmatpush3.bf16.msra.mxu0 (!%p387_p2), %v444_v6  ;;  %v727_v60 = vpack.c.bf16 (!%p387_p2), %v2021_v59, %v2020_v58  ;;  %v733_v2 = vpack.c.bf16 (!%p387_p2), %v2023_v63, %v2022_v62  ;;  %v2024_v5 = vld [vmem:[%s2957_s1 + $0xb0] sm:$0xff] (!%p387_p2)  ;;  %v2025_v6 = vld [vmem:[%s2957_s1 + $0xb8] sm:$0xff] (!%p387_p2)  ;;  %v2027_v30 = vld [vmem:[%s2957_s1 + $0x128] sm:$0xff] (!%p387_p2) }
   0xd   : > { %s2971_s26 = smov (!%p428_p3, %s1993_s26), 1  ;;  %2184 = vmatprep.subr.bf16.mxu0 %v2410_v3  ;;  %v734_v7 = vpack.c.bf16 %v2025_v6, %v2024_v5  ;;  %v2028_v31 = vld [vmem:[%s2957_s1 + $0x130] sm:$0xff]  ;;  %v719_v58 = vld [vmem:[%s2959_s3] sm:$0xff]  ;;  %v2051_v6 = vld [vmem:[%s2957_s1 + $0xd8] sm:$0xff] }
   0xe   : > { %s1998_s18 = sshll.u32 %s2971_s26, 2  ;;  %v720_v59 = vpack.c.bf16 %v719_v58, %v719_v58  ;;  %v2050_v5 = vld [vmem:[%s2957_s1 + $0xd0] sm:$0xff] }
   0xf   : > { %s431_s27 = scalar_lea.vmem %s2956_s0, %s1998_s18  ;;  %s435_s15 = scalar_lea.vmem %s2969_s13, %s1998_s18 }
  0x10   : > { %v2523_v9 = vld [vmem:[%s431_s27] sm:$0xf]  ;;  %v1049_v63 = vsel %vm1001_vm6, %v720_v59, 0 }
  0x11   : > { %v2527_v10 = vpack.c.bf16 %v2523_v9, %v2523_v9 }
  0x13   : > { %2181 = vmatmul.mubr.msk.bf16.vlgmr.msra.gmra.mrb[0].mxu0 %vm466_vm1, %v2527_v10 }
  0x14   : > { %2185 = vmatpush3.bf16.msra.mxu0 %v450_v11  ;;  %2188 = vmatprep.mubr.msk.bf16.mxu0 %vm2411_vm0, %v2410_v3 }
  0x15   : > { %2186 = vmatprep.subr.bf16.mxu0 %v2410_v3 }
  0x18   : > { %2187 = vmatpush3.bf16.msra.mxu0 %v451_v14 }
  0x19   : > { %2192 = vmatprep.subr.bf16.mxu0 %v2410_v3 }
  0x1b   : > { %2189 = vmatmul.mubr.msk.bf16.vlgmr.msra.gmra.mrb[4].mxu0 %vm466_vm1, %v2527_v10 }
  0x1c   : > { %2196 = vmatprep.mubr.msk.bf16.mxu0 %vm2411_vm0, %v2410_v3  ;;  %2193 = vmatpush3.bf16.msra.mxu0 %v457_v33  ;;  %v2029_v33 = vld [vmem:[%s2957_s1 + $0x138] sm:$0xff] }
  0x1d   : > { %2194 = vmatprep.subr.bf16.mxu0 %v2410_v3  ;;  %v741_v34 = vpack.c.bf16 %v2029_v33, %v2028_v31 }
  0x20   : > { %2195 = vmatpush3.bf16.msra.mxu0 %v458_v35 }
  0x21   : > { %2206 = vmatprep.subr.bf16.mxu0 %v2410_v3 }
  0x23   : > { %2197 = vmatmul.mubr.msk.bf16.vlgmr.msra.gmra.mrb[8].mxu0 %vm466_vm1, %v2527_v10 }
  0x24   : > { %2208 = vmatprep.mubr.msk.bf16.mxu0 %vm2411_vm0, %v2410_v3 }
  0xe6   : > { %v504_v15 = vpop.f32.mrb[0].mxu0 }
  0xe7   : > { %v2182_v16 = vpop.f32.mrb[1].mxu0  ;;  %v505_v28 = vadd.f32 %v2008_v26, %v504_v15 }
  0xe8   : > { %v507_v17 = vpop.f32.mrb[2].mxu0 }
  0xe9   : > { %v2183_v18 = vpop.f32.mrb[3].mxu0  ;;  %v606_v29 = vpack.c.bf16 %v505_v28, %v505_v28 }
  0xea   : > { %v2034_v18 = vld [vmem:[%s2958_s2 + $0x5] ss:$0 sm:$0xff] }
  0xee   : > { %v552_v20 = vpop.f32.mrb[4].mxu0 }
  0xef   : > { %v553_v21 = vadd.f32 %v2011_v19, %v552_v20  ;;  %v2190_v22 = vpop.f32.mrb[5].mxu0 }
  0xf0   : > { %v555_v23 = vpop.f32.mrb[6].mxu0 }
  0xf1   : > { %v607_v24 = vpack.c.bf16 %v553_v21, %v553_v21  ;;  %v2191_v25 = vpop.f32.mrb[7].mxu0  ;;  %v2031_v23 = vld [vmem:[%s2958_s2 + $0x1] ss:$0 sm:$0xff] }
  0xf3   : > { %v613_v27 = vsel %vm608_vm2, %v607_v24, 0 }
  0xf4   : > { %2201 = vmatpush3.bf16.xpose.msra.mxu1 %v613_v27 }
  0xf5   : > { %2212 = vmatprep.subr.bf16.mxu1 %v2410_v3 }
  0xf6   : > { %v600_v47 = vpop.f32.mrb[8].mxu0 }
  0xf7   : > { %v2198_v48 = vpop.f32.mrb[9].mxu0  ;;  %v601_v52 = vadd.f32 %v2014_v50, %v600_v47 }
  0xf8   : > { %v603_v49 = vpop.f32.mrb[10].mxu0 }
  0xf9   : > { %v2199_v51 = vpop.f32.mrb[11].mxu0  ;;  %v669_v53 = vpack.c.bf16 %v601_v52, %v601_v52 }
  0xfb   : > { %2203 = vmatmul.mubr.msk.bf16.vlgmr.msra.gmra.mrb[0].mxu1 %vm608_vm2, %v606_v29  ;;  %v676_v54 = vsel %vm674_vm4, %v669_v53, 0  ;;  %v2026_v29 = vld [vmem:[%s2957_s1 + $0x120] sm:$0xff] }
  0xfc   : > { %2216 = vmatprep.mubr.msk.bf16.mxu1 %vm2411_vm0, %v2410_v3  ;;  %2207 = vmatpush3.bf16.msra.mxu0 %v676_v54  ;;  %v740_v32 = vpack.c.bf16 %v2027_v30, %v2026_v29  ;;  %v2041_v54 = vld [vmem:[%s2959_s3 + $0x8] sm:$0xff] }
  0xfd   : > { %2220 = vmatprep.subr.bf16.mxu0 %v2410_v3  ;;  %2213 = vmatpush3.bf16.msra.mxu1 %v726_v57  ;;  %v997_v55 = vpack.c.bf16 %v2041_v54, %v2041_v54 }
  0xfe   : > { %2214 = vmatprep.subr.bf16.mxu1 %v2410_v3 }
  0xff   : > { %v1003_v56 = vsel %vm1001_vm6, %v997_v55, 0 }
 0x101   : > { %2215 = vmatpush3.bf16.msra.mxu1 %v727_v60 }
 0x102   : > { %2228 = vmatprep.subr.bf16.mxu1 %v2410_v3 }
 0x104   : > { %2217 = vmatmul.mubr.msk.bf16.vlgmr.msra.gmra.mrb[4].mxu1 %vm466_vm1, %v2527_v10 }
 0x105   : > { %2232 = vmatprep.mubr.msk.bf16.mxu1 %vm2411_vm0, %v2410_v3  ;;  %2229 = vmatpush3.bf16.msra.mxu1 %v740_v32 }
 0x106   : > { %2230 = vmatprep.subr.bf16.mxu1 %v2410_v3 }
 0x109   : > { %2231 = vmatpush3.bf16.msra.mxu1 %v741_v34 }
 0x10a   : > { %2242 = vmatprep.subr.bf16.mxu1 %v2410_v3 }
 0x10c   : > { %2233 = vmatmul.mubr.msk.bf16.vlgmr.msra.gmra.mrb[8].mxu1 %vm466_vm1, %v2527_v10 }
 0x10d   : > { %2244 = vmatprep.mubr.msk.bf16.mxu1 %vm2411_vm0, %v2410_v3 }
 0x1ce   : > { %v649_v36 = vpop.f32.mrb[0].mxu1 }
 0x1cf   : > { %v655_v37 = vmul.f32 0.35355338, %v649_v36  ;;  %v2204_v38 = vpop.f32.mrb[1].mxu1 }
 0x1d0   : > { %v652_v39 = vpop.f32.mrb[2].mxu1 }
 0x1d1   : > { %v2205_v40 = vpop.f32.mrb[3].mxu1  ;;  %v657_v41 = vsel %vm656_vm3, %v655_v37, -inf }
 0x1d2   : > { %658 = vmax.xlane.f32.xlu0 %v657_v41  ;;  %v2037_v41 = vld [vmem:[%s2958_s2 + $0x9] ss:$0 sm:$0xff] }
 0x1d7   : > { %v784_v8 = vpop.f32.mrb[4].mxu1 }
 0x1d8   : > { %v2218_v11 = vpop.f32.mrb[5].mxu1  ;;  %v785_v27 = vadd.f32 %v2031_v23, %v784_v8  ;;  %v2044_v8 = vld [vmem:[%s2957_s1 + $0x40] sm:$0xff] }
 0x1d9   : > { %v787_v12 = vpop.f32.mrb[6].mxu1  ;;  %v2045_v11 = vld [vmem:[%s2957_s1 + $0x48] sm:$0xff] }
 0x1da   : > { %v2219_v13 = vpop.f32.mrb[7].mxu1  ;;  %v886_v28 = vpack.c.bf16 %v785_v27, %v785_v27 }
 0x1db   : > { %v1096_v13 = vpack.c.bf16 %v2045_v11, %v2044_v8 }
 0x25f   : > { %v659_v42 = vpop.xlane.xlu0 %658 }
 0x260   : > { %v660_v43 = vsub.f32 %v655_v37, %v659_v42  ;;  %v880_v42 = vpop.f32.mrb[8].mxu1 }
 0x262   : > { %v661_v44 = vmul.f32 1.442695, %v660_v43  ;;  %v881_v43 = vadd.f32 %v2037_v41, %v880_v42 }
 0x264   : > { %2382 = vpow2.f32 %v661_v44  ;;  %v2234_v44 = vpop.f32.mrb[9].mxu1 }
 0x26e   : > { %v2383_v45 = vpop.eup %2382 }
 0x26f   : > { %v663_v46 = vsel %vm656_vm3, %v2383_v45, 0.0 }
 0x270   : > { %664 = vadd.xlane.f32.xlu0 %v663_v46  ;;  %v947_v46 = vpack.c.bf16 %v881_v43, %v881_v43 }
 0x272   : > { %v952_v48 = vsel %vm674_vm4, %v947_v46, 0  ;;  %v2053_v46 = vld [vmem:[%s2957_s1 + $0x148] sm:$0xff] }
 0x273   : > { %2243 = vmatpush3.bf16.msra.mxu1 %v952_v48 }
 0x274   : > { %2254 = vmatprep.subr.bf16.mxu1 %v2410_v3 }
 0x2fd   : > { %v665_v61 = vpop.xlane.xlu0 %664 }
 0x2fe   : > { %2384 = vrcp.f32 %v665_v61 }
 0x308   : > { %v2385_v0 = vpop.eup %2384 }
 0x309   : > { %v667_v1 = vmul.f32 %v2385_v0, %v2383_v45  ;;  %v883_v45 = vpop.f32.mrb[10].mxu1  ;;  %v2048_v0 = vld [vmem:[%s2957_s1 + $0xc0] sm:$0xff] }
 0x30a   : > { %v2235_v47 = vpop.f32.mrb[11].mxu1  ;;  %v2052_v45 = vld [vmem:[%s2957_s1 + $0x140] sm:$0xff] }
 0x30b   : > { %v668_v4 = vpack.c.bf16 %v667_v1, %v667_v1  ;;  %v2049_v1 = vld [vmem:[%s2957_s1 + $0xc8] sm:$0xff]  ;;  %v2054_v47 = vld [vmem:[%s2957_s1 + $0x150] sm:$0xff]  ;;  %v1110_v48 = vpack.c.bf16 %v2053_v46, %v2052_v45 }
 0x30d   : > { %2209 = vmatmul.mubr.msk.bf16.vlgmr.msra.gmra.mrb[12].mxu0 %vm670_vm5, %v668_v4 }
 0x30e   : > { %2221 = vmatpush3.bf16.msra.mxu0 %v733_v2  ;;  %2224 = vmatprep.mubr.msk.bf16.mxu0 %vm2411_vm0, %v2410_v3  ;;  %v1103_v2 = vpack.c.bf16 %v2049_v1, %v2048_v0  ;;  %v2063_v1 = vld [vmem:[%s2958_s2 + $0xa] ss:$0 sm:$0xff] }
 0x30f   : > { %2222 = vmatprep.subr.bf16.mxu0 %v2410_v3 }
 0x312   : > { %2223 = vmatpush3.bf16.msra.mxu0 %v734_v7  ;;  %v1104_v7 = vpack.c.bf16 %v2051_v6, %v2050_v5 }
 0x313   : > { %2236 = vmatprep.subr.bf16.mxu0 %v2410_v3 }
 0x315   : > { %2225 = vmatmul.mubr.msk.bf16.vlgmr.msra.gmra.mrb[16].mxu0 %vm466_vm1, %v2527_v10 }
 0x316   : > { %2238 = vmatprep.mubr.msk.bf16.mxu0 %vm2411_vm0, %v2410_v3 }
 0x3e0   : > { %v2621_v14 = vpop.f32.mrb[12].mxu0 }
 0x3e1   : > { %v2210_v15 = vpop.f32.mrb[13].mxu0  ;;  %v718_v4 = vpack.c.bf16 %v2621_v14, %v2621_v14 }
 0x3e2   : > { %v715_v16 = vpop.f32.mrb[14].mxu0 }
 0x3e3   : > { %v2211_v17 = vpop.f32.mrb[15].mxu0  ;;  %v2046_v16 = vld [vmem:[%s2957_s1 + $0x50] sm:$0xff] }
 0x3e4   : > { %v2047_v17 = vld [vmem:[%s2957_s1 + $0x58] sm:$0xff] }
 0x3e8   : > { %v832_v19 = vpop.f32.mrb[16].mxu0 }
 0x3e9   : > { %v833_v20 = vadd.f32 %v2034_v18, %v832_v19  ;;  %v2226_v21 = vpop.f32.mrb[17].mxu0 }
 0x3ea   : > { %v835_v22 = vpop.f32.mrb[18].mxu0 }
 0x3eb   : > { %v887_v24 = vpack.c.bf16 %v833_v20, %v833_v20  ;;  %v2227_v25 = vpop.f32.mrb[19].mxu0  ;;  %v1097_v20 = vpack.c.bf16 %v2047_v17, %v2046_v16  ;;  %v2069_v16 = vld [vmem:[%s2957_s1 + $0x60] sm:$0xff]  ;;  %v2070_v17 = vld [vmem:[%s2957_s1 + $0x68] sm:$0xff] }
 0x3ec   : > { %v2060_v25 = vld [vmem:[%s2958_s2 + $0x6] ss:$0 sm:$0xff] }
 0x3ed   : > { %v892_v26 = vsel %vm608_vm2, %v887_v24, 0 }
 0x3ee   : > { %2237 = vmatpush3.bf16.xpose.msra.mxu0 %v892_v26 }
 0x3ef   : > { %2248 = vmatprep.subr.bf16.mxu0 %v2410_v3 }
 0x3f5   : > { %2239 = vmatmul.mubr.msk.bf16.vlgmr.msra.gmra.mrb[20].mxu0 %vm608_vm2, %v886_v28 }
 0x3f6   : > { %2250 = vmatprep.mubr.msk.bf16.mxu0 %vm2411_vm0, %v2410_v3  ;;  %2249 = vmatpush3.bf16.msra.mxu0 %v1003_v56 }
 0x3f7   : > { %2260 = vmatprep.subr.bf16.mxu0 %v2410_v3 }
 0x4c8   : > { %v928_v35 = vpop.f32.mrb[20].mxu0 }
 0x4c9   : > { %v934_v36 = vmul.f32 0.35355338, %v928_v35  ;;  %v2240_v37 = vpop.f32.mrb[21].mxu0 }
 0x4ca   : > { %v931_v38 = vpop.f32.mrb[22].mxu0 }
 0x4cb   : > { %v2241_v39 = vpop.f32.mrb[23].mxu0  ;;  %v935_v40 = vsel %vm656_vm3, %v934_v36, -inf  ;;  %v2057_v38 = vld [vmem:[%s2958_s2 + $0x2] ss:$0 sm:$0xff] }
 0x4cc   : > { %936 = vmax.xlane.f32.xlu1 %v935_v40 }
 0x559   : > { %v937_v49 = vpop.xlane.xlu1 %936 }
 0x55a   : > { %v938_v50 = vsub.f32 %v934_v36, %v937_v49  ;;  %v2055_v49 = vld [vmem:[%s2957_s1 + $0x158] sm:$0xff] }
 0x55c   : > { %v939_v51 = vmul.f32 1.442695, %v938_v50  ;;  %v1111_v50 = vpack.c.bf16 %v2055_v49, %v2054_v47 }
 0x55e   : > { %2386 = vpow2.f32 %v939_v51 }
 0x568   : > { %v2387_v52 = vpop.eup %2386 }
 0x569   : > { %v941_v53 = vsel %vm656_vm3, %v2387_v52, 0.0 }
 0x56a   : > { %942 = vadd.xlane.f32.xlu1 %v941_v53 }
 0x5f7   : > { %v943_v57 = vpop.xlane.xlu1 %942 }
 0x5f8   : > { %2388 = vrcp.f32 %v943_v57 }
 0x602   : > { %v2389_v60 = vpop.eup %2388 }
 0x603   : > { %v945_v61 = vmul.f32 %v2389_v60, %v2387_v52 }
 0x605   : > { %v946_v62 = vpack.c.bf16 %v945_v61, %v945_v61 }
 0x607   : > { %2245 = vmatmul.mubr.msk.bf16.vlgmr.msra.gmra.mrb[12].mxu1 %vm670_vm5, %v946_v62 }
 0x608   : > { %2255 = vmatpush3.bf16.msra.mxu1 %v1049_v63  ;;  %2256 = vmatprep.mubr.msk.bf16.mxu1 %vm2411_vm0, %v2410_v3 }
 0x609   : > { %2268 = vmatprep.subr.bf16.mxu1 %v2410_v3 }
 0x60f   : > { %2257 = vmatmul.mubr.msk.bf16.vlgmr.msra.gmra.mrb[16].mxu1 %vm608_vm2, %v718_v4 }
 0x610   : > { %2269 = vmatpush3.bf16.msra.mxu1 %v1103_v2  ;;  %2272 = vmatprep.mubr.msk.bf16.mxu1 %vm2411_vm0, %v2410_v3 }
 0x611   : > { %2270 = vmatprep.subr.bf16.mxu1 %v2410_v3 }
 0x614   : > { %2271 = vmatpush3.bf16.msra.mxu1 %v1104_v7  ;;  %v2067_v7 = vld [vmem:[%s2959_s3 + $0x10] sm:$0xff] }
 0x615   : > { %2284 = vmatprep.subr.bf16.mxu1 %v2410_v3  ;;  %v1367_v8 = vpack.c.bf16 %v2067_v7, %v2067_v7 }
 0x617   : > { %2273 = vmatmul.mubr.msk.bf16.vlgmr.msra.gmra.mrb[20].mxu1 %vm466_vm1, %v2527_v10  ;;  %v1372_v11 = vsel %vm1001_vm6, %v1367_v8, 0 }
 0x618   : > { %2286 = vmatprep.mubr.msk.bf16.mxu1 %vm2411_vm0, %v2410_v3 }
 0x6da   : > { %v988_v12 = vpop.f32.mrb[12].mxu1 }
 0x6db   : > { %v994_v14 = vpack.c.bf16 %v988_v12, %v988_v12  ;;  %v2246_v15 = vpop.f32.mrb[13].mxu1 }
 0x6dc   : > { %v991_v18 = vpop.f32.mrb[14].mxu1 }
 0x6dd   : > { %v2247_v19 = vpop.f32.mrb[15].mxu1  ;;  %2251 = vmatmul.mubr.msk.bf16.vlgmr.msra.gmra.mrb[24].mxu0 %vm608_vm2, %v994_v14  ;;  %v1420_v18 = vpack.c.bf16 %v2070_v17, %v2069_v16  ;;  %v2092_v16 = vld [vmem:[%s2959_s3 + $0x18] sm:$0xff] }
 0x6de   : > { %2261 = vmatpush3.bf16.msra.mxu0 %v1096_v13  ;;  %2264 = vmatprep.mubr.msk.bf16.mxu0 %vm2411_vm0, %v2410_v3  ;;  %v2071_v19 = vld [vmem:[%s2957_s1 + $0x70] sm:$0xff]  ;;  %v1691_v17 = vpack.c.bf16 %v2092_v16, %v2092_v16 }
 0x6df   : > { %2262 = vmatprep.subr.bf16.mxu0 %v2410_v3  ;;  %v1852_v16 = vld [vmem:[%s2965_s9 + $0x70] sm:$0xff] }
 0x6e2   : > { %v1085_v21 = vpop.f32.mrb[16].mxu1  ;;  %2263 = vmatpush3.bf16.msra.mxu0 %v1097_v20  ;;  %v2072_v20 = vld [vmem:[%s2957_s1 + $0x78] sm:$0xff] }
 0x6e3   : > { %v2258_v22 = vpop.f32.mrb[17].mxu1  ;;  %2276 = vmatprep.subr.bf16.mxu0 %v2410_v3 }
 0x6e4   : > { %v1088_v23 = vpop.f32.mrb[18].mxu1  ;;  %v2073_v22 = vld [vmem:[%s2957_s1 + $0xe0] sm:$0xff] }
 0x6e5   : > { %v2259_v24 = vpop.f32.mrb[19].mxu1  ;;  %2265 = vmatmul.mubr.msk.bf16.vlgmr.msra.gmra.mrb[28].mxu0 %vm466_vm1, %v2527_v10  ;;  %v2074_v23 = vld [vmem:[%s2957_s1 + $0xe8] sm:$0xff] }
 0x6e6   : > { %2280 = vmatprep.mubr.msk.bf16.mxu0 %vm2411_vm0, %v2410_v3  ;;  %2277 = vmatpush3.bf16.msra.mxu0 %v1110_v48  ;;  %v2082_v48 = vld [vmem:[%s2958_s2 + $0x3] ss:$0 sm:$0xff] }
 0x6e7   : > { %2278 = vmatprep.subr.bf16.mxu0 %v2410_v3 }
 0x6ea   : > { %v1202_v26 = vpop.f32.mrb[20].mxu1  ;;  %2279 = vmatpush3.bf16.msra.mxu0 %v1111_v50 }
 0x6eb   : > { %v1203_v27 = vadd.f32 %v2060_v25, %v1202_v26  ;;  %v2274_v28 = vpop.f32.mrb[21].mxu1  ;;  %2290 = vmatprep.subr.bf16.mxu0 %v2410_v3  ;;  %v1427_v25 = vpack.c.bf16 %v2074_v23, %v2073_v22 }
 0x6ec   : > { %v1205_v29 = vpop.f32.mrb[22].mxu1  ;;  %v2075_v28 = vld [vmem:[%s2957_s1 + $0xf0] sm:$0xff] }
 0x6ed   : > { %v1257_v30 = vpack.c.bf16 %v1203_v27, %v1203_v27  ;;  %v2275_v31 = vpop.f32.mrb[23].mxu1  ;;  %2281 = vmatmul.mubr.msk.bf16.vlgmr.msra.gmra.mrb[32].mxu0 %vm466_vm1, %v2527_v10  ;;  %v2076_v29 = vld [vmem:[%s2957_s1 + $0xf8] sm:$0xff] }
 0x6ee   : > { %2292 = vmatprep.mubr.msk.bf16.mxu0 %vm2411_vm0, %v2410_v3 }
 0x6ef   : > { %v1262_v32 = vsel %vm608_vm2, %v1257_v30, 0 }
 0x6f0   : > { %2285 = vmatpush3.bf16.xpose.msra.mxu1 %v1262_v32  ;;  %v1428_v32 = vpack.c.bf16 %v2076_v29, %v2075_v28  ;;  %v2094_v29 = vld [vmem:[%s2960_s4] ss:$0 sm:$0xff] }
 0x6f1   : > { %2296 = vmatprep.subr.bf16.mxu1 %v2410_v3 }
 0x7b0   : > { %v1039_v33 = vpop.f32.mrb[24].mxu0 }
 0x7b1   : > { %v2721_v34 = vadd.f32 %v1085_v21, %v1039_v33  ;;  %v2252_v35 = vpop.f32.mrb[25].mxu0  ;;  %v1421_v21 = vpack.c.bf16 %v2072_v20, %v2071_v19 }
 0x7b2   : > { %v1042_v36 = vpop.f32.mrb[26].mxu0 }
 0x7b3   : > { %v2253_v37 = vpop.f32.mrb[27].mxu0 }
 0x7b8   : > { %v1154_v39 = vpop.f32.mrb[28].mxu0 }
 0x7b9   : > { %v1155_v40 = vadd.f32 %v2057_v38, %v1154_v39  ;;  %v2266_v41 = vpop.f32.mrb[29].mxu0 }
 0x7ba   : > { %v1157_v42 = vpop.f32.mrb[30].mxu0 }
 0x7bb   : > { %v1256_v43 = vpack.c.bf16 %v1155_v40, %v1155_v40  ;;  %v2267_v44 = vpop.f32.mrb[31].mxu0 }
 0x7bd   : > { %2287 = vmatmul.mubr.msk.bf16.vlgmr.msra.gmra.mrb[24].mxu1 %vm608_vm2, %v1256_v43  ;;  %v2085_v43 = vld [vmem:[%s2958_s2 + $0x7] ss:$0 sm:$0xff] }
 0x7be   : > { %2298 = vmatprep.mubr.msk.bf16.mxu1 %vm2411_vm0, %v2410_v3  ;;  %2297 = vmatpush3.bf16.msra.mxu1 %v1372_v11  ;;  %v2088_v11 = vld [vmem:[%s2958_s2 + $0xb] ss:$0 sm:$0xff] }
 0x7bf   : > { %2310 = vmatprep.subr.bf16.mxu1 %v2410_v3 }
 0x7c0   : > { %v1250_v62 = vpop.f32.mrb[32].mxu0 }
 0x7c1   : > { %v2282_v63 = vpop.f32.mrb[33].mxu0  ;;  %v1251_v4 = vadd.f32 %v2063_v1, %v1250_v62 }
 0x7c2   : > { %v1253_v0 = vpop.f32.mrb[34].mxu0 }
 0x7c3   : > { %v2283_v2 = vpop.f32.mrb[35].mxu0  ;;  %v1317_v5 = vpack.c.bf16 %v1251_v4, %v1251_v4 }
 0x7c5   : > { %v1322_v6 = vsel %vm674_vm4, %v1317_v5, 0 }
 0x7c6   : > { %2291 = vmatpush3.bf16.msra.mxu0 %v1322_v6 }
 0x7c7   : > { %2302 = vmatprep.subr.bf16.mxu0 %v2410_v3 }
 0x890   : > { %v1298_v51 = vpop.f32.mrb[24].mxu1 }
 0x891   : > { %v1304_v52 = vmul.f32 0.35355338, %v1298_v51  ;;  %v2288_v53 = vpop.f32.mrb[25].mxu1 }
 0x892   : > { %v1301_v54 = vpop.f32.mrb[26].mxu1  ;;  %v2077_v53 = vld [vmem:[%s2957_s1 + $0x160] sm:$0xff] }
 0x893   : > { %v2289_v55 = vpop.f32.mrb[27].mxu1  ;;  %v1305_v56 = vsel %vm656_vm3, %v1304_v52, -inf  ;;  %v2078_v54 = vld [vmem:[%s2957_s1 + $0x168] sm:$0xff] }
 0x894   : > { %1306 = vmax.xlane.f32.xlu0 %v1305_v56  ;;  %v2079_v55 = vld [vmem:[%s2957_s1 + $0x170] sm:$0xff]  ;;  %v1434_v56 = vpack.c.bf16 %v2078_v54, %v2077_v53  ;;  %v1842_v53 = vld [vmem:[%s2965_s9 + $0x20] sm:$0xff]  ;;  %v1843_v54 = vld [vmem:[%s2965_s9 + $0x28] sm:$0xff] }
 0x921   : > { %v1307_v57 = vpop.xlane.xlu0 %1306 }
 0x922   : > { %v1308_v58 = vsub.f32 %v1304_v52, %v1307_v57  ;;  %v2080_v57 = vld [vmem:[%s2957_s1 + $0x178] sm:$0xff] }
 0x924   : > { %v1309_v59 = vmul.f32 1.442695, %v1308_v58  ;;  %v1435_v58 = vpack.c.bf16 %v2080_v57, %v2079_v55  ;;  %v1856_v55 = vpack.c.bf16 %v1843_v54, %v1842_v53  ;;  %v1845_v57 = vld [vmem:[%s2965_s9 + $0x38] sm:$0xff] }
 0x926   : > { %2390 = vpow2.f32 %v1309_v59 }
 0x930   : > { %v2391_v60 = vpop.eup %2390 }
 0x931   : > { %v1311_v61 = vsel %vm656_vm3, %v2391_v60, 0.0 }
 0x932   : > { %1312 = vadd.xlane.f32.xlu1 %v1311_v61 }
 0x9bf   : > { %v1313_v12 = vpop.xlane.xlu1 %1312 }
 0x9c0   : > { %2392 = vrcp.f32 %v1313_v12 }
 0x9ca   : > { %v2393_v13 = vpop.eup %2392 }
 0x9cb   : > { %v1315_v14 = vmul.f32 %v2393_v13, %v2391_v60 }
 0x9cd   : > { %v1316_v15 = vpack.c.bf16 %v1315_v14, %v1315_v14 }
 0x9cf   : > { %2293 = vmatmul.mubr.msk.bf16.vlgmr.msra.gmra.mrb[36].mxu0 %vm670_vm5, %v1316_v15 }
 0x9d0   : > { %2306 = vmatprep.mubr.msk.bf16.mxu0 %vm2411_vm0, %v2410_v3  ;;  %2303 = vmatpush3.bf16.msra.mxu0 %v1420_v18  ;;  %v1696_v18 = vsel %vm1001_vm6, %v1691_v17, 0  ;;  %v1853_v17 = vld [vmem:[%s2965_s9 + $0x78] sm:$0xff] }
 0x9d1   : > { %2304 = vmatprep.subr.bf16.mxu0 %v2410_v3 }
 0x9d4   : > { %2305 = vmatpush3.bf16.msra.mxu0 %v1421_v21 }
 0x9d5   : > { %2318 = vmatprep.subr.bf16.mxu0 %v2410_v3 }
 0x9d7   : > { %2307 = vmatmul.mubr.msk.bf16.vlgmr.msra.gmra.mrb[40].mxu0 %vm466_vm1, %v2527_v10 }
 0x9d8   : > { %2322 = vmatprep.mubr.msk.bf16.mxu0 %vm2411_vm0, %v2410_v3  ;;  %2319 = vmatpush3.bf16.msra.mxu0 %v1434_v56  ;;  %v1844_v56 = vld [vmem:[%s2965_s9 + $0x30] sm:$0xff] }
 0x9d9   : > { %2320 = vmatprep.subr.bf16.mxu0 %v2410_v3 }
 0x9dc   : > { %2321 = vmatpush3.bf16.msra.mxu0 %v1435_v58  ;;  %v1857_v58 = vpack.c.bf16 %v1845_v57, %v1844_v56 }
 0x9dd   : > { %2332 = vmatprep.subr.bf16.mxu0 %v2410_v3 }
 0x9df   : > { %2323 = vmatmul.mubr.msk.bf16.vlgmr.msra.gmra.mrb[44].mxu0 %vm466_vm1, %v2527_v10 }
 0x9e0   : > { %2334 = vmatprep.mubr.msk.bf16.mxu0 %vm2411_vm0, %v2410_v3 }
 0xaa2   : > { %v1358_v24 = vpop.f32.mrb[36].mxu0 }
 0xaa3   : > { %v1364_v26 = vpack.c.bf16 %v1358_v24, %v1358_v24  ;;  %v2294_v27 = vpop.f32.mrb[37].mxu0 }
 0xaa4   : > { %v1361_v30 = vpop.f32.mrb[38].mxu0 }
 0xaa5   : > { %v2295_v31 = vpop.f32.mrb[39].mxu0  ;;  %2299 = vmatmul.mubr.msk.bf16.vlgmr.msra.gmra.mrb[28].mxu1 %vm608_vm2, %v1364_v26 }
 0xaa6   : > { %2311 = vmatpush3.bf16.msra.mxu1 %v1427_v25  ;;  %2314 = vmatprep.mubr.msk.bf16.mxu1 %vm2411_vm0, %v2410_v3 }
 0xaa7   : > { %2312 = vmatprep.subr.bf16.mxu1 %v2410_v3 }
 0xaaa   : > { %2313 = vmatpush3.bf16.msra.mxu1 %v1428_v32  ;;  %v1478_v33 = vpop.f32.mrb[40].mxu0 }
 0xaab   : > { %2326 = vmatprep.subr.bf16.mxu1 %v2410_v3  ;;  %v2308_v35 = vpop.f32.mrb[41].mxu0  ;;  %v1479_v51 = vadd.f32 %v2082_v48, %v1478_v33  ;;  %v1838_v48 = vld [vmem:[%s2965_s9] sm:$0xff] }
 0xaac   : > { %v1481_v36 = vpop.f32.mrb[42].mxu0 }
 0xaad   : > { %2315 = vmatmul.mubr.msk.bf16.vlgmr.msra.gmra.mrb[32].mxu1 %vm466_vm1, %v2527_v10  ;;  %v2309_v37 = vpop.f32.mrb[43].mxu0  ;;  %v1580_v52 = vpack.c.bf16 %v1479_v51, %v1479_v51  ;;  %v1841_v51 = vld [vmem:[%s2965_s9 + $0x18] sm:$0xff] }
 0xaae   : > { %2328 = vmatprep.mubr.msk.bf16.mxu1 %vm2411_vm0, %v2410_v3 }
 0xab2   : > { %v1574_v10 = vpop.f32.mrb[44].mxu0 }
 0xab3   : > { %v2324_v7 = vpop.f32.mrb[45].mxu0  ;;  %v1575_v13 = vadd.f32 %v2088_v11, %v1574_v10 }
 0xab4   : > { %v1577_v8 = vpop.f32.mrb[46].mxu0  ;;  %v2096_v7 = vld [vmem:[%s2962_s6] ss:$0 sm:$0xff] }
 0xab5   : > { %v2325_v12 = vpop.f32.mrb[47].mxu0  ;;  %v1641_v14 = vpack.c.bf16 %v1575_v13, %v1575_v13  ;;  %v1850_v13 = vld [vmem:[%s2965_s9 + $0x60] sm:$0xff] }
 0xab7   : > { %v1646_v15 = vsel %vm674_vm4, %v1641_v14, 0  ;;  %v1851_v14 = vld [vmem:[%s2965_s9 + $0x68] sm:$0xff] }
 0xab8   : > { %2333 = vmatpush3.bf16.msra.mxu0 %v1646_v15  ;;  %v1860_v15 = vpack.c.bf16 %v1851_v14, %v1850_v13 }
 0xab9   : > { %2344 = vmatprep.subr.bf16.mxu0 %v2410_v3 }
 0xb78   : > { %v1408_v38 = vpop.f32.mrb[28].mxu1 }
 0xb79   : > { %v2802_v39 = vadd.f32 %v1408_v38, %v2721_v34  ;;  %v2300_v40 = vpop.f32.mrb[29].mxu1 }
 0xb7a   : > { %v1411_v41 = vpop.f32.mrb[30].mxu1 }
 0xb7b   : > { %v2301_v42 = vpop.f32.mrb[31].mxu1 }
 0xb80   : > { %v1526_v44 = vpop.f32.mrb[32].mxu1 }
 0xb81   : > { %v1527_v45 = vadd.f32 %v2085_v43, %v1526_v44  ;;  %v2316_v46 = vpop.f32.mrb[33].mxu1  ;;  %v1781_v44 = vld [vmem:[%s2963_s7 + $0x8] sm:$0xff] }
 0xb82   : > { %v1529_v47 = vpop.f32.mrb[34].mxu1  ;;  %v1783_v46 = vld [vmem:[%s2963_s7 + $0x18] sm:$0xff] }
 0xb83   : > { %v1581_v49 = vpack.c.bf16 %v1527_v45, %v1527_v45  ;;  %v2317_v50 = vpop.f32.mrb[35].mxu1 }
 0xb84   : > { %v1840_v50 = vld [vmem:[%s2965_s9 + $0x10] sm:$0xff] }
 0xb85   : > { %v1586_v34 = vsel %vm608_vm2, %v1581_v49, 0  ;;  %v1839_v49 = vld [vmem:[%s2965_s9 + $0x8] sm:$0xff] }
 0xb86   : > { %2327 = vmatpush3.bf16.xpose.msra.mxu1 %v1586_v34  ;;  %v1854_v34 = vpack.c.bf16 %v1839_v49, %v1838_v48 }
 0xb87   : > { %2338 = vmatprep.subr.bf16.mxu1 %v2410_v3 }
 0xb8d   : > { %2329 = vmatmul.mubr.msk.bf16.vlgmr.msra.gmra.mrb[36].mxu1 %vm608_vm2, %v1580_v52  ;;  %v1855_v52 = vpack.c.bf16 %v1841_v51, %v1840_v50 }
 0xb8e   : > { %2340 = vmatprep.mubr.msk.bf16.mxu1 %vm2411_vm0, %v2410_v3  ;;  %2339 = vmatpush3.bf16.msra.mxu1 %v1696_v18  ;;  %v1861_v18 = vpack.c.bf16 %v1853_v17, %v1852_v16 }
 0xb8f   : > { %2352 = vmatprep.subr.bf16.mxu1 %v2410_v3 }
 0xc60   : > { %v1622_v59 = vpop.f32.mrb[36].mxu1 }
 0xc61   : > { %v1628_v60 = vmul.f32 0.35355338, %v1622_v59  ;;  %v2330_v61 = vpop.f32.mrb[37].mxu1  ;;  %v1846_v59 = vld [vmem:[%s2965_s9 + $0x40] sm:$0xff] }
 0xc62   : > { %v1625_v62 = vpop.f32.mrb[38].mxu1 }
 0xc63   : > { %v2331_v63 = vpop.f32.mrb[39].mxu1  ;;  %v1629_v0 = vsel %vm656_vm3, %v1628_v60, -inf  ;;  %v1848_v62 = vld [vmem:[%s2965_s9 + $0x50] sm:$0xff] }
 0xc64   : > { %1630 = vmax.xlane.f32.xlu0 %v1629_v0  ;;  %v1849_v63 = vld [vmem:[%s2965_s9 + $0x58] sm:$0xff] }
 0xc65   : > { %v1859_v0 = vpack.c.bf16 %v1849_v63, %v1848_v62 }
 0xcf1   : > { %v1631_v1 = vpop.xlane.xlu0 %1630 }
 0xcf2   : > { %v1632_v2 = vsub.f32 %v1628_v60, %v1631_v1  ;;  %v1847_v60 = vld [vmem:[%s2965_s9 + $0x48] sm:$0xff] }
 0xcf3   : > { %v1858_v61 = vpack.c.bf16 %v1847_v60, %v1846_v59 }
 0xcf4   : > { %v1633_v4 = vmul.f32 1.442695, %v1632_v2 }
 0xcf6   : > { %2394 = vpow2.f32 %v1633_v4 }
 0xd00   : > { %v2395_v5 = vpop.eup %2394 }
 0xd01   : > { %v1635_v6 = vsel %vm656_vm3, %v2395_v5, 0.0 }
 0xd02   : > { %1636 = vadd.xlane.f32.xlu1 %v1635_v6  ;;  %v2095_v6 = vld [vmem:[%s2961_s5] ss:$0 sm:$0xff] }
 0xd8f   : > { %v1637_v19 = vpop.xlane.xlu1 %1636 }
 0xd90   : > { %2396 = vrcp.f32 %v1637_v19  ;;  %v2097_v19 = vld [vmem:[%s2964_s8] ss:$0 sm:$0xff] }
 0xd9a   : > { %v2397_v20 = vpop.eup %2396 }
 0xd9b   : > { %v1639_v21 = vmul.f32 %v2397_v20, %v2395_v5 }
 0xd9d   : > { %v1640_v22 = vpack.c.bf16 %v1639_v21, %v1639_v21 }
 0xd9f   : > { %2335 = vmatmul.mubr.msk.bf16.vlgmr.msra.gmra.mrb[48].mxu0 %vm670_vm5, %v1640_v22 }
 0xda0   : > { %2348 = vmatprep.mubr.msk.bf16.mxu0 %vm2411_vm0, %v2410_v3 }
 0xe72   : > { %v1682_v23 = vpop.f32.mrb[48].mxu0 }
 0xe73   : > { %v1688_v24 = vpack.c.bf16 %v1682_v23, %v1682_v23  ;;  %v2336_v25 = vpop.f32.mrb[49].mxu0 }
 0xe74   : > { %v1685_v26 = vpop.f32.mrb[50].mxu0 }
 0xe75   : > { %v2337_v27 = vpop.f32.mrb[51].mxu0  ;;  %2341 = vmatmul.mubr.msk.bf16.vlgmr.msra.gmra.mrb[40].mxu1 %vm608_vm2, %v1688_v24  ;;  %v2099_v26 = vld [vmem:[%s2966_s10] ss:$0 sm:$0xff] }
 0xe76   : > { %2368 = vmatprep.mubr.msk.bf16.mxu1 %vm2411_vm0, %v2410_v3  ;;  %2353 = vmatpush3.bf16.msra.mxu1 %v1854_v34 }
 0xe77   : > { %2354 = vmatprep.subr.bf16.mxu1 %v2410_v3 }
 0xe7a   : > { %2355 = vmatpush3.bf16.msra.mxu1 %v1855_v52 }
 0xe7b   : > { %2356 = vmatprep.subr.bf16.mxu1 %v2410_v3 }
 0xe7e   : > { %2357 = vmatpush3.bf16.msra.mxu1 %v1856_v55 }
 0xe7f   : > { %2358 = vmatprep.subr.bf16.mxu1 %v2410_v3 }
 0xe82   : > { %2359 = vmatpush3.bf16.msra.mxu1 %v1857_v58 }
 0xe83   : > { %2360 = vmatprep.subr.bf16.mxu1 %v2410_v3 }
 0xe86   : > { %2361 = vmatpush3.bf16.msra.mxu1 %v1858_v61 }
 0xe87   : > { %2362 = vmatprep.subr.bf16.mxu1 %v2410_v3 }
 0xe8a   : > { %2363 = vmatpush3.bf16.msra.mxu1 %v1859_v0 }
 0xe8b   : > { %2364 = vmatprep.subr.bf16.mxu1 %v2410_v3 }
 0xe8e   : > { %2365 = vmatpush3.bf16.msra.mxu1 %v1860_v15 }
 0xe8f   : > { %2366 = vmatprep.subr.bf16.mxu1 %v2410_v3 }
 0xe92   : > { %2367 = vmatpush3.bf16.msra.mxu1 %v1861_v18 }
 0xf48   : > { %v1732_v28 = vpop.f32.mrb[40].mxu1 }
 0xf49   : > { %v1738_v30 = vadd.f32 %v1732_v28, %v2802_v39  ;;  %v2342_v31 = vpop.f32.mrb[41].mxu1  ;;  %v1780_v39 = vld [vmem:[%s2963_s7] sm:$0xff] }
 0xf4a   : > { %v1735_v32 = vpop.f32.mrb[42].mxu1  ;;  %v1784_v45 = vpack.c.bf16 %v1781_v44, %v1780_v39  ;;  %v2100_v44 = vld [vmem:[%s2967_s11] ss:$0 sm:$0xff] }
 0xf4b   : > { %v1746_v33 = vadd.f32 %v2094_v29, %v1738_v30  ;;  %v2343_v35 = vpop.f32.mrb[43].mxu1 }
 0xf4c   : > { %2345 = vmatpush3.bf16.msra.mxu0 %v1784_v45 }
 0xf4d   : > { %v1747_v36 = vadd.f32 %v1746_v33, %v2523_v9  ;;  %2346 = vmatprep.subr.bf16.mxu0 %v2410_v3  ;;  %v1782_v9 = vld [vmem:[%s2963_s7 + $0x10] sm:$0xff] }
 0xf4e   : > { %v1785_v47 = vpack.c.bf16 %v1783_v46, %v1782_v9  ;;  %v2101_v9 = vld [vmem:[%s2968_s12] ss:$0 sm:$0xff] }
 0xf4f   : > { %v1751_v37 = vsel %vm1750_vm7, %v1747_v36, 0.0 }
 0xf50   : > { %1752 = vadd.xlane.f32.xlu0 %v1751_v37  ;;  %2347 = vmatpush3.bf16.msra.mxu0 %v1785_v47 }
 0xfdd   : > { %v1753_v38 = vpop.xlane.xlu0 %1752 }
 0xfde   : > { %v1755_v40 = vmul.f32 0.03125, %v1753_v38 }
 0xfe0   : > { %v1756_v41 = vsub.f32 %v1747_v36, %v1755_v40 }
 0xfe2   : > { %v1757_v42 = vmul.f32 %v1756_v41, %v1756_v41 }
 0xfe4   : > { %v1758_v43 = vsel %vm1750_vm7, %v1757_v42, 0.0 }
 0xfe5   : > { %1759 = vadd.xlane.f32.xlu1 %v1758_v43 }
0x1072   : > { %v1760_v1 = vpop.xlane.xlu1 %1759 }
0x1073   : > { %v1761_v2 = vmul.f32 0.03125, %v1760_v1 }
0x1075   : > { %v1762_v4 = vadd.f32 1e-05, %v1761_v2 }
0x1077   : > { %2398 = vrsqrt.f32 %v1762_v4 }
0x1081   : > { %v2399_v5 = vpop.eup %2398 }
0x1082   : > { %v1764_v10 = vmul.f32 %v2399_v5, %v1756_v41 }
0x1084   : > { %v1771_v8 = vmul.f32 %v2095_v6, %v1764_v10 }
0x1086   : > { %v1778_v11 = vadd.f32 %v2096_v7, %v1771_v8 }
0x1088   : > { %v1779_v12 = vpack.c.bf16 %v1778_v11, %v1778_v11 }
0x108a   : > { %2349 = vmatmul.mubr.msk.bf16.vlgmr.msra.gmra.mrb[52].mxu0 %vm466_vm1, %v1779_v12 }
0x115d   : > { %v1830_v20 = vpop.f32.mrb[52].mxu0 }
0x115e   : > { %v1831_v21 = vadd.f32 %v2097_v19, %v1830_v20  ;;  %v2350_v22 = vpop.f32.mrb[53].mxu0 }
0x115f   : > { %v1833_v23 = vpop.f32.mrb[54].mxu0 }
0x1160   : > { %v1836_v24 = vmax.f32 %v1831_v21, 0.0  ;;  %v2351_v3 = vpop.f32.mrb[55].mxu0 }
0x1162   : > { %v1837_v25 = vpack.c.bf16 %v1836_v24, %v1836_v24 }
0x1164   : > { %2369 = vmatmul.mubr.bf16.vlgmr.msra.gmra.mrb[44].mxu1 %v1837_v25 }
0x1237   : > { %v1903_v27 = vpop.f32.mrb[44].mxu1 }
0x1238   : > { %v1904_v28 = vadd.f32 %v2099_v26, %v1903_v27  ;;  %v2370_v29 = vpop.f32.mrb[45].mxu1 }
0x1239   : > { %v1906_v30 = vpop.f32.mrb[46].mxu1 }
0x123a   : > { %v2371_v31 = vpop.f32.mrb[47].mxu1  ;;  %v1909_v32 = vadd.f32 %v1904_v28, %v1778_v11 }
0x123c   : > { %v1912_v33 = vsel %vm1750_vm7, %v1909_v32, 0.0 }
0x123d   : > { %1913 = vadd.xlane.f32.xlu0 %v1912_v33 }
0x12ca   : > { %v1914_v35 = vpop.xlane.xlu0 %1913 }
0x12cb   : > { %v1915_v36 = vmul.f32 0.03125, %v1914_v35 }
0x12cd   : > { %v1916_v37 = vsub.f32 %v1909_v32, %v1915_v36 }
0x12cf   : > { %v1917_v38 = vmul.f32 %v1916_v37, %v1916_v37 }
0x12d1   : > { %v1918_v40 = vsel %vm1750_vm7, %v1917_v38, 0.0 }
0x12d2   : > { %1919 = vadd.xlane.f32.xlu1 %v1918_v40 }
0x135f   : > { %v1920_v41 = vpop.xlane.xlu1 %1919 }
0x1360   : > { %v1921_v42 = vmul.f32 0.03125, %v1920_v41 }
0x1362   : > { %v1922_v43 = vadd.f32 1e-05, %v1921_v42 }
0x1364   : > { %2400 = vrsqrt.f32 %v1922_v43 }
0x136e   : > { %v2401_v39 = vpop.eup %2400 }
0x136f   : > { %v1924_v45 = vmul.f32 %v2401_v39, %v1916_v37 }
0x1371   : > { %v1931_v46 = vmul.f32 %v2100_v44, %v1924_v45 }
0x1373   : > { %v1938_v47 = vadd.f32 %v2101_v9, %v1931_v46 }
0x1375   : > { %1939 = vst.msk [vmem:[%s435_s15] sm:$0xf] %vm1750_vm7, %v1938_v47 }
0x1376 PF: > { %s23_s25 = sadd.s32 1, %s2408_s25  }
0x1377   : > { %p20_p4 = scmp.ge.s32.totalorder %s23_s25, 4  }
0x1379   :  { %22 = sbr.rel (!%p20_p4) target bundleno = 1 (0x1), region = 127 }

// kernel: forward.8
= control target key start
LH: loop header
LB: loop body
LE: loop exit
PB: predicated region body
PF: predicated region fallthrough
CT: control target
= control target key end

     0   :  { %s4693_s17 = smov 0   ;;  %s5680_s0 = inlined_call_operand.vmem [shape: f32[8,16,64], index: 0, kind: input, shape index: {}]   ;;  %s5681_s1 = inlined_call_operand.vmem [shape: f32[32,16], index: 1, kind: input, shape index: {}]   ;;  %s5682_s2 = inlined_call_operand.vmem [shape: f32[32,1], index: 2, kind: input, shape index: {}]   ;;  %s5683_s3 = inlined_call_operand.vmem [shape: f32[3,64,64], index: 3, kind: input, shape index: {}]   ;;  %s5684_s4 = inlined_call_operand.vmem [shape: f32[3,32,16], index: 4, kind: input, shape index: {}]   ;;  %s5685_s5 = inlined_call_operand.vmem [shape: f32[32,1], index: 5, kind: input, shape index: {}]   ;;  %s5686_s6 = inlined_call_operand.vmem [shape: f32[32,1], index: 6, kind: input, shape index: {}]   ;;  %s5687_s7 = inlined_call_operand.vmem [shape: f32[32,1], index: 7, kind: input, shape index: {}]   ;;  %s5688_s8 = inlined_call_operand.vmem [shape: f32[8,32], index: 8, kind: input, shape index: {}]   ;;  %s5689_s9 = inlined_call_operand.vmem [shape: f32[8,1], index: 9, kind: input, shape index: {}]   ;;  %s5690_s10 = inlined_call_operand.vmem [shape: f32[8,32,64], index: 10, kind: output, shape index: {0}]   ;;  %s5691_s11 = inlined_call_operand.vmem [shape: f32[8,8,64], index: 11, kind: output, shape index: {1}]  }
   0x1 LB: > { %s3683_s18 = sadd.s32 4294967295, %s4628_s17   ;;  %p3687_p0 = scmp.ge.s32.totalorder %s4628_s17, 1  ;;  %s4628_s17 = sphi %s4693_s17, %s22_s17  }
   0x2   : > { %p342_p1 = scmp.lt.s32.totalorder %s4628_s17, 3 }
   0x4   : > { %p343_p2 = pnand %p3687_p0, %p342_p1 }
   0x6   : > { %346 = sbr.rel (%p343_p2) target bundleno = 6845 (0x1abd), region = 60 }
   0xd   : > { %s3688_s19 = sshll.u32 %s3683_s18, 2  ;;  %v410_v0 = vld [vmem:[%s5681_s1] sm:$0xff]  ;;  %v411_v1 = vld [vmem:[%s5681_s1 + $0x8] sm:$0xff]  ;;  %vm458_vm0 = vcmask 130048   ;;  %v4630_v3 = vmov 0   ;;  %v412_v6 = vld [vmem:[%s5681_s1 + $0x10] sm:$0xff] }
   0xe   : > { %p390_p3 = scmp.lt.s32.totalorder %s3688_s19, 7  ;;  %v4707_v2 = vpack.c.bf16 %v411_v1, %v410_v0  ;;  %4492 = vset.pattern.permute.xlu0 %v4630_v3  ;;  %v416_v4 = vld [vmem:[%s5682_s2] sm:$0xff]  ;;  %v417_v5 = vld [vmem:[%s5682_s2 + $0x8] sm:$0xff]  ;;  %v413_v9 = vld [vmem:[%s5681_s1 + $0x18] sm:$0xff]  ;;  %vm546_vm1 = vcmask 1043456   ;;  %vm533_vm2 = vcmask 64512  }
   0xf   : > { %440 = vperm.xlu0 %4492, %v416_v4   ;;  %v4739_v11 = vpack.c.bf16 %v413_v9, %v412_v6  ;;  %vm615_vm3 = vcmask 523264   ;;  %vm4632_vm4 = vmmov 0   ;;  %vm1254_vm5 = vcmask 261120  }
  0x10   : > { %s5703_s19 = smov (!%p390_p3, %s3688_s19), 7  ;;  %4071 = vmatprep.mubr.msk.bf16.mxu0 %vm458_vm0, %v4707_v2 }
  0x11   : > { %s3895_s28 = sshll.u32 %s5703_s19, 4  ;;  %s3896_s23 = sshll.u32 %s5703_s19, 5 }
  0x12   : > { %s4723_s12 = scalar_lea.vmem %s5680_s0, %s3895_s28  ;;  %s5084_s26 = scalar_lea.vmem %s5690_s10, %s3896_s23 }
  0x13   : > { %445 = vperm.xlu0 %4492, %v417_v5   ;;  %v4729_v7 = vld [vmem:[%s4723_s12] sm:$0xff]  ;;  %v4732_v8 = vld [vmem:[%s4723_s12 + $0x8] sm:$0xff]  ;;  %s3695_s27 = sshll.u32 %s5703_s19, 3 }
  0x14   : > { %v437_v10 = vpack.c.bf16 %v4732_v8, %v4729_v7  ;;  %s5583_s30 = scalar_lea.vmem %s5691_s11, %s3695_s27 }
  0x16   : > { %4069 = vmatprep.subr.bf16.mxu0 %v437_v10 }
  0x17   : > { %4070 = vmatpush3.bf16.msra.mxu0 %v437_v10 }
  0x1a   : > { %4072 = vmatmul.mubr.msk.bf16.vlgmr.msra.gmra.mrb[0].mxu0 %vm458_vm0, %v4739_v11 }
  0x8e   : > { %v4743_v12 = vpop.permute.xlu0 %440 }
  0x92   : > { %v4750_v17 = vpop.permute.xlu0 %445 }
  0x93   : > { %5696 = vst [vmem:[#allocation2_spill] sm:$0xff] %v4750_v17 }
  0xed   : > { %v4745_v13 = vpop.f32.mrb[0].mxu0 }
  0xee   : > { %v499_v14 = vpop.f32.mrb[1].mxu0 }
  0xef   : > { %v4747_v15 = vpop.f32.mrb[2].mxu0  ;;  %v500_v16 = vadd.f32 %v499_v14, %v4743_v12 }
  0xf0   : > { %v502_v18 = vpop.f32.mrb[3].mxu0 }
  0xf1   : > { %v503_v19 = vadd.f32 %v502_v18, %v4750_v17  ;;  %v514_v20 = vpack.c.bf16 %v500_v16, %v500_v16 }
  0xf3   : > { %v515_v21 = vpack.c.bf16 %v503_v19, %v503_v19  ;;  %517 = vxpose.xlu1.c.b16.start.end [1/1] (short) (narrow) %v514_v20, 64 }
  0xf5   : > { %4477 = vmatprep.subr.msk.bf16.mxu1 %vm546_vm1, %v515_v21  ;;  %v548_v22 = vsel %vm546_vm1, %v515_v21, 0 }
  0xf6   : > { %4076 = vmatpush3.bf16.msra.mxu1 %v548_v22 }
  0xf7   : > { %4493 = vset.pattern.permute.xlu1 %v4630_v3 }
 0x159   : > { %v525_v23 = vpop.trf.xlu1 }
 0x15a   : > { %4077 = vmatprep.mubr.msk.bf16.mxu1 %vm533_vm2, %v525_v23 }
 0x15d   : > { %v526_v24 = vpop.trf.xlu1 }
 0x15e   : > { %4078 = vmatmul.mubr.msk.bf16.vlgmr.msra.gmra.mrb[0].mxu1 %vm533_vm2, %v526_v24 }
 0x161   : > { %v527_v25 = vpop.trf.xlu1 }
 0x162   : > { %4081 = vmatprep.mubr.msk.bf16.mxu1 %vm533_vm2, %v527_v25 }
 0x165   : > { %v528_v26 = vpop.trf.xlu1 }
 0x166   : > { %4082 = vmatmul.mubr.msk.bf16.gmra.mrb[4].mxu1 %vm533_vm2, %v528_v26 }
 0x231   : > { %v4079_v27 = vpop.f32.mrb[0].mxu1 }
 0x232   : > { %v584_v28 = vpop.f32.mrb[1].mxu1  ;;  %v622_v33 = vsel %vm615_vm3, %v4079_v27, -inf }
 0x233   : > { %v4080_v29 = vpop.f32.mrb[2].mxu1  ;;  %v616_v30 = vsel %vm615_vm3, %v584_v28, -inf }
 0x234   : > { %617 = vmax.xlane.f32.xlu1 %v616_v30  ;;  %v587_v31 = vpop.f32.mrb[3].mxu1  ;;  %v625_v37 = vsel %vm615_vm3, %v4080_v29, -inf  ;;  %v422_v30 = vld [vmem:[%s5685_s5] sm:$0xff] }
 0x235   : > { %v619_v32 = vsel %vm615_vm3, %v587_v31, -inf }
 0x236   : > { %620 = vmax.xlane.f32.xlu0 %v619_v32  ;;  %v423_v32 = vld [vmem:[%s5685_s5 + $0x8] sm:$0xff] }
 0x238   : > { %623 = vmax.xlane.f32.xlu1 %v622_v33  ;;  %v424_v33 = vld [vmem:[%s5685_s5 + $0x10] sm:$0xff] }
 0x239   : > { %v4083_v34 = vpop.f32.mrb[4].mxu1 }
 0x23a   : > { %v600_v35 = vpop.f32.mrb[5].mxu1  ;;  %v634_v42 = vsel %vm615_vm3, %v4083_v34, -inf }
 0x23b   : > { %v4084_v36 = vpop.f32.mrb[6].mxu1  ;;  %v628_v40 = vsel %vm615_vm3, %v600_v35, -inf }
 0x23c   : > { %626 = vmax.xlane.f32.xlu1 %v625_v37  ;;  %v603_v38 = vpop.f32.mrb[7].mxu1  ;;  %v637_v41 = vsel %vm615_vm3, %v4084_v36, -inf  ;;  %v429_v37 = vld [vmem:[%s5686_s6 + $0x10] sm:$0xff] }
 0x23d   : > { %v631_v39 = vsel %vm615_vm3, %v603_v38, -inf }
 0x23e   : > { %632 = vmax.xlane.f32.xlu0 %v631_v39  ;;  %v433_v39 = vld [vmem:[%s5687_s7 + $0x10] sm:$0xff] }
 0x240   : > { %629 = vmax.xlane.f32.xlu1 %v628_v40  ;;  %v430_v40 = vld [vmem:[%s5686_s6 + $0x18] sm:$0xff] }
 0x242   : > { %638 = vmax.xlane.f32.xlu0 %v637_v41  ;;  %v434_v41 = vld [vmem:[%s5687_s7 + $0x18] sm:$0xff] }
 0x244   : > { %635 = vmax.xlane.f32.xlu1 %v634_v42 }
 0x2c1   : > { %v618_v43 = vpop.xlane.xlu1 %617 }
 0x2c2   : > { %v640_v44 = vsub.f32 %v584_v28, %v618_v43  ;;  %v418_v28 = vld [vmem:[%s5682_s2 + $0x10] sm:$0xff] }
 0x2c3   : > { %v621_v45 = vpop.xlane.xlu0 %620 }
 0x2c4   : > { %v648_v46 = vmul.f32 1.442695, %v640_v44  ;;  %v641_v47 = vsub.f32 %v587_v31, %v621_v45  ;;  %v427_v31 = vld [vmem:[%s5686_s6] sm:$0xff] }
 0x2c5   : > { %v624_v48 = vpop.xlane.xlu1 %623 }
 0x2c6   : > { %4494 = vpow2.f32 %v648_v46  ;;  %v650_v49 = vmul.f32 1.442695, %v641_v47  ;;  %v642_v50 = vsub.f32 %v4079_v27, %v624_v48  ;;  %v5692_v27 = vmov 0.0  }
 0x2c7   : > { %4085 = vmatprep.subr.bf16.mxu0 %v5692_v27  ;;  %4093 = vmatprep.mubr.msk.bf16.mxu0 %vm4632_vm4, %v5692_v27 }
 0x2c8   : > { %4496 = vpow2.f32 %v650_v49  ;;  %v652_v51 = vmul.f32 1.442695, %v642_v50 }
 0x2c9   : > { %v627_v52 = vpop.xlane.xlu1 %626 }
 0x2ca   : > { %4498 = vpow2.f32 %v652_v51  ;;  %v643_v53 = vsub.f32 %v4080_v29, %v627_v52  ;;  %v419_v29 = vld [vmem:[%s5682_s2 + $0x18] sm:$0xff] }
 0x2cb   : > { %v633_v54 = vpop.xlane.xlu0 %632 }
 0x2cc   : > { %v654_v55 = vmul.f32 1.442695, %v643_v53  ;;  %v645_v56 = vsub.f32 %v603_v38, %v633_v54  ;;  %v432_v38 = vld [vmem:[%s5687_s7 + $0x8] sm:$0xff] }
 0x2cd   : > { %v630_v57 = vpop.xlane.xlu1 %629 }
 0x2ce   : > { %4500 = vpow2.f32 %v654_v55  ;;  %v658_v58 = vmul.f32 1.442695, %v645_v56  ;;  %v644_v61 = vsub.f32 %v600_v35, %v630_v57  ;;  %v431_v35 = vld [vmem:[%s5687_s7] sm:$0xff] }
 0x2cf   : > { %v639_v59 = vpop.xlane.xlu0 %638 }
 0x2d0   : > { %v4767_v60 = vpop.eup %4494  ;;  %4502 = vpow2.f32 %v658_v58  ;;  %v647_v62 = vsub.f32 %v4084_v36, %v639_v59  ;;  %v656_v9 = vmul.f32 1.442695, %v644_v61  ;;  %v425_v36 = vld [vmem:[%s5685_s5 + $0x18] sm:$0xff] }
 0x2d1   : > { %v636_v63 = vpop.xlane.xlu1 %635  ;;  %v664_v0 = vsel %vm615_vm3, %v4767_v60, 0.0 }
 0x2d2   : > { %v4771_v1 = vpop.eup %4496  ;;  %v662_v3 = vmul.f32 1.442695, %v647_v62  ;;  %v646_v4 = vsub.f32 %v4083_v34, %v636_v63  ;;  %665 = vadd.xlane.f32.xlu1 %v664_v0  ;;  %v428_v34 = vld [vmem:[%s5686_s6 + $0x8] sm:$0xff] }
 0x2d3   : > { %v667_v5 = vsel %vm615_vm3, %v4771_v1, 0.0 }
 0x2d4   : > { %v4775_v6 = vpop.eup %4498  ;;  %4504 = vpow2.f32 %v662_v3  ;;  %v660_v10 = vmul.f32 1.442695, %v646_v4  ;;  %668 = vadd.xlane.f32.xlu0 %v667_v5 }
 0x2d5   : > { %v670_v14 = vsel %vm615_vm3, %v4775_v6, 0.0 }
 0x2d6   : > { %4506 = vpow2.f32 %v660_v10  ;;  %671 = vadd.xlane.f32.xlu1 %v670_v14 }
 0x2d7   : > { %4508 = vpow2.f32 %v656_v9 }
 0x2d8   : > { %v4779_v16 = vpop.eup %4500 }
 0x2d9   : > { %v673_v18 = vsel %vm615_vm3, %v4779_v16, 0.0 }
 0x2da   : > { %v4783_v19 = vpop.eup %4502  ;;  %674 = vadd.xlane.f32.xlu0 %v673_v18 }
 0x2db   : > { %v679_v20 = vsel %vm615_vm3, %v4783_v19, 0.0 }
 0x2de   : > { %v4787_v21 = vpop.eup %4504  ;;  %680 = vadd.xlane.f32.xlu0 %v679_v20 }
 0x2df   : > { %v685_v23 = vsel %vm615_vm3, %v4787_v21, 0.0 }
 0x2e0   : > { %v4789_v22 = vpop.eup %4506 }
 0x2e1   : > { %v682_v24 = vsel %vm615_vm3, %v4789_v22, 0.0  ;;  %v4795_v25 = vpop.eup %4508 }
 0x2e2   : > { %686 = vadd.xlane.f32.xlu0 %v685_v23  ;;  %683 = vadd.xlane.f32.xlu1 %v682_v24  ;;  %v676_v26 = vsel %vm615_vm3, %v4795_v25, 0.0  ;;  %v766_v24 = vld [vmem:[%s5684_s4 + $0x8] sm:$0xff] }
 0x2e6   : > { %677 = vadd.xlane.f32.xlu1 %v676_v26 }
 0x2f7   : > { %450 = vperm.xlu1 %4493, %v418_v28   ;;  %v828_v28 = vld [vmem:[%s5683_s3] sm:$0xff] }
 0x2f8   : > { %455 = vperm.xlu0 %4492, %v419_v29   ;;  %v829_v29 = vld [vmem:[%s5683_s3 + $0x8] sm:$0xff] }
 0x2fb   : > { %897 = vperm.xlu1 %4493, %v422_v30  }
 0x2fc   : > { %1197 = vperm.xlu0 %4492, %v427_v31  }
 0x2ff   : > { %902 = vperm.xlu1 %4493, %v423_v32  }
 0x300   : > { %907 = vperm.xlu0 %4492, %v424_v33   ;;  %v767_v33 = vld [vmem:[%s5684_s4 + $0x10] sm:$0xff] }
 0x303   : > { %1202 = vperm.xlu1 %4493, %v428_v34   ;;  %v768_v34 = vld [vmem:[%s5684_s4 + $0x18] sm:$0xff] }
 0x304   : > { %1221 = vperm.xlu0 %4492, %v431_v35  }
 0x307   : > { %912 = vperm.xlu1 %4493, %v425_v36   ;;  %v4892_v36 = vpack.c.bf16 %v829_v29, %v828_v28 }
 0x308   : > { %1207 = vperm.xlu0 %4492, %v429_v37   ;;  %v830_v37 = vld [vmem:[%s5683_s3 + $0x10] sm:$0xff] }
 0x30b   : > { %1226 = vperm.xlu1 %4493, %v432_v38  }
 0x30c   : > { %1231 = vperm.xlu0 %4492, %v433_v39   ;;  %v832_v39 = vld [vmem:[%s5683_s3 + $0x20] sm:$0xff] }
 0x30f   : > { %1212 = vperm.xlu1 %4493, %v430_v40   ;;  %v833_v40 = vld [vmem:[%s5683_s3 + $0x28] sm:$0xff] }
 0x313   : > { %1236 = vperm.xlu1 %4493, %v434_v41   ;;  %v4916_v41 = vpack.c.bf16 %v833_v40, %v832_v39  ;;  %v3733_v40 = vld [vmem:[%s5683_s3 + $0xa0] sm:$0xff] }
 0x35f   : > { %v666_v42 = vpop.xlane.xlu1 %665 }
 0x360   : > { %4510 = vrcp.f32 %v666_v42  ;;  %v834_v42 = vld [vmem:[%s5683_s3 + $0x30] sm:$0xff] }
 0x361   : > { %v669_v43 = vpop.xlane.xlu0 %668 }
 0x362   : > { %4512 = vrcp.f32 %v669_v43  ;;  %v835_v43 = vld [vmem:[%s5683_s3 + $0x38] sm:$0xff] }
 0x363   : > { %v672_v44 = vpop.xlane.xlu1 %671 }
 0x364   : > { %4514 = vrcp.f32 %v672_v44  ;;  %v4926_v44 = vpack.c.bf16 %v835_v43, %v834_v42  ;;  %v3734_v42 = vld [vmem:[%s5683_s3 + $0xa8] sm:$0xff] }
 0x365   : > { %v5043_v43 = vpack.c.bf16 %v3734_v42, %v3733_v40  ;;  %v5116_v40 = vld [vmem:[%s4723_s12 + $0x18] sm:$0xff]  ;;  %v420_v42 = vld [vmem:[%s5688_s8] sm:$0xff] }
 0x367   : > { %v675_v45 = vpop.xlane.xlu0 %674 }
 0x368   : > { %4516 = vrcp.f32 %v675_v45  ;;  %v3723_v45 = vld [vmem:[%s5684_s4 + $0x40] sm:$0xff] }
 0x36a   : > { %v4511_v46 = vpop.eup %4510 }
 0x36b   : > { %v681_v48 = vpop.xlane.xlu0 %680  ;;  %v696_v49 = vmul.f32 %v4511_v46, %v4767_v60  ;;  %v3724_v46 = vld [vmem:[%s5684_s4 + $0x48] sm:$0xff] }
 0x36c   : > { %v4513_v47 = vpop.eup %4512  ;;  %4518 = vrcp.f32 %v681_v48  ;;  %v4940_v48 = vpack.c.bf16 %v3724_v46, %v3723_v45  ;;  %v3735_v45 = vld [vmem:[%s5683_s3 + $0xb0] sm:$0xff]  ;;  %v3736_v46 = vld [vmem:[%s5683_s3 + $0xb8] sm:$0xff] }
 0x36d   : > { %v697_v50 = vmul.f32 %v4513_v47, %v4771_v1  ;;  %v3725_v47 = vld [vmem:[%s5684_s4 + $0x50] sm:$0xff] }
 0x36e   : > { %v4515_v53 = vpop.eup %4514 }
 0x36f   : > { %v684_v51 = vpop.xlane.xlu1 %683  ;;  %v704_v52 = vpack.c.bf16 %v697_v50, %v696_v49  ;;  %v687_v56 = vpop.xlane.xlu0 %686  ;;  %v698_v58 = vmul.f32 %v4515_v53, %v4775_v6  ;;  %v3726_v49 = vld [vmem:[%s5684_s4 + $0x58] sm:$0xff]  ;;  %v3707_v53 = vld [vmem:[%s5684_s4 + $0x20] sm:$0xff] }
 0x370   : > { %v4945_v50 = vpack.c.bf16 %v3726_v49, %v3725_v47  ;;  %v5053_v47 = vpack.c.bf16 %v3736_v46, %v3735_v45  ;;  %v5124_v46 = vpack.c.bf16 %v420_v42, %v420_v42 }
 0x371   : > { %v712_v54 = vsel %vm615_vm3, %v704_v52, 0 }
 0x372   : > { %v4517_v55 = vpop.eup %4516  ;;  %4086 = vmatpush3.bf16.xpose.msra.mxu0 %v712_v54  ;;  %v3708_v54 = vld [vmem:[%s5684_s4 + $0x28] sm:$0xff] }
 0x373   : > { %v678_v57 = vpop.xlane.xlu1 %677  ;;  %4087 = vmatprep.subr.bf16.mxu0 %v5692_v27  ;;  %v699_v59 = vmul.f32 %v4517_v55, %v4779_v16 }
 0x374   : > { %4520 = vrcp.f32 %v678_v57  ;;  %v3714_v57 = vld [vmem:[%s5683_s3 + $0x48] sm:$0xff] }
 0x375   : > { %4522 = vrcp.f32 %v687_v56  ;;  %v705_v60 = vpack.c.bf16 %v699_v59, %v698_v58  ;;  %v3713_v56 = vld [vmem:[%s5683_s3 + $0x40] sm:$0xff] }
 0x376   : > { %4524 = vrcp.f32 %v684_v51  ;;  %v4519_v4 = vpop.eup %4518 }
 0x377   : > { %v4850_v61 = vpop.permute.xlu0 %455  ;;  %v4852_v62 = vpop.permute.xlu1 %450  ;;  %v715_v1 = vsel %vm615_vm3, %v705_v60, 0  ;;  %v701_v10 = vmul.f32 %v4519_v4, %v4783_v19  ;;  %v765_v19 = vld [vmem:[%s5684_s4] sm:$0xff]  ;;  %v3715_v4 = vld [vmem:[%s5683_s3 + $0x50] sm:$0xff] }
 0x378   : > { %v511_v63 = vadd.f32 %v4747_v15, %v4850_v61  ;;  %v508_v0 = vadd.f32 %v4745_v13, %v4852_v62 }
 0x37a   : > { %v516_v3 = vpack.c.bf16 %v511_v63, %v508_v0  ;;  %4088 = vmatpush3.bf16.xpose.msra.mxu0 %v715_v1  ;;  %v4965_v63 = vpack.c.bf16 %v3708_v54, %v3707_v53  ;;  %v4967_v0 = vpack.c.bf16 %v3714_v57, %v3713_v56  ;;  %v3709_v1 = vld [vmem:[%s5684_s4 + $0x30] sm:$0xff] }
 0x37b   : > { %4089 = vmatprep.subr.bf16.mxu0 %v5692_v27  ;;  %v5062_v49 = vpop.permute.xlu1 %897 }
 0x37e   : > { %v4521_v5 = vpop.eup %4520 }
 0x37f   : > { %v4523_v6 = vpop.eup %4522  ;;  %v700_v9 = vmul.f32 %v4521_v5, %v4795_v25  ;;  %v3716_v5 = vld [vmem:[%s5683_s3 + $0x58] sm:$0xff] }
 0x380   : > { %v4525_v14 = vpop.eup %4524  ;;  %v703_v13 = vmul.f32 %v4523_v6, %v4787_v21 }
 0x381   : > { %v706_v16 = vpack.c.bf16 %v701_v10, %v700_v9  ;;  %v702_v18 = vmul.f32 %v4525_v14, %v4789_v22  ;;  %v4874_v22 = vpack.c.bf16 %v766_v24, %v765_v19  ;;  %v4988_v9 = vpack.c.bf16 %v3716_v5, %v3715_v4  ;;  %v3717_v10 = vld [vmem:[%s5683_s3 + $0x60] sm:$0xff]  ;;  %v3718_v14 = vld [vmem:[%s5683_s3 + $0x68] sm:$0xff] }
 0x383   : > { %v718_v15 = vsel %vm615_vm3, %v706_v16, 0  ;;  %v707_v20 = vpack.c.bf16 %v703_v13, %v702_v18  ;;  %4099 = vmatprep.mubr.msk.bf16.mxu1 %vm458_vm0, %v4874_v22  ;;  %v5000_v16 = vpack.c.bf16 %v3718_v14, %v3717_v10  ;;  %v3720_v18 = vld [vmem:[%s5683_s3 + $0x78] sm:$0xff] }
 0x384   : > { %4090 = vmatpush3.bf16.xpose.msra.mxu0 %v718_v15  ;;  %v3719_v15 = vld [vmem:[%s5683_s3 + $0x70] sm:$0xff] }
 0x385   : > { %4091 = vmatprep.subr.bf16.mxu0 %v5692_v27  ;;  %v721_v23 = vsel %vm615_vm3, %v707_v20, 0  ;;  %v5011_v13 = vpack.c.bf16 %v3720_v18, %v3719_v15  ;;  %v3729_v20 = vld [vmem:[%s5683_s3 + $0x80] sm:$0xff] }
 0x38c   : > { %4092 = vmatpush3.bf16.xpose.msra.mxu0 %v721_v23  ;;  %v3730_v23 = vld [vmem:[%s5683_s3 + $0x88] sm:$0xff] }
 0x38d   : > { %v5021_v19 = vpack.c.bf16 %v3730_v23, %v3729_v20 }
 0x393   : > { %4094 = vmatmul.mubr.msk.bf16.vlgmr.msra.gmra.mrb[4].mxu0 %vm615_vm3, %v516_v3  ;;  %v3710_v3 = vld [vmem:[%s5684_s4 + $0x38] sm:$0xff] }
 0x394   : > { %4135 = vmatprep.mubr.msk.bf16.mxu0 %vm458_vm0, %v4940_v48  ;;  %v4986_v6 = vpack.c.bf16 %v3710_v3, %v3709_v1 }
 0x466   : > { %v757_v21 = vpop.f32.mrb[4].mxu0 }
 0x467   : > { %v4095_v25 = vpop.f32.mrb[5].mxu0  ;;  %v758_v30 = vadd.f32 %v757_v21, %v4729_v7  ;;  %v831_v7 = vld [vmem:[%s5683_s3 + $0x18] sm:$0xff] }
 0x468   : > { %v760_v26 = vpop.f32.mrb[6].mxu0  ;;  %v4903_v38 = vpack.c.bf16 %v831_v7, %v830_v37 }
 0x469   : > { %v761_v31 = vadd.f32 %v760_v26, %v4732_v8  ;;  %v4096_v32 = vpop.f32.mrb[7].mxu0  ;;  %v4900_v8 = vpack.c.bf16 %v768_v34, %v767_v33  ;;  %v3731_v33 = vld [vmem:[%s5683_s3 + $0x90] sm:$0xff]  ;;  %v3732_v34 = vld [vmem:[%s5683_s3 + $0x98] sm:$0xff] }
 0x46a   : > { %v5030_v39 = vpack.c.bf16 %v3732_v34, %v3731_v33 }
 0x46b   : > { %v764_v35 = vpack.c.bf16 %v761_v31, %v758_v30 }
 0x46d   : > { %4097 = vmatprep.subr.bf16.mxu1 %v764_v35  ;;  %4133 = vmatprep.subr.bf16.mxu0 %v764_v35 }
 0x46e   : > { %4098 = vmatpush3.bf16.msra.mxu1 %v764_v35  ;;  %4134 = vmatpush3.bf16.msra.mxu0 %v764_v35 }
 0x46f   : > { %4103 = vmatprep.subr.bf16.mxu1 %v4892_v36  ;;  %4151 = vmatprep.subr.bf16.mxu0 %v5692_v27 }
 0x471   : > { %4100 = vmatmul.mubr.msk.bf16.vlgmr.msra.gmra.mrb[8].mxu1 %vm458_vm0, %v4900_v8  ;;  %4136 = vmatmul.mubr.msk.bf16.vlgmr.msra.gmra.mrb[8].mxu0 %vm458_vm0, %v4945_v50 }
 0x472   : > { %4104 = vmatpush3.bf16.msra.mxu1 %v4892_v36  ;;  %4155 = vmatprep.mubr.msk.bf16.mxu0 %vm4632_vm4, %v5692_v27 }
 0x473   : > { %4105 = vmatprep.subr.bf16.mxu1 %v4903_v38 }
 0x476   : > { %4106 = vmatpush3.bf16.msra.mxu1 %v4903_v38 }
 0x477   : > { %4107 = vmatprep.subr.bf16.mxu1 %v4916_v41 }
 0x47a   : > { %4108 = vmatpush3.bf16.msra.mxu1 %v4916_v41 }
 0x47b   : > { %4109 = vmatprep.subr.bf16.mxu1 %v4926_v44 }
 0x47e   : > { %4110 = vmatpush3.bf16.msra.mxu1 %v4926_v44 }
 0x47f   : > { %4115 = vmatprep.subr.bf16.mxu1 %v764_v35 }
 0x544   : > { %v4101_v51 = vpop.f32.mrb[8].mxu1  ;;  %v4137_v24 = vpop.f32.mrb[8].mxu0 }
 0x545   : > { %v811_v52 = vpop.f32.mrb[9].mxu1  ;;  %v1102_v21 = vpop.f32.mrb[9].mxu0 }
 0x546   : > { %v4102_v55 = vpop.f32.mrb[10].mxu1  ;;  %v4138_v25 = vpop.f32.mrb[10].mxu0 }
 0x547   : > { %v827_v58 = vpack.c.bf16 %v4102_v55, %v4101_v51  ;;  %v814_v59 = vpop.f32.mrb[11].mxu1  ;;  %v1118_v26 = vpack.c.bf16 %v4138_v25, %v4137_v24  ;;  %v1105_v28 = vpop.f32.mrb[11].mxu0 }
 0x548   : > { %v826_v60 = vpack.c.bf16 %v814_v59, %v811_v52  ;;  %v1117_v29 = vpack.c.bf16 %v1105_v28, %v1102_v21  ;;  %v5064_v51 = vpop.permute.xlu1 %902  ;;  %v5066_v52 = vpop.permute.xlu0 %1197 }
 0x54a   : > { %4111 = vmatprep.mubr.msk.bf16.mxu1 %vm615_vm3, %v826_v60 }
 0x54b   : > { %4112 = vmatmul.mubr.msk.bf16.vlgmr.msra.gmra.mrb[12].mxu1 %vm615_vm3, %v827_v58 }
 0x54c   : > { %4116 = vmatpush3.bf16.msra.mxu1 %v764_v35  ;;  %4117 = vmatprep.mubr.msk.bf16.mxu1 %vm458_vm0, %v4965_v63  ;;  %v5068_v53 = vpop.permute.xlu1 %1202  ;;  %v5070_v54 = vpop.permute.xlu0 %907 }
 0x54d   : > { %4121 = vmatprep.subr.bf16.mxu1 %v4967_v0 }
 0x550   : > { %v5072_v55 = vpop.permute.xlu1 %912  ;;  %v5074_v56 = vpop.permute.xlu0 %1221 }
 0x553   : > { %4118 = vmatmul.mubr.msk.bf16.vlgmr.msra.gmra.mrb[16].mxu1 %vm458_vm0, %v4986_v6 }
 0x554   : > { %4122 = vmatpush3.bf16.msra.mxu1 %v4967_v0  ;;  %v5076_v57 = vpop.permute.xlu1 %1226  ;;  %v5079_v58 = vpop.permute.xlu0 %1207 }
 0x555   : > { %4123 = vmatprep.subr.bf16.mxu1 %v4988_v9 }
 0x558   : > { %4124 = vmatpush3.bf16.msra.mxu1 %v4988_v9  ;;  %v5086_v59 = vpop.permute.xlu1 %1212  ;;  %v5094_v18 = vpop.permute.xlu0 %1231 }
 0x559   : > { %4125 = vmatprep.subr.bf16.mxu1 %v5000_v16 }
 0x55c   : > { %4126 = vmatpush3.bf16.msra.mxu1 %v5000_v16  ;;  %v5104_v25 = vpop.permute.xlu1 %1236 }
 0x55d   : > { %4127 = vmatprep.subr.bf16.mxu1 %v5011_v13 }
 0x560   : > { %4128 = vmatpush3.bf16.msra.mxu1 %v5011_v13 }
 0x561   : > { %4139 = vmatprep.subr.bf16.mxu1 %v5021_v19 }
 0x626   : > { %v4119_v30 = vpop.f32.mrb[16].mxu1 }
 0x627   : > { %v966_v31 = vpop.f32.mrb[17].mxu1 }
 0x628   : > { %v4120_v32 = vpop.f32.mrb[18].mxu1 }
 0x629   : > { %v982_v35 = vpack.c.bf16 %v4120_v32, %v4119_v30  ;;  %v969_v37 = vpop.f32.mrb[19].mxu1 }
 0x62a   : > { %v981_v7 = vpack.c.bf16 %v969_v37, %v966_v31 }
 0x62c   : > { %4129 = vmatprep.mubr.msk.bf16.mxu1 %vm615_vm3, %v981_v7  ;;  %v5113_v7 = vld [vmem:[%s4723_s12 + $0x10] sm:$0xff] }
 0x62d   : > { %4130 = vmatmul.mubr.msk.bf16.vlgmr.msra.gmra.mrb[12].mxu1 %vm615_vm3, %v982_v35  ;;  %v1302_v45 = vpack.c.bf16 %v5116_v40, %v5113_v7 }
 0x62e   : > { %4140 = vmatpush3.bf16.msra.mxu1 %v5021_v19  ;;  %4147 = vmatprep.mubr.msk.bf16.mxu1 %vm615_vm3, %v1117_v29 }
 0x62f   : > { %4141 = vmatprep.subr.bf16.mxu1 %v5030_v39 }
 0x632   : > { %4142 = vmatpush3.bf16.msra.mxu1 %v5030_v39 }
 0x633   : > { %4143 = vmatprep.subr.bf16.mxu1 %v5043_v43 }
 0x636   : > { %4144 = vmatpush3.bf16.msra.mxu1 %v5043_v43 }
 0x637   : > { %4145 = vmatprep.subr.bf16.mxu1 %v5053_v47 }
 0x63a   : > { %4146 = vmatpush3.bf16.msra.mxu1 %v5053_v47 }
 0x63b   : > { %4175 = vmatprep.subr.bf16.mxu1 %v5692_v27 }
 0x63d   : > { %4148 = vmatmul.mubr.msk.bf16.vlgmr.msra.gmra.mrb[12].mxu1 %vm615_vm3, %v1118_v26 }
 0x63e   : > { %4183 = vmatprep.mubr.msk.bf16.mxu1 %vm4632_vm4, %v5692_v27 }
 0x710   : > { %v4149_v60 = vpop.f32.mrb[12].mxu1 }
 0x711   : > { %v4429_v1 = vadd.f32 %v4149_v60, %v5070_v54  ;;  %v1172_v3 = vpop.f32.mrb[13].mxu1 }
 0x712   : > { %v4430_v4 = vadd.f32 %v1172_v3, %v5062_v49  ;;  %v4150_v5 = vpop.f32.mrb[14].mxu1 }
 0x713   : > { %1193 = vst.msk [vmem:[%s5084_s26 + $0x10] sm:$0xff] %vm615_vm3, %v4429_v1  ;;  %v1217_v10 = vmul.f32 %v4429_v1, %v5079_v58  ;;  %v4431_v14 = vadd.f32 %v4150_v5, %v5072_v55  ;;  %v1175_v15 = vpop.f32.mrb[15].mxu1 }
 0x714   : > { %1191 = vst.msk [vmem:[%s5084_s26] sm:$0xff] %vm615_vm3, %v4430_v4  ;;  %v1215_v20 = vmul.f32 %v4430_v4, %v5066_v52  ;;  %v4432_v23 = vadd.f32 %v1175_v15, %v5064_v51 }
 0x715   : > { %v1241_v24 = vadd.f32 %v5094_v18, %v1217_v10  ;;  %1194 = vst.msk [vmem:[%s5084_s26 + $0x18] sm:$0xff] %vm615_vm3, %v4431_v14  ;;  %v1218_v21 = vmul.f32 %v4431_v14, %v5086_v59 }
 0x716   : > { %v1239_v26 = vadd.f32 %v5074_v56, %v1215_v20  ;;  %1192 = vst.msk [vmem:[%s5084_s26 + $0x8] sm:$0xff] %vm615_vm3, %v4432_v23  ;;  %v1216_v28 = vmul.f32 %v4432_v23, %v5068_v53 }
 0x717   : > { %v1242_v29 = vadd.f32 %v5104_v25, %v1218_v21  ;;  %v1245_v31 = vmax.f32 %v1241_v24, 0.0 }
 0x718   : > { %v1240_v30 = vadd.f32 %v5076_v57, %v1216_v28  ;;  %v1243_v33 = vmax.f32 %v1239_v26, 0.0 }
 0x719   : > { %v1246_v32 = vmax.f32 %v1242_v29, 0.0 }
 0x71a   : > { %v1244_v34 = vmax.f32 %v1240_v30, 0.0 }
 0x71b   : > { %v1248_v35 = vpack.c.bf16 %v1246_v32, %v1245_v31 }
 0x71c   : > { %v1247_v37 = vpack.c.bf16 %v1244_v34, %v1243_v33 }
 0x71e   : > { %4152 = vmatpush3.bf16.msra.mxu0 %v1247_v37 }
 0x71f   : > { %4153 = vmatprep.subr.bf16.mxu0 %v5692_v27 }
 0x722   : > { %4154 = vmatpush3.bf16.msra.mxu0 %v1248_v35 }
 0x723   : > { %4159 = vmatprep.subr.bf16.mxu0 %v1302_v45 }
 0x725   : > { %4156 = vmatmul.mubr.msk.bf16.vlgmr.msra.gmra.mrb[12].mxu0 %vm1254_vm5, %v5124_v46 }
 0x726   : > { %4160 = vmatpush3.bf16.msra.mxu0 %v1302_v45  ;;  %4161 = vmatprep.mubr.msk.bf16.mxu0 %vm458_vm0, %v4707_v2 }
 0x72d   : > { %4162 = vmatmul.mubr.msk.bf16.vlgmr.msra.gmra.mrb[16].mxu0 %vm458_vm0, %v4739_v11 }
 0x7f8   : > { %v5132_v60 = vpop.f32.mrb[12].mxu0 }
 0x7f9   : > { %5697 = vst [vmem:[#allocation3_spill] sm:$0xff] %v5132_v60  ;;  %v4157_v1 = vpop.f32.mrb[13].mxu0 }
 0x7fa   : > { %v1295_v3 = vpop.f32.mrb[14].mxu0 }
 0x7fb   : > { %v4158_v4 = vpop.f32.mrb[15].mxu0 }
 0x800   : > { %v4163_v5 = vpop.f32.mrb[16].mxu0 }
 0x801   : > { %v1337_v10 = vpop.f32.mrb[17].mxu0  ;;  %v5136_v20 = vadd.f32 %v4163_v5, %v4852_v62 }
 0x802   : > { %v1338_v14 = vadd.f32 %v1337_v10, %v4743_v12  ;;  %v4164_v15 = vpop.f32.mrb[18].mxu0 }
 0x803   : > { %v5139_v23 = vadd.f32 %v4164_v15, %v4850_v61  ;;  %v1340_v24 = vpop.f32.mrb[19].mxu0 }
 0x804   : > { %v1352_v21 = vpack.c.bf16 %v1338_v14, %v1338_v14  ;;  %v1341_v26 = vadd.f32 %v1340_v24, %v4750_v17 }
 0x806   : > { %v1353_v29 = vpack.c.bf16 %v1341_v26, %v1341_v26  ;;  %1355 = vxpose.xlu0.c.b16.start.end [1/1] (short) (narrow) %v1352_v21, 64 }
 0x808   : > { %v1384_v30 = vsel %vm546_vm1, %v1353_v29, 0  ;;  %4478 = vmatprep.subr.msk.bf16.mxu0 %vm546_vm1, %v1353_v29 }
 0x809   : > { %4166 = vmatpush3.bf16.msra.mxu0 %v1384_v30 }
 0x86c   : > { %v1363_v31 = vpop.trf.xlu0 }
 0x86d   : > { %4167 = vmatprep.mubr.msk.bf16.mxu0 %vm533_vm2, %v1363_v31 }
 0x870   : > { %v1364_v32 = vpop.trf.xlu0 }
 0x871   : > { %4168 = vmatmul.mubr.msk.bf16.vlgmr.msra.gmra.mrb[20].mxu0 %vm533_vm2, %v1364_v32 }
 0x874   : > { %v1365_v33 = vpop.trf.xlu0 }
 0x875   : > { %4171 = vmatprep.mubr.msk.bf16.mxu0 %vm533_vm2, %v1365_v33 }
 0x878   : > { %v1366_v34 = vpop.trf.xlu0 }
 0x879   : > { %4172 = vmatmul.mubr.msk.bf16.gmra.mrb[24].mxu0 %vm533_vm2, %v1366_v34 }
 0x87a   : > { %4189 = vmatprep.mubr.msk.bf16.mxu0 %vm458_vm0, %v4874_v22 }
 0x944   : > { %v4169_v35 = vpop.f32.mrb[20].mxu0 }
 0x945   : > { %v1420_v37 = vpop.f32.mrb[21].mxu0  ;;  %v1457_v4 = vsel %vm615_vm3, %v4169_v35, -inf }
 0x946   : > { %v4170_v42 = vpop.f32.mrb[22].mxu0  ;;  %v1451_v45 = vsel %vm615_vm3, %v1420_v37, -inf }
 0x947   : > { %1452 = vmax.xlane.f32.xlu1 %v1451_v45  ;;  %v1423_v1 = vpop.f32.mrb[23].mxu0  ;;  %v1460_v15 = vsel %vm615_vm3, %v4170_v42, -inf }
 0x948   : > { %v1454_v3 = vsel %vm615_vm3, %v1423_v1, -inf }
 0x949   : > { %1455 = vmax.xlane.f32.xlu0 %v1454_v3 }
 0x94b   : > { %1458 = vmax.xlane.f32.xlu1 %v1457_v4 }
 0x94c   : > { %v4173_v5 = vpop.f32.mrb[24].mxu0 }
 0x94d   : > { %v1436_v10 = vpop.f32.mrb[25].mxu0  ;;  %v1469_v29 = vsel %vm615_vm3, %v4173_v5, -inf }
 0x94e   : > { %v4174_v14 = vpop.f32.mrb[26].mxu0  ;;  %v1463_v21 = vsel %vm615_vm3, %v1436_v10, -inf }
 0x94f   : > { %1461 = vmax.xlane.f32.xlu1 %v1460_v15  ;;  %v1472_v22 = vsel %vm615_vm3, %v4174_v14, -inf  ;;  %v1439_v24 = vpop.f32.mrb[27].mxu0 }
 0x950   : > { %1473 = vmax.xlane.f32.xlu0 %v1472_v22  ;;  %v1466_v26 = vsel %vm615_vm3, %v1439_v24, -inf }
 0x953   : > { %1464 = vmax.xlane.f32.xlu1 %v1463_v21 }
 0x957   : > { %1467 = vmax.xlane.f32.xlu1 %v1466_v26 }
 0x95b   : > { %1470 = vmax.xlane.f32.xlu1 %v1469_v29 }
 0x9d4   : > { %v1453_v30 = vpop.xlane.xlu1 %1452 }
 0x9d5   : > { %v1475_v31 = vsub.f32 %v1420_v37, %v1453_v30 }
 0x9d6   : > { %v1456_v32 = vpop.xlane.xlu0 %1455 }
 0x9d7   : > { %v1483_v33 = vmul.f32 1.442695, %v1475_v31  ;;  %v1476_v34 = vsub.f32 %v1423_v1, %v1456_v32 }
 0x9d8   : > { %v1459_v45 = vpop.xlane.xlu1 %1458 }
 0x9d9   : > { %4526 = vpow2.f32 %v1483_v33  ;;  %v1485_v3 = vmul.f32 1.442695, %v1476_v34  ;;  %v1477_v4 = vsub.f32 %v4169_v35, %v1459_v45 }
 0x9db   : > { %4528 = vpow2.f32 %v1485_v3  ;;  %v1487_v15 = vmul.f32 1.442695, %v1477_v4 }
 0x9dc   : > { %v1462_v22 = vpop.xlane.xlu1 %1461 }
 0x9dd   : > { %4530 = vpow2.f32 %v1487_v15  ;;  %v1478_v21 = vsub.f32 %v4170_v42, %v1462_v22  ;;  %v1474_v27 = vpop.xlane.xlu0 %1473 }
 0x9de   : > { %v1482_v17 = vsub.f32 %v4174_v14, %v1474_v27 }
 0x9df   : > { %v1489_v28 = vmul.f32 1.442695, %v1478_v21 }
 0x9e0   : > { %v1465_v26 = vpop.xlane.xlu1 %1464  ;;  %v1497_v34 = vmul.f32 1.442695, %v1482_v17 }
 0x9e1   : > { %4532 = vpow2.f32 %v1489_v28  ;;  %v1479_v60 = vsub.f32 %v1436_v10, %v1465_v26 }
 0x9e3   : > { %v4527_v29 = vpop.eup %4526  ;;  %v1491_v37 = vmul.f32 1.442695, %v1479_v60 }
 0x9e4   : > { %v1468_v30 = vpop.xlane.xlu1 %1467  ;;  %v1499_v1 = vsel %vm615_vm3, %v4527_v29, 0.0 }
 0x9e5   : > { %v4529_v31 = vpop.eup %4528  ;;  %4534 = vpow2.f32 %v1491_v37  ;;  %v1480_v32 = vsub.f32 %v1439_v24, %v1468_v30  ;;  %1500 = vadd.xlane.f32.xlu1 %v1499_v1 }
 0x9e6   : > { %v1502_v35 = vsel %vm615_vm3, %v4529_v31, 0.0 }
 0x9e7   : > { %v4531_v33 = vpop.eup %4530  ;;  %v1493_v42 = vmul.f32 1.442695, %v1480_v32  ;;  %1503 = vadd.xlane.f32.xlu0 %v1502_v35 }
 0x9e8   : > { %v1471_v45 = vpop.xlane.xlu1 %1470  ;;  %v1505_v28 = vsel %vm615_vm3, %v4531_v33, 0.0 }
 0x9e9   : > { %4536 = vpow2.f32 %v1493_v42  ;;  %v1481_v10 = vsub.f32 %v4173_v5, %v1471_v45  ;;  %1506 = vadd.xlane.f32.xlu1 %v1505_v28 }
 0x9ea   : > { %4538 = vpow2.f32 %v1497_v34 }
 0x9eb   : > { %v4533_v27 = vpop.eup %4532  ;;  %v1495_v60 = vmul.f32 1.442695, %v1481_v10 }
 0x9ec   : > { %v1508_v14 = vsel %vm615_vm3, %v4533_v27, 0.0 }
 0x9ed   : > { %4540 = vpow2.f32 %v1495_v60  ;;  %1509 = vadd.xlane.f32.xlu0 %v1508_v14 }
 0x9ef   : > { %v4535_v24 = vpop.eup %4534 }
 0x9f0   : > { %v1511_v3 = vsel %vm615_vm3, %v4535_v24, 0.0 }
 0x9f1   : > { %1512 = vadd.xlane.f32.xlu1 %v1511_v3 }
 0x9f3   : > { %v4537_v17 = vpop.eup %4536 }
 0x9f4   : > { %v1514_v4 = vsel %vm615_vm3, %v4537_v17, 0.0  ;;  %v4539_v15 = vpop.eup %4538 }
 0x9f5   : > { %1515 = vadd.xlane.f32.xlu0 %v1514_v4  ;;  %v1520_v21 = vsel %vm615_vm3, %v4539_v15, 0.0 }
 0x9f7   : > { %v4541_v22 = vpop.eup %4540 }
 0x9f8   : > { %v1517_v5 = vsel %vm615_vm3, %v4541_v22, 0.0 }
 0x9f9   : > { %1518 = vadd.xlane.f32.xlu1 %v1517_v5  ;;  %1521 = vadd.xlane.f32.xlu0 %v1520_v21  ;;  %v5698_v21 = vmov 0.0  }
 0xa72   : > { %v1501_v26 = vpop.xlane.xlu1 %1500 }
 0xa73   : > { %4542 = vrcp.f32 %v1501_v26 }
 0xa74   : > { %v1504_v37 = vpop.xlane.xlu0 %1503 }
 0xa75   : > { %4544 = vrcp.f32 %v1504_v37 }
 0xa76   : > { %v1507_v30 = vpop.xlane.xlu1 %1506 }
 0xa77   : > { %4546 = vrcp.f32 %v1507_v30 }
 0xa7a   : > { %v1510_v1 = vpop.xlane.xlu0 %1509 }
 0xa7b   : > { %4548 = vrcp.f32 %v1510_v1 }
 0xa7d   : > { %v4543_v32 = vpop.eup %4542 }
 0xa7e   : > { %v1513_v35 = vpop.xlane.xlu1 %1512  ;;  %v1531_v42 = vmul.f32 %v4543_v32, %v4527_v29 }
 0xa7f   : > { %v4545_v34 = vpop.eup %4544  ;;  %4550 = vrcp.f32 %v1513_v35 }
 0xa80   : > { %v1532_v45 = vmul.f32 %v4545_v34, %v4529_v31 }
 0xa81   : > { %v4547_v60 = vpop.eup %4546 }
 0xa82   : > { %v1516_v28 = vpop.xlane.xlu0 %1515  ;;  %v1539_v10 = vpack.c.bf16 %v1532_v45, %v1531_v42  ;;  %v1533_v26 = vmul.f32 %v4547_v60, %v4531_v33 }
 0xa83   : > { %4552 = vrcp.f32 %v1516_v28 }
 0xa84   : > { %v1547_v14 = vsel %vm615_vm3, %v1539_v10, 0 }
 0xa85   : > { %v4549_v3 = vpop.eup %4548  ;;  %4176 = vmatpush3.bf16.xpose.msra.mxu1 %v1547_v14  ;;  %v5699_v14 = vpack.c.bf16 %v5139_v23, %v5136_v20 }
 0xa86   : > { %v1519_v4 = vpop.xlane.xlu1 %1518  ;;  %v1522_v5 = vpop.xlane.xlu0 %1521  ;;  %4177 = vmatprep.subr.bf16.mxu1 %v5698_v21  ;;  %v1534_v37 = vmul.f32 %v4549_v3, %v4533_v27 }
 0xa87   : > { %4554 = vrcp.f32 %v1519_v4 }
 0xa88   : > { %4556 = vrcp.f32 %v1522_v5  ;;  %v1540_v30 = vpack.c.bf16 %v1534_v37, %v1533_v26 }
 0xa89   : > { %v4551_v29 = vpop.eup %4550 }
 0xa8a   : > { %v1550_v31 = vsel %vm615_vm3, %v1540_v30, 0  ;;  %v1535_v32 = vmul.f32 %v4551_v29, %v4535_v24 }
 0xa8d   : > { %v4553_v1 = vpop.eup %4552  ;;  %4178 = vmatpush3.bf16.xpose.msra.mxu1 %v1550_v31 }
 0xa8e   : > { %4179 = vmatprep.subr.bf16.mxu1 %v5698_v21  ;;  %v1536_v35 = vmul.f32 %v4553_v1, %v4537_v17 }
 0xa90   : > { %v1541_v34 = vpack.c.bf16 %v1536_v35, %v1535_v32 }
 0xa91   : > { %v4555_v42 = vpop.eup %4554 }
 0xa92   : > { %v4557_v45 = vpop.eup %4556  ;;  %v1553_v28 = vsel %vm615_vm3, %v1541_v34, 0  ;;  %v1537_v10 = vmul.f32 %v4555_v42, %v4541_v22 }
 0xa93   : > { %v1538_v33 = vmul.f32 %v4557_v45, %v4539_v15 }
 0xa95   : > { %4180 = vmatpush3.bf16.xpose.msra.mxu1 %v1553_v28  ;;  %v1542_v27 = vpack.c.bf16 %v1538_v33, %v1537_v10 }
 0xa96   : > { %4181 = vmatprep.subr.bf16.mxu1 %v5698_v21 }
 0xa97   : > { %v1556_v60 = vsel %vm615_vm3, %v1542_v27, 0 }
 0xa9d   : > { %4182 = vmatpush3.bf16.xpose.msra.mxu1 %v1556_v60 }
 0xaa4   : > { %4184 = vmatmul.mubr.msk.bf16.vlgmr.msra.gmra.mrb[20].mxu1 %vm615_vm3, %v5699_v14 }
 0xaa5   : > { %4207 = vmatprep.mubr.msk.bf16.mxu1 %vm458_vm0, %v4965_v63 }
 0xb77   : > { %v1592_v24 = vpop.f32.mrb[20].mxu1 }
 0xb78   : > { %v4185_v17 = vpop.f32.mrb[21].mxu1  ;;  %v1593_v15 = vadd.f32 %v5113_v7, %v1592_v24 }
 0xb79   : > { %v1595_v3 = vpop.f32.mrb[22].mxu1 }
 0xb7a   : > { %v1596_v22 = vadd.f32 %v5116_v40, %v1595_v3  ;;  %v4186_v4 = vpop.f32.mrb[23].mxu1  ;;  %v5248_v3 = vld [vmem:[%s4723_s12 + $0x20] sm:$0xff] }
 0xb7c   : > { %v1599_v5 = vpack.c.bf16 %v1596_v22, %v1593_v15  ;;  %v5251_v15 = vld [vmem:[%s4723_s12 + $0x28] sm:$0xff] }
 0xb7d   : > { %v2066_v22 = vpack.c.bf16 %v5251_v15, %v5248_v3 }
 0xb7e   : > { %4187 = vmatprep.subr.bf16.mxu0 %v1599_v5  ;;  %4205 = vmatprep.subr.bf16.mxu1 %v1599_v5 }
 0xb7f   : > { %4188 = vmatpush3.bf16.msra.mxu0 %v1599_v5  ;;  %4206 = vmatpush3.bf16.msra.mxu1 %v1599_v5 }
 0xb80   : > { %4223 = vmatprep.subr.bf16.mxu1 %v1599_v5  ;;  %4193 = vmatprep.subr.bf16.mxu0 %v4892_v36 }
 0xb82   : > { %4190 = vmatmul.mubr.msk.bf16.vlgmr.msra.gmra.mrb[28].mxu0 %vm458_vm0, %v4900_v8  ;;  %4208 = vmatmul.mubr.msk.bf16.vlgmr.msra.gmra.mrb[24].mxu1 %vm458_vm0, %v4986_v6 }
 0xb83   : > { %4224 = vmatpush3.bf16.msra.mxu1 %v1599_v5  ;;  %4225 = vmatprep.mubr.msk.bf16.mxu1 %vm458_vm0, %v4940_v48 }
 0xb84   : > { %4194 = vmatpush3.bf16.msra.mxu0 %v4892_v36  ;;  %4241 = vmatprep.subr.bf16.mxu1 %v5698_v21 }
 0xb85   : > { %4195 = vmatprep.subr.bf16.mxu0 %v4903_v38 }
 0xb88   : > { %4196 = vmatpush3.bf16.msra.mxu0 %v4903_v38 }
 0xb89   : > { %4197 = vmatprep.subr.bf16.mxu0 %v4916_v41 }
 0xb8a   : > { %4226 = vmatmul.mubr.msk.bf16.vlgmr.msra.gmra.mrb[28].mxu1 %vm458_vm0, %v4945_v50 }
 0xb8b   : > { %4245 = vmatprep.mubr.msk.bf16.mxu1 %vm4632_vm4, %v5698_v21 }
 0xb8c   : > { %4198 = vmatpush3.bf16.msra.mxu0 %v4916_v41 }
 0xb8d   : > { %4199 = vmatprep.subr.bf16.mxu0 %v4926_v44 }
 0xb90   : > { %4200 = vmatpush3.bf16.msra.mxu0 %v4926_v44 }
 0xb91   : > { %4211 = vmatprep.subr.bf16.mxu0 %v4967_v0 }
 0xc55   : > { %v4191_v36 = vpop.f32.mrb[28].mxu0  ;;  %v4209_v8 = vpop.f32.mrb[24].mxu1 }
 0xc56   : > { %v1646_v48 = vpop.f32.mrb[29].mxu0  ;;  %v1780_v38 = vpop.f32.mrb[25].mxu1 }
 0xc57   : > { %v4192_v63 = vpop.f32.mrb[30].mxu0  ;;  %v4210_v6 = vpop.f32.mrb[26].mxu1 }
 0xc58   : > { %v1662_v7 = vpack.c.bf16 %v4192_v63, %v4191_v36  ;;  %v1649_v40 = vpop.f32.mrb[31].mxu0  ;;  %v1796_v50 = vpack.c.bf16 %v4210_v6, %v4209_v8  ;;  %v1783_v20 = vpop.f32.mrb[27].mxu1 }
 0xc59   : > { %v1661_v23 = vpack.c.bf16 %v1649_v40, %v1646_v48  ;;  %v1795_v26 = vpack.c.bf16 %v1783_v20, %v1780_v38 }
 0xc5b   : > { %4201 = vmatprep.mubr.msk.bf16.mxu0 %vm615_vm3, %v1661_v23  ;;  %v5700_v23 = vld [vmem:[#allocation2_spill] sm:$0xff] }
 0xc5c   : > { %4202 = vmatmul.mubr.msk.bf16.vlgmr.msra.gmra.mrb[32].mxu0 %vm615_vm3, %v1662_v7 }
 0xc5d   : > { %4212 = vmatpush3.bf16.msra.mxu0 %v4967_v0  ;;  %4219 = vmatprep.mubr.msk.bf16.mxu0 %vm615_vm3, %v1795_v26  ;;  %v4227_v41 = vpop.f32.mrb[28].mxu1 }
 0xc5e   : > { %4213 = vmatprep.subr.bf16.mxu0 %v4988_v9  ;;  %v1914_v44 = vpop.f32.mrb[29].mxu1 }
 0xc5f   : > { %v4228_v37 = vpop.f32.mrb[30].mxu1 }
 0xc60   : > { %v1930_v30 = vpack.c.bf16 %v4228_v37, %v4227_v41  ;;  %v1917_v29 = vpop.f32.mrb[31].mxu1 }
 0xc61   : > { %4214 = vmatpush3.bf16.msra.mxu0 %v4988_v9  ;;  %v1929_v31 = vpack.c.bf16 %v1917_v29, %v1914_v44 }
 0xc62   : > { %4215 = vmatprep.subr.bf16.mxu0 %v5000_v16 }
 0xc65   : > { %4216 = vmatpush3.bf16.msra.mxu0 %v5000_v16 }
 0xc66   : > { %4217 = vmatprep.subr.bf16.mxu0 %v5011_v13 }
 0xc69   : > { %4218 = vmatpush3.bf16.msra.mxu0 %v5011_v13 }
 0xc6a   : > { %4229 = vmatprep.subr.bf16.mxu0 %v5021_v19 }
 0xc6c   : > { %4220 = vmatmul.mubr.msk.bf16.vlgmr.msra.gmra.mrb[32].mxu0 %vm615_vm3, %v1796_v50 }
 0xc6d   : > { %4230 = vmatpush3.bf16.msra.mxu0 %v5021_v19  ;;  %4237 = vmatprep.mubr.msk.bf16.mxu0 %vm615_vm3, %v1929_v31 }
 0xc6e   : > { %4231 = vmatprep.subr.bf16.mxu0 %v5030_v39 }
 0xc71   : > { %4232 = vmatpush3.bf16.msra.mxu0 %v5030_v39 }
 0xc72   : > { %4233 = vmatprep.subr.bf16.mxu0 %v5043_v43 }
 0xc75   : > { %4234 = vmatpush3.bf16.msra.mxu0 %v5043_v43 }
 0xc76   : > { %4235 = vmatprep.subr.bf16.mxu0 %v5053_v47 }
 0xc79   : > { %4236 = vmatpush3.bf16.msra.mxu0 %v5053_v47 }
 0xc7a   : > { %4265 = vmatprep.subr.bf16.mxu0 %v5698_v21 }
 0xc7c   : > { %4238 = vmatmul.mubr.msk.bf16.vlgmr.msra.gmra.mrb[32].mxu0 %vm615_vm3, %v1930_v30 }
 0xc7d   : > { %4273 = vmatprep.mubr.msk.bf16.mxu0 %vm4632_vm4, %v5698_v21 }
 0xd4f   : > { %v4239_v0 = vpop.f32.mrb[32].mxu0 }
 0xd50   : > { %v4433_v9 = vadd.f32 %v4239_v0, %v5070_v54  ;;  %v1983_v16 = vpop.f32.mrb[33].mxu0 }
 0xd51   : > { %v4434_v13 = vadd.f32 %v1983_v16, %v5062_v49  ;;  %v4240_v19 = vpop.f32.mrb[34].mxu0 }
 0xd52   : > { %3787 = vst.msk [vmem:[%s5084_s26 + $0x30] sm:$0xff] %vm615_vm3, %v4433_v9  ;;  %v2009_v39 = vmul.f32 %v4433_v9, %v5079_v58  ;;  %v4435_v43 = vadd.f32 %v4240_v19, %v5072_v55  ;;  %v1986_v47 = vpop.f32.mrb[35].mxu0 }
 0xd53   : > { %3785 = vst.msk [vmem:[%s5084_s26 + $0x20] sm:$0xff] %vm615_vm3, %v4434_v13  ;;  %v2007_v1 = vmul.f32 %v4434_v13, %v5066_v52  ;;  %v4436_v32 = vadd.f32 %v1986_v47, %v5064_v51 }
 0xd54   : > { %v2013_v35 = vadd.f32 %v2009_v39, %v5094_v18  ;;  %3788 = vst.msk [vmem:[%s5084_s26 + $0x38] sm:$0xff] %vm615_vm3, %v4435_v43  ;;  %v2010_v34 = vmul.f32 %v4435_v43, %v5086_v59 }
 0xd55   : > { %v2011_v42 = vadd.f32 %v2007_v1, %v5074_v56  ;;  %3786 = vst.msk [vmem:[%s5084_s26 + $0x28] sm:$0xff] %vm615_vm3, %v4436_v32  ;;  %v2008_v45 = vmul.f32 %v4436_v32, %v5068_v53 }
 0xd56   : > { %v2014_v28 = vadd.f32 %v2010_v34, %v5104_v25  ;;  %v2017_v33 = vmax.f32 %v2013_v35, 0.0 }
 0xd57   : > { %v2012_v10 = vadd.f32 %v2008_v45, %v5076_v57  ;;  %v2015_v60 = vmax.f32 %v2011_v42, 0.0 }
 0xd58   : > { %v2018_v27 = vmax.f32 %v2014_v28, 0.0 }
 0xd59   : > { %v2016_v14 = vmax.f32 %v2012_v10, 0.0 }
 0xd5a   : > { %v2020_v24 = vpack.c.bf16 %v2018_v27, %v2017_v33 }
 0xd5b   : > { %v2019_v17 = vpack.c.bf16 %v2016_v14, %v2015_v60 }
 0xd5d   : > { %4242 = vmatpush3.bf16.msra.mxu1 %v2019_v17 }
 0xd5e   : > { %4243 = vmatprep.subr.bf16.mxu1 %v5698_v21 }
 0xd61   : > { %4244 = vmatpush3.bf16.msra.mxu1 %v2020_v24 }
 0xd62   : > { %4249 = vmatprep.subr.bf16.mxu1 %v2066_v22 }
 0xd64   : > { %4246 = vmatmul.mubr.msk.bf16.vlgmr.msra.gmra.mrb[32].mxu1 %vm1254_vm5, %v5124_v46 }
 0xd65   : > { %4250 = vmatpush3.bf16.msra.mxu1 %v2066_v22  ;;  %4251 = vmatprep.mubr.msk.bf16.mxu1 %vm458_vm0, %v4707_v2 }
 0xd6c   : > { %4252 = vmatmul.mubr.msk.bf16.vlgmr.msra.gmra.mrb[36].mxu1 %vm458_vm0, %v4739_v11 }
 0xe37   : > { %v5262_v4 = vpop.f32.mrb[32].mxu1 }
 0xe38   : > { %v4247_v5 = vpop.f32.mrb[33].mxu1 }
 0xe39   : > { %v2058_v36 = vpop.f32.mrb[34].mxu1 }
 0xe3a   : > { %v4248_v8 = vpop.f32.mrb[35].mxu1 }
 0xe3f   : > { %v4253_v48 = vpop.f32.mrb[36].mxu1 }
 0xe40   : > { %v2101_v38 = vpop.f32.mrb[37].mxu1  ;;  %v5266_v7 = vadd.f32 %v4253_v48, %v4852_v62 }
 0xe41   : > { %v2102_v63 = vadd.f32 %v2101_v38, %v4743_v12  ;;  %v4254_v6 = vpop.f32.mrb[38].mxu1 }
 0xe42   : > { %v5269_v40 = vadd.f32 %v4254_v6, %v4850_v61  ;;  %v2104_v50 = vpop.f32.mrb[39].mxu1 }
 0xe43   : > { %v2116_v20 = vpack.c.bf16 %v2102_v63, %v2102_v63  ;;  %v2105_v26 = vadd.f32 %v2104_v50, %v5700_v23 }
 0xe44   : > { %v2118_v41 = vpack.c.bf16 %v5269_v40, %v5266_v7  ;;  %v3805_v7 = vld [vmem:[%s5684_s4 + $0x28] sm:$0xff] }
 0xe45   : > { %v2117_v44 = vpack.c.bf16 %v2105_v26, %v2105_v26  ;;  %2119 = vxpose.xlu1.c.b16.start.end [1/1] (short) (narrow) %v2116_v20, 64 }
 0xe47   : > { %v2148_v37 = vsel %vm546_vm1, %v2117_v44, 0  ;;  %4479 = vmatprep.subr.msk.bf16.mxu1 %vm546_vm1, %v2117_v44 }
 0xe48   : > { %4256 = vmatpush3.bf16.msra.mxu1 %v2148_v37 }
 0xeab   : > { %v2127_v30 = vpop.trf.xlu1 }
 0xeac   : > { %4257 = vmatprep.mubr.msk.bf16.mxu1 %vm533_vm2, %v2127_v30 }
 0xeaf   : > { %v2128_v29 = vpop.trf.xlu1 }
 0xeb0   : > { %4258 = vmatmul.mubr.msk.bf16.vlgmr.msra.gmra.mrb[40].mxu1 %vm533_vm2, %v2128_v29 }
 0xeb3   : > { %v2129_v31 = vpop.trf.xlu1 }
 0xeb4   : > { %4261 = vmatprep.mubr.msk.bf16.mxu1 %vm533_vm2, %v2129_v31 }
 0xeb7   : > { %v2130_v0 = vpop.trf.xlu1 }
 0xeb8   : > { %4262 = vmatmul.mubr.msk.bf16.gmra.mrb[44].mxu1 %vm533_vm2, %v2130_v0 }
 0xf83   : > { %v4259_v9 = vpop.f32.mrb[40].mxu1 }
 0xf84   : > { %v2184_v16 = vpop.f32.mrb[41].mxu1  ;;  %v2221_v32 = vsel %vm615_vm3, %v4259_v9, -inf }
 0xf85   : > { %v4260_v13 = vpop.f32.mrb[42].mxu1  ;;  %v2215_v19 = vsel %vm615_vm3, %v2184_v16, -inf }
 0xf86   : > { %2216 = vmax.xlane.f32.xlu0 %v2215_v19  ;;  %v2187_v39 = vpop.f32.mrb[43].mxu1  ;;  %v2224_v42 = vsel %vm615_vm3, %v4260_v13, -inf }
 0xf87   : > { %v2218_v43 = vsel %vm615_vm3, %v2187_v39, -inf }
 0xf8a   : > { %2219 = vmax.xlane.f32.xlu0 %v2218_v43 }
 0xf8b   : > { %v4263_v47 = vpop.f32.mrb[44].mxu1 }
 0xf8c   : > { %v2200_v1 = vpop.f32.mrb[45].mxu1  ;;  %v2233_v10 = vsel %vm615_vm3, %v4263_v47, -inf }
 0xf8d   : > { %v4264_v35 = vpop.f32.mrb[46].mxu1  ;;  %v2227_v45 = vsel %vm615_vm3, %v2200_v1, -inf }
 0xf8e   : > { %2222 = vmax.xlane.f32.xlu0 %v2221_v32  ;;  %v2203_v34 = vpop.f32.mrb[47].mxu1  ;;  %v2236_v33 = vsel %vm615_vm3, %v4264_v35, -inf }
 0xf8f   : > { %v2230_v28 = vsel %vm615_vm3, %v2203_v34, -inf }
 0xf92   : > { %2225 = vmax.xlane.f32.xlu0 %v2224_v42 }
 0xf96   : > { %2228 = vmax.xlane.f32.xlu0 %v2227_v45 }
 0xf9a   : > { %2231 = vmax.xlane.f32.xlu0 %v2230_v28 }
 0xf9e   : > { %2234 = vmax.xlane.f32.xlu0 %v2233_v10 }
 0xfa2   : > { %2237 = vmax.xlane.f32.xlu0 %v2236_v33 }
0x1013   : > { %v2217_v27 = vpop.xlane.xlu0 %2216 }
0x1014   : > { %v2239_v60 = vsub.f32 %v2184_v16, %v2217_v27 }
0x1016   : > { %v2247_v14 = vmul.f32 1.442695, %v2239_v60 }
0x1017   : > { %v2220_v24 = vpop.xlane.xlu0 %2219 }
0x1018   : > { %4558 = vpow2.f32 %v2247_v14  ;;  %v2240_v17 = vsub.f32 %v2187_v39, %v2220_v24 }
0x101a   : > { %v2249_v22 = vmul.f32 1.442695, %v2240_v17 }
0x101b   : > { %v2223_v5 = vpop.xlane.xlu0 %2222 }
0x101c   : > { %4560 = vpow2.f32 %v2249_v22  ;;  %v2241_v36 = vsub.f32 %v4259_v9, %v2223_v5 }
0x101e   : > { %v2251_v8 = vmul.f32 1.442695, %v2241_v36 }
0x101f   : > { %v2226_v48 = vpop.xlane.xlu0 %2225 }
0x1020   : > { %4562 = vpow2.f32 %v2251_v8  ;;  %v2242_v38 = vsub.f32 %v4260_v13, %v2226_v48 }
0x1022   : > { %v4559_v63 = vpop.eup %4558  ;;  %v2253_v6 = vmul.f32 1.442695, %v2242_v38 }
0x1023   : > { %v2229_v50 = vpop.xlane.xlu0 %2228  ;;  %v2263_v20 = vsel %vm615_vm3, %v4559_v63, 0.0 }
0x1024   : > { %4564 = vpow2.f32 %v2253_v6  ;;  %v2243_v26 = vsub.f32 %v2200_v1, %v2229_v50  ;;  %2264 = vadd.xlane.f32.xlu0 %v2263_v20 }
0x1026   : > { %v4561_v44 = vpop.eup %4560  ;;  %v2255_v37 = vmul.f32 1.442695, %v2243_v26 }
0x1027   : > { %v2232_v30 = vpop.xlane.xlu0 %2231  ;;  %v2266_v29 = vsel %vm615_vm3, %v4561_v44, 0.0 }
0x1028   : > { %4566 = vpow2.f32 %v2255_v37  ;;  %v2244_v31 = vsub.f32 %v2203_v34, %v2232_v30  ;;  %2267 = vadd.xlane.f32.xlu0 %v2266_v29 }
0x102a   : > { %v4563_v0 = vpop.eup %4562  ;;  %v2257_v9 = vmul.f32 1.442695, %v2244_v31 }
0x102b   : > { %v2235_v16 = vpop.xlane.xlu0 %2234  ;;  %v2269_v13 = vsel %vm615_vm3, %v4563_v0, 0.0 }
0x102c   : > { %4568 = vpow2.f32 %v2257_v9  ;;  %v2245_v19 = vsub.f32 %v4263_v47, %v2235_v16  ;;  %2270 = vadd.xlane.f32.xlu0 %v2269_v13 }
0x102e   : > { %v4565_v39 = vpop.eup %4564  ;;  %v2259_v43 = vmul.f32 1.442695, %v2245_v19 }
0x102f   : > { %v2238_v1 = vpop.xlane.xlu0 %2237  ;;  %v2272_v32 = vsel %vm615_vm3, %v4565_v39, 0.0 }
0x1030   : > { %4570 = vpow2.f32 %v2259_v43  ;;  %v2246_v42 = vsub.f32 %v4264_v35, %v2238_v1  ;;  %2273 = vadd.xlane.f32.xlu1 %v2272_v32 }
0x1032   : > { %v4567_v45 = vpop.eup %4566  ;;  %v2261_v28 = vmul.f32 1.442695, %v2246_v42 }
0x1033   : > { %v2275_v34 = vsel %vm615_vm3, %v4567_v45, 0.0 }
0x1034   : > { %4572 = vpow2.f32 %v2261_v28  ;;  %2276 = vadd.xlane.f32.xlu0 %v2275_v34 }
0x1036   : > { %v4569_v10 = vpop.eup %4568 }
0x1037   : > { %v2278_v33 = vsel %vm615_vm3, %v4569_v10, 0.0 }
0x1038   : > { %2279 = vadd.xlane.f32.xlu0 %v2278_v33 }
0x103a   : > { %v4571_v47 = vpop.eup %4570 }
0x103b   : > { %v2281_v27 = vsel %vm615_vm3, %v4571_v47, 0.0 }
0x103c   : > { %2282 = vadd.xlane.f32.xlu0 %v2281_v27 }
0x103e   : > { %v4573_v60 = vpop.eup %4572 }
0x103f   : > { %v2284_v14 = vsel %vm615_vm3, %v4573_v60, 0.0 }
0x1040   : > { %2285 = vadd.xlane.f32.xlu0 %v2284_v14 }
0x10b1   : > { %v2265_v35 = vpop.xlane.xlu0 %2264 }
0x10b2   : > { %4574 = vrcp.f32 %v2265_v35  ;;  %v2427_v35 = vld [vmem:[%s5683_s3] sm:$0xff] }
0x10b5   : > { %v2268_v24 = vpop.xlane.xlu0 %2267 }
0x10b6   : > { %4576 = vrcp.f32 %v2268_v24  ;;  %v2428_v24 = vld [vmem:[%s5683_s3 + $0x8] sm:$0xff] }
0x10b9   : > { %v2271_v17 = vpop.xlane.xlu0 %2270 }
0x10ba   : > { %4578 = vrcp.f32 %v2271_v17 }
0x10bc   : > { %v4575_v5 = vpop.eup %4574 }
0x10bd   : > { %v2274_v22 = vpop.xlane.xlu1 %2273  ;;  %v2295_v48 = vmul.f32 %v4575_v5, %v4559_v63 }
0x10be   : > { %4580 = vrcp.f32 %v2274_v22 }
0x10c0   : > { %v4577_v36 = vpop.eup %4576 }
0x10c1   : > { %v2277_v8 = vpop.xlane.xlu0 %2276  ;;  %v2296_v38 = vmul.f32 %v4577_v36, %v4561_v44  ;;  %v2366_v36 = vld [vmem:[%s5684_s4 + $0x10] sm:$0xff] }
0x10c2   : > { %4582 = vrcp.f32 %v2277_v8  ;;  %v2367_v8 = vld [vmem:[%s5684_s4 + $0x18] sm:$0xff] }
0x10c3   : > { %v2303_v6 = vpack.c.bf16 %v2296_v38, %v2295_v48  ;;  %v3806_v48 = vld [vmem:[%s5684_s4 + $0x30] sm:$0xff]  ;;  %v3807_v38 = vld [vmem:[%s5684_s4 + $0x38] sm:$0xff] }
0x10c4   : > { %v4579_v26 = vpop.eup %4578 }
0x10c5   : > { %v2280_v50 = vpop.xlane.xlu0 %2279  ;;  %v2311_v20 = vsel %vm615_vm3, %v2303_v6, 0  ;;  %v2297_v29 = vmul.f32 %v4579_v26, %v4563_v0  ;;  %v3821_v6 = vld [vmem:[%s5684_s4 + $0x48] sm:$0xff]  ;;  %v5357_v26 = vpack.c.bf16 %v3807_v38, %v3806_v48 }
0x10c6   : > { %4584 = vrcp.f32 %v2280_v50  ;;  %4266 = vmatpush3.bf16.xpose.msra.mxu0 %v2311_v20  ;;  %v5353_v50 = vpack.c.bf16 %v2428_v24, %v2427_v35  ;;  %v5355_v20 = vpack.c.bf16 %v2367_v8, %v2366_v36  ;;  %v3814_v36 = vld [vmem:[%s5683_s3 + $0x60] sm:$0xff]  ;;  %v3815_v8 = vld [vmem:[%s5683_s3 + $0x68] sm:$0xff] }
0x10c7   : > { %4267 = vmatprep.subr.bf16.mxu0 %v5698_v21  ;;  %v5440_v38 = vpack.c.bf16 %v3815_v8, %v3814_v36 }
0x10c8   : > { %v4581_v37 = vpop.eup %4580 }
0x10c9   : > { %v2283_v30 = vpop.xlane.xlu0 %2282  ;;  %v2298_v31 = vmul.f32 %v4581_v37, %v4565_v39  ;;  %v2429_v37 = vld [vmem:[%s5683_s3 + $0x10] sm:$0xff] }
0x10ca   : > { %4586 = vrcp.f32 %v2283_v30  ;;  %v2430_v30 = vld [vmem:[%s5683_s3 + $0x18] sm:$0xff] }
0x10cb   : > { %v2304_v9 = vpack.c.bf16 %v2298_v31, %v2297_v29  ;;  %v5368_v31 = vpack.c.bf16 %v2430_v30, %v2429_v37 }
0x10cc   : > { %v4583_v44 = vpop.eup %4582 }
0x10cd   : > { %v2286_v16 = vpop.xlane.xlu0 %2285  ;;  %v2314_v63 = vsel %vm615_vm3, %v2304_v9, 0  ;;  %v2299_v19 = vmul.f32 %v4583_v44, %v4567_v45  ;;  %v2364_v45 = vld [vmem:[%s5684_s4] sm:$0xff]  ;;  %v3823_v44 = vld [vmem:[%s5684_s4 + $0x58] sm:$0xff] }
0x10ce   : > { %4588 = vrcp.f32 %v2286_v16  ;;  %4268 = vmatpush3.bf16.xpose.msra.mxu0 %v2314_v63  ;;  %v2431_v9 = vld [vmem:[%s5683_s3 + $0x20] sm:$0xff]  ;;  %v2432_v16 = vld [vmem:[%s5683_s3 + $0x28] sm:$0xff]  ;;  %v3822_v63 = vld [vmem:[%s5684_s4 + $0x50] sm:$0xff] }
0x10cf   : > { %4269 = vmatprep.subr.bf16.mxu0 %v5698_v21 }
0x10d0   : > { %v4585_v13 = vpop.eup %4584 }
0x10d1   : > { %v2300_v43 = vmul.f32 %v4585_v13, %v4569_v10  ;;  %v2365_v10 = vld [vmem:[%s5684_s4 + $0x8] sm:$0xff]  ;;  %v5391_v13 = vpack.c.bf16 %v2432_v16, %v2431_v9 }
0x10d2   : > { %v5313_v27 = vpack.c.bf16 %v2365_v10, %v2364_v45 }
0x10d3   : > { %v2305_v1 = vpack.c.bf16 %v2300_v43, %v2299_v19  ;;  %v5393_v19 = vpack.c.bf16 %v3823_v44, %v3822_v63  ;;  %v2433_v43 = vld [vmem:[%s5683_s3 + $0x30] sm:$0xff]  ;;  %v3826_v44 = vld [vmem:[%s5683_s3 + $0x80] sm:$0xff] }
0x10d4   : > { %v4587_v42 = vpop.eup %4586  ;;  %4279 = vmatprep.mubr.msk.bf16.mxu1 %vm458_vm0, %v5313_v27 }
0x10d5   : > { %v2317_v32 = vsel %vm615_vm3, %v2305_v1, 0  ;;  %v2301_v39 = vmul.f32 %v4587_v42, %v4571_v47  ;;  %v3804_v47 = vld [vmem:[%s5684_s4 + $0x20] sm:$0xff]  ;;  %v2434_v1 = vld [vmem:[%s5683_s3 + $0x38] sm:$0xff] }
0x10d6   : > { %4270 = vmatpush3.bf16.xpose.msra.mxu0 %v2317_v32  ;;  %v5323_v40 = vpack.c.bf16 %v3805_v7, %v3804_v47  ;;  %v5408_v32 = vpack.c.bf16 %v2434_v1, %v2433_v43  ;;  %v3810_v42 = vld [vmem:[%s5683_s3 + $0x40] sm:$0xff]  ;;  %v3812_v47 = vld [vmem:[%s5683_s3 + $0x50] sm:$0xff]  ;;  %v3813_v7 = vld [vmem:[%s5683_s3 + $0x58] sm:$0xff] }
0x10d7   : > { %4271 = vmatprep.subr.bf16.mxu0 %v5698_v21  ;;  %v3827_v43 = vld [vmem:[%s5683_s3 + $0x88] sm:$0xff] }
0x10d8   : > { %v4589_v0 = vpop.eup %4588  ;;  %v5460_v1 = vpack.c.bf16 %v3827_v43, %v3826_v44 }
0x10d9   : > { %v2302_v28 = vmul.f32 %v4589_v0, %v4573_v60  ;;  %v3811_v0 = vld [vmem:[%s5683_s3 + $0x48] sm:$0xff] }
0x10db   : > { %v2306_v34 = vpack.c.bf16 %v2302_v28, %v2301_v39  ;;  %v5418_v39 = vpack.c.bf16 %v3811_v0, %v3810_v42  ;;  %v3828_v42 = vld [vmem:[%s5683_s3 + $0x90] sm:$0xff]  ;;  %v3829_v0 = vld [vmem:[%s5683_s3 + $0x98] sm:$0xff] }
0x10dd   : > { %v2320_v33 = vsel %vm615_vm3, %v2306_v34, 0 }
0x10de   : > { %4272 = vmatpush3.bf16.xpose.msra.mxu0 %v2320_v33 }
0x10e5   : > { %4274 = vmatmul.mubr.msk.bf16.vlgmr.msra.gmra.mrb[36].mxu0 %vm615_vm3, %v2118_v41 }
0x10e6   : > { %4297 = vmatprep.mubr.msk.bf16.mxu0 %vm458_vm0, %v5323_v40 }
0x11b8   : > { %v2356_v41 = vpop.f32.mrb[36].mxu0 }
0x11b9   : > { %v4275_v60 = vpop.f32.mrb[37].mxu0  ;;  %v2357_v17 = vadd.f32 %v5248_v3, %v2356_v41 }
0x11ba   : > { %v2359_v14 = vpop.f32.mrb[38].mxu0 }
0x11bb   : > { %v2360_v22 = vadd.f32 %v5251_v15, %v2359_v14  ;;  %v4276_v5 = vpop.f32.mrb[39].mxu0  ;;  %v3820_v15 = vld [vmem:[%s5684_s4 + $0x40] sm:$0xff] }
0x11bc   : > { %v5365_v29 = vpack.c.bf16 %v3821_v6, %v3820_v15  ;;  %v5427_v5 = vpack.c.bf16 %v3813_v7, %v3812_v47  ;;  %v3816_v15 = vld [vmem:[%s5683_s3 + $0x70] sm:$0xff]  ;;  %v3817_v6 = vld [vmem:[%s5683_s3 + $0x78] sm:$0xff] }
0x11bd   : > { %v2363_v3 = vpack.c.bf16 %v2360_v22, %v2357_v17  ;;  %v5450_v63 = vpack.c.bf16 %v3817_v6, %v3816_v15  ;;  %v3833_v47 = vld [vmem:[%s5683_s3 + $0xb8] sm:$0xff] }
0x11bf   : > { %4277 = vmatprep.subr.bf16.mxu1 %v2363_v3  ;;  %4295 = vmatprep.subr.bf16.mxu0 %v2363_v3 }
0x11c0   : > { %4278 = vmatpush3.bf16.msra.mxu1 %v2363_v3  ;;  %4296 = vmatpush3.bf16.msra.mxu0 %v2363_v3 }
0x11c1   : > { %4313 = vmatprep.subr.bf16.mxu0 %v2363_v3  ;;  %4283 = vmatprep.subr.bf16.mxu1 %v5353_v50 }
0x11c3   : > { %4280 = vmatmul.mubr.msk.bf16.vlgmr.msra.gmra.mrb[48].mxu1 %vm458_vm0, %v5355_v20  ;;  %4298 = vmatmul.mubr.msk.bf16.vlgmr.msra.gmra.mrb[40].mxu0 %vm458_vm0, %v5357_v26 }
0x11c4   : > { %4314 = vmatpush3.bf16.msra.mxu0 %v2363_v3  ;;  %4315 = vmatprep.mubr.msk.bf16.mxu0 %vm458_vm0, %v5365_v29 }
0x11c5   : > { %4284 = vmatpush3.bf16.msra.mxu1 %v5353_v50  ;;  %4331 = vmatprep.subr.bf16.mxu0 %v5698_v21 }
0x11c6   : > { %4285 = vmatprep.subr.bf16.mxu1 %v5368_v31 }
0x11c9   : > { %4286 = vmatpush3.bf16.msra.mxu1 %v5368_v31 }
0x11ca   : > { %4287 = vmatprep.subr.bf16.mxu1 %v5391_v13 }
0x11cb   : > { %4316 = vmatmul.mubr.msk.bf16.vlgmr.msra.gmra.mrb[44].mxu0 %vm458_vm0, %v5393_v19 }
0x11cc   : > { %4335 = vmatprep.mubr.msk.bf16.mxu0 %vm4632_vm4, %v5698_v21 }
0x11cd   : > { %4288 = vmatpush3.bf16.msra.mxu1 %v5391_v13 }
0x11ce   : > { %4289 = vmatprep.subr.bf16.mxu1 %v5408_v32 }
0x11d1   : > { %4290 = vmatpush3.bf16.msra.mxu1 %v5408_v32 }
0x11d2   : > { %4301 = vmatprep.subr.bf16.mxu1 %v5418_v39 }
0x1296   : > { %v4281_v28 = vpop.f32.mrb[48].mxu1  ;;  %v4299_v34 = vpop.f32.mrb[40].mxu0 }
0x1297   : > { %v2410_v33 = vpop.f32.mrb[49].mxu1  ;;  %v2544_v45 = vpop.f32.mrb[41].mxu0 }
0x1298   : > { %v4282_v10 = vpop.f32.mrb[50].mxu1  ;;  %v4300_v41 = vpop.f32.mrb[42].mxu0 }
0x1299   : > { %v2426_v60 = vpack.c.bf16 %v4282_v10, %v4281_v28  ;;  %v2413_v14 = vpop.f32.mrb[51].mxu1  ;;  %v2560_v35 = vpack.c.bf16 %v4300_v41, %v4299_v34  ;;  %v2547_v24 = vpop.f32.mrb[43].mxu0  ;;  %v5470_v28 = vpack.c.bf16 %v3829_v0, %v3828_v42  ;;  %v3830_v34 = vld [vmem:[%s5683_s3 + $0xa0] sm:$0xff]  ;;  %v3832_v10 = vld [vmem:[%s5683_s3 + $0xb0] sm:$0xff] }
0x129a   : > { %v2425_v17 = vpack.c.bf16 %v2413_v14, %v2410_v33  ;;  %v2559_v22 = vpack.c.bf16 %v2547_v24, %v2544_v45  ;;  %v3831_v33 = vld [vmem:[%s5683_s3 + $0xa8] sm:$0xff]  ;;  %v5492_v7 = vpack.c.bf16 %v3833_v47, %v3832_v10  ;;  %v5525_v10 = vld [vmem:[%s4723_s12 + $0x38] sm:$0xff] }
0x129b   : > { %v5482_v45 = vpack.c.bf16 %v3831_v33, %v3830_v34  ;;  %v5522_v33 = vld [vmem:[%s4723_s12 + $0x30] sm:$0xff] }
0x129c   : > { %4291 = vmatprep.mubr.msk.bf16.mxu1 %vm615_vm3, %v2425_v17  ;;  %v2830_v47 = vpack.c.bf16 %v5525_v10, %v5522_v33 }
0x129d   : > { %4292 = vmatmul.mubr.msk.bf16.vlgmr.msra.gmra.mrb[52].mxu1 %vm615_vm3, %v2426_v60 }
0x129e   : > { %4302 = vmatpush3.bf16.msra.mxu1 %v5418_v39  ;;  %4309 = vmatprep.mubr.msk.bf16.mxu1 %vm615_vm3, %v2559_v22  ;;  %v4317_v48 = vpop.f32.mrb[44].mxu0 }
0x129f   : > { %4303 = vmatprep.subr.bf16.mxu1 %v5427_v5  ;;  %v2678_v3 = vpop.f32.mrb[45].mxu0 }
0x12a0   : > { %v4318_v37 = vpop.f32.mrb[46].mxu0 }
0x12a1   : > { %v2694_v30 = vpack.c.bf16 %v4318_v37, %v4317_v48  ;;  %v2681_v9 = vpop.f32.mrb[47].mxu0 }
0x12a2   : > { %4304 = vmatpush3.bf16.msra.mxu1 %v5427_v5  ;;  %v2693_v16 = vpack.c.bf16 %v2681_v9, %v2678_v3 }
0x12a3   : > { %4305 = vmatprep.subr.bf16.mxu1 %v5440_v38 }
0x12a6   : > { %4306 = vmatpush3.bf16.msra.mxu1 %v5440_v38 }
0x12a7   : > { %4307 = vmatprep.subr.bf16.mxu1 %v5450_v63 }
0x12aa   : > { %4308 = vmatpush3.bf16.msra.mxu1 %v5450_v63 }
0x12ab   : > { %4319 = vmatprep.subr.bf16.mxu1 %v5460_v1 }
0x12ad   : > { %4310 = vmatmul.mubr.msk.bf16.vlgmr.msra.gmra.mrb[52].mxu1 %vm615_vm3, %v2560_v35 }
0x12ae   : > { %4320 = vmatpush3.bf16.msra.mxu1 %v5460_v1  ;;  %4327 = vmatprep.mubr.msk.bf16.mxu1 %vm615_vm3, %v2693_v16 }
0x12af   : > { %4321 = vmatprep.subr.bf16.mxu1 %v5470_v28 }
0x12b2   : > { %4322 = vmatpush3.bf16.msra.mxu1 %v5470_v28 }
0x12b3   : > { %4323 = vmatprep.subr.bf16.mxu1 %v5482_v45 }
0x12b6   : > { %4324 = vmatpush3.bf16.msra.mxu1 %v5482_v45 }
0x12b7   : > { %4325 = vmatprep.subr.bf16.mxu1 %v5492_v7 }
0x12ba   : > { %4326 = vmatpush3.bf16.msra.mxu1 %v5492_v7 }
0x12bb   : > { %4355 = vmatprep.subr.bf16.mxu1 %v5698_v21 }
0x12bd   : > { %4328 = vmatmul.mubr.msk.bf16.vlgmr.msra.gmra.mrb[52].mxu1 %vm615_vm3, %v2694_v30 }
0x12be   : > { %4363 = vmatprep.mubr.msk.bf16.mxu1 %vm4632_vm4, %v5698_v21 }
0x1390   : > { %v4329_v41 = vpop.f32.mrb[52].mxu1 }
0x1391   : > { %v4437_v60 = vadd.f32 %v4329_v41, %v5070_v54  ;;  %v2747_v14 = vpop.f32.mrb[53].mxu1 }
0x1392   : > { %v4438_v35 = vadd.f32 %v2747_v14, %v5062_v49  ;;  %v4330_v24 = vpop.f32.mrb[54].mxu1 }
0x1393   : > { %3838 = vst.msk [vmem:[%s5084_s26 + $0x50] sm:$0xff] %vm615_vm3, %v4437_v60  ;;  %v2773_v17 = vmul.f32 %v4437_v60, %v5079_v58  ;;  %v4439_v22 = vadd.f32 %v4330_v24, %v5072_v55  ;;  %v2750_v36 = vpop.f32.mrb[55].mxu1 }
0x1394   : > { %3836 = vst.msk [vmem:[%s5084_s26 + $0x40] sm:$0xff] %vm615_vm3, %v4438_v35  ;;  %v2771_v8 = vmul.f32 %v4438_v35, %v5066_v52  ;;  %v4440_v48 = vadd.f32 %v2750_v36, %v5064_v51 }
0x1395   : > { %v2777_v3 = vadd.f32 %v2773_v17, %v5094_v18  ;;  %3839 = vst.msk [vmem:[%s5084_s26 + $0x58] sm:$0xff] %vm615_vm3, %v4439_v22  ;;  %v2774_v15 = vmul.f32 %v4439_v22, %v5086_v59 }
0x1396   : > { %v2775_v6 = vadd.f32 %v2771_v8, %v5074_v56  ;;  %3837 = vst.msk [vmem:[%s5084_s26 + $0x48] sm:$0xff] %vm615_vm3, %v4440_v48  ;;  %v2772_v37 = vmul.f32 %v4440_v48, %v5068_v53 }
0x1397   : > { %v2778_v30 = vadd.f32 %v2774_v15, %v5104_v25  ;;  %v2781_v16 = vmax.f32 %v2777_v3, 0.0 }
0x1398   : > { %v2776_v9 = vadd.f32 %v2772_v37, %v5076_v57  ;;  %v2779_v43 = vmax.f32 %v2775_v6, 0.0 }
0x1399   : > { %v2782_v44 = vmax.f32 %v2778_v30, 0.0 }
0x139a   : > { %v2780_v42 = vmax.f32 %v2776_v9, 0.0 }
0x139b   : > { %v2784_v0 = vpack.c.bf16 %v2782_v44, %v2781_v16 }
0x139c   : > { %v2783_v34 = vpack.c.bf16 %v2780_v42, %v2779_v43 }
0x139e   : > { %4332 = vmatpush3.bf16.msra.mxu0 %v2783_v34 }
0x139f   : > { %4333 = vmatprep.subr.bf16.mxu0 %v5698_v21 }
0x13a2   : > { %4334 = vmatpush3.bf16.msra.mxu0 %v2784_v0 }
0x13a3   : > { %4339 = vmatprep.subr.bf16.mxu0 %v2830_v47 }
0x13a5   : > { %4336 = vmatmul.mubr.msk.bf16.vlgmr.msra.gmra.mrb[48].mxu0 %vm1254_vm5, %v5124_v46 }
0x13a6   : > { %4340 = vmatpush3.bf16.msra.mxu0 %v2830_v47  ;;  %4341 = vmatprep.mubr.msk.bf16.mxu0 %vm458_vm0, %v4707_v2 }
0x13ad   : > { %4342 = vmatmul.mubr.msk.bf16.vlgmr.msra.gmra.mrb[52].mxu0 %vm458_vm0, %v4739_v11 }
0x1478   : > { %v5536_v41 = vpop.f32.mrb[48].mxu0 }
0x1479   : > { %v4337_v60 = vpop.f32.mrb[49].mxu0 }
0x147a   : > { %v2822_v14 = vpop.f32.mrb[50].mxu0 }
0x147b   : > { %v4338_v35 = vpop.f32.mrb[51].mxu0 }
0x1480   : > { %v4343_v24 = vpop.f32.mrb[52].mxu0 }
0x1481   : > { %v2865_v17 = vpop.f32.mrb[53].mxu0  ;;  %v5540_v8 = vadd.f32 %v4343_v24, %v4852_v62 }
0x1482   : > { %v2866_v22 = vadd.f32 %v2865_v17, %v4743_v12  ;;  %v4344_v36 = vpop.f32.mrb[54].mxu0 }
0x1483   : > { %v5543_v48 = vadd.f32 %v4344_v36, %v4850_v61  ;;  %v2868_v2 = vpop.f32.mrb[55].mxu0 }
0x1484   : > { %v2880_v3 = vpack.c.bf16 %v2866_v22, %v2866_v22  ;;  %v2869_v11 = vadd.f32 %v2868_v2, %v5700_v23 }
0x1485   : > { %v2882_v15 = vpack.c.bf16 %v5543_v48, %v5540_v8 }
0x1486   : > { %v2881_v6 = vpack.c.bf16 %v2869_v11, %v2869_v11  ;;  %2883 = vxpose.xlu0.c.b16.start.end [1/1] (short) (narrow) %v2880_v3, 64 }
0x1488   : > { %v2912_v37 = vsel %vm546_vm1, %v2881_v6, 0  ;;  %4480 = vmatprep.subr.msk.bf16.mxu0 %vm546_vm1, %v2881_v6 }
0x1489   : > { %4346 = vmatpush3.bf16.msra.mxu0 %v2912_v37 }
0x14ec   : > { %v2891_v12 = vpop.trf.xlu0 }
0x14ed   : > { %4347 = vmatprep.mubr.msk.bf16.mxu0 %vm533_vm2, %v2891_v12 }
0x14f0   : > { %v2892_v62 = vpop.trf.xlu0 }
0x14f1   : > { %4348 = vmatmul.mubr.msk.bf16.vlgmr.msra.gmra.mrb[56].mxu0 %vm533_vm2, %v2892_v62 }
0x14f4   : > { %v2893_v61 = vpop.trf.xlu0 }
0x14f5   : > { %4351 = vmatprep.mubr.msk.bf16.mxu0 %vm533_vm2, %v2893_v61 }
0x14f8   : > { %v2894_v23 = vpop.trf.xlu0 }
0x14f9   : > { %4352 = vmatmul.mubr.msk.bf16.gmra.mrb[60].mxu0 %vm533_vm2, %v2894_v23 }
0x14fa   : > { %4369 = vmatprep.mubr.msk.bf16.mxu0 %vm458_vm0, %v5313_v27 }
0x15c4   : > { %v4349_v30 = vpop.f32.mrb[56].mxu0 }
0x15c5   : > { %v2948_v9 = vpop.f32.mrb[57].mxu0  ;;  %v2985_v47 = vsel %vm615_vm3, %v4349_v30, -inf }
0x15c6   : > { %v4350_v16 = vpop.f32.mrb[58].mxu0  ;;  %v2979_v44 = vsel %vm615_vm3, %v2948_v9, -inf }
0x15c7   : > { %2980 = vmax.xlane.f32.xlu1 %v2979_v44  ;;  %v2951_v43 = vpop.f32.mrb[59].mxu0  ;;  %v2988_v35 = vsel %vm615_vm3, %v4350_v16, -inf }
0x15c8   : > { %v2982_v42 = vsel %vm615_vm3, %v2951_v43, -inf }
0x15cb   : > { %2983 = vmax.xlane.f32.xlu1 %v2982_v42 }
0x15cc   : > { %v4353_v0 = vpop.f32.mrb[60].mxu0 }
0x15cd   : > { %v2964_v34 = vpop.f32.mrb[61].mxu0  ;;  %v2997_v17 = vsel %vm615_vm3, %v4353_v0, -inf }
0x15ce   : > { %v4354_v60 = vpop.f32.mrb[62].mxu0  ;;  %v2991_v27 = vsel %vm615_vm3, %v2964_v34, -inf }
0x15cf   : > { %2986 = vmax.xlane.f32.xlu1 %v2985_v47  ;;  %v2967_v14 = vpop.f32.mrb[63].mxu0  ;;  %v3000_v22 = vsel %vm615_vm3, %v4354_v60, -inf }
0x15d0   : > { %v2994_v24 = vsel %vm615_vm3, %v2967_v14, -inf }
0x15d3   : > { %2989 = vmax.xlane.f32.xlu1 %v2988_v35 }
0x15d7   : > { %2992 = vmax.xlane.f32.xlu1 %v2991_v27 }
0x15db   : > { %2995 = vmax.xlane.f32.xlu1 %v2994_v24 }
0x15df   : > { %2998 = vmax.xlane.f32.xlu1 %v2997_v17 }
0x15e3   : > { %3001 = vmax.xlane.f32.xlu1 %v3000_v22 }
0x1654   : > { %v2981_v36 = vpop.xlane.xlu1 %2980 }
0x1655   : > { %v3003_v2 = vsub.f32 %v2948_v9, %v2981_v36 }
0x1657   : > { %v3011_v3 = vmul.f32 1.442695, %v3003_v2 }
0x1658   : > { %v2984_v11 = vpop.xlane.xlu1 %2983 }
0x1659   : > { %4590 = vpow2.f32 %v3011_v3  ;;  %v3004_v6 = vsub.f32 %v2951_v43, %v2984_v11 }
0x165b   : > { %v3013_v37 = vmul.f32 1.442695, %v3004_v6 }
0x165c   : > { %v2987_v12 = vpop.xlane.xlu1 %2986 }
0x165d   : > { %4592 = vpow2.f32 %v3013_v37  ;;  %v3005_v62 = vsub.f32 %v4349_v30, %v2987_v12 }
0x165f   : > { %v3015_v61 = vmul.f32 1.442695, %v3005_v62 }
0x1660   : > { %v2990_v23 = vpop.xlane.xlu1 %2989 }
0x1661   : > { %4594 = vpow2.f32 %v3015_v61  ;;  %v3006_v44 = vsub.f32 %v4350_v16, %v2990_v23 }
0x1663   : > { %v4591_v42 = vpop.eup %4590  ;;  %v3017_v47 = vmul.f32 1.442695, %v3006_v44 }
0x1664   : > { %v2993_v35 = vpop.xlane.xlu1 %2992  ;;  %v3027_v27 = vsel %vm615_vm3, %v4591_v42, 0.0 }
0x1665   : > { %4596 = vpow2.f32 %v3017_v47  ;;  %v3007_v24 = vsub.f32 %v2964_v34, %v2993_v35  ;;  %3028 = vadd.xlane.f32.xlu1 %v3027_v27 }
0x1667   : > { %v4593_v9 = vpop.eup %4592  ;;  %v3019_v17 = vmul.f32 1.442695, %v3007_v24 }
0x1668   : > { %v2996_v22 = vpop.xlane.xlu1 %2995  ;;  %v3030_v43 = vsel %vm615_vm3, %v4593_v9, 0.0 }
0x1669   : > { %4598 = vpow2.f32 %v3019_v17  ;;  %v3008_v36 = vsub.f32 %v2967_v14, %v2996_v22  ;;  %3031 = vadd.xlane.f32.xlu1 %v3030_v43 }
0x166b   : > { %v4595_v30 = vpop.eup %4594  ;;  %v3021_v2 = vmul.f32 1.442695, %v3008_v36 }
0x166c   : > { %v2999_v3 = vpop.xlane.xlu1 %2998  ;;  %v3033_v16 = vsel %vm615_vm3, %v4595_v30, 0.0 }
0x166d   : > { %4600 = vpow2.f32 %v3021_v2  ;;  %v3009_v11 = vsub.f32 %v4353_v0, %v2999_v3  ;;  %3034 = vadd.xlane.f32.xlu0 %v3033_v16 }
0x166f   : > { %v4597_v6 = vpop.eup %4596  ;;  %v3023_v37 = vmul.f32 1.442695, %v3009_v11 }
0x1670   : > { %v3002_v34 = vpop.xlane.xlu1 %3001  ;;  %v3036_v12 = vsel %vm615_vm3, %v4597_v6, 0.0 }
0x1671   : > { %4602 = vpow2.f32 %v3023_v37  ;;  %v3010_v62 = vsub.f32 %v4354_v60, %v3002_v34  ;;  %3037 = vadd.xlane.f32.xlu1 %v3036_v12  ;;  %v426_v60 = vld [vmem:[%s5689_s9] sm:$0xff] }
0x1673   : > { %v4599_v61 = vpop.eup %4598  ;;  %v3025_v23 = vmul.f32 1.442695, %v3010_v62 }
0x1674   : > { %v3039_v14 = vsel %vm615_vm3, %v4599_v61, 0.0 }
0x1675   : > { %4604 = vpow2.f32 %v3025_v23  ;;  %3040 = vadd.xlane.f32.xlu1 %v3039_v14 }
0x1677   : > { %v4601_v44 = vpop.eup %4600 }
0x1678   : > { %v3042_v47 = vsel %vm615_vm3, %v4601_v44, 0.0 }
0x1679   : > { %3043 = vadd.xlane.f32.xlu1 %v3042_v47 }
0x167b   : > { %v4603_v0 = vpop.eup %4602 }
0x167c   : > { %v3045_v35 = vsel %vm615_vm3, %v4603_v0, 0.0 }
0x167d   : > { %3046 = vadd.xlane.f32.xlu1 %v3045_v35 }
0x167f   : > { %v4605_v27 = vpop.eup %4604 }
0x1680   : > { %v3048_v24 = vsel %vm615_vm3, %v4605_v27, 0.0 }
0x1681   : > { %3049 = vadd.xlane.f32.xlu1 %v3048_v24 }
0x1692   : > { %1251 = vperm.xlu1 %4493, %v426_v60  }
0x16f2   : > { %v3029_v17 = vpop.xlane.xlu1 %3028 }
0x16f3   : > { %4606 = vrcp.f32 %v3029_v17 }
0x16f6   : > { %v3032_v22 = vpop.xlane.xlu1 %3031 }
0x16f7   : > { %4608 = vrcp.f32 %v3032_v22 }
0x16fa   : > { %v3035_v43 = vpop.xlane.xlu0 %3034 }
0x16fb   : > { %4610 = vrcp.f32 %v3035_v43 }
0x16fd   : > { %v4607_v2 = vpop.eup %4606 }
0x16fe   : > { %v3038_v36 = vpop.xlane.xlu1 %3037  ;;  %v3059_v11 = vmul.f32 %v4607_v2, %v4591_v42 }
0x16ff   : > { %4612 = vrcp.f32 %v3038_v36  ;;  %v5701_v36 = vld [vmem:[#allocation3_spill] sm:$0xff] }
0x1701   : > { %v4609_v3 = vpop.eup %4608 }
0x1702   : > { %v3041_v16 = vpop.xlane.xlu1 %3040  ;;  %v3060_v37 = vmul.f32 %v4609_v3, %v4593_v9 }
0x1703   : > { %4614 = vrcp.f32 %v3041_v16 }
0x1704   : > { %v3067_v34 = vpack.c.bf16 %v3060_v37, %v3059_v11 }
0x1705   : > { %v4611_v23 = vpop.eup %4610 }
0x1706   : > { %v3044_v12 = vpop.xlane.xlu1 %3043  ;;  %v3075_v62 = vsel %vm615_vm3, %v3067_v34, 0  ;;  %v3061_v35 = vmul.f32 %v4611_v23, %v4595_v30 }
0x1707   : > { %4616 = vrcp.f32 %v3044_v12  ;;  %4356 = vmatpush3.bf16.xpose.msra.mxu1 %v3075_v62 }
0x1708   : > { %4357 = vmatprep.subr.bf16.mxu1 %v5698_v21 }
0x1709   : > { %v4613_v14 = vpop.eup %4612 }
0x170a   : > { %v3047_v47 = vpop.xlane.xlu1 %3046  ;;  %v3062_v24 = vmul.f32 %v4613_v14, %v4597_v6 }
0x170b   : > { %4618 = vrcp.f32 %v3047_v47 }
0x170c   : > { %v3068_v60 = vpack.c.bf16 %v3062_v24, %v3061_v35 }
0x170d   : > { %v4615_v9 = vpop.eup %4614 }
0x170e   : > { %v3050_v17 = vpop.xlane.xlu1 %3049  ;;  %v3078_v42 = vsel %vm615_vm3, %v3068_v60, 0  ;;  %v3063_v6 = vmul.f32 %v4615_v9, %v4599_v61 }
0x170f   : > { %4620 = vrcp.f32 %v3050_v17  ;;  %4358 = vmatpush3.bf16.xpose.msra.mxu1 %v3078_v42 }
0x1710   : > { %4359 = vmatprep.subr.bf16.mxu1 %v5698_v21 }
0x1711   : > { %v4617_v22 = vpop.eup %4616 }
0x1712   : > { %v5585_v30 = vpop.permute.xlu1 %1251  ;;  %v3064_v43 = vmul.f32 %v4617_v22, %v4601_v44 }
0x1713   : > { %v1293_v2 = vadd.f32 %v5701_v36, %v5585_v30  ;;  %v2056_v3 = vadd.f32 %v5262_v4, %v5585_v30  ;;  %v2820_v11 = vadd.f32 %v5536_v41, %v5585_v30 }
0x1714   : > { %v3069_v16 = vpack.c.bf16 %v3064_v43, %v3063_v6 }
0x1715   : > { %1298 = vst.msk [vmem:[%s5583_s30] sm:$0xff] %vm615_vm3, %v1293_v2  ;;  %3790 = vst.msk [vmem:[%s5583_s30 + $0x8] sm:$0xff] %vm615_vm3, %v2056_v3  ;;  %v4619_v34 = vpop.eup %4618 }
0x1716   : > { %v3081_v37 = vsel %vm615_vm3, %v3069_v16, 0  ;;  %3841 = vst.msk [vmem:[%s5583_s30 + $0x10] sm:$0xff] %vm615_vm3, %v2820_v11  ;;  %v3065_v44 = vmul.f32 %v4619_v34, %v4603_v0 }
0x1717   : > { %4360 = vmatpush3.bf16.xpose.msra.mxu1 %v3081_v37 }
0x1718   : > { %4361 = vmatprep.subr.bf16.mxu1 %v5698_v21 }
0x1719   : > { %v4621_v61 = vpop.eup %4620 }
0x171a   : > { %v3066_v12 = vmul.f32 %v4621_v61, %v4605_v27 }
0x171c   : > { %v3070_v4 = vpack.c.bf16 %v3066_v12, %v3065_v44 }
0x171e   : > { %v3084_v62 = vsel %vm615_vm3, %v3070_v4, 0 }
0x171f   : > { %4362 = vmatpush3.bf16.xpose.msra.mxu1 %v3084_v62 }
0x1726   : > { %4364 = vmatmul.mubr.msk.bf16.vlgmr.msra.gmra.mrb[56].mxu1 %vm615_vm3, %v2882_v15 }
0x1727   : > { %4387 = vmatprep.mubr.msk.bf16.mxu1 %vm458_vm0, %v5323_v40 }
0x17f9   : > { %v3120_v41 = vpop.f32.mrb[56].mxu1 }
0x17fa   : > { %v4365_v23 = vpop.f32.mrb[57].mxu1  ;;  %v3121_v47 = vadd.f32 %v5522_v33, %v3120_v41 }
0x17fb   : > { %v3123_v14 = vpop.f32.mrb[58].mxu1 }
0x17fc   : > { %v3124_v0 = vadd.f32 %v5525_v10, %v3123_v14  ;;  %v4366_v27 = vpop.f32.mrb[59].mxu1 }
0x17fe   : > { %v3127_v35 = vpack.c.bf16 %v3124_v0, %v3121_v47 }
0x1800   : > { %4367 = vmatprep.subr.bf16.mxu0 %v3127_v35  ;;  %4385 = vmatprep.subr.bf16.mxu1 %v3127_v35 }
0x1801   : > { %4368 = vmatpush3.bf16.msra.mxu0 %v3127_v35  ;;  %4386 = vmatpush3.bf16.msra.mxu1 %v3127_v35 }
0x1802   : > { %4403 = vmatprep.subr.bf16.mxu1 %v3127_v35  ;;  %4373 = vmatprep.subr.bf16.mxu0 %v5353_v50 }
0x1804   : > { %4370 = vmatmul.mubr.msk.bf16.vlgmr.msra.gmra.mrb[64].mxu0 %vm458_vm0, %v5355_v20  ;;  %4388 = vmatmul.mubr.msk.bf16.vlgmr.msra.gmra.mrb[60].mxu1 %vm458_vm0, %v5357_v26 }
0x1805   : > { %4404 = vmatpush3.bf16.msra.mxu1 %v3127_v35  ;;  %4405 = vmatprep.mubr.msk.bf16.mxu1 %vm458_vm0, %v5365_v29 }
0x1806   : > { %4374 = vmatpush3.bf16.msra.mxu0 %v5353_v50  ;;  %4421 = vmatprep.subr.bf16.mxu1 %v5698_v21 }
0x1807   : > { %4375 = vmatprep.subr.bf16.mxu0 %v5368_v31 }
0x180a   : > { %4376 = vmatpush3.bf16.msra.mxu0 %v5368_v31 }
0x180b   : > { %4377 = vmatprep.subr.bf16.mxu0 %v5391_v13 }
0x180c   : > { %4406 = vmatmul.mubr.msk.bf16.vlgmr.msra.gmra.mrb[64].mxu1 %vm458_vm0, %v5393_v19 }
0x180d   : > { %4425 = vmatprep.mubr.msk.bf16.mxu1 %vm4632_vm4, %v5698_v21 }
0x180e   : > { %4378 = vmatpush3.bf16.msra.mxu0 %v5391_v13 }
0x180f   : > { %4379 = vmatprep.subr.bf16.mxu0 %v5408_v32 }
0x1812   : > { %4380 = vmatpush3.bf16.msra.mxu0 %v5408_v32 }
0x1813   : > { %4391 = vmatprep.subr.bf16.mxu0 %v5418_v39 }
0x18d7   : > { %v4371_v40 = vpop.f32.mrb[64].mxu0  ;;  %v4389_v50 = vpop.f32.mrb[60].mxu1 }
0x18d8   : > { %v3174_v20 = vpop.f32.mrb[65].mxu0  ;;  %v3308_v26 = vpop.f32.mrb[61].mxu1 }
0x18d9   : > { %v4372_v29 = vpop.f32.mrb[66].mxu0  ;;  %v4390_v31 = vpop.f32.mrb[62].mxu1 }
0x18da   : > { %v3190_v33 = vpack.c.bf16 %v4372_v29, %v4371_v40  ;;  %v3177_v10 = vpop.f32.mrb[67].mxu0  ;;  %v3324_v19 = vpack.c.bf16 %v4390_v31, %v4389_v50  ;;  %v3311_v8 = vpop.f32.mrb[63].mxu1 }
0x18db   : > { %v3189_v48 = vpack.c.bf16 %v3177_v10, %v3174_v20  ;;  %v3323_v15 = vpack.c.bf16 %v3311_v8, %v3308_v26 }
0x18dd   : > { %4381 = vmatprep.mubr.msk.bf16.mxu0 %vm615_vm3, %v3189_v48 }
0x18de   : > { %4382 = vmatmul.mubr.msk.bf16.vlgmr.msra.gmra.mrb[68].mxu0 %vm615_vm3, %v3190_v33 }
0x18df   : > { %4392 = vmatpush3.bf16.msra.mxu0 %v5418_v39  ;;  %4399 = vmatprep.mubr.msk.bf16.mxu0 %vm615_vm3, %v3323_v15  ;;  %v4407_v13 = vpop.f32.mrb[64].mxu1 }
0x18e0   : > { %4393 = vmatprep.subr.bf16.mxu0 %v5427_v5  ;;  %v3442_v32 = vpop.f32.mrb[65].mxu1 }
0x18e1   : > { %v4408_v24 = vpop.f32.mrb[66].mxu1 }
0x18e2   : > { %v3458_v60 = vpack.c.bf16 %v4408_v24, %v4407_v13  ;;  %v3445_v17 = vpop.f32.mrb[67].mxu1 }
0x18e3   : > { %4394 = vmatpush3.bf16.msra.mxu0 %v5427_v5  ;;  %v3457_v42 = vpack.c.bf16 %v3445_v17, %v3442_v32 }
0x18e4   : > { %4395 = vmatprep.subr.bf16.mxu0 %v5440_v38 }
0x18e7   : > { %4396 = vmatpush3.bf16.msra.mxu0 %v5440_v38 }
0x18e8   : > { %4397 = vmatprep.subr.bf16.mxu0 %v5450_v63 }
0x18eb   : > { %4398 = vmatpush3.bf16.msra.mxu0 %v5450_v63 }
0x18ec   : > { %4409 = vmatprep.subr.bf16.mxu0 %v5460_v1 }
0x18ee   : > { %4400 = vmatmul.mubr.msk.bf16.vlgmr.msra.gmra.mrb[68].mxu0 %vm615_vm3, %v3324_v19 }
0x18ef   : > { %4410 = vmatpush3.bf16.msra.mxu0 %v5460_v1  ;;  %4417 = vmatprep.mubr.msk.bf16.mxu0 %vm615_vm3, %v3457_v42 }
0x18f0   : > { %4411 = vmatprep.subr.bf16.mxu0 %v5470_v28 }
0x18f3   : > { %4412 = vmatpush3.bf16.msra.mxu0 %v5470_v28 }
0x18f4   : > { %4413 = vmatprep.subr.bf16.mxu0 %v5482_v45 }
0x18f7   : > { %4414 = vmatpush3.bf16.msra.mxu0 %v5482_v45 }
0x18f8   : > { %4415 = vmatprep.subr.bf16.mxu0 %v5492_v7 }
0x18fb   : > { %4416 = vmatpush3.bf16.msra.mxu0 %v5492_v7 }
0x18fe   : > { %4418 = vmatmul.mubr.msk.bf16.vlgmr.msra.gmra.mrb[68].mxu0 %vm615_vm3, %v3458_v60 }
0x19d1   : > { %v4419_v39 = vpop.f32.mrb[68].mxu0 }
0x19d2   : > { %v4441_v5 = vadd.f32 %v4419_v39, %v5070_v54  ;;  %v3511_v38 = vpop.f32.mrb[69].mxu0 }
0x19d3   : > { %v4442_v63 = vadd.f32 %v3511_v38, %v5062_v49  ;;  %v4420_v1 = vpop.f32.mrb[70].mxu0 }
0x19d4   : > { %3889 = vst.msk [vmem:[%s5084_s26 + $0x70] sm:$0xff] %vm615_vm3, %v4441_v5  ;;  %v3537_v28 = vmul.f32 %v4441_v5, %v5079_v58  ;;  %v4443_v45 = vadd.f32 %v4420_v1, %v5072_v55  ;;  %v3514_v9 = vpop.f32.mrb[71].mxu0 }
0x19d5   : > { %3887 = vst.msk [vmem:[%s5084_s26 + $0x60] sm:$0xff] %vm615_vm3, %v4442_v63  ;;  %v3535_v7 = vmul.f32 %v4442_v63, %v5066_v52  ;;  %v4444_v22 = vadd.f32 %v3514_v9, %v5064_v51 }
0x19d6   : > { %v3541_v6 = vadd.f32 %v3537_v28, %v5094_v18  ;;  %3890 = vst.msk [vmem:[%s5084_s26 + $0x78] sm:$0xff] %vm615_vm3, %v4443_v45  ;;  %v3538_v49 = vmul.f32 %v4443_v45, %v5086_v59 }
0x19d7   : > { %v3539_v54 = vadd.f32 %v3535_v7, %v5074_v56  ;;  %3888 = vst.msk [vmem:[%s5084_s26 + $0x68] sm:$0xff] %vm615_vm3, %v4444_v22  ;;  %v3536_v58 = vmul.f32 %v4444_v22, %v5068_v53 }
0x19d8   : > { %v3542_v55 = vadd.f32 %v3538_v49, %v5104_v25  ;;  %v3545_v52 = vmax.f32 %v3541_v6, 0.0 }
0x19d9   : > { %v3540_v43 = vadd.f32 %v3536_v58, %v5076_v57  ;;  %v3543_v51 = vmax.f32 %v3539_v54, 0.0 }
0x19da   : > { %v3546_v36 = vmax.f32 %v3542_v55, 0.0 }
0x19db   : > { %v3544_v2 = vmax.f32 %v3540_v43, 0.0 }
0x19dc   : > { %v3548_v18 = vpack.c.bf16 %v3546_v36, %v3545_v52 }
0x19dd   : > { %v3547_v3 = vpack.c.bf16 %v3544_v2, %v3543_v51 }
0x19df   : > { %4422 = vmatpush3.bf16.msra.mxu1 %v3547_v3 }
0x19e0   : > { %4423 = vmatprep.subr.bf16.mxu1 %v5698_v21 }
0x19e3   : > { %4424 = vmatpush3.bf16.msra.mxu1 %v3548_v18 }
0x19e6   : > { %4426 = vmatmul.mubr.msk.bf16.vlgmr.msra.gmra.mrb[68].mxu1 %vm1254_vm5, %v5124_v46 }
0x1ab9   : > { %v3583_v56 = vpop.f32.mrb[68].mxu1 }
0x1aba   : > { %v3584_v53 = vadd.f32 %v3583_v56, %v5585_v30  ;;  %v4427_v59 = vpop.f32.mrb[69].mxu1 }
0x1abb   : > { %v3586_v25 = vpop.f32.mrb[70].mxu1 }
0x1abc   : > { %3892 = vst.msk [vmem:[%s5583_s30 + $0x18] sm:$0xff] %vm615_vm3, %v3584_v53  ;;  %v4428_v57 = vpop.f32.mrb[71].mxu1 }
0x1abd PF: > { %s22_s17 = sadd.s32 1, %s4628_s17  }
0x1abe   : > { %p19_p4 = scmp.ge.s32.totalorder %s22_s17, 4  }
0x1ac0   :  { %21 = sbr.rel (!%p19_p4) target bundleno = 1 (0x1), region = 115 }

// kernel: forward.13
= control target key start
LH: loop header
LB: loop body
LE: loop exit
PB: predicated region body
PF: predicated region fallthrough
CT: control target
= control target key end

     0   :  { %s5254_s0 = inlined_call_operand.vmem [shape: f32[2,4,32], index: 0, kind: input, shape index: {}]   ;;  %s5255_s1 = inlined_call_operand.vmem [shape: f32[2,4,32], index: 1, kind: input, shape index: {}]   ;;  %s5256_s2 = inlined_call_operand.vmem [shape: f32[12,32,8], index: 2, kind: input, shape index: {}]   ;;  %s5257_s3 = inlined_call_operand.vmem [shape: f32[12,1,8], index: 3, kind: input, shape index: {}]   ;;  %s5258_s4 = inlined_call_operand.vmem [shape: f32[4,8,32], index: 4, kind: input, shape index: {}]   ;;  %s5259_s5 = inlined_call_operand.vmem [shape: f32[1,32], index: 5, kind: input, shape index: {}]   ;;  %s5260_s6 = inlined_call_operand.vmem [shape: f32[12,32,8], index: 6, kind: input, shape index: {}]   ;;  %s5261_s7 = inlined_call_operand.vmem [shape: f32[12,1,8], index: 7, kind: input, shape index: {}]   ;;  %s5262_s8 = inlined_call_operand.vmem [shape: f32[4,8,32], index: 8, kind: input, shape index: {}]   ;;  %s5263_s9 = inlined_call_operand.vmem [shape: f32[1,32], index: 9, kind: input, shape index: {}]   ;;  %s5264_s10 = inlined_call_operand.vmem [shape: f32[1,32], index: 10, kind: input, shape index: {}]   ;;  %s5265_s11 = inlined_call_operand.vmem [shape: f32[1,32], index: 11, kind: input, shape index: {}]   ;;  %s5266_s12 = inlined_call_operand.vmem [shape: f32[1,32], index: 12, kind: input, shape index: {}]   ;;  %s5267_s13 = inlined_call_operand.vmem [shape: f32[1,32], index: 13, kind: input, shape index: {}]   ;;  %s5268_s14 = inlined_call_operand.vmem [shape: f32[32,128], index: 14, kind: input, shape index: {}]   ;;  %s5269_s15 = inlined_call_operand.vmem [shape: f32[1,128], index: 15, kind: input, shape index: {}]   ;;  %s5270_s16 = inlined_call_operand.vmem [shape: f32[128,32], index: 16, kind: input, shape index: {}]   ;;  %s5271_s17 = inlined_call_operand.vmem [shape: f32[1,32], index: 17, kind: input, shape index: {}]   ;;  %s5272_s18 = inlined_call_operand.vmem [shape: f32[1,32], index: 18, kind: input, shape index: {}]   ;;  %s5273_s19 = inlined_call_operand.vmem [shape: f32[1,32], index: 19, kind: input, shape index: {}]   ;;  %s5274_s20 = inlined_call_operand.vmem [shape: f32[2,4,32], index: 20, kind: output, shape index: {}]  }
   0x1   :  { %5278 = sst [smem:[#allocation2_spill]] %s5254_s0 }
   0x2   :  { %5279 = sst [smem:[#allocation3_spill]] %s5255_s1  ;;  %s4417_s1 = smov 0  }
   0x3   :  { %5280 = sst [smem:[#allocation4_spill]] %s5256_s2 }
   0x4   :  { %5281 = sst [smem:[#allocation5_spill]] %s5257_s3 }
   0x5   :  { %5282 = sst [smem:[#allocation6_spill]] %s5258_s4 }
   0x6 LB: > { %s3549_s22 = sadd.s32 4294967295, %s4308_s1   ;;  %p3553_p0 = scmp.ge.s32.totalorder %s4308_s1, 1  ;;  %s4308_s1 = sphi %s4417_s1, %s30_s1  }
   0x7   : > { %p570_p1 = scmp.lt.s32.totalorder %s4308_s1, 3 }
   0x9   : > { %p571_p2 = pnand %p3553_p0, %p570_p1 }
   0xa   : > { %s5283_s2 = sld [smem:[#allocation4_spill]] (!%p571_p2)  ;;  %p630_p3 = scmp.lt.s32.totalorder (!%p571_p2), %s3549_s22, 1  ;;  %v4310_v3 = vmov (!%p571_p2), 0.0   ;;  %vm4311_vm0 = vmmov (!%p571_p2), 0   ;;  %vm673_vm1 = vcmask (!%p571_p2), 261120   ;;  %vm815_vm2 = vcmask (!%p571_p2), 64512  }
   0xb   : > { %574 = sbr.rel (%p571_p2) target bundleno = 9188 (0x23e4), region = 100  ;;  %3890 = vmatprep.subr.bf16.mxu0 (!%p571_p2), %v4310_v3  ;;  %3894 = vmatprep.mubr.msk.bf16.mxu0 (!%p571_p2), %vm4311_vm0, %v4310_v3  ;;  %s5284_s3 = sld [smem:[#allocation2_spill]] (!%p571_p2)  ;;  %vm863_vm3 = vcmask (!%p571_p2), 27648   ;;  %vm881_vm4 = vcmask (!%p571_p2), 1041408   ;;  %vm877_vm5 = vcmask (!%p571_p2), 31744   ;;  %vm1208_vm6 = vcmask (!%p571_p2), 1043456  }
   0xc   : > { %3914 = vmatprep.subr.bf16.mxu1 (!%p571_p2), %v4310_v3  ;;  %3916 = vmatprep.mubr.msk.bf16.mxu1 (!%p571_p2), %vm4311_vm0, %v4310_v3  ;;  %s5285_s21 = sld [smem:[#allocation5_spill]] (!%p571_p2)  ;;  %s5286_s23 = sld [smem:[#allocation6_spill]] (!%p571_p2)  ;;  %vm1957_vm7 = vcmask (!%p571_p2), 257024  }
   0xd   : > { %s5287_s30 = sld [smem:[#allocation3_spill]] (!%p571_p2) }
  0x10   : > { %v646_v0 = vld [vmem:[%s5283_s2] sm:$0xff] (!%p571_p2)  ;;  %v647_v1 = vld [vmem:[%s5283_s2 + $0x8] sm:$0xff] (!%p571_p2)  ;;  %v648_v2 = vld [vmem:[%s5283_s2 + $0x10] sm:$0xff] (!%p571_p2) }
  0x11   : > { %v650_v4 = vpack.c.bf16 (!%p571_p2), %v647_v1, %v646_v0  ;;  %v649_v5 = vld [vmem:[%s5283_s2 + $0x18] sm:$0xff] (!%p571_p2)  ;;  %v3557_v7 = vld [vmem:[%s5283_s2 + $0x80] sm:$0xff] (!%p571_p2)  ;;  %v3558_v8 = vld [vmem:[%s5283_s2 + $0x88] sm:$0xff] (!%p571_p2) }
  0x12   : > { %s5289_s22 = smov (!%p630_p3, %s3549_s22), 1  ;;  %v651_v6 = vpack.c.bf16 %v649_v5, %v648_v2  ;;  %v657_v11 = vpack.c.bf16 %v3558_v8, %v3557_v7  ;;  %v3559_v12 = vld [vmem:[%s5283_s2 + $0x90] sm:$0xff]  ;;  %v3560_v13 = vld [vmem:[%s5283_s2 + $0x98] sm:$0xff]  ;;  %v3568_v19 = vld [vmem:[%s5285_s21 + $0x4] ss:$0 sm:$0xff] }
  0x13   : > { %3891 = vmatpush3.bf16.msra.mxu0 %v650_v4  ;;  %s4444_s29 = sshll.u32 %s5289_s22, 2  ;;  %v658_v14 = vpack.c.bf16 %v3560_v13, %v3559_v12  ;;  %v3565_v26 = vld [vmem:[%s5285_s21] ss:$0 sm:$0xff]  ;;  %v3562_v31 = vld [vmem:[%s5283_s2 + $0x108] sm:$0xff]  ;;  %v3563_v32 = vld [vmem:[%s5283_s2 + $0x110] sm:$0xff] }
  0x14   : > { %3892 = vmatprep.subr.bf16.mxu0 %v4310_v3  ;;  %s633_s26 = scalar_lea.vmem %s5284_s3, %s4444_s29  ;;  %v3561_v30 = vld [vmem:[%s5283_s2 + $0x100] sm:$0xff]  ;;  %v3564_v34 = vld [vmem:[%s5283_s2 + $0x118] sm:$0xff]  ;;  %v3571_v50 = vld [vmem:[%s5285_s21 + $0x8] ss:$0 sm:$0xff]  ;;  %s637_s0 = scalar_lea.vmem %s5287_s30, %s4444_s29 }
  0x15   : > { %v4456_v9 = vld [vmem:[%s633_s26] sm:$0xf]  ;;  %v664_v33 = vpack.c.bf16 %v3562_v31, %v3561_v30  ;;  %v665_v35 = vpack.c.bf16 %v3564_v34, %v3563_v32  ;;  %v3576_v56 = vld [vmem:[%s5283_s2 + $0x28] sm:$0xff]  ;;  %v3577_v58 = vld [vmem:[%s5283_s2 + $0x30] sm:$0xff]  ;;  %s641_s24 = scalar_lea.vmem %s5274_s20, %s4444_s29 }
  0x16   : > { %v4460_v10 = vpack.c.bf16 %v4456_v9, %v4456_v9  ;;  %v3575_v55 = vld [vmem:[%s5283_s2 + $0x20] sm:$0xff]  ;;  %v3578_v59 = vld [vmem:[%s5283_s2 + $0x38] sm:$0xff]  ;;  %v3580_v63 = vld [vmem:[%s5283_s2 + $0xa8] sm:$0xff] }
  0x17   : > { %3893 = vmatpush3.bf16.msra.mxu0 %v651_v6  ;;  %v933_v57 = vpack.c.bf16 %v3576_v56, %v3575_v55  ;;  %v934_v60 = vpack.c.bf16 %v3578_v59, %v3577_v58  ;;  %v3579_v62 = vld [vmem:[%s5283_s2 + $0xa0] sm:$0xff]  ;;  %v3581_v5 = vld [vmem:[%s5283_s2 + $0xb0] sm:$0xff]  ;;  %v3582_v6 = vld [vmem:[%s5283_s2 + $0xb8] sm:$0xff] }
  0x18   : > { %3898 = vmatprep.subr.bf16.mxu0 %v4310_v3  ;;  %v940_v2 = vpack.c.bf16 %v3580_v63, %v3579_v62  ;;  %v941_v7 = vpack.c.bf16 %v3582_v6, %v3581_v5  ;;  %v3584_v30 = vld [vmem:[%s5283_s2 + $0x128] sm:$0xff]  ;;  %v3585_v31 = vld [vmem:[%s5283_s2 + $0x130] sm:$0xff]  ;;  %v926_v58 = vld [vmem:[%s5286_s23] sm:$0xff] }
  0x19   : > { %v927_v59 = vpack.c.bf16 %v926_v58, %v926_v58  ;;  %v3607_v5 = vld [vmem:[%s5283_s2 + $0xd0] sm:$0xff]  ;;  %v3608_v6 = vld [vmem:[%s5283_s2 + $0xd8] sm:$0xff] }
  0x1a   : > { %3895 = vmatmul.mubr.msk.bf16.vlgmr.msra.gmra.mrb[0].mxu0 %vm673_vm1, %v4460_v10 }
  0x1b   : > { %3899 = vmatpush3.bf16.msra.mxu0 %v657_v11  ;;  %3902 = vmatprep.mubr.msk.bf16.mxu0 %vm4311_vm0, %v4310_v3  ;;  %v1256_v63 = vsel %vm1208_vm6, %v927_v59, 0 }
  0x1c   : > { %3900 = vmatprep.subr.bf16.mxu0 %v4310_v3 }
  0x1f   : > { %3901 = vmatpush3.bf16.msra.mxu0 %v658_v14 }
  0x20   : > { %3906 = vmatprep.subr.bf16.mxu0 %v4310_v3 }
  0x22   : > { %3903 = vmatmul.mubr.msk.bf16.vlgmr.msra.gmra.mrb[4].mxu0 %vm673_vm1, %v4460_v10 }
  0x23   : > { %3910 = vmatprep.mubr.msk.bf16.mxu0 %vm4311_vm0, %v4310_v3  ;;  %3907 = vmatpush3.bf16.msra.mxu0 %v664_v33  ;;  %v3586_v33 = vld [vmem:[%s5283_s2 + $0x138] sm:$0xff] }
  0x24   : > { %3908 = vmatprep.subr.bf16.mxu0 %v4310_v3  ;;  %v948_v34 = vpack.c.bf16 %v3586_v33, %v3585_v31 }
  0x27   : > { %3909 = vmatpush3.bf16.msra.mxu0 %v665_v35 }
  0x28   : > { %3920 = vmatprep.subr.bf16.mxu0 %v4310_v3 }
  0x2a   : > { %3911 = vmatmul.mubr.msk.bf16.vlgmr.msra.gmra.mrb[8].mxu0 %vm673_vm1, %v4460_v10 }
  0x2b   : > { %3922 = vmatprep.mubr.msk.bf16.mxu0 %vm4311_vm0, %v4310_v3 }
  0xed   : > { %v711_v15 = vpop.f32.mrb[0].mxu0 }
  0xee   : > { %v3896_v16 = vpop.f32.mrb[1].mxu0  ;;  %v712_v28 = vadd.f32 %v3565_v26, %v711_v15 }
  0xef   : > { %v714_v17 = vpop.f32.mrb[2].mxu0 }
  0xf0   : > { %v3897_v18 = vpop.f32.mrb[3].mxu0  ;;  %v813_v29 = vpack.c.bf16 %v712_v28, %v712_v28 }
  0xf1   : > { %v3591_v18 = vld [vmem:[%s5285_s21 + $0x5] ss:$0 sm:$0xff] }
  0xf5   : > { %v759_v20 = vpop.f32.mrb[4].mxu0 }
  0xf6   : > { %v760_v21 = vadd.f32 %v3568_v19, %v759_v20  ;;  %v3904_v22 = vpop.f32.mrb[5].mxu0 }
  0xf7   : > { %v762_v23 = vpop.f32.mrb[6].mxu0 }
  0xf8   : > { %v814_v24 = vpack.c.bf16 %v760_v21, %v760_v21  ;;  %v3905_v25 = vpop.f32.mrb[7].mxu0  ;;  %v3588_v23 = vld [vmem:[%s5285_s21 + $0x1] ss:$0 sm:$0xff] }
  0xfa   : > { %v820_v27 = vsel %vm815_vm2, %v814_v24, 0 }
  0xfb   : > { %3915 = vmatpush3.bf16.xpose.msra.mxu1 %v820_v27 }
  0xfc   : > { %3926 = vmatprep.subr.bf16.mxu1 %v4310_v3 }
  0xfd   : > { %v807_v47 = vpop.f32.mrb[8].mxu0 }
  0xfe   : > { %v3912_v48 = vpop.f32.mrb[9].mxu0  ;;  %v808_v52 = vadd.f32 %v3571_v50, %v807_v47 }
  0xff   : > { %v810_v49 = vpop.f32.mrb[10].mxu0 }
 0x100   : > { %v3913_v51 = vpop.f32.mrb[11].mxu0  ;;  %v876_v53 = vpack.c.bf16 %v808_v52, %v808_v52 }
 0x102   : > { %3917 = vmatmul.mubr.msk.bf16.vlgmr.msra.gmra.mrb[0].mxu1 %vm815_vm2, %v813_v29  ;;  %v883_v54 = vsel %vm881_vm4, %v876_v53, 0  ;;  %v3583_v29 = vld [vmem:[%s5283_s2 + $0x120] sm:$0xff] }
 0x103   : > { %3930 = vmatprep.mubr.msk.bf16.mxu1 %vm4311_vm0, %v4310_v3  ;;  %3921 = vmatpush3.bf16.msra.mxu0 %v883_v54  ;;  %v947_v32 = vpack.c.bf16 %v3584_v30, %v3583_v29  ;;  %v3598_v54 = vld [vmem:[%s5286_s23 + $0x8] sm:$0xff] }
 0x104   : > { %3934 = vmatprep.subr.bf16.mxu0 %v4310_v3  ;;  %3927 = vmatpush3.bf16.msra.mxu1 %v933_v57  ;;  %v1204_v55 = vpack.c.bf16 %v3598_v54, %v3598_v54 }
 0x105   : > { %3928 = vmatprep.subr.bf16.mxu1 %v4310_v3 }
 0x106   : > { %v1210_v56 = vsel %vm1208_vm6, %v1204_v55, 0 }
 0x108   : > { %3929 = vmatpush3.bf16.msra.mxu1 %v934_v60 }
 0x109   : > { %3942 = vmatprep.subr.bf16.mxu1 %v4310_v3 }
 0x10b   : > { %3931 = vmatmul.mubr.msk.bf16.vlgmr.msra.gmra.mrb[4].mxu1 %vm673_vm1, %v4460_v10 }
 0x10c   : > { %3946 = vmatprep.mubr.msk.bf16.mxu1 %vm4311_vm0, %v4310_v3  ;;  %3943 = vmatpush3.bf16.msra.mxu1 %v947_v32 }
 0x10d   : > { %3944 = vmatprep.subr.bf16.mxu1 %v4310_v3 }
 0x110   : > { %3945 = vmatpush3.bf16.msra.mxu1 %v948_v34 }
 0x111   : > { %3956 = vmatprep.subr.bf16.mxu1 %v4310_v3 }
 0x113   : > { %3947 = vmatmul.mubr.msk.bf16.vlgmr.msra.gmra.mrb[8].mxu1 %vm673_vm1, %v4460_v10 }
 0x114   : > { %3958 = vmatprep.mubr.msk.bf16.mxu1 %vm4311_vm0, %v4310_v3 }
 0x1d5   : > { %v856_v36 = vpop.f32.mrb[0].mxu1 }
 0x1d6   : > { %v862_v37 = vmul.f32 0.35355338, %v856_v36  ;;  %v3918_v38 = vpop.f32.mrb[1].mxu1 }
 0x1d7   : > { %v859_v39 = vpop.f32.mrb[2].mxu1 }
 0x1d8   : > { %v3919_v40 = vpop.f32.mrb[3].mxu1  ;;  %v864_v41 = vsel %vm863_vm3, %v862_v37, -inf }
 0x1d9   : > { %865 = vmax.xlane.f32.xlu0 %v864_v41  ;;  %v3594_v41 = vld [vmem:[%s5285_s21 + $0x9] ss:$0 sm:$0xff] }
 0x1de   : > { %v991_v8 = vpop.f32.mrb[4].mxu1 }
 0x1df   : > { %v3932_v11 = vpop.f32.mrb[5].mxu1  ;;  %v992_v27 = vadd.f32 %v3588_v23, %v991_v8  ;;  %v3601_v8 = vld [vmem:[%s5283_s2 + $0x40] sm:$0xff] }
 0x1e0   : > { %v994_v12 = vpop.f32.mrb[6].mxu1  ;;  %v3602_v11 = vld [vmem:[%s5283_s2 + $0x48] sm:$0xff] }
 0x1e1   : > { %v3933_v13 = vpop.f32.mrb[7].mxu1  ;;  %v1093_v28 = vpack.c.bf16 %v992_v27, %v992_v27 }
 0x1e2   : > { %v1303_v13 = vpack.c.bf16 %v3602_v11, %v3601_v8 }
 0x266   : > { %v866_v42 = vpop.xlane.xlu0 %865 }
 0x267   : > { %v867_v43 = vsub.f32 %v862_v37, %v866_v42  ;;  %v1087_v42 = vpop.f32.mrb[8].mxu1 }
 0x269   : > { %v868_v44 = vmul.f32 1.442695, %v867_v43  ;;  %v1088_v43 = vadd.f32 %v3594_v41, %v1087_v42 }
 0x26b   : > { %4264 = vpow2.f32 %v868_v44  ;;  %v3948_v44 = vpop.f32.mrb[9].mxu1 }
 0x275   : > { %v4265_v45 = vpop.eup %4264 }
 0x276   : > { %v870_v46 = vsel %vm863_vm3, %v4265_v45, 0.0 }
 0x277   : > { %871 = vadd.xlane.f32.xlu0 %v870_v46  ;;  %v1154_v46 = vpack.c.bf16 %v1088_v43, %v1088_v43 }
 0x279   : > { %v1159_v48 = vsel %vm881_vm4, %v1154_v46, 0  ;;  %v3610_v46 = vld [vmem:[%s5283_s2 + $0x148] sm:$0xff] }
 0x27a   : > { %3957 = vmatpush3.bf16.msra.mxu1 %v1159_v48 }
 0x27b   : > { %3968 = vmatprep.subr.bf16.mxu1 %v4310_v3 }
 0x304   : > { %v872_v61 = vpop.xlane.xlu0 %871 }
 0x305   : > { %4266 = vrcp.f32 %v872_v61 }
 0x30f   : > { %v4267_v0 = vpop.eup %4266 }
 0x310   : > { %v874_v1 = vmul.f32 %v4267_v0, %v4265_v45  ;;  %v1090_v45 = vpop.f32.mrb[10].mxu1  ;;  %v3605_v0 = vld [vmem:[%s5283_s2 + $0xc0] sm:$0xff] }
 0x311   : > { %v3949_v47 = vpop.f32.mrb[11].mxu1  ;;  %v3609_v45 = vld [vmem:[%s5283_s2 + $0x140] sm:$0xff] }
 0x312   : > { %v875_v4 = vpack.c.bf16 %v874_v1, %v874_v1  ;;  %v3606_v1 = vld [vmem:[%s5283_s2 + $0xc8] sm:$0xff]  ;;  %v3611_v47 = vld [vmem:[%s5283_s2 + $0x150] sm:$0xff]  ;;  %v1317_v48 = vpack.c.bf16 %v3610_v46, %v3609_v45 }
 0x314   : > { %3923 = vmatmul.mubr.msk.bf16.vlgmr.msra.gmra.mrb[12].mxu0 %vm877_vm5, %v875_v4 }
 0x315   : > { %3935 = vmatpush3.bf16.msra.mxu0 %v940_v2  ;;  %3938 = vmatprep.mubr.msk.bf16.mxu0 %vm4311_vm0, %v4310_v3  ;;  %v1310_v2 = vpack.c.bf16 %v3606_v1, %v3605_v0  ;;  %v3620_v1 = vld [vmem:[%s5285_s21 + $0xa] ss:$0 sm:$0xff] }
 0x316   : > { %3936 = vmatprep.subr.bf16.mxu0 %v4310_v3 }
 0x319   : > { %3937 = vmatpush3.bf16.msra.mxu0 %v941_v7  ;;  %v1311_v7 = vpack.c.bf16 %v3608_v6, %v3607_v5 }
 0x31a   : > { %3950 = vmatprep.subr.bf16.mxu0 %v4310_v3 }
 0x31c   : > { %3939 = vmatmul.mubr.msk.bf16.vlgmr.msra.gmra.mrb[16].mxu0 %vm673_vm1, %v4460_v10 }
 0x31d   : > { %3952 = vmatprep.mubr.msk.bf16.mxu0 %vm4311_vm0, %v4310_v3 }
 0x3e7   : > { %v4554_v14 = vpop.f32.mrb[12].mxu0 }
 0x3e8   : > { %v3924_v15 = vpop.f32.mrb[13].mxu0  ;;  %v925_v4 = vpack.c.bf16 %v4554_v14, %v4554_v14 }
 0x3e9   : > { %v922_v16 = vpop.f32.mrb[14].mxu0 }
 0x3ea   : > { %v3925_v17 = vpop.f32.mrb[15].mxu0  ;;  %v3603_v16 = vld [vmem:[%s5283_s2 + $0x50] sm:$0xff] }
 0x3eb   : > { %v3604_v17 = vld [vmem:[%s5283_s2 + $0x58] sm:$0xff] }
 0x3ef   : > { %v1039_v19 = vpop.f32.mrb[16].mxu0 }
 0x3f0   : > { %v1040_v20 = vadd.f32 %v3591_v18, %v1039_v19  ;;  %v3940_v21 = vpop.f32.mrb[17].mxu0 }
 0x3f1   : > { %v1042_v22 = vpop.f32.mrb[18].mxu0 }
 0x3f2   : > { %v1094_v24 = vpack.c.bf16 %v1040_v20, %v1040_v20  ;;  %v3941_v25 = vpop.f32.mrb[19].mxu0  ;;  %v1304_v20 = vpack.c.bf16 %v3604_v17, %v3603_v16  ;;  %v3626_v16 = vld [vmem:[%s5283_s2 + $0x60] sm:$0xff]  ;;  %v3627_v17 = vld [vmem:[%s5283_s2 + $0x68] sm:$0xff] }
 0x3f3   : > { %v3617_v25 = vld [vmem:[%s5285_s21 + $0x6] ss:$0 sm:$0xff] }
 0x3f4   : > { %v1099_v26 = vsel %vm815_vm2, %v1094_v24, 0 }
 0x3f5   : > { %3951 = vmatpush3.bf16.xpose.msra.mxu0 %v1099_v26 }
 0x3f6   : > { %3962 = vmatprep.subr.bf16.mxu0 %v4310_v3 }
 0x3fc   : > { %3953 = vmatmul.mubr.msk.bf16.vlgmr.msra.gmra.mrb[20].mxu0 %vm815_vm2, %v1093_v28 }
 0x3fd   : > { %3964 = vmatprep.mubr.msk.bf16.mxu0 %vm4311_vm0, %v4310_v3  ;;  %3963 = vmatpush3.bf16.msra.mxu0 %v1210_v56 }
 0x3fe   : > { %3974 = vmatprep.subr.bf16.mxu0 %v4310_v3 }
 0x4cf   : > { %v1135_v35 = vpop.f32.mrb[20].mxu0 }
 0x4d0   : > { %v1141_v36 = vmul.f32 0.35355338, %v1135_v35  ;;  %v3954_v37 = vpop.f32.mrb[21].mxu0 }
 0x4d1   : > { %v1138_v38 = vpop.f32.mrb[22].mxu0 }
 0x4d2   : > { %v3955_v39 = vpop.f32.mrb[23].mxu0  ;;  %v1142_v40 = vsel %vm863_vm3, %v1141_v36, -inf  ;;  %v3614_v38 = vld [vmem:[%s5285_s21 + $0x2] ss:$0 sm:$0xff] }
 0x4d3   : > { %1143 = vmax.xlane.f32.xlu1 %v1142_v40 }
 0x560   : > { %v1144_v49 = vpop.xlane.xlu1 %1143 }
 0x561   : > { %v1145_v50 = vsub.f32 %v1141_v36, %v1144_v49  ;;  %v3612_v49 = vld [vmem:[%s5283_s2 + $0x158] sm:$0xff] }
 0x563   : > { %v1146_v51 = vmul.f32 1.442695, %v1145_v50  ;;  %v1318_v50 = vpack.c.bf16 %v3612_v49, %v3611_v47 }
 0x565   : > { %4268 = vpow2.f32 %v1146_v51 }
 0x56f   : > { %v4269_v52 = vpop.eup %4268 }
 0x570   : > { %v1148_v53 = vsel %vm863_vm3, %v4269_v52, 0.0 }
 0x571   : > { %1149 = vadd.xlane.f32.xlu1 %v1148_v53 }
 0x5fe   : > { %v1150_v57 = vpop.xlane.xlu1 %1149 }
 0x5ff   : > { %4270 = vrcp.f32 %v1150_v57 }
 0x609   : > { %v4271_v60 = vpop.eup %4270 }
 0x60a   : > { %v1152_v61 = vmul.f32 %v4271_v60, %v4269_v52 }
 0x60c   : > { %v1153_v62 = vpack.c.bf16 %v1152_v61, %v1152_v61 }
 0x60e   : > { %3959 = vmatmul.mubr.msk.bf16.vlgmr.msra.gmra.mrb[12].mxu1 %vm877_vm5, %v1153_v62 }
 0x60f   : > { %3969 = vmatpush3.bf16.msra.mxu1 %v1256_v63  ;;  %3970 = vmatprep.mubr.msk.bf16.mxu1 %vm4311_vm0, %v4310_v3 }
 0x610   : > { %3982 = vmatprep.subr.bf16.mxu1 %v4310_v3 }
 0x616   : > { %3971 = vmatmul.mubr.msk.bf16.vlgmr.msra.gmra.mrb[16].mxu1 %vm815_vm2, %v925_v4 }
 0x617   : > { %3983 = vmatpush3.bf16.msra.mxu1 %v1310_v2  ;;  %3986 = vmatprep.mubr.msk.bf16.mxu1 %vm4311_vm0, %v4310_v3 }
 0x618   : > { %3984 = vmatprep.subr.bf16.mxu1 %v4310_v3 }
 0x61b   : > { %3985 = vmatpush3.bf16.msra.mxu1 %v1311_v7  ;;  %v3624_v7 = vld [vmem:[%s5286_s23 + $0x10] sm:$0xff] }
 0x61c   : > { %3998 = vmatprep.subr.bf16.mxu1 %v4310_v3  ;;  %v1574_v8 = vpack.c.bf16 %v3624_v7, %v3624_v7 }
 0x61e   : > { %3987 = vmatmul.mubr.msk.bf16.vlgmr.msra.gmra.mrb[20].mxu1 %vm673_vm1, %v4460_v10  ;;  %v1579_v11 = vsel %vm1208_vm6, %v1574_v8, 0 }
 0x61f   : > { %4000 = vmatprep.mubr.msk.bf16.mxu1 %vm4311_vm0, %v4310_v3 }
 0x6e1   : > { %v1195_v12 = vpop.f32.mrb[12].mxu1 }
 0x6e2   : > { %v1201_v14 = vpack.c.bf16 %v1195_v12, %v1195_v12  ;;  %v3960_v15 = vpop.f32.mrb[13].mxu1 }
 0x6e3   : > { %v1198_v18 = vpop.f32.mrb[14].mxu1 }
 0x6e4   : > { %v3961_v19 = vpop.f32.mrb[15].mxu1  ;;  %3965 = vmatmul.mubr.msk.bf16.vlgmr.msra.gmra.mrb[24].mxu0 %vm815_vm2, %v1201_v14  ;;  %v1627_v18 = vpack.c.bf16 %v3627_v17, %v3626_v16  ;;  %v3649_v16 = vld [vmem:[%s5286_s23 + $0x18] sm:$0xff] }
 0x6e5   : > { %3975 = vmatpush3.bf16.msra.mxu0 %v1303_v13  ;;  %3978 = vmatprep.mubr.msk.bf16.mxu0 %vm4311_vm0, %v4310_v3  ;;  %v3628_v19 = vld [vmem:[%s5283_s2 + $0x70] sm:$0xff]  ;;  %v1898_v17 = vpack.c.bf16 %v3649_v16, %v3649_v16 }
 0x6e6   : > { %3976 = vmatprep.subr.bf16.mxu0 %v4310_v3 }
 0x6e9   : > { %v1292_v21 = vpop.f32.mrb[16].mxu1  ;;  %3977 = vmatpush3.bf16.msra.mxu0 %v1304_v20  ;;  %v3629_v20 = vld [vmem:[%s5283_s2 + $0x78] sm:$0xff] }
 0x6ea   : > { %v3972_v22 = vpop.f32.mrb[17].mxu1  ;;  %3990 = vmatprep.subr.bf16.mxu0 %v4310_v3 }
 0x6eb   : > { %v1295_v23 = vpop.f32.mrb[18].mxu1  ;;  %v3630_v22 = vld [vmem:[%s5283_s2 + $0xe0] sm:$0xff] }
 0x6ec   : > { %v3973_v24 = vpop.f32.mrb[19].mxu1  ;;  %3979 = vmatmul.mubr.msk.bf16.vlgmr.msra.gmra.mrb[28].mxu0 %vm673_vm1, %v4460_v10  ;;  %v3631_v23 = vld [vmem:[%s5283_s2 + $0xe8] sm:$0xff] }
 0x6ed   : > { %3994 = vmatprep.mubr.msk.bf16.mxu0 %vm4311_vm0, %v4310_v3  ;;  %3991 = vmatpush3.bf16.msra.mxu0 %v1317_v48  ;;  %v3639_v48 = vld [vmem:[%s5285_s21 + $0x3] ss:$0 sm:$0xff] }
 0x6ee   : > { %3992 = vmatprep.subr.bf16.mxu0 %v4310_v3 }
 0x6f1   : > { %v1409_v26 = vpop.f32.mrb[20].mxu1  ;;  %3993 = vmatpush3.bf16.msra.mxu0 %v1318_v50 }
 0x6f2   : > { %v1410_v27 = vadd.f32 %v3617_v25, %v1409_v26  ;;  %v3988_v28 = vpop.f32.mrb[21].mxu1  ;;  %4004 = vmatprep.subr.bf16.mxu0 %v4310_v3  ;;  %v1634_v25 = vpack.c.bf16 %v3631_v23, %v3630_v22 }
 0x6f3   : > { %v1412_v29 = vpop.f32.mrb[22].mxu1  ;;  %v3632_v28 = vld [vmem:[%s5283_s2 + $0xf0] sm:$0xff] }
 0x6f4   : > { %v1464_v30 = vpack.c.bf16 %v1410_v27, %v1410_v27  ;;  %v3989_v31 = vpop.f32.mrb[23].mxu1  ;;  %3995 = vmatmul.mubr.msk.bf16.vlgmr.msra.gmra.mrb[32].mxu0 %vm673_vm1, %v4460_v10  ;;  %v3633_v29 = vld [vmem:[%s5283_s2 + $0xf8] sm:$0xff] }
 0x6f5   : > { %4006 = vmatprep.mubr.msk.bf16.mxu0 %vm4311_vm0, %v4310_v3 }
 0x6f6   : > { %v1469_v32 = vsel %vm815_vm2, %v1464_v30, 0 }
 0x6f7   : > { %3999 = vmatpush3.bf16.xpose.msra.mxu1 %v1469_v32  ;;  %v1635_v32 = vpack.c.bf16 %v3633_v29, %v3632_v28  ;;  %v3651_v29 = vld [vmem:[%s5259_s5] ss:$0 sm:$0xff] }
 0x6f8   : > { %4010 = vmatprep.subr.bf16.mxu1 %v4310_v3 }
 0x7b7   : > { %v1246_v33 = vpop.f32.mrb[24].mxu0 }
 0x7b8   : > { %v4654_v34 = vadd.f32 %v1292_v21, %v1246_v33  ;;  %v3966_v35 = vpop.f32.mrb[25].mxu0  ;;  %v1628_v21 = vpack.c.bf16 %v3629_v20, %v3628_v19 }
 0x7b9   : > { %v1249_v36 = vpop.f32.mrb[26].mxu0 }
 0x7ba   : > { %v3967_v37 = vpop.f32.mrb[27].mxu0 }
 0x7bf   : > { %v1361_v39 = vpop.f32.mrb[28].mxu0 }
 0x7c0   : > { %v1362_v40 = vadd.f32 %v3614_v38, %v1361_v39  ;;  %v3980_v41 = vpop.f32.mrb[29].mxu0 }
 0x7c1   : > { %v1364_v42 = vpop.f32.mrb[30].mxu0 }
 0x7c2   : > { %v1463_v43 = vpack.c.bf16 %v1362_v40, %v1362_v40  ;;  %v3981_v44 = vpop.f32.mrb[31].mxu0 }
 0x7c4   : > { %4001 = vmatmul.mubr.msk.bf16.vlgmr.msra.gmra.mrb[24].mxu1 %vm815_vm2, %v1463_v43  ;;  %v3642_v43 = vld [vmem:[%s5285_s21 + $0x7] ss:$0 sm:$0xff] }
 0x7c5   : > { %4012 = vmatprep.mubr.msk.bf16.mxu1 %vm4311_vm0, %v4310_v3  ;;  %4011 = vmatpush3.bf16.msra.mxu1 %v1579_v11  ;;  %v3645_v11 = vld [vmem:[%s5285_s21 + $0xb] ss:$0 sm:$0xff] }
 0x7c6   : > { %4024 = vmatprep.subr.bf16.mxu1 %v4310_v3 }
 0x7c7   : > { %v1457_v62 = vpop.f32.mrb[32].mxu0 }
 0x7c8   : > { %v3996_v63 = vpop.f32.mrb[33].mxu0  ;;  %v1458_v4 = vadd.f32 %v3620_v1, %v1457_v62 }
 0x7c9   : > { %v1460_v0 = vpop.f32.mrb[34].mxu0 }
 0x7ca   : > { %v3997_v2 = vpop.f32.mrb[35].mxu0  ;;  %v1524_v5 = vpack.c.bf16 %v1458_v4, %v1458_v4 }
 0x7cc   : > { %v1529_v6 = vsel %vm881_vm4, %v1524_v5, 0 }
 0x7cd   : > { %4005 = vmatpush3.bf16.msra.mxu0 %v1529_v6 }
 0x7ce   : > { %4016 = vmatprep.subr.bf16.mxu0 %v4310_v3 }
 0x897   : > { %v1505_v51 = vpop.f32.mrb[24].mxu1 }
 0x898   : > { %v1511_v52 = vmul.f32 0.35355338, %v1505_v51  ;;  %v4002_v53 = vpop.f32.mrb[25].mxu1 }
 0x899   : > { %v1508_v54 = vpop.f32.mrb[26].mxu1  ;;  %v3634_v53 = vld [vmem:[%s5283_s2 + $0x160] sm:$0xff] }
 0x89a   : > { %v4003_v55 = vpop.f32.mrb[27].mxu1  ;;  %v1512_v56 = vsel %vm863_vm3, %v1511_v52, -inf  ;;  %v3635_v54 = vld [vmem:[%s5283_s2 + $0x168] sm:$0xff] }
 0x89b   : > { %1513 = vmax.xlane.f32.xlu0 %v1512_v56  ;;  %v3636_v55 = vld [vmem:[%s5283_s2 + $0x170] sm:$0xff]  ;;  %v1641_v56 = vpack.c.bf16 %v3635_v54, %v3634_v53  ;;  %v1991_v53 = vld [vmem:[%s5260_s6 + $0x18] sm:$0xff] }
 0x928   : > { %v1514_v57 = vpop.xlane.xlu0 %1513 }
 0x929   : > { %v1515_v58 = vsub.f32 %v1511_v52, %v1514_v57  ;;  %v3637_v57 = vld [vmem:[%s5283_s2 + $0x178] sm:$0xff] }
 0x92b   : > { %v1516_v59 = vmul.f32 1.442695, %v1515_v58  ;;  %v1642_v58 = vpack.c.bf16 %v3637_v57, %v3636_v55 }
 0x92d   : > { %4272 = vpow2.f32 %v1516_v59 }
 0x937   : > { %v4273_v60 = vpop.eup %4272 }
 0x938   : > { %v1518_v61 = vsel %vm863_vm3, %v4273_v60, 0.0 }
 0x939   : > { %1519 = vadd.xlane.f32.xlu1 %v1518_v61 }
 0x9c6   : > { %v1520_v12 = vpop.xlane.xlu1 %1519 }
 0x9c7   : > { %4274 = vrcp.f32 %v1520_v12 }
 0x9d1   : > { %v4275_v13 = vpop.eup %4274 }
 0x9d2   : > { %v1522_v14 = vmul.f32 %v4275_v13, %v4273_v60 }
 0x9d4   : > { %v1523_v15 = vpack.c.bf16 %v1522_v14, %v1522_v14 }
 0x9d6   : > { %4007 = vmatmul.mubr.msk.bf16.vlgmr.msra.gmra.mrb[36].mxu0 %vm877_vm5, %v1523_v15 }
 0x9d7   : > { %4020 = vmatprep.mubr.msk.bf16.mxu0 %vm4311_vm0, %v4310_v3  ;;  %4017 = vmatpush3.bf16.msra.mxu0 %v1627_v18  ;;  %v1903_v18 = vsel %vm1208_vm6, %v1898_v17, 0 }
 0x9d8   : > { %4018 = vmatprep.subr.bf16.mxu0 %v4310_v3 }
 0x9db   : > { %4019 = vmatpush3.bf16.msra.mxu0 %v1628_v21 }
 0x9dc   : > { %4032 = vmatprep.subr.bf16.mxu0 %v4310_v3 }
 0x9de   : > { %4021 = vmatmul.mubr.msk.bf16.vlgmr.msra.gmra.mrb[40].mxu0 %vm673_vm1, %v4460_v10 }
 0x9df   : > { %4036 = vmatprep.mubr.msk.bf16.mxu0 %vm4311_vm0, %v4310_v3  ;;  %4033 = vmatpush3.bf16.msra.mxu0 %v1641_v56 }
 0x9e0   : > { %4034 = vmatprep.subr.bf16.mxu0 %v4310_v3 }
 0x9e3   : > { %4035 = vmatpush3.bf16.msra.mxu0 %v1642_v58 }
 0x9e4   : > { %4046 = vmatprep.subr.bf16.mxu0 %v4310_v3 }
 0x9e6   : > { %4037 = vmatmul.mubr.msk.bf16.vlgmr.msra.gmra.mrb[44].mxu0 %vm673_vm1, %v4460_v10 }
 0x9e7   : > { %4048 = vmatprep.mubr.msk.bf16.mxu0 %vm4311_vm0, %v4310_v3 }
 0xaa9   : > { %v1565_v24 = vpop.f32.mrb[36].mxu0 }
 0xaaa   : > { %v1571_v26 = vpack.c.bf16 %v1565_v24, %v1565_v24  ;;  %v4008_v27 = vpop.f32.mrb[37].mxu0 }
 0xaab   : > { %v1568_v30 = vpop.f32.mrb[38].mxu0 }
 0xaac   : > { %v4009_v31 = vpop.f32.mrb[39].mxu0  ;;  %4013 = vmatmul.mubr.msk.bf16.vlgmr.msra.gmra.mrb[28].mxu1 %vm815_vm2, %v1571_v26 }
 0xaad   : > { %4025 = vmatpush3.bf16.msra.mxu1 %v1634_v25  ;;  %4028 = vmatprep.mubr.msk.bf16.mxu1 %vm4311_vm0, %v4310_v3 }
 0xaae   : > { %4026 = vmatprep.subr.bf16.mxu1 %v4310_v3 }
 0xab1   : > { %4027 = vmatpush3.bf16.msra.mxu1 %v1635_v32  ;;  %v1685_v33 = vpop.f32.mrb[40].mxu0 }
 0xab2   : > { %4040 = vmatprep.subr.bf16.mxu1 %v4310_v3  ;;  %v4022_v35 = vpop.f32.mrb[41].mxu0  ;;  %v1686_v51 = vadd.f32 %v3639_v48, %v1685_v33  ;;  %v644_v48 = vld [vmem:[%s637_s0] sm:$0xf] }
 0xab3   : > { %v1688_v36 = vpop.f32.mrb[42].mxu0 }
 0xab4   : > { %4029 = vmatmul.mubr.msk.bf16.vlgmr.msra.gmra.mrb[32].mxu1 %vm673_vm1, %v4460_v10  ;;  %v4023_v37 = vpop.f32.mrb[43].mxu0  ;;  %v1787_v52 = vpack.c.bf16 %v1686_v51, %v1686_v51 }
 0xab5   : > { %4042 = vmatprep.mubr.msk.bf16.mxu1 %vm4311_vm0, %v4310_v3 }
 0xab9   : > { %v1781_v10 = vpop.f32.mrb[44].mxu0 }
 0xaba   : > { %v4038_v7 = vpop.f32.mrb[45].mxu0  ;;  %v1782_v13 = vadd.f32 %v3645_v11, %v1781_v10  ;;  %v3662_v11 = vld [vmem:[%s5261_s7] ss:$0 sm:$0xff] }
 0xabb   : > { %v1784_v8 = vpop.f32.mrb[46].mxu0 }
 0xabc   : > { %v4039_v12 = vpop.f32.mrb[47].mxu0  ;;  %v1848_v14 = vpack.c.bf16 %v1782_v13, %v1782_v13  ;;  %v3673_v13 = vld [vmem:[%s5260_s6 + $0x28] sm:$0xff] }
 0xabd   : > { %v3672_v12 = vld [vmem:[%s5260_s6 + $0x20] sm:$0xff] }
 0xabe   : > { %v1853_v15 = vsel %vm881_vm4, %v1848_v14, 0 }
 0xabf   : > { %4047 = vmatpush3.bf16.msra.mxu0 %v1853_v15 }
 0xac0   : > { %4058 = vmatprep.subr.bf16.mxu0 %v4310_v3 }
 0xb7f   : > { %v1615_v38 = vpop.f32.mrb[28].mxu1 }
 0xb80   : > { %v4735_v39 = vadd.f32 %v1615_v38, %v4654_v34  ;;  %v4014_v40 = vpop.f32.mrb[29].mxu1 }
 0xb81   : > { %v1618_v41 = vpop.f32.mrb[30].mxu1 }
 0xb82   : > { %v4015_v42 = vpop.f32.mrb[31].mxu1 }
 0xb87   : > { %v1733_v44 = vpop.f32.mrb[32].mxu1 }
 0xb88   : > { %v1734_v45 = vadd.f32 %v3642_v43, %v1733_v44  ;;  %v4030_v46 = vpop.f32.mrb[33].mxu1  ;;  %v3655_v44 = vld [vmem:[%s5260_s6 + $0x88] sm:$0xff] }
 0xb89   : > { %v1736_v47 = vpop.f32.mrb[34].mxu1  ;;  %v3657_v46 = vld [vmem:[%s5260_s6 + $0x98] sm:$0xff] }
 0xb8a   : > { %v1788_v49 = vpack.c.bf16 %v1734_v45, %v1734_v45  ;;  %v4031_v50 = vpop.f32.mrb[35].mxu1  ;;  %v3656_v45 = vld [vmem:[%s5260_s6 + $0x90] sm:$0xff] }
 0xb8b   : > { %v2000_v47 = vpack.c.bf16 %v3657_v46, %v3656_v45  ;;  %v1988_v50 = vld [vmem:[%s5260_s6] sm:$0xff] }
 0xb8c   : > { %v1793_v34 = vsel %vm815_vm2, %v1788_v49, 0  ;;  %v4808_v49 = vpack.c.bf16 %v644_v48, %v644_v48  ;;  %v3668_v48 = vld [vmem:[%s5261_s7 + $0x8] ss:$0 sm:$0xff] }
 0xb8d   : > { %4041 = vmatpush3.bf16.xpose.msra.mxu1 %v1793_v34  ;;  %v1989_v34 = vld [vmem:[%s5260_s6 + $0x8] sm:$0xff] }
 0xb8e   : > { %4052 = vmatprep.subr.bf16.mxu1 %v4310_v3  ;;  %v1992_v51 = vpack.c.bf16 %v1989_v34, %v1988_v50 }
 0xb94   : > { %4043 = vmatmul.mubr.msk.bf16.vlgmr.msra.gmra.mrb[36].mxu1 %vm815_vm2, %v1787_v52  ;;  %v1990_v52 = vld [vmem:[%s5260_s6 + $0x10] sm:$0xff] }
 0xb95   : > { %4054 = vmatprep.mubr.msk.bf16.mxu1 %vm4311_vm0, %v4310_v3  ;;  %4053 = vmatpush3.bf16.msra.mxu1 %v1903_v18  ;;  %v1993_v54 = vpack.c.bf16 %v1991_v53, %v1990_v52  ;;  %v2273_v18 = vpack.c.bf16 %v3673_v13, %v3672_v12 }
 0xb96   : > { %4066 = vmatprep.subr.bf16.mxu1 %v4310_v3 }
 0xc67   : > { %v1829_v59 = vpop.f32.mrb[36].mxu1 }
 0xc68   : > { %v1835_v60 = vmul.f32 0.35355338, %v1829_v59  ;;  %v4044_v61 = vpop.f32.mrb[37].mxu1  ;;  %v3652_v59 = vld [vmem:[%s5264_s10] ss:$0 sm:$0xff] }
 0xc69   : > { %v1832_v62 = vpop.f32.mrb[38].mxu1  ;;  %v3653_v61 = vld [vmem:[%s5265_s11] ss:$0 sm:$0xff] }
 0xc6a   : > { %v4045_v63 = vpop.f32.mrb[39].mxu1  ;;  %v1836_v0 = vsel %vm863_vm3, %v1835_v60, -inf }
 0xc6b   : > { %1837 = vmax.xlane.f32.xlu0 %v1836_v0 }
 0xcf8   : > { %v1838_v1 = vpop.xlane.xlu0 %1837 }
 0xcf9   : > { %v1839_v2 = vsub.f32 %v1835_v60, %v1838_v1  ;;  %v3665_v1 = vld [vmem:[%s5261_s7 + $0x4] ss:$0 sm:$0xff] }
 0xcfb   : > { %v1840_v4 = vmul.f32 1.442695, %v1839_v2 }
 0xcfd   : > { %4276 = vpow2.f32 %v1840_v4 }
 0xd07   : > { %v4277_v5 = vpop.eup %4276 }
 0xd08   : > { %v1842_v6 = vsel %vm863_vm3, %v4277_v5, 0.0 }
 0xd09   : > { %1843 = vadd.xlane.f32.xlu1 %v1842_v6 }
 0xd96   : > { %v1844_v19 = vpop.xlane.xlu1 %1843 }
 0xd97   : > { %4278 = vrcp.f32 %v1844_v19 }
 0xda1   : > { %v4279_v20 = vpop.eup %4278 }
 0xda2   : > { %v1846_v21 = vmul.f32 %v4279_v20, %v4277_v5 }
 0xda4   : > { %v1847_v22 = vpack.c.bf16 %v1846_v21, %v1846_v21  ;;  %v3674_v21 = vld [vmem:[%s5260_s6 + $0x30] sm:$0xff] }
 0xda6   : > { %4049 = vmatmul.mubr.msk.bf16.vlgmr.msra.gmra.mrb[48].mxu0 %vm877_vm5, %v1847_v22  ;;  %v3675_v22 = vld [vmem:[%s5260_s6 + $0x38] sm:$0xff] }
 0xda7   : > { %4062 = vmatprep.mubr.msk.bf16.mxu0 %vm4311_vm0, %v4310_v3  ;;  %4059 = vmatpush3.bf16.msra.mxu0 %v1992_v51 }
 0xda8   : > { %4060 = vmatprep.subr.bf16.mxu0 %v4310_v3 }
 0xdab   : > { %4061 = vmatpush3.bf16.msra.mxu0 %v1993_v54  ;;  %v3676_v54 = vld [vmem:[%s5260_s6 + $0xa0] sm:$0xff] }
 0xdac   : > { %4074 = vmatprep.subr.bf16.mxu0 %v4310_v3 }
 0xe79   : > { %v1889_v23 = vpop.f32.mrb[48].mxu0 }
 0xe7a   : > { %v1895_v24 = vpack.c.bf16 %v1889_v23, %v1889_v23  ;;  %v4050_v25 = vpop.f32.mrb[49].mxu0  ;;  %v2274_v23 = vpack.c.bf16 %v3675_v22, %v3674_v21  ;;  %v3683_v22 = vld [vmem:[%s5260_s6 + $0x138] sm:$0xff] }
 0xe7b   : > { %v1892_v26 = vpop.f32.mrb[50].mxu0  ;;  %v3659_v25 = vld [vmem:[%s5260_s6 + $0x108] sm:$0xff] }
 0xe7c   : > { %v4051_v27 = vpop.f32.mrb[51].mxu0  ;;  %4055 = vmatmul.mubr.msk.bf16.vlgmr.msra.gmra.mrb[40].mxu1 %vm815_vm2, %v1895_v24  ;;  %v3658_v24 = vld [vmem:[%s5260_s6 + $0x100] sm:$0xff]  ;;  %v3660_v26 = vld [vmem:[%s5260_s6 + $0x110] sm:$0xff] }
 0xe7d   : > { %4070 = vmatprep.mubr.msk.bf16.mxu1 %vm4311_vm0, %v4310_v3  ;;  %v2006_v27 = vpack.c.bf16 %v3659_v25, %v3658_v24 }
 0xf4f   : > { %v1939_v28 = vpop.f32.mrb[40].mxu1 }
 0xf50   : > { %v1945_v30 = vadd.f32 %v1939_v28, %v4735_v39  ;;  %v4056_v31 = vpop.f32.mrb[41].mxu1  ;;  %v3654_v39 = vld [vmem:[%s5260_s6 + $0x80] sm:$0xff]  ;;  %v3661_v28 = vld [vmem:[%s5260_s6 + $0x118] sm:$0xff] }
 0xf51   : > { %v1942_v32 = vpop.f32.mrb[42].mxu1 }
 0xf52   : > { %v1953_v33 = vadd.f32 %v3651_v29, %v1945_v30  ;;  %v4057_v35 = vpop.f32.mrb[43].mxu1  ;;  %v2007_v29 = vpack.c.bf16 %v3661_v28, %v3660_v26 }
 0xf54   : > { %v1954_v36 = vadd.f32 %v1953_v33, %v4456_v9  ;;  %v1999_v9 = vpack.c.bf16 %v3655_v44, %v3654_v39 }
 0xf56   : > { %v1958_v37 = vsel %vm1957_vm7, %v1954_v36, 0.0  ;;  %4067 = vmatpush3.bf16.msra.mxu1 %v1999_v9 }
 0xf57   : > { %1959 = vadd.xlane.f32.xlu0 %v1958_v37  ;;  %4068 = vmatprep.subr.bf16.mxu1 %v4310_v3 }
 0xf5a   : > { %4069 = vmatpush3.bf16.msra.mxu1 %v2000_v47 }
 0xf5b   : > { %4082 = vmatprep.subr.bf16.mxu1 %v4310_v3 }
 0xf5d   : > { %4071 = vmatmul.mubr.msk.bf16.vlgmr.msra.gmra.mrb[44].mxu1 %vm673_vm1, %v4808_v49 }
 0xf5e   : > { %4084 = vmatprep.mubr.msk.bf16.mxu1 %vm4311_vm0, %v4310_v3 }
 0xfe4   : > { %v1960_v38 = vpop.xlane.xlu0 %1959 }
 0xfe5   : > { %v1962_v40 = vmul.f32 0.03125, %v1960_v38 }
 0xfe7   : > { %v1963_v41 = vsub.f32 %v1954_v36, %v1962_v40 }
 0xfe9   : > { %v1964_v42 = vmul.f32 %v1963_v41, %v1963_v41 }
 0xfeb   : > { %v1965_v43 = vsel %vm1957_vm7, %v1964_v42, 0.0 }
 0xfec   : > { %1966 = vadd.xlane.f32.xlu1 %v1965_v43 }
0x1030   : > { %v2103_v2 = vpop.f32.mrb[44].mxu1 }
0x1031   : > { %v2104_v4 = vadd.f32 %v3665_v1, %v2103_v2  ;;  %v4072_v5 = vpop.f32.mrb[45].mxu1 }
0x1032   : > { %v2106_v6 = vpop.f32.mrb[46].mxu1 }
0x1033   : > { %v2158_v10 = vpack.c.bf16 %v2104_v4, %v2104_v4  ;;  %v4073_v7 = vpop.f32.mrb[47].mxu1  ;;  %v3688_v6 = vld [vmem:[%s5261_s7 + $0x5] ss:$0 sm:$0xff] }
0x1035   : > { %v2163_v8 = vsel %vm815_vm2, %v2158_v10, 0 }
0x1036   : > { %4083 = vmatpush3.bf16.xpose.msra.mxu1 %v2163_v8 }
0x1037   : > { %4094 = vmatprep.subr.bf16.mxu1 %v4310_v3 }
0x1079   : > { %v1967_v55 = vpop.xlane.xlu1 %1966 }
0x107a   : > { %v1968_v56 = vmul.f32 0.03125, %v1967_v55  ;;  %v3677_v55 = vld [vmem:[%s5260_s6 + $0xa8] sm:$0xff] }
0x107c   : > { %v1969_v57 = vadd.f32 1e-05, %v1968_v56 }
0x107e   : > { %4280 = vrsqrt.f32 %v1969_v57 }
0x1088   : > { %v4281_v58 = vpop.eup %4280 }
0x1089   : > { %v1971_v60 = vmul.f32 %v4281_v58, %v1963_v41  ;;  %v2280_v58 = vpack.c.bf16 %v3677_v55, %v3676_v54  ;;  %v3703_v54 = vld [vmem:[%s5260_s6 + $0xc8] sm:$0xff] }
0x108b   : > { %v1978_v62 = vmul.f32 %v3652_v59, %v1971_v60  ;;  %v3678_v60 = vld [vmem:[%s5260_s6 + $0xb0] sm:$0xff] }
0x108d   : > { %v4835_v63 = vadd.f32 %v3653_v61, %v1978_v62  ;;  %v3679_v61 = vld [vmem:[%s5260_s6 + $0xb8] sm:$0xff] }
0x108e   : > { %v2281_v62 = vpack.c.bf16 %v3679_v61, %v3678_v60  ;;  %v3698_v60 = vld [vmem:[%s5260_s6 + $0x40] sm:$0xff]  ;;  %v3699_v61 = vld [vmem:[%s5260_s6 + $0x48] sm:$0xff] }
0x108f   : > { %v4839_v0 = vpack.c.bf16 %v4835_v63, %v4835_v63 }
0x1091   : > { %4063 = vmatmul.mubr.msk.bf16.vlgmr.msra.gmra.mrb[52].mxu0 %vm673_vm1, %v4839_v0 }
0x1092   : > { %4078 = vmatprep.mubr.msk.bf16.mxu0 %vm4311_vm0, %v4310_v3  ;;  %4075 = vmatpush3.bf16.msra.mxu0 %v2006_v27 }
0x1093   : > { %4076 = vmatprep.subr.bf16.mxu0 %v4310_v3 }
0x1096   : > { %4077 = vmatpush3.bf16.msra.mxu0 %v2007_v29 }
0x1097   : > { %4088 = vmatprep.subr.bf16.mxu0 %v4310_v3 }
0x1099   : > { %4079 = vmatmul.mubr.msk.bf16.vlgmr.msra.gmra.mrb[56].mxu0 %vm673_vm1, %v4808_v49 }
0x109a   : > { %4090 = vmatprep.mubr.msk.bf16.mxu0 %vm4311_vm0, %v4310_v3 }
0x1164   : > { %v2052_v14 = vpop.f32.mrb[52].mxu0 }
0x1165   : > { %v2053_v15 = vadd.f32 %v3662_v11, %v2052_v14  ;;  %v4064_v16 = vpop.f32.mrb[53].mxu0  ;;  %v3685_v14 = vld [vmem:[%s5261_s7 + $0x1] ss:$0 sm:$0xff] }
0x1166   : > { %v2055_v17 = vpop.f32.mrb[54].mxu0 }
0x1167   : > { %v2157_v19 = vpack.c.bf16 %v2053_v15, %v2053_v15  ;;  %v4065_v20 = vpop.f32.mrb[55].mxu0 }
0x1168   : > { %v3682_v20 = vld [vmem:[%s5260_s6 + $0x130] sm:$0xff] }
0x1169   : > { %4085 = vmatmul.mubr.msk.bf16.vlgmr.msra.gmra.mrb[48].mxu1 %vm815_vm2, %v2157_v19  ;;  %v3681_v19 = vld [vmem:[%s5260_s6 + $0x128] sm:$0xff] }
0x116a   : > { %4095 = vmatpush3.bf16.msra.mxu1 %v2273_v18  ;;  %4098 = vmatprep.mubr.msk.bf16.mxu1 %vm4311_vm0, %v4310_v3  ;;  %v3680_v18 = vld [vmem:[%s5260_s6 + $0x120] sm:$0xff] }
0x116b   : > { %4096 = vmatprep.subr.bf16.mxu1 %v4310_v3  ;;  %v2287_v21 = vpack.c.bf16 %v3681_v19, %v3680_v18 }
0x116c   : > { %v2151_v45 = vpop.f32.mrb[56].mxu0 }
0x116d   : > { %v4080_v46 = vpop.f32.mrb[57].mxu0  ;;  %v2152_v34 = vadd.f32 %v3668_v48, %v2151_v45 }
0x116e   : > { %4097 = vmatpush3.bf16.msra.mxu1 %v2274_v23  ;;  %v2154_v47 = vpop.f32.mrb[58].mxu0  ;;  %v2288_v23 = vpack.c.bf16 %v3683_v22, %v3682_v20 }
0x116f   : > { %4110 = vmatprep.subr.bf16.mxu1 %v4310_v3  ;;  %v4081_v50 = vpop.f32.mrb[59].mxu0  ;;  %v2218_v51 = vpack.c.bf16 %v2152_v34, %v2152_v34  ;;  %v2266_v47 = vld [vmem:[%s5262_s8] sm:$0xff] }
0x1170   : > { %v2267_v48 = vpack.c.bf16 %v2266_v47, %v2266_v47 }
0x1171   : > { %4099 = vmatmul.mubr.msk.bf16.vlgmr.msra.gmra.mrb[52].mxu1 %vm673_vm1, %v4839_v0  ;;  %v2223_v52 = vsel %vm881_vm4, %v2218_v51, 0 }
0x1172   : > { %4114 = vmatprep.mubr.msk.bf16.mxu1 %vm4311_vm0, %v4310_v3  ;;  %4089 = vmatpush3.bf16.msra.mxu0 %v2223_v52  ;;  %v2595_v52 = vsel %vm1208_vm6, %v2267_v48, 0 }
0x1173   : > { %4102 = vmatprep.subr.bf16.mxu0 %v4310_v3  ;;  %4111 = vmatpush3.bf16.msra.mxu1 %v2287_v21 }
0x1174   : > { %4112 = vmatprep.subr.bf16.mxu1 %v4310_v3 }
0x1177   : > { %4113 = vmatpush3.bf16.msra.mxu1 %v2288_v23 }
0x1178   : > { %4124 = vmatprep.subr.bf16.mxu1 %v4310_v3 }
0x117a   : > { %4115 = vmatmul.mubr.msk.bf16.vlgmr.msra.gmra.mrb[56].mxu1 %vm673_vm1, %v4808_v49 }
0x117b   : > { %4126 = vmatprep.mubr.msk.bf16.mxu1 %vm4311_vm0, %v4310_v3 }
0x123c   : > { %v2199_v30 = vpop.f32.mrb[48].mxu1 }
0x123d   : > { %v2205_v31 = vmul.f32 0.35355338, %v2199_v30  ;;  %v4086_v32 = vpop.f32.mrb[49].mxu1  ;;  %v3691_v30 = vld [vmem:[%s5261_s7 + $0x9] ss:$0 sm:$0xff] }
0x123e   : > { %v2202_v33 = vpop.f32.mrb[50].mxu1 }
0x123f   : > { %v4087_v35 = vpop.f32.mrb[51].mxu1  ;;  %v2206_v36 = vsel %vm863_vm3, %v2205_v31, -inf }
0x1240   : > { %2207 = vmax.xlane.f32.xlu0 %v2206_v36 }
0x1244   : > { %v2331_v37 = vpop.f32.mrb[52].mxu1 }
0x1245   : > { %v4100_v38 = vpop.f32.mrb[53].mxu1  ;;  %v2332_v16 = vadd.f32 %v3685_v14, %v2331_v37 }
0x1246   : > { %v2334_v40 = vpop.f32.mrb[54].mxu1 }
0x1247   : > { %v4101_v41 = vpop.f32.mrb[55].mxu1  ;;  %v2433_v17 = vpack.c.bf16 %v2332_v16, %v2332_v16 }
0x12cd   : > { %v2208_v42 = vpop.xlane.xlu0 %2207 }
0x12ce   : > { %v2209_v43 = vsub.f32 %v2205_v31, %v2208_v42  ;;  %v2427_v31 = vpop.f32.mrb[56].mxu1 }
0x12cf   : > { %v2428_v32 = vadd.f32 %v3691_v30, %v2427_v31  ;;  %v4116_v33 = vpop.f32.mrb[57].mxu1 }
0x12d0   : > { %v2210_v39 = vmul.f32 1.442695, %v2209_v43  ;;  %v2430_v35 = vpop.f32.mrb[58].mxu1 }
0x12d1   : > { %v2494_v36 = vpack.c.bf16 %v2428_v32, %v2428_v32  ;;  %v4117_v37 = vpop.f32.mrb[59].mxu1 }
0x12d2   : > { %4282 = vpow2.f32 %v2210_v39  ;;  %v3707_v37 = vld [vmem:[%s5260_s6 + $0x148] sm:$0xff] }
0x12d3   : > { %v2499_v38 = vsel %vm881_vm4, %v2494_v36, 0  ;;  %v3706_v36 = vld [vmem:[%s5260_s6 + $0x140] sm:$0xff] }
0x12d4   : > { %4125 = vmatpush3.bf16.msra.mxu1 %v2499_v38  ;;  %v3708_v38 = vld [vmem:[%s5260_s6 + $0x150] sm:$0xff] }
0x12d5   : > { %4136 = vmatprep.subr.bf16.mxu1 %v4310_v3 }
0x12dc   : > { %v4283_v44 = vpop.eup %4282 }
0x12dd   : > { %v2212_v9 = vsel %vm863_vm3, %v4283_v44, 0.0 }
0x12de   : > { %2213 = vadd.xlane.f32.xlu1 %v2212_v9 }
0x136b   : > { %v2214_v53 = vpop.xlane.xlu1 %2213 }
0x136c   : > { %4284 = vrcp.f32 %v2214_v53  ;;  %v3702_v53 = vld [vmem:[%s5260_s6 + $0xc0] sm:$0xff] }
0x136d   : > { %v2649_v55 = vpack.c.bf16 %v3703_v54, %v3702_v53 }
0x1376   : > { %v4285_v56 = vpop.eup %4284 }
0x1377   : > { %v2216_v57 = vmul.f32 %v4285_v56, %v4283_v44  ;;  %v3695_v44 = vld [vmem:[%s5262_s8 + $0x8] sm:$0xff] }
0x1378   : > { %v2544_v9 = vpack.c.bf16 %v3695_v44, %v3695_v44 }
0x1379   : > { %v2217_v59 = vpack.c.bf16 %v2216_v57, %v2216_v57  ;;  %v3704_v57 = vld [vmem:[%s5260_s6 + $0xd0] sm:$0xff] }
0x137a   : > { %v2549_v45 = vsel %vm1208_vm6, %v2544_v9, 0 }
0x137b   : > { %4091 = vmatmul.mubr.msk.bf16.vlgmr.msra.gmra.mrb[60].mxu0 %vm877_vm5, %v2217_v59 }
0x137c   : > { %4103 = vmatpush3.bf16.msra.mxu0 %v2280_v58  ;;  %4106 = vmatprep.mubr.msk.bf16.mxu0 %vm4311_vm0, %v4310_v3  ;;  %v3705_v58 = vld [vmem:[%s5260_s6 + $0xd8] sm:$0xff] }
0x137d   : > { %4104 = vmatprep.subr.bf16.mxu0 %v4310_v3  ;;  %v2650_v59 = vpack.c.bf16 %v3705_v58, %v3704_v57 }
0x1380   : > { %4105 = vmatpush3.bf16.msra.mxu0 %v2281_v62 }
0x1381   : > { %4118 = vmatprep.subr.bf16.mxu0 %v4310_v3 }
0x1383   : > { %4107 = vmatmul.mubr.msk.bf16.vlgmr.msra.gmra.mrb[64].mxu0 %vm673_vm1, %v4808_v49 }
0x1384   : > { %4120 = vmatprep.mubr.msk.bf16.mxu0 %vm4311_vm0, %v4310_v3 }
0x144e   : > { %v4920_v1 = vpop.f32.mrb[60].mxu0 }
0x144f   : > { %v4092_v2 = vpop.f32.mrb[61].mxu0  ;;  %v2265_v56 = vpack.c.bf16 %v4920_v1, %v4920_v1  ;;  %v2642_v1 = vpack.c.bf16 %v3699_v61, %v3698_v60  ;;  %v3721_v60 = vld [vmem:[%s5262_s8 + $0x10] sm:$0xff] }
0x1450   : > { %v2262_v4 = vpop.f32.mrb[62].mxu0  ;;  %v2913_v61 = vpack.c.bf16 %v3721_v60, %v3721_v60 }
0x1451   : > { %v4093_v5 = vpop.f32.mrb[63].mxu0 }
0x1452   : > { %v3700_v5 = vld [vmem:[%s5260_s6 + $0x50] sm:$0xff] }
0x1456   : > { %v2379_v10 = vpop.f32.mrb[64].mxu0 }
0x1457   : > { %v2380_v7 = vadd.f32 %v3688_v6, %v2379_v10  ;;  %v4108_v8 = vpop.f32.mrb[65].mxu0  ;;  %v3701_v6 = vld [vmem:[%s5260_s6 + $0x58] sm:$0xff] }
0x1458   : > { %v2382_v11 = vpop.f32.mrb[66].mxu0  ;;  %v2643_v8 = vpack.c.bf16 %v3701_v6, %v3700_v5 }
0x1459   : > { %v2434_v12 = vpack.c.bf16 %v2380_v7, %v2380_v7  ;;  %v4109_v13 = vpop.f32.mrb[67].mxu0 }
0x145b   : > { %v2439_v15 = vsel %vm815_vm2, %v2434_v12, 0 }
0x145c   : > { %4119 = vmatpush3.bf16.xpose.msra.mxu0 %v2439_v15  ;;  %v3714_v15 = vld [vmem:[%s5261_s7 + $0x6] ss:$0 sm:$0xff] }
0x145d   : > { %4130 = vmatprep.subr.bf16.mxu0 %v4310_v3 }
0x1463   : > { %4121 = vmatmul.mubr.msk.bf16.vlgmr.msra.gmra.mrb[68].mxu0 %vm815_vm2, %v2433_v17 }
0x1464   : > { %4132 = vmatprep.mubr.msk.bf16.mxu0 %vm4311_vm0, %v4310_v3  ;;  %4131 = vmatpush3.bf16.msra.mxu0 %v2549_v45 }
0x1465   : > { %4142 = vmatprep.subr.bf16.mxu0 %v4310_v3 }
0x1536   : > { %v2475_v24 = vpop.f32.mrb[68].mxu0 }
0x1537   : > { %v2481_v25 = vmul.f32 0.35355338, %v2475_v24  ;;  %v4122_v26 = vpop.f32.mrb[69].mxu0 }
0x1538   : > { %v2478_v27 = vpop.f32.mrb[70].mxu0 }
0x1539   : > { %v4123_v28 = vpop.f32.mrb[71].mxu0  ;;  %v2482_v29 = vsel %vm863_vm3, %v2481_v25, -inf }
0x153a   : > { %2483 = vmax.xlane.f32.xlu0 %v2482_v29  ;;  %v3711_v28 = vld [vmem:[%s5261_s7 + $0x2] ss:$0 sm:$0xff] }
0x15c7   : > { %v2484_v40 = vpop.xlane.xlu0 %2483 }
0x15c8   : > { %v2485_v41 = vsub.f32 %v2481_v25, %v2484_v40  ;;  %v2656_v40 = vpack.c.bf16 %v3707_v37, %v3706_v36 }
0x15ca   : > { %v2486_v42 = vmul.f32 1.442695, %v2485_v41  ;;  %v3709_v41 = vld [vmem:[%s5260_s6 + $0x158] sm:$0xff] }
0x15cc   : > { %4286 = vpow2.f32 %v2486_v42  ;;  %v2657_v42 = vpack.c.bf16 %v3709_v41, %v3708_v38 }
0x15d6   : > { %v4287_v43 = vpop.eup %4286 }
0x15d7   : > { %v2488_v39 = vsel %vm863_vm3, %v4287_v43, 0.0 }
0x15d8   : > { %2489 = vadd.xlane.f32.xlu1 %v2488_v39 }
0x1665   : > { %v2490_v46 = vpop.xlane.xlu1 %2489 }
0x1666   : > { %4288 = vrcp.f32 %v2490_v46 }
0x1670   : > { %v4289_v50 = vpop.eup %4288 }
0x1671   : > { %v2492_v34 = vmul.f32 %v4289_v50, %v4287_v43 }
0x1673   : > { %v2493_v51 = vpack.c.bf16 %v2492_v34, %v2492_v34 }
0x1675   : > { %4127 = vmatmul.mubr.msk.bf16.vlgmr.msra.gmra.mrb[60].mxu1 %vm877_vm5, %v2493_v51 }
0x1676   : > { %4137 = vmatpush3.bf16.msra.mxu1 %v2595_v52  ;;  %4138 = vmatprep.mubr.msk.bf16.mxu1 %vm4311_vm0, %v4310_v3 }
0x1677   : > { %4150 = vmatprep.subr.bf16.mxu1 %v4310_v3 }
0x167d   : > { %4139 = vmatmul.mubr.msk.bf16.vlgmr.msra.gmra.mrb[64].mxu1 %vm815_vm2, %v2265_v56 }
0x167e   : > { %4151 = vmatpush3.bf16.msra.mxu1 %v2649_v55  ;;  %4154 = vmatprep.mubr.msk.bf16.mxu1 %vm4311_vm0, %v4310_v3  ;;  %v3717_v55 = vld [vmem:[%s5261_s7 + $0xa] ss:$0 sm:$0xff] }
0x167f   : > { %4152 = vmatprep.subr.bf16.mxu1 %v4310_v3 }
0x1682   : > { %4153 = vmatpush3.bf16.msra.mxu1 %v2650_v59 }
0x1683   : > { %4166 = vmatprep.subr.bf16.mxu1 %v4310_v3 }
0x1685   : > { %4155 = vmatmul.mubr.msk.bf16.vlgmr.msra.gmra.mrb[68].mxu1 %vm673_vm1, %v4808_v49 }
0x1686   : > { %4168 = vmatprep.mubr.msk.bf16.mxu1 %vm4311_vm0, %v4310_v3 }
0x1748   : > { %v2535_v62 = vpop.f32.mrb[60].mxu1 }
0x1749   : > { %v2541_v2 = vpack.c.bf16 %v2535_v62, %v2535_v62  ;;  %v4128_v4 = vpop.f32.mrb[61].mxu1  ;;  %v2918_v62 = vsel %vm1208_vm6, %v2913_v61, 0 }
0x174a   : > { %v2538_v10 = vpop.f32.mrb[62].mxu1  ;;  %v3724_v4 = vld [vmem:[%s5260_s6 + $0x68] sm:$0xff] }
0x174b   : > { %v4129_v7 = vpop.f32.mrb[63].mxu1  ;;  %4133 = vmatmul.mubr.msk.bf16.vlgmr.msra.gmra.mrb[72].mxu0 %vm815_vm2, %v2541_v2  ;;  %v3723_v2 = vld [vmem:[%s5260_s6 + $0x60] sm:$0xff] }
0x174c   : > { %4143 = vmatpush3.bf16.msra.mxu0 %v2642_v1  ;;  %4146 = vmatprep.mubr.msk.bf16.mxu0 %vm4311_vm0, %v4310_v3  ;;  %v2966_v10 = vpack.c.bf16 %v3724_v4, %v3723_v2 }
0x174d   : > { %4144 = vmatprep.subr.bf16.mxu0 %v4310_v3 }
0x1750   : > { %v2631_v11 = vpop.f32.mrb[64].mxu1  ;;  %4145 = vmatpush3.bf16.msra.mxu0 %v2643_v8  ;;  %v3725_v8 = vld [vmem:[%s5260_s6 + $0x70] sm:$0xff] }
0x1751   : > { %v4140_v12 = vpop.f32.mrb[65].mxu1  ;;  %4158 = vmatprep.subr.bf16.mxu0 %v4310_v3 }
0x1752   : > { %v2634_v13 = vpop.f32.mrb[66].mxu1 }
0x1753   : > { %v4141_v14 = vpop.f32.mrb[67].mxu1  ;;  %4147 = vmatmul.mubr.msk.bf16.vlgmr.msra.gmra.mrb[76].mxu0 %vm673_vm1, %v4839_v0  ;;  %v3727_v13 = vld [vmem:[%s5260_s6 + $0xe0] sm:$0xff] }
0x1754   : > { %4162 = vmatprep.mubr.msk.bf16.mxu0 %vm4311_vm0, %v4310_v3  ;;  %4159 = vmatpush3.bf16.msra.mxu0 %v2656_v40  ;;  %v3728_v14 = vld [vmem:[%s5260_s6 + $0xe8] sm:$0xff] }
0x1755   : > { %4160 = vmatprep.subr.bf16.mxu0 %v4310_v3 }
0x1758   : > { %v2748_v16 = vpop.f32.mrb[68].mxu1  ;;  %4161 = vmatpush3.bf16.msra.mxu0 %v2657_v42  ;;  %v3736_v42 = vld [vmem:[%s5261_s7 + $0x3] ss:$0 sm:$0xff] }
0x1759   : > { %v2749_v17 = vadd.f32 %v3714_v15, %v2748_v16  ;;  %v4156_v18 = vpop.f32.mrb[69].mxu1  ;;  %4172 = vmatprep.subr.bf16.mxu0 %v4310_v3  ;;  %v2973_v16 = vpack.c.bf16 %v3728_v14, %v3727_v13 }
0x175a   : > { %v2751_v19 = vpop.f32.mrb[70].mxu1 }
0x175b   : > { %v2803_v20 = vpack.c.bf16 %v2749_v17, %v2749_v17  ;;  %v4157_v21 = vpop.f32.mrb[71].mxu1  ;;  %4163 = vmatmul.mubr.msk.bf16.vlgmr.msra.gmra.mrb[80].mxu0 %vm673_vm1, %v4808_v49  ;;  %v3729_v19 = vld [vmem:[%s5260_s6 + $0xf0] sm:$0xff] }
0x175c   : > { %4174 = vmatprep.mubr.msk.bf16.mxu0 %vm4311_vm0, %v4310_v3 }
0x175d   : > { %v2808_v22 = vsel %vm815_vm2, %v2803_v20, 0 }
0x175e   : > { %4167 = vmatpush3.bf16.xpose.msra.mxu1 %v2808_v22 }
0x175f   : > { %4178 = vmatprep.subr.bf16.mxu1 %v4310_v3 }
0x181e   : > { %v2585_v23 = vpop.f32.mrb[72].mxu0 }
0x181f   : > { %v5020_v24 = vadd.f32 %v2631_v11, %v2585_v23  ;;  %v4134_v25 = vpop.f32.mrb[73].mxu0  ;;  %v3726_v11 = vld [vmem:[%s5260_s6 + $0x78] sm:$0xff] }
0x1820   : > { %v2588_v26 = vpop.f32.mrb[74].mxu0  ;;  %v2967_v12 = vpack.c.bf16 %v3726_v11, %v3725_v8 }
0x1821   : > { %v4135_v27 = vpop.f32.mrb[75].mxu0 }
0x1826   : > { %v2700_v29 = vpop.f32.mrb[76].mxu0 }
0x1827   : > { %v2701_v30 = vadd.f32 %v3711_v28, %v2700_v29  ;;  %v4148_v31 = vpop.f32.mrb[77].mxu0 }
0x1828   : > { %v2703_v32 = vpop.f32.mrb[78].mxu0 }
0x1829   : > { %v2802_v33 = vpack.c.bf16 %v2701_v30, %v2701_v30  ;;  %v4149_v35 = vpop.f32.mrb[79].mxu0 }
0x182b   : > { %4169 = vmatmul.mubr.msk.bf16.vlgmr.msra.gmra.mrb[72].mxu1 %vm815_vm2, %v2802_v33  ;;  %v3739_v33 = vld [vmem:[%s5261_s7 + $0x7] ss:$0 sm:$0xff] }
0x182c   : > { %4180 = vmatprep.mubr.msk.bf16.mxu1 %vm4311_vm0, %v4310_v3  ;;  %4179 = vmatpush3.bf16.msra.mxu1 %v2918_v62  ;;  %v3742_v62 = vld [vmem:[%s5261_s7 + $0xb] ss:$0 sm:$0xff] }
0x182d   : > { %4192 = vmatprep.subr.bf16.mxu1 %v4310_v3 }
0x182e   : > { %v2796_v52 = vpop.f32.mrb[80].mxu0 }
0x182f   : > { %v4164_v53 = vpop.f32.mrb[81].mxu0  ;;  %v2797_v57 = vadd.f32 %v3717_v55, %v2796_v52 }
0x1830   : > { %v2799_v54 = vpop.f32.mrb[82].mxu0 }
0x1831   : > { %v4165_v56 = vpop.f32.mrb[83].mxu0  ;;  %v2863_v58 = vpack.c.bf16 %v2797_v57, %v2797_v57 }
0x1833   : > { %v2868_v59 = vsel %vm881_vm4, %v2863_v58, 0 }
0x1834   : > { %4173 = vmatpush3.bf16.msra.mxu0 %v2868_v59 }
0x1835   : > { %4184 = vmatprep.subr.bf16.mxu0 %v4310_v3 }
0x18fe   : > { %v2844_v43 = vpop.f32.mrb[72].mxu1 }
0x18ff   : > { %v2850_v39 = vmul.f32 0.35355338, %v2844_v43  ;;  %v4170_v44 = vpop.f32.mrb[73].mxu1 }
0x1900   : > { %v2847_v9 = vpop.f32.mrb[74].mxu1  ;;  %v3731_v44 = vld [vmem:[%s5260_s6 + $0x160] sm:$0xff] }
0x1901   : > { %v4171_v45 = vpop.f32.mrb[75].mxu1  ;;  %v2851_v46 = vsel %vm863_vm3, %v2850_v39, -inf  ;;  %v3732_v9 = vld [vmem:[%s5260_s6 + $0x168] sm:$0xff] }
0x1902   : > { %2852 = vmax.xlane.f32.xlu0 %v2851_v46  ;;  %v3733_v45 = vld [vmem:[%s5260_s6 + $0x170] sm:$0xff]  ;;  %v2980_v46 = vpack.c.bf16 %v3732_v9, %v3731_v44  ;;  %v3386_v44 = vld [vmem:[%s5270_s16 + $0x20] sm:$0xff]  ;;  %v3387_v9 = vld [vmem:[%s5270_s16 + $0x28] sm:$0xff] }
0x198f   : > { %v2853_v47 = vpop.xlane.xlu0 %2852 }
0x1990   : > { %v2854_v48 = vsub.f32 %v2850_v39, %v2853_v47  ;;  %v3734_v47 = vld [vmem:[%s5260_s6 + $0x178] sm:$0xff] }
0x1992   : > { %v2855_v50 = vmul.f32 1.442695, %v2854_v48  ;;  %v2981_v48 = vpack.c.bf16 %v3734_v47, %v3733_v45  ;;  %v3400_v45 = vpack.c.bf16 %v3387_v9, %v3386_v44  ;;  %v3389_v47 = vld [vmem:[%s5270_s16 + $0x38] sm:$0xff] }
0x1994   : > { %4290 = vpow2.f32 %v2855_v50 }
0x199e   : > { %v4291_v34 = vpop.eup %4290 }
0x199f   : > { %v2857_v51 = vsel %vm863_vm3, %v4291_v34, 0.0 }
0x19a0   : > { %2858 = vadd.xlane.f32.xlu1 %v2857_v51 }
0x1a2d   : > { %v2859_v1 = vpop.xlane.xlu1 %2858 }
0x1a2e   : > { %4292 = vrcp.f32 %v2859_v1 }
0x1a38   : > { %v4293_v5 = vpop.eup %4292 }
0x1a39   : > { %v2861_v6 = vmul.f32 %v4293_v5, %v4291_v34 }
0x1a3b   : > { %v2862_v7 = vpack.c.bf16 %v2861_v6, %v2861_v6  ;;  %v3746_v6 = vld [vmem:[%s5262_s8 + $0x18] sm:$0xff] }
0x1a3d   : > { %4175 = vmatmul.mubr.msk.bf16.vlgmr.msra.gmra.mrb[84].mxu0 %vm877_vm5, %v2862_v7 }
0x1a3e   : > { %4185 = vmatpush3.bf16.msra.mxu0 %v2966_v10  ;;  %4188 = vmatprep.mubr.msk.bf16.mxu0 %vm4311_vm0, %v4310_v3  ;;  %v3237_v10 = vpack.c.bf16 %v3746_v6, %v3746_v6  ;;  %v3396_v6 = vld [vmem:[%s5270_s16 + $0x70] sm:$0xff] }
0x1a3f   : > { %4186 = vmatprep.subr.bf16.mxu0 %v4310_v3 }
0x1a40   : > { %v3242_v7 = vsel %vm1208_vm6, %v3237_v10, 0  ;;  %v3397_v10 = vld [vmem:[%s5270_s16 + $0x78] sm:$0xff] }
0x1a42   : > { %4187 = vmatpush3.bf16.msra.mxu0 %v2967_v12 }
0x1a43   : > { %4200 = vmatprep.subr.bf16.mxu0 %v4310_v3 }
0x1a45   : > { %4189 = vmatmul.mubr.msk.bf16.vlgmr.msra.gmra.mrb[88].mxu0 %vm673_vm1, %v4839_v0  ;;  %v3730_v0 = vld [vmem:[%s5260_s6 + $0xf8] sm:$0xff] }
0x1a46   : > { %4204 = vmatprep.mubr.msk.bf16.mxu0 %vm4311_vm0, %v4310_v3  ;;  %v2974_v22 = vpack.c.bf16 %v3730_v0, %v3729_v19  ;;  %4201 = vmatpush3.bf16.msra.mxu0 %v2980_v46  ;;  %v3748_v0 = vld [vmem:[%s5263_s9] ss:$0 sm:$0xff]  ;;  %v3388_v46 = vld [vmem:[%s5270_s16 + $0x30] sm:$0xff] }
0x1a47   : > { %4202 = vmatprep.subr.bf16.mxu0 %v4310_v3 }
0x1a4a   : > { %4203 = vmatpush3.bf16.msra.mxu0 %v2981_v48  ;;  %v3401_v48 = vpack.c.bf16 %v3389_v47, %v3388_v46 }
0x1a4b   : > { %4214 = vmatprep.subr.bf16.mxu0 %v4310_v3 }
0x1a4d   : > { %4205 = vmatmul.mubr.msk.bf16.vlgmr.msra.gmra.mrb[92].mxu0 %vm673_vm1, %v4808_v49 }
0x1a4e   : > { %4216 = vmatprep.mubr.msk.bf16.mxu0 %vm4311_vm0, %v4310_v3 }
0x1b10   : > { %v2904_v15 = vpop.f32.mrb[84].mxu0 }
0x1b11   : > { %v2910_v17 = vpack.c.bf16 %v2904_v15, %v2904_v15  ;;  %v4176_v18 = vpop.f32.mrb[85].mxu0 }
0x1b12   : > { %v2907_v20 = vpop.f32.mrb[86].mxu0 }
0x1b13   : > { %v4177_v21 = vpop.f32.mrb[87].mxu0  ;;  %4181 = vmatmul.mubr.msk.bf16.vlgmr.msra.gmra.mrb[76].mxu1 %vm815_vm2, %v2910_v17 }
0x1b14   : > { %4193 = vmatpush3.bf16.msra.mxu1 %v2973_v16  ;;  %4196 = vmatprep.mubr.msk.bf16.mxu1 %vm4311_vm0, %v4310_v3 }
0x1b15   : > { %4194 = vmatprep.subr.bf16.mxu1 %v4310_v3 }
0x1b18   : > { %v3024_v23 = vpop.f32.mrb[88].mxu0  ;;  %4195 = vmatpush3.bf16.msra.mxu1 %v2974_v22 }
0x1b19   : > { %v4190_v25 = vpop.f32.mrb[89].mxu0  ;;  %4208 = vmatprep.subr.bf16.mxu1 %v4310_v3  ;;  %v3025_v43 = vadd.f32 %v3736_v42, %v3024_v23  ;;  %v3384_v42 = vld [vmem:[%s5270_s16 + $0x10] sm:$0xff] }
0x1b1a   : > { %v3027_v26 = vpop.f32.mrb[90].mxu0 }
0x1b1b   : > { %v4191_v27 = vpop.f32.mrb[91].mxu0  ;;  %4197 = vmatmul.mubr.msk.bf16.vlgmr.msra.gmra.mrb[80].mxu1 %vm673_vm1, %v4808_v49  ;;  %v3126_v39 = vpack.c.bf16 %v3025_v43, %v3025_v43  ;;  %v3385_v43 = vld [vmem:[%s5270_s16 + $0x18] sm:$0xff] }
0x1b1c   : > { %4210 = vmatprep.mubr.msk.bf16.mxu1 %vm4311_vm0, %v4310_v3 }
0x1b20   : > { %v3120_v49 = vpop.f32.mrb[92].mxu0 }
0x1b21   : > { %v4206_v60 = vpop.f32.mrb[93].mxu0  ;;  %v3121_v2 = vadd.f32 %v3742_v62, %v3120_v49 }
0x1b22   : > { %v3123_v61 = vpop.f32.mrb[94].mxu0  ;;  %v3750_v60 = vld [vmem:[%s5267_s13] ss:$0 sm:$0xff] }
0x1b23   : > { %v4207_v1 = vpop.f32.mrb[95].mxu0  ;;  %v3187_v4 = vpack.c.bf16 %v3121_v2, %v3121_v2  ;;  %v3394_v2 = vld [vmem:[%s5270_s16 + $0x60] sm:$0xff] }
0x1b25   : > { %v3192_v5 = vsel %vm881_vm4, %v3187_v4, 0  ;;  %v3395_v4 = vld [vmem:[%s5270_s16 + $0x68] sm:$0xff] }
0x1b26   : > { %4215 = vmatpush3.bf16.msra.mxu0 %v3192_v5  ;;  %v3404_v5 = vpack.c.bf16 %v3395_v4, %v3394_v2 }
0x1b27   : > { %4226 = vmatprep.subr.bf16.mxu0 %v4310_v3 }
0x1be6   : > { %v2954_v28 = vpop.f32.mrb[76].mxu1 }
0x1be7   : > { %v5101_v29 = vadd.f32 %v2954_v28, %v5020_v24  ;;  %v4182_v30 = vpop.f32.mrb[77].mxu1 }
0x1be8   : > { %v2957_v31 = vpop.f32.mrb[78].mxu1 }
0x1be9   : > { %v4183_v32 = vpop.f32.mrb[79].mxu1 }
0x1bee   : > { %v3072_v35 = vpop.f32.mrb[80].mxu1 }
0x1bef   : > { %v3073_v36 = vadd.f32 %v3739_v33, %v3072_v35  ;;  %v4198_v37 = vpop.f32.mrb[81].mxu1  ;;  %v3325_v35 = vld [vmem:[%s5268_s14 + $0x8] sm:$0xff] }
0x1bf0   : > { %v3075_v38 = vpop.f32.mrb[82].mxu1  ;;  %v3327_v37 = vld [vmem:[%s5268_s14 + $0x18] sm:$0xff] }
0x1bf1   : > { %v3127_v40 = vpack.c.bf16 %v3073_v36, %v3073_v36  ;;  %v4199_v41 = vpop.f32.mrb[83].mxu1 }
0x1bf2   : > { %v3383_v41 = vld [vmem:[%s5270_s16 + $0x8] sm:$0xff] }
0x1bf3   : > { %v3132_v24 = vsel %vm815_vm2, %v3127_v40, 0  ;;  %v3382_v40 = vld [vmem:[%s5270_s16] sm:$0xff] }
0x1bf4   : > { %4209 = vmatpush3.bf16.xpose.msra.mxu1 %v3132_v24  ;;  %v3398_v24 = vpack.c.bf16 %v3383_v41, %v3382_v40 }
0x1bf5   : > { %4220 = vmatprep.subr.bf16.mxu1 %v4310_v3 }
0x1bfb   : > { %4211 = vmatmul.mubr.msk.bf16.vlgmr.msra.gmra.mrb[84].mxu1 %vm815_vm2, %v3126_v39  ;;  %v3399_v39 = vpack.c.bf16 %v3385_v43, %v3384_v42 }
0x1bfc   : > { %4222 = vmatprep.mubr.msk.bf16.mxu1 %vm4311_vm0, %v4310_v3  ;;  %4221 = vmatpush3.bf16.msra.mxu1 %v3242_v7  ;;  %v3405_v7 = vpack.c.bf16 %v3397_v10, %v3396_v6 }
0x1bfd   : > { %4234 = vmatprep.subr.bf16.mxu1 %v4310_v3 }
0x1cce   : > { %v3168_v50 = vpop.f32.mrb[84].mxu1 }
0x1ccf   : > { %v3174_v34 = vmul.f32 0.35355338, %v3168_v50  ;;  %v4212_v51 = vpop.f32.mrb[85].mxu1  ;;  %v3390_v50 = vld [vmem:[%s5270_s16 + $0x40] sm:$0xff] }
0x1cd0   : > { %v3171_v52 = vpop.f32.mrb[86].mxu1 }
0x1cd1   : > { %v4213_v53 = vpop.f32.mrb[87].mxu1  ;;  %v3175_v54 = vsel %vm863_vm3, %v3174_v34, -inf  ;;  %v3392_v52 = vld [vmem:[%s5270_s16 + $0x50] sm:$0xff] }
0x1cd2   : > { %3176 = vmax.xlane.f32.xlu0 %v3175_v54  ;;  %v3393_v53 = vld [vmem:[%s5270_s16 + $0x58] sm:$0xff] }
0x1cd3   : > { %v3403_v54 = vpack.c.bf16 %v3393_v53, %v3392_v52 }
0x1d5f   : > { %v3177_v55 = vpop.xlane.xlu0 %3176 }
0x1d60   : > { %v3178_v56 = vsub.f32 %v3174_v34, %v3177_v55  ;;  %v3391_v34 = vld [vmem:[%s5270_s16 + $0x48] sm:$0xff] }
0x1d61   : > { %v3402_v51 = vpack.c.bf16 %v3391_v34, %v3390_v50 }
0x1d62   : > { %v3179_v57 = vmul.f32 1.442695, %v3178_v56 }
0x1d64   : > { %4294 = vpow2.f32 %v3179_v57 }
0x1d6e   : > { %v4295_v58 = vpop.eup %4294 }
0x1d6f   : > { %v3181_v59 = vsel %vm863_vm3, %v4295_v58, 0.0 }
0x1d70   : > { %3182 = vadd.xlane.f32.xlu1 %v3181_v59  ;;  %v3749_v59 = vld [vmem:[%s5266_s12] ss:$0 sm:$0xff] }
0x1dfd   : > { %v3183_v8 = vpop.xlane.xlu1 %3182 }
0x1dfe   : > { %4296 = vrcp.f32 %v3183_v8  ;;  %v3751_v8 = vld [vmem:[%s5269_s15] ss:$0 sm:$0xff] }
0x1e08   : > { %v4297_v11 = vpop.eup %4296 }
0x1e09   : > { %v3185_v12 = vmul.f32 %v4297_v11, %v4295_v58 }
0x1e0b   : > { %v3186_v13 = vpack.c.bf16 %v3185_v12, %v3185_v12 }
0x1e0d   : > { %4217 = vmatmul.mubr.msk.bf16.vlgmr.msra.gmra.mrb[96].mxu0 %vm877_vm5, %v3186_v13 }
0x1e0e   : > { %4230 = vmatprep.mubr.msk.bf16.mxu0 %vm4311_vm0, %v4310_v3 }
0x1ee0   : > { %v3228_v14 = vpop.f32.mrb[96].mxu0 }
0x1ee1   : > { %v3234_v15 = vpack.c.bf16 %v3228_v14, %v3228_v14  ;;  %v4218_v16 = vpop.f32.mrb[97].mxu0 }
0x1ee2   : > { %v3231_v17 = vpop.f32.mrb[98].mxu0 }
0x1ee3   : > { %v4219_v18 = vpop.f32.mrb[99].mxu0  ;;  %4223 = vmatmul.mubr.msk.bf16.vlgmr.msra.gmra.mrb[88].mxu1 %vm815_vm2, %v3234_v15  ;;  %v3753_v17 = vld [vmem:[%s5271_s17] ss:$0 sm:$0xff] }
0x1ee4   : > { %4250 = vmatprep.mubr.msk.bf16.mxu1 %vm4311_vm0, %v4310_v3  ;;  %4235 = vmatpush3.bf16.msra.mxu1 %v3398_v24 }
0x1ee5   : > { %4236 = vmatprep.subr.bf16.mxu1 %v4310_v3 }
0x1ee8   : > { %4237 = vmatpush3.bf16.msra.mxu1 %v3399_v39 }
0x1ee9   : > { %4238 = vmatprep.subr.bf16.mxu1 %v4310_v3 }
0x1eec   : > { %4239 = vmatpush3.bf16.msra.mxu1 %v3400_v45 }
0x1eed   : > { %4240 = vmatprep.subr.bf16.mxu1 %v4310_v3 }
0x1ef0   : > { %4241 = vmatpush3.bf16.msra.mxu1 %v3401_v48 }
0x1ef1   : > { %4242 = vmatprep.subr.bf16.mxu1 %v4310_v3 }
0x1ef4   : > { %4243 = vmatpush3.bf16.msra.mxu1 %v3402_v51 }
0x1ef5   : > { %4244 = vmatprep.subr.bf16.mxu1 %v4310_v3 }
0x1ef8   : > { %4245 = vmatpush3.bf16.msra.mxu1 %v3403_v54 }
0x1ef9   : > { %4246 = vmatprep.subr.bf16.mxu1 %v4310_v3 }
0x1efc   : > { %4247 = vmatpush3.bf16.msra.mxu1 %v3404_v5 }
0x1efd   : > { %4248 = vmatprep.subr.bf16.mxu1 %v4310_v3 }
0x1f00   : > { %4249 = vmatpush3.bf16.msra.mxu1 %v3405_v7 }
0x1fb6   : > { %v3278_v19 = vpop.f32.mrb[88].mxu1 }
0x1fb7   : > { %v3284_v20 = vadd.f32 %v3278_v19, %v5101_v29  ;;  %v4224_v21 = vpop.f32.mrb[89].mxu1  ;;  %v3324_v29 = vld [vmem:[%s5268_s14] sm:$0xff] }
0x1fb8   : > { %v3281_v22 = vpop.f32.mrb[90].mxu1  ;;  %v3328_v36 = vpack.c.bf16 %v3325_v35, %v3324_v29  ;;  %v3754_v35 = vld [vmem:[%s5272_s18] ss:$0 sm:$0xff] }
0x1fb9   : > { %v3292_v23 = vadd.f32 %v3748_v0, %v3284_v20  ;;  %v4225_v25 = vpop.f32.mrb[91].mxu1 }
0x1fba   : > { %4227 = vmatpush3.bf16.msra.mxu0 %v3328_v36 }
0x1fbb   : > { %v3293_v26 = vadd.f32 %v3292_v23, %v4835_v63  ;;  %4228 = vmatprep.subr.bf16.mxu0 %v4310_v3  ;;  %v3326_v63 = vld [vmem:[%s5268_s14 + $0x10] sm:$0xff] }
0x1fbc   : > { %v3329_v38 = vpack.c.bf16 %v3327_v37, %v3326_v63  ;;  %v3755_v63 = vld [vmem:[%s5273_s19] ss:$0 sm:$0xff] }
0x1fbd   : > { %v3296_v27 = vsel %vm1957_vm7, %v3293_v26, 0.0 }
0x1fbe   : > { %3297 = vadd.xlane.f32.xlu0 %v3296_v27  ;;  %4229 = vmatpush3.bf16.msra.mxu0 %v3329_v38 }
0x204b   : > { %v3298_v28 = vpop.xlane.xlu0 %3297 }
0x204c   : > { %v3299_v30 = vmul.f32 0.03125, %v3298_v28 }
0x204e   : > { %v3300_v31 = vsub.f32 %v3293_v26, %v3299_v30 }
0x2050   : > { %v3301_v32 = vmul.f32 %v3300_v31, %v3300_v31 }
0x2052   : > { %v3302_v33 = vsel %vm1957_vm7, %v3301_v32, 0.0 }
0x2053   : > { %3303 = vadd.xlane.f32.xlu1 %v3302_v33 }
0x20e0   : > { %v3304_v55 = vpop.xlane.xlu1 %3303 }
0x20e1   : > { %v3305_v56 = vmul.f32 0.03125, %v3304_v55 }
0x20e3   : > { %v3306_v57 = vadd.f32 1e-05, %v3305_v56 }
0x20e5   : > { %4298 = vrsqrt.f32 %v3306_v57 }
0x20ef   : > { %v4299_v58 = vpop.eup %4298 }
0x20f0   : > { %v3308_v49 = vmul.f32 %v4299_v58, %v3300_v31 }
0x20f2   : > { %v3315_v61 = vmul.f32 %v3749_v59, %v3308_v49 }
0x20f4   : > { %v3322_v62 = vadd.f32 %v3750_v60, %v3315_v61 }
0x20f6   : > { %v3323_v1 = vpack.c.bf16 %v3322_v62, %v3322_v62 }
0x20f8   : > { %4231 = vmatmul.mubr.msk.bf16.vlgmr.msra.gmra.mrb[100].mxu0 %vm673_vm1, %v3323_v1 }
0x21cb   : > { %v3374_v11 = vpop.f32.mrb[100].mxu0 }
0x21cc   : > { %v3375_v12 = vadd.f32 %v3751_v8, %v3374_v11  ;;  %v4232_v13 = vpop.f32.mrb[101].mxu0 }
0x21cd   : > { %v3377_v14 = vpop.f32.mrb[102].mxu0 }
0x21ce   : > { %v3380_v15 = vmax.f32 %v3375_v12, 0.0  ;;  %v4233_v3 = vpop.f32.mrb[103].mxu0 }
0x21d0   : > { %v3381_v16 = vpack.c.bf16 %v3380_v15, %v3380_v15 }
0x21d2   : > { %4251 = vmatmul.mubr.bf16.vlgmr.msra.gmra.mrb[92].mxu1 %v3381_v16 }
0x22a5   : > { %v3447_v18 = vpop.f32.mrb[92].mxu1 }
0x22a6   : > { %v3448_v19 = vadd.f32 %v3753_v17, %v3447_v18  ;;  %v4252_v0 = vpop.f32.mrb[93].mxu1 }
0x22a7   : > { %v3450_v20 = vpop.f32.mrb[94].mxu1 }
0x22a8   : > { %v4253_v21 = vpop.f32.mrb[95].mxu1  ;;  %v3453_v22 = vadd.f32 %v3448_v19, %v3322_v62 }
0x22aa   : > { %v3456_v23 = vsel %vm1957_vm7, %v3453_v22, 0.0 }
0x22ab   : > { %3457 = vadd.xlane.f32.xlu0 %v3456_v23 }
0x2338   : > { %v3458_v25 = vpop.xlane.xlu0 %3457 }
0x2339   : > { %v3459_v26 = vmul.f32 0.03125, %v3458_v25 }
0x233b   : > { %v3460_v27 = vsub.f32 %v3453_v22, %v3459_v26 }
0x233d   : > { %v3461_v28 = vmul.f32 %v3460_v27, %v3460_v27 }
0x233f   : > { %v3462_v30 = vsel %vm1957_vm7, %v3461_v28, 0.0 }
0x2340   : > { %3463 = vadd.xlane.f32.xlu1 %v3462_v30 }
0x23cd   : > { %v3464_v31 = vpop.xlane.xlu1 %3463 }
0x23ce   : > { %v3465_v32 = vmul.f32 0.03125, %v3464_v31 }
0x23d0   : > { %v3466_v33 = vadd.f32 1e-05, %v3465_v32 }
0x23d2   : > { %4300 = vrsqrt.f32 %v3466_v33 }
0x23dc   : > { %v4301_v29 = vpop.eup %4300 }
0x23dd   : > { %v3468_v36 = vmul.f32 %v4301_v29, %v3460_v27 }
0x23df   : > { %v3475_v37 = vmul.f32 %v3754_v35, %v3468_v36 }
0x23e1   : > { %v3482_v38 = vadd.f32 %v3755_v63, %v3475_v37 }
0x23e3   : > { %3483 = vst.msk [vmem:[%s641_s24] sm:$0xf] %vm1957_vm7, %v3482_v38 }
0x23e4 PF: > { %s30_s1 = sadd.s32 1, %s4308_s1  }
0x23e5   : > { %p27_p4 = scmp.ge.s32.totalorder %s30_s1, 4  }
0x23e7   :  { %29 = sbr.rel (!%p27_p4) target bundleno = 6 (0x6), region = 183 }

</bundles_post_ra>
